<compile_context>
chip_gen: v7x
topology: tpu7x:2x2x1
jax: 0.10.0
libtpu: 0.0.40
codegen_flags: <defaults>
</compile_context>

<pallas_src>
import functools

import jax
import jax.numpy as jnp
from jax.experimental import pallas as pl
from jax.experimental.pallas import tpu as pltpu


# ----------------------------------------------------------------------------
# Pallas kernels
# ----------------------------------------------------------------------------
def _conv_q_kernel(x_ref, w_ref, b_ref, o_ref, *, W2, L, C4, relu):
    """One quadrant-packed conv layer for one batch element.

    x_ref: [1, Rp, 4*Cin] packed input (row = packed cell h2*W2 + w2, +1 pad row)
    w_ref: [16*Cin, Cout]  rows ordered (a, b, p, q, cin) with kh=2a+p, kw=2b+q
    b_ref: [1, Cout] f32
    o_ref: [1, L=Ho*W2, Cout]  (column w2 == W2-1 of each row is garbage,
                                cropped by the host-side repack)
    """
    acc = None
    for a in (0, 1):
        for bq in (0, 1):
            off = a * W2 + bq                       # contiguous shifted window
            q = 2 * a + bq
            slab = x_ref[0, off:off + L, :]         # [L, 4*Cin]  (contiguous)
            wblk = w_ref[q * C4:(q + 1) * C4, :]    # [4*Cin, Cout] (resident)
            part = jnp.dot(slab, wblk, preferred_element_type=jnp.float32)
            acc = part if acc is None else acc + part
    acc = acc + b_ref[...]
    if relu:
        acc = jnp.maximum(acc, 0.0)
    o_ref[0] = acc.astype(o_ref.dtype)


def _tail_kernel(x_ref, w4_ref, b4_ref, wf_ref, bf_ref, o_ref):
    """Fused conv4 + (fc_mu || fc_logvar) for one batch element.

    x_ref:  [1, 10, 512]  quadrant-packed conv3 output (3x3 cells + 1 pad row)
    w4_ref: [2048, 256]   conv4 weight, quadrant-ordered rows
    b4_ref: [1, 256] f32
    wf_ref: [1024, 64]    merged FC weight, rows in (h, w, c) flatten order
    bf_ref: [1, 64] f32
    o_ref:  [1, 1, 64] f32  (mu = [:32], logvar = [32:])
    """
    W2, L, C4 = 3, 6, 512
    acc = None
    for a in (0, 1):
        for bq in (0, 1):
            off = a * W2 + bq
            q = 2 * a + bq
            slab = x_ref[0, off:off + L, :]                  # [6, 512]
            wblk = w4_ref[q * C4:(q + 1) * C4, :]            # [512, 256]
            part = jnp.dot(slab, wblk, preferred_element_type=jnp.float32)
            acc = part if acc is None else acc + part
    y4 = jnp.maximum(acc + b4_ref[...], 0.0).astype(jnp.bfloat16)   # [6, 256]
    # Valid 2x2 spatial rows in (h, w) order: (0,0)->0, (0,1)->1, (1,0)->3, (1,1)->4.
    # Lane-concat == the NHWC flatten, so the FC weight rows are (h, w, c) ordered.
    flat = jnp.concatenate([y4[0:1], y4[1:2], y4[3:4], y4[4:5]], axis=1)  # [1, 1024]
    heads = jnp.dot(flat, wf_ref[...], preferred_element_type=jnp.float32)
    heads = heads + bf_ref[...]
    o_ref[0] = heads.astype(o_ref.dtype)


# ----------------------------------------------------------------------------
# pallas_call wrappers
# ----------------------------------------------------------------------------
def conv_packed(x_packed, w, b, *, W2, Ho, relu=True, out_dtype=jnp.bfloat16):
    """Quadrant-packed conv layer.  x_packed: [B, Rp, 4Cin] bf16."""
    B, Rp, C4 = x_packed.shape
    K16, Cout = w.shape
    L = Ho * W2
    kernel = functools.partial(_conv_q_kernel, W2=W2, L=L, C4=C4, relu=relu)
    cost = pl.CostEstimate(
        flops=2 * B * L * K16 * Cout, transcendentals=0,
        bytes_accessed=(x_packed.size * 2 + w.size * 2 + b.size * 4
                        + B * L * Cout * jnp.dtype(out_dtype).itemsize))
    return pl.pallas_call(
        kernel,
        out_shape=jax.ShapeDtypeStruct((B, L, Cout), out_dtype),
        grid_spec=pltpu.PrefetchScalarGridSpec(
            num_scalar_prefetch=0,
            grid=(B,),
            in_specs=[
                pl.BlockSpec((1, Rp, C4), lambda i: (i, 0, 0)),
                pl.BlockSpec((K16, Cout), lambda i: (0, 0)),   # VMEM-resident weight
                pl.BlockSpec((1, Cout), lambda i: (0, 0)),     # VMEM-resident bias
            ],
            out_specs=pl.BlockSpec((1, L, Cout), lambda i: (i, 0, 0)),
        ),
        compiler_params=pltpu.CompilerParams(dimension_semantics=("parallel",)),
        cost_estimate=cost,
    )(x_packed, w, b)


def conv4_fc_fused(x_packed, w4, b4, wf, bf):
    """Fused conv4 + merged FC heads.  x_packed: [B, 10, 512] bf16 -> [B, 1, 64] f32."""
    B, Rp, C4 = x_packed.shape
    cost = pl.CostEstimate(
        flops=2 * B * (6 * 2048 * 256 + 1024 * 64), transcendentals=0,
        bytes_accessed=(x_packed.size * 2 + w4.size * 2 + b4.size * 4
                        + wf.size * 2 + bf.size * 4 + B * 64 * 4))
    return pl.pallas_call(
        _tail_kernel,
        out_shape=jax.ShapeDtypeStruct((B, 1, 64), jnp.float32),
        grid_spec=pltpu.PrefetchScalarGridSpec(
            num_scalar_prefetch=0,
            grid=(B,),
            in_specs=[
                pl.BlockSpec((1, Rp, C4), lambda i: (i, 0, 0)),
                pl.BlockSpec((2048, 256), lambda i: (0, 0)),
                pl.BlockSpec((1, 256), lambda i: (0, 0)),
                pl.BlockSpec((1024, 64), lambda i: (0, 0)),
                pl.BlockSpec((1, 64), lambda i: (0, 0)),
            ],
            out_specs=pl.BlockSpec((1, 1, 64), lambda i: (i, 0, 0)),
        ),
        compiler_params=pltpu.CompilerParams(dimension_semantics=("parallel",)),
        cost_estimate=cost,
    )(x_packed, w4, b4, wf, bf)


# ----------------------------------------------------------------------------
# Tiny XLA-side space-to-depth repacks between layers (activation-sized copies)
# ----------------------------------------------------------------------------
def _pack2x2(y, Hv, Wv, crop_h, crop_w):
    """[B, Hv*Wv, C] conv output (rows in (h,w) order) -> [B, (crop_h/2)*(crop_w/2)+1, 4C]."""
    B, _, C = y.shape
    y = y.reshape(B, Hv, Wv, C)[:, :crop_h, :crop_w, :]
    h2, w2 = crop_h // 2, crop_w // 2
    y = (y.reshape(B, h2, 2, w2, 2, C)
          .transpose(0, 1, 3, 2, 4, 5)            # (B, h2, w2, p, q, C)
          .reshape(B, h2 * w2, 4 * C))
    return jnp.concatenate([y, jnp.zeros((B, 1, 4 * C), y.dtype)], axis=1)


def _pack_input(x_nchw):
    """[B, 3, 64, 64] f32 NCHW -> [B, 32*32+1, 12] bf16 quadrant-packed (one pass)."""
    B = x_nchw.shape[0]
    x = (x_nchw.astype(jnp.bfloat16)
               .reshape(B, 3, 32, 2, 32, 2)       # (B, c, h2, p, w2, q)
               .transpose(0, 2, 4, 3, 5, 1)       # (B, h2, w2, p, q, c)
               .reshape(B, 32 * 32, 12))
    return jnp.concatenate([x, jnp.zeros((B, 1, 12), jnp.bfloat16)], axis=1)


# ----------------------------------------------------------------------------
# Parameters: PyTorch layout at init, one-time re-layout for the kernels.
# ----------------------------------------------------------------------------
def _uniform(key, shape, fan_in):
    bound = 1.0 / jnp.sqrt(jnp.float32(fan_in))
    return jax.random.uniform(key, shape, jnp.float32, -bound, bound)


def init_encoder_params(key):
    """PyTorch-layout parameters (conv: [Cout,Cin,K,K], fc: [out,in])."""
    conv_dims = [(32, 3, 4), (64, 32, 4), (128, 64, 4), (256, 128, 4)]
    params = {}
    keys = jax.random.split(key, 12)
    k = 0
    for li, (cout, cin, ksz) in enumerate(conv_dims, start=1):
        fan_in = cin * ksz * ksz
        params[f"conv{li}_w"] = _uniform(keys[k], (cout, cin, ksz, ksz), fan_in); k += 1
        params[f"conv{li}_b"] = _uniform(keys[k], (cout,), fan_in); k += 1
    for name in ("mu", "logvar"):
        fan_in = 256 * 2 * 2
        params[f"fc_{name}_w"] = _uniform(keys[k], (32, fan_in), fan_in); k += 1
        params[f"fc_{name}_b"] = _uniform(keys[k], (32,), fan_in); k += 1
    return params


def prepare_kernel_params(params, compute_dtype=jnp.bfloat16):
    """One-time re-layout so the jitted forward contains no weight transposes."""
    kp = {}
    for li in range(1, 5):
        w = params[f"conv{li}_w"]                        # [Cout, Cin, 4, 4]
        cout, cin = w.shape[0], w.shape[1]
        # kh = 2a+p, kw = 2b+q  ->  rows ordered (a, b, p, q, cin), matching the
        # quadrant-packed patch feature order used by the kernels.
        kp[f"conv{li}_w"] = (w.reshape(cout, cin, 2, 2, 2, 2)   # (cout,cin,a,p,b,q)
                              .transpose(2, 4, 3, 5, 1, 0)      # (a,b,p,q,cin,cout)
                              .reshape(16 * cin, cout)
                              .astype(compute_dtype))
        kp[f"conv{li}_b"] = params[f"conv{li}_b"].reshape(1, cout).astype(jnp.float32)

    def _fc_rows_hwc(w):                                 # [32, 1024=(c,h,w)]
        # Permute input rows (c,h,w) -> (h,w,c) to match the in-kernel flatten,
        # preserving PyTorch's NCHW .view(B,-1) semantics.
        return w.reshape(32, 256, 2, 2).transpose(2, 3, 1, 0).reshape(1024, 32)

    kp["fc_w"] = jnp.concatenate(
        [_fc_rows_hwc(params["fc_mu_w"]), _fc_rows_hwc(params["fc_logvar_w"])],
        axis=1).astype(compute_dtype)                    # [1024, 64] (mu || logvar)
    kp["fc_b"] = jnp.concatenate(
        [params["fc_mu_b"], params["fc_logvar_b"]]).reshape(1, 64).astype(jnp.float32)
    return kp


# ----------------------------------------------------------------------------
# Encoder forward (kernel path): 4 pallas_calls + 4 tiny XLA repacks
# ----------------------------------------------------------------------------
def encoder_forward(kp, x_nchw):
    B = x_nchw.shape[0]
    x = _pack_input(x_nchw)                                            # [B, 1025, 12]
    y1 = conv_packed(x,  kp["conv1_w"], kp["conv1_b"], W2=32, Ho=31)   # [B, 992, 32]
    x2 = _pack2x2(y1, 31, 32, 30, 30)                                  # [B, 226, 128]
    y2 = conv_packed(x2, kp["conv2_w"], kp["conv2_b"], W2=15, Ho=14)   # [B, 210, 64]
    x3 = _pack2x2(y2, 14, 15, 14, 14)                                  # [B,  50, 256]
    y3 = conv_packed(x3, kp["conv3_w"], kp["conv3_b"], W2=7,  Ho=6)    # [B,  42, 128]
    x4 = _pack2x2(y3, 6, 7, 6, 6)                                      # [B,  10, 512]
    heads = conv4_fc_fused(x4, kp["conv4_w"], kp["conv4_b"],
                           kp["fc_w"], kp["fc_b"]).reshape(B, 64)      # [B, 64] f32
    return heads[:, :32], heads[:, 32:]


# ----------------------------------------------------------------------------
# Pure-JAX f32 reference (PyTorch layouts, NCHW .view semantics)
# ----------------------------------------------------------------------------
def encoder_forward_ref(params, x):
    hp = jax.lax.Precision.HIGHEST

    def conv(x, w, b):
        y = jax.lax.conv_general_dilated(
            x, w, window_strides=(2, 2), padding="VALID",
            dimension_numbers=("NCHW", "OIHW", "NCHW"), precision=hp)
        return jax.nn.relu(y + b[None, :, None, None])

    x = conv(x, params["conv1_w"], params["conv1_b"])
    x = conv(x, params["conv2_w"], params["conv2_b"])
    x = conv(x, params["conv3_w"], params["conv3_b"])
    x = conv(x, params["conv4_w"], params["conv4_b"])
    flat = x.reshape(x.shape[0], -1)
    mu = jnp.matmul(flat, params["fc_mu_w"].T, precision=hp) + params["fc_mu_b"]
    logvar = jnp.matmul(flat, params["fc_logvar_w"].T, precision=hp) + params["fc_logvar_b"]
    return mu, logvar


if __name__ == "__main__":
    key = jax.random.PRNGKey(0)
    pkey, xkey = jax.random.split(key)
    params = init_encoder_params(pkey)          # PyTorch layout, f32
    kparams = prepare_kernel_params(params)     # kernel layout, bf16 (one-time)

    # The module hard-codes 64x64x3 inputs (fc expects 256*2*2 features); batch=2.
    x = jax.random.normal(xkey, (2, 3, 64, 64), jnp.float32)

    fwd = jax.jit(encoder_forward)
    mu, logvar = fwd(kparams, x)
    jax.block_until_ready((mu, logvar))

    mu_ref, logvar_ref = encoder_forward_ref(params, x)
    assert mu.shape == (2, 32) and logvar.shape == (2, 32)
    # bf16 GEMM operands / bf16 inter-layer activations vs a full-f32 reference.
    assert jnp.allclose(mu, mu_ref, rtol=5e-2, atol=2e-2), \
        float(jnp.max(jnp.abs(mu - mu_ref)))
    assert jnp.allclose(logvar, logvar_ref, rtol=5e-2, atol=2e-2), \
        float(jnp.max(jnp.abs(logvar - logvar_ref)))

    print("KERNEL_OK")
</pallas_src>

<mosaic_0001>
module attributes {stable_mosaic.version = 11 : i64} {
  func.func @_conv_q_kernel(%arg0: i32, %arg1: memref<1x1025x12xbf16, #tpu.memory_space<vmem>>, %arg2: memref<48x32xbf16, #tpu.memory_space<vmem>>, %arg3: memref<1x32xf32, #tpu.memory_space<vmem>>, %arg4: memref<1x992x32xbf16, #tpu.memory_space<vmem>>) attributes {dimension_semantics = [#tpu.dimension_semantics<parallel>], iteration_bounds = array<i64: 2>, scalar_prefetch = 0 : i64, scratch_operands = 0 : i64, tpu.core_type = #tpu.core_type<tc>, window_params = [{transform_indices = @transform_0, window_bounds = array<i64: 1, 1025, 12>}, {pipeline_mode = #tpu.pipeline_mode<synchronous>, transform_indices = @transform_1, window_bounds = array<i64: 48, 32>}, {pipeline_mode = #tpu.pipeline_mode<synchronous>, transform_indices = @transform_2, window_bounds = array<i64: 1, 32>}, {transform_indices = @transform_3, window_bounds = array<i64: 1, 992, 32>}]} {
    %c0 = arith.constant 0 : index
    %c0_0 = arith.constant 0 : index
    %c0_1 = arith.constant 0 : index
    %0 = vector.load %arg1[%c0, %c0_0, %c0_1] : memref<1x1025x12xbf16, #tpu.memory_space<vmem>>, vector<1x992x12xbf16>
    %1 = vector.shape_cast %0 : vector<1x992x12xbf16> to vector<992x12xbf16>
    %c0_2 = arith.constant 0 : index
    %c0_3 = arith.constant 0 : index
    %2 = vector.load %arg2[%c0_2, %c0_3] : memref<48x32xbf16, #tpu.memory_space<vmem>>, vector<12x32xbf16>
    %cst = arith.constant dense<0.000000e+00> : vector<992x32xf32>
    %3 = tpu.matmul %1, %2, %cst {dimension_numbers = #tpu.dot_dimension_numbers<[1], [0], [0], [1], [0, 0, 1, 1], [], []>} : vector<992x12xbf16>, vector<12x32xbf16>, vector<992x32xf32> -> vector<992x32xf32>
    %c0_4 = arith.constant 0 : index
    %c1 = arith.constant 1 : index
    %c0_5 = arith.constant 0 : index
    %4 = vector.load %arg1[%c0_4, %c1, %c0_5] : memref<1x1025x12xbf16, #tpu.memory_space<vmem>>, vector<1x992x12xbf16>
    %5 = vector.shape_cast %4 : vector<1x992x12xbf16> to vector<992x12xbf16>
    %c12 = arith.constant 12 : index
    %c0_6 = arith.constant 0 : index
    %6 = vector.load %arg2[%c12, %c0_6] : memref<48x32xbf16, #tpu.memory_space<vmem>>, vector<12x32xbf16>
    %cst_7 = arith.constant dense<0.000000e+00> : vector<992x32xf32>
    %7 = tpu.matmul %5, %6, %cst_7 {dimension_numbers = #tpu.dot_dimension_numbers<[1], [0], [0], [1], [0, 0, 1, 1], [], []>} : vector<992x12xbf16>, vector<12x32xbf16>, vector<992x32xf32> -> vector<992x32xf32>
    %8 = arith.addf %3, %7 : vector<992x32xf32>
    %c0_8 = arith.constant 0 : index
    %c32 = arith.constant 32 : index
    %c0_9 = arith.constant 0 : index
    %9 = vector.load %arg1[%c0_8, %c32, %c0_9] : memref<1x1025x12xbf16, #tpu.memory_space<vmem>>, vector<1x992x12xbf16>
    %10 = vector.shape_cast %9 : vector<1x992x12xbf16> to vector<992x12xbf16>
    %c24 = arith.constant 24 : index
    %c0_10 = arith.constant 0 : index
    %11 = vector.load %arg2[%c24, %c0_10] : memref<48x32xbf16, #tpu.memory_space<vmem>>, vector<12x32xbf16>
    %cst_11 = arith.constant dense<0.000000e+00> : vector<992x32xf32>
    %12 = tpu.matmul %10, %11, %cst_11 {dimension_numbers = #tpu.dot_dimension_numbers<[1], [0], [0], [1], [0, 0, 1, 1], [], []>} : vector<992x12xbf16>, vector<12x32xbf16>, vector<992x32xf32> -> vector<992x32xf32>
    %13 = arith.addf %8, %12 : vector<992x32xf32>
    %c0_12 = arith.constant 0 : index
    %c33 = arith.constant 33 : index
    %c0_13 = arith.constant 0 : index
    %14 = vector.load %arg1[%c0_12, %c33, %c0_13] : memref<1x1025x12xbf16, #tpu.memory_space<vmem>>, vector<1x992x12xbf16>
    %15 = vector.shape_cast %14 : vector<1x992x12xbf16> to vector<992x12xbf16>
    %c36 = arith.constant 36 : index
    %c0_14 = arith.constant 0 : index
    %16 = vector.load %arg2[%c36, %c0_14] : memref<48x32xbf16, #tpu.memory_space<vmem>>, vector<12x32xbf16>
    %cst_15 = arith.constant dense<0.000000e+00> : vector<992x32xf32>
    %17 = tpu.matmul %15, %16, %cst_15 {dimension_numbers = #tpu.dot_dimension_numbers<[1], [0], [0], [1], [0, 0, 1, 1], [], []>} : vector<992x12xbf16>, vector<12x32xbf16>, vector<992x32xf32> -> vector<992x32xf32>
    %18 = arith.addf %13, %17 : vector<992x32xf32>
    %c0_16 = arith.constant 0 : index
    %c0_17 = arith.constant 0 : index
    %19 = vector.load %arg3[%c0_16, %c0_17] : memref<1x32xf32, #tpu.memory_space<vmem>>, vector<1x32xf32>
    %20 = vector.broadcast %19 : vector<1x32xf32> to vector<992x32xf32>
    %21 = arith.addf %18, %20 : vector<992x32xf32>
    %cst_18 = arith.constant 0.000000e+00 : f32
    %22 = vector.broadcast %cst_18 : f32 to vector<992x32xf32>
    %23 = arith.maximumf %21, %22 : vector<992x32xf32>
    %24 = arith.truncf %23 : vector<992x32xf32> to vector<992x32xbf16>
    %c0_19 = arith.constant 0 : index
    %c0_20 = arith.constant 0 : index
    %c0_21 = arith.constant 0 : index
    %25 = vector.load %arg4[%c0_19, %c0_20, %c0_21] : memref<1x992x32xbf16, #tpu.memory_space<vmem>>, vector<1x992x32xbf16>
    %26 = vector.shape_cast %25 : vector<1x992x32xbf16> to vector<992x32xbf16>
    %27 = vector.shape_cast %24 : vector<992x32xbf16> to vector<1x992x32xbf16>
    tpu.vector_store %arg4[%c0_19, %c0_20, %c0_21], %27 {strides = array<i32>} : memref<1x992x32xbf16, #tpu.memory_space<vmem>>, vector<1x992x32xbf16>,
    return
  }
  func.func @transform_0(%arg0: i32) -> (i32, i32, i32) {
    %c0_i32 = arith.constant 0 : i32
    %c0_i32_0 = arith.constant 0 : i32
    %c0_i32_1 = arith.constant 0 : i32
    return %arg0, %c0_i32, %c0_i32_0 : i32, i32, i32
  }
  func.func @transform_1(%arg0: i32) -> (i32, i32) {
    %c0_i32 = arith.constant 0 : i32
    %c0_i32_0 = arith.constant 0 : i32
    %c0_i32_1 = arith.constant 0 : i32
    return %c0_i32, %c0_i32_0 : i32, i32
  }
  func.func @transform_2(%arg0: i32) -> (i32, i32) {
    %c0_i32 = arith.constant 0 : i32
    %c0_i32_0 = arith.constant 0 : i32
    %c0_i32_1 = arith.constant 0 : i32
    return %c0_i32, %c0_i32_0 : i32, i32
  }
  func.func @transform_3(%arg0: i32) -> (i32, i32, i32) {
    %c0_i32 = arith.constant 0 : i32
    %c0_i32_0 = arith.constant 0 : i32
    %c0_i32_1 = arith.constant 0 : i32
    return %arg0, %c0_i32, %c0_i32_0 : i32, i32, i32
  }
}

module attributes {stable_mosaic.version = 11 : i64} {
  func.func @_conv_q_kernel(%arg0: i32, %arg1: memref<1x226x128xbf16, #tpu.memory_space<vmem>>, %arg2: memref<512x64xbf16, #tpu.memory_space<vmem>>, %arg3: memref<1x64xf32, #tpu.memory_space<vmem>>, %arg4: memref<1x210x64xbf16, #tpu.memory_space<vmem>>) attributes {dimension_semantics = [#tpu.dimension_semantics<parallel>], iteration_bounds = array<i64: 2>, scalar_prefetch = 0 : i64, scratch_operands = 0 : i64, tpu.core_type = #tpu.core_type<tc>, window_params = [{transform_indices = @transform_0, window_bounds = array<i64: 1, 226, 128>}, {pipeline_mode = #tpu.pipeline_mode<synchronous>, transform_indices = @transform_1, window_bounds = array<i64: 512, 64>}, {pipeline_mode = #tpu.pipeline_mode<synchronous>, transform_indices = @transform_2, window_bounds = array<i64: 1, 64>}, {transform_indices = @transform_3, window_bounds = array<i64: 1, 210, 64>}]} {
    %c0 = arith.constant 0 : index
    %c0_0 = arith.constant 0 : index
    %c0_1 = arith.constant 0 : index
    %0 = vector.load %arg1[%c0, %c0_0, %c0_1] : memref<1x226x128xbf16, #tpu.memory_space<vmem>>, vector<1x210x128xbf16>
    %1 = vector.shape_cast %0 : vector<1x210x128xbf16> to vector<210x128xbf16>
    %c0_2 = arith.constant 0 : index
    %c0_3 = arith.constant 0 : index
    %2 = vector.load %arg2[%c0_2, %c0_3] : memref<512x64xbf16, #tpu.memory_space<vmem>>, vector<128x64xbf16>
    %cst = arith.constant dense<0.000000e+00> : vector<210x64xf32>
    %3 = tpu.matmul %1, %2, %cst {dimension_numbers = #tpu.dot_dimension_numbers<[1], [0], [0], [1], [0, 0, 1, 1], [], []>} : vector<210x128xbf16>, vector<128x64xbf16>, vector<210x64xf32> -> vector<210x64xf32>
    %c0_4 = arith.constant 0 : index
    %c1 = arith.constant 1 : index
    %c0_5 = arith.constant 0 : index
    %4 = vector.load %arg1[%c0_4, %c1, %c0_5] : memref<1x226x128xbf16, #tpu.memory_space<vmem>>, vector<1x210x128xbf16>
    %5 = vector.shape_cast %4 : vector<1x210x128xbf16> to vector<210x128xbf16>
    %c128 = arith.constant 128 : index
    %c0_6 = arith.constant 0 : index
    %6 = vector.load %arg2[%c128, %c0_6] : memref<512x64xbf16, #tpu.memory_space<vmem>>, vector<128x64xbf16>
    %cst_7 = arith.constant dense<0.000000e+00> : vector<210x64xf32>
    %7 = tpu.matmul %5, %6, %cst_7 {dimension_numbers = #tpu.dot_dimension_numbers<[1], [0], [0], [1], [0, 0, 1, 1], [], []>} : vector<210x128xbf16>, vector<128x64xbf16>, vector<210x64xf32> -> vector<210x64xf32>
    %8 = arith.addf %3, %7 : vector<210x64xf32>
    %c0_8 = arith.constant 0 : index
    %c15 = arith.constant 15 : index
    %c0_9 = arith.constant 0 : index
    %9 = vector.load %arg1[%c0_8, %c15, %c0_9] : memref<1x226x128xbf16, #tpu.memory_space<vmem>>, vector<1x210x128xbf16>
    %10 = vector.shape_cast %9 : vector<1x210x128xbf16> to vector<210x128xbf16>
    %c256 = arith.constant 256 : index
    %c0_10 = arith.constant 0 : index
    %11 = vector.load %arg2[%c256, %c0_10] : memref<512x64xbf16, #tpu.memory_space<vmem>>, vector<128x64xbf16>
    %cst_11 = arith.constant dense<0.000000e+00> : vector<210x64xf32>
    %12 = tpu.matmul %10, %11, %cst_11 {dimension_numbers = #tpu.dot_dimension_numbers<[1], [0], [0], [1], [0, 0, 1, 1], [], []>} : vector<210x128xbf16>, vector<128x64xbf16>, vector<210x64xf32> -> vector<210x64xf32>
    %13 = arith.addf %8, %12 : vector<210x64xf32>
    %c0_12 = arith.constant 0 : index
    %c16 = arith.constant 16 : index
    %c0_13 = arith.constant 0 : index
    %14 = vector.load %arg1[%c0_12, %c16, %c0_13] : memref<1x226x128xbf16, #tpu.memory_space<vmem>>, vector<1x210x128xbf16>
    %15 = vector.shape_cast %14 : vector<1x210x128xbf16> to vector<210x128xbf16>
    %c384 = arith.constant 384 : index
    %c0_14 = arith.constant 0 : index
    %16 = vector.load %arg2[%c384, %c0_14] : memref<512x64xbf16, #tpu.memory_space<vmem>>, vector<128x64xbf16>
    %cst_15 = arith.constant dense<0.000000e+00> : vector<210x64xf32>
    %17 = tpu.matmul %15, %16, %cst_15 {dimension_numbers = #tpu.dot_dimension_numbers<[1], [0], [0], [1], [0, 0, 1, 1], [], []>} : vector<210x128xbf16>, vector<128x64xbf16>, vector<210x64xf32> -> vector<210x64xf32>
    %18 = arith.addf %13, %17 : vector<210x64xf32>
    %c0_16 = arith.constant 0 : index
    %c0_17 = arith.constant 0 : index
    %19 = vector.load %arg3[%c0_16, %c0_17] : memref<1x64xf32, #tpu.memory_space<vmem>>, vector<1x64xf32>
    %20 = vector.broadcast %19 : vector<1x64xf32> to vector<210x64xf32>
    %21 = arith.addf %18, %20 : vector<210x64xf32>
    %cst_18 = arith.constant 0.000000e+00 : f32
    %22 = vector.broadcast %cst_18 : f32 to vector<210x64xf32>
    %23 = arith.maximumf %21, %22 : vector<210x64xf32>
    %24 = arith.truncf %23 : vector<210x64xf32> to vector<210x64xbf16>
    %c0_19 = arith.constant 0 : index
    %c0_20 = arith.constant 0 : index
    %c0_21 = arith.constant 0 : index
    %25 = vector.load %arg4[%c0_19, %c0_20, %c0_21] : memref<1x210x64xbf16, #tpu.memory_space<vmem>>, vector<1x210x64xbf16>
    %26 = vector.shape_cast %25 : vector<1x210x64xbf16> to vector<210x64xbf16>
    %27 = vector.shape_cast %24 : vector<210x64xbf16> to vector<1x210x64xbf16>
    tpu.vector_store %arg4[%c0_19, %c0_20, %c0_21], %27 {strides = array<i32>} : memref<1x210x64xbf16, #tpu.memory_space<vmem>>, vector<1x210x64xbf16>,
    return
  }
  func.func @transform_0(%arg0: i32) -> (i32, i32, i32) {
    %c0_i32 = arith.constant 0 : i32
    %c0_i32_0 = arith.constant 0 : i32
    %c0_i32_1 = arith.constant 0 : i32
    return %arg0, %c0_i32, %c0_i32_0 : i32, i32, i32
  }
  func.func @transform_1(%arg0: i32) -> (i32, i32) {
    %c0_i32 = arith.constant 0 : i32
    %c0_i32_0 = arith.constant 0 : i32
    %c0_i32_1 = arith.constant 0 : i32
    return %c0_i32, %c0_i32_0 : i32, i32
  }
  func.func @transform_2(%arg0: i32) -> (i32, i32) {
    %c0_i32 = arith.constant 0 : i32
    %c0_i32_0 = arith.constant 0 : i32
    %c0_i32_1 = arith.constant 0 : i32
    return %c0_i32, %c0_i32_0 : i32, i32
  }
  func.func @transform_3(%arg0: i32) -> (i32, i32, i32) {
    %c0_i32 = arith.constant 0 : i32
    %c0_i32_0 = arith.constant 0 : i32
    %c0_i32_1 = arith.constant 0 : i32
    return %arg0, %c0_i32, %c0_i32_0 : i32, i32, i32
  }
}

module attributes {stable_mosaic.version = 11 : i64} {
  func.func @_conv_q_kernel(%arg0: i32, %arg1: memref<1x50x256xbf16, #tpu.memory_space<vmem>>, %arg2: memref<1024x128xbf16, #tpu.memory_space<vmem>>, %arg3: memref<1x128xf32, #tpu.memory_space<vmem>>, %arg4: memref<1x42x128xbf16, #tpu.memory_space<vmem>>) attributes {dimension_semantics = [#tpu.dimension_semantics<parallel>], iteration_bounds = array<i64: 2>, scalar_prefetch = 0 : i64, scratch_operands = 0 : i64, tpu.core_type = #tpu.core_type<tc>, window_params = [{transform_indices = @transform_0, window_bounds = array<i64: 1, 50, 256>}, {pipeline_mode = #tpu.pipeline_mode<synchronous>, transform_indices = @transform_1, window_bounds = array<i64: 1024, 128>}, {pipeline_mode = #tpu.pipeline_mode<synchronous>, transform_indices = @transform_2, window_bounds = array<i64: 1, 128>}, {transform_indices = @transform_3, window_bounds = array<i64: 1, 42, 128>}]} {
    %c0 = arith.constant 0 : index
    %c0_0 = arith.constant 0 : index
    %c0_1 = arith.constant 0 : index
    %0 = vector.load %arg1[%c0, %c0_0, %c0_1] : memref<1x50x256xbf16, #tpu.memory_space<vmem>>, vector<1x42x256xbf16>
    %1 = vector.shape_cast %0 : vector<1x42x256xbf16> to vector<42x256xbf16>
    %c0_2 = arith.constant 0 : index
    %c0_3 = arith.constant 0 : index
    %2 = vector.load %arg2[%c0_2, %c0_3] : memref<1024x128xbf16, #tpu.memory_space<vmem>>, vector<256x128xbf16>
    %cst = arith.constant dense<0.000000e+00> : vector<42x128xf32>
    %3 = tpu.matmul %1, %2, %cst {dimension_numbers = #tpu.dot_dimension_numbers<[1], [0], [0], [1], [0, 0, 1, 1], [], []>} : vector<42x256xbf16>, vector<256x128xbf16>, vector<42x128xf32> -> vector<42x128xf32>
    %c0_4 = arith.constant 0 : index
    %c1 = arith.constant 1 : index
    %c0_5 = arith.constant 0 : index
    %4 = vector.load %arg1[%c0_4, %c1, %c0_5] : memref<1x50x256xbf16, #tpu.memory_space<vmem>>, vector<1x42x256xbf16>
    %5 = vector.shape_cast %4 : vector<1x42x256xbf16> to vector<42x256xbf16>
    %c256 = arith.constant 256 : index
    %c0_6 = arith.constant 0 : index
    %6 = vector.load %arg2[%c256, %c0_6] : memref<1024x128xbf16, #tpu.memory_space<vmem>>, vector<256x128xbf16>
    %cst_7 = arith.constant dense<0.000000e+00> : vector<42x128xf32>
    %7 = tpu.matmul %5, %6, %cst_7 {dimension_numbers = #tpu.dot_dimension_numbers<[1], [0], [0], [1], [0, 0, 1, 1], [], []>} : vector<42x256xbf16>, vector<256x128xbf16>, vector<42x128xf32> -> vector<42x128xf32>
    %8 = arith.addf %3, %7 : vector<42x128xf32>
    %c0_8 = arith.constant 0 : index
    %c7 = arith.constant 7 : index
    %c0_9 = arith.constant 0 : index
    %9 = vector.load %arg1[%c0_8, %c7, %c0_9] : memref<1x50x256xbf16, #tpu.memory_space<vmem>>, vector<1x42x256xbf16>
    %10 = vector.shape_cast %9 : vector<1x42x256xbf16> to vector<42x256xbf16>
    %c512 = arith.constant 512 : index
    %c0_10 = arith.constant 0 : index
    %11 = vector.load %arg2[%c512, %c0_10] : memref<1024x128xbf16, #tpu.memory_space<vmem>>, vector<256x128xbf16>
    %cst_11 = arith.constant dense<0.000000e+00> : vector<42x128xf32>
    %12 = tpu.matmul %10, %11, %cst_11 {dimension_numbers = #tpu.dot_dimension_numbers<[1], [0], [0], [1], [0, 0, 1, 1], [], []>} : vector<42x256xbf16>, vector<256x128xbf16>, vector<42x128xf32> -> vector<42x128xf32>
    %13 = arith.addf %8, %12 : vector<42x128xf32>
    %c0_12 = arith.constant 0 : index
    %c8 = arith.constant 8 : index
    %c0_13 = arith.constant 0 : index
    %14 = vector.load %arg1[%c0_12, %c8, %c0_13] : memref<1x50x256xbf16, #tpu.memory_space<vmem>>, vector<1x42x256xbf16>
    %15 = vector.shape_cast %14 : vector<1x42x256xbf16> to vector<42x256xbf16>
    %c768 = arith.constant 768 : index
    %c0_14 = arith.constant 0 : index
    %16 = vector.load %arg2[%c768, %c0_14] : memref<1024x128xbf16, #tpu.memory_space<vmem>>, vector<256x128xbf16>
    %cst_15 = arith.constant dense<0.000000e+00> : vector<42x128xf32>
    %17 = tpu.matmul %15, %16, %cst_15 {dimension_numbers = #tpu.dot_dimension_numbers<[1], [0], [0], [1], [0, 0, 1, 1], [], []>} : vector<42x256xbf16>, vector<256x128xbf16>, vector<42x128xf32> -> vector<42x128xf32>
    %18 = arith.addf %13, %17 : vector<42x128xf32>
    %c0_16 = arith.constant 0 : index
    %c0_17 = arith.constant 0 : index
    %19 = vector.load %arg3[%c0_16, %c0_17] : memref<1x128xf32, #tpu.memory_space<vmem>>, vector<1x128xf32>
    %20 = vector.broadcast %19 : vector<1x128xf32> to vector<42x128xf32>
    %21 = arith.addf %18, %20 : vector<42x128xf32>
    %cst_18 = arith.constant 0.000000e+00 : f32
    %22 = vector.broadcast %cst_18 : f32 to vector<42x128xf32>
    %23 = arith.maximumf %21, %22 : vector<42x128xf32>
    %24 = arith.truncf %23 : vector<42x128xf32> to vector<42x128xbf16>
    %c0_19 = arith.constant 0 : index
    %c0_20 = arith.constant 0 : index
    %c0_21 = arith.constant 0 : index
    %25 = vector.load %arg4[%c0_19, %c0_20, %c0_21] : memref<1x42x128xbf16, #tpu.memory_space<vmem>>, vector<1x42x128xbf16>
    %26 = vector.shape_cast %25 : vector<1x42x128xbf16> to vector<42x128xbf16>
    %27 = vector.shape_cast %24 : vector<42x128xbf16> to vector<1x42x128xbf16>
    tpu.vector_store %arg4[%c0_19, %c0_20, %c0_21], %27 {strides = array<i32>} : memref<1x42x128xbf16, #tpu.memory_space<vmem>>, vector<1x42x128xbf16>,
    return
  }
  func.func @transform_0(%arg0: i32) -> (i32, i32, i32) {
    %c0_i32 = arith.constant 0 : i32
    %c0_i32_0 = arith.constant 0 : i32
    %c0_i32_1 = arith.constant 0 : i32
    return %arg0, %c0_i32, %c0_i32_0 : i32, i32, i32
  }
  func.func @transform_1(%arg0: i32) -> (i32, i32) {
    %c0_i32 = arith.constant 0 : i32
    %c0_i32_0 = arith.constant 0 : i32
    %c0_i32_1 = arith.constant 0 : i32
    return %c0_i32, %c0_i32_0 : i32, i32
  }
  func.func @transform_2(%arg0: i32) -> (i32, i32) {
    %c0_i32 = arith.constant 0 : i32
    %c0_i32_0 = arith.constant 0 : i32
    %c0_i32_1 = arith.constant 0 : i32
    return %c0_i32, %c0_i32_0 : i32, i32
  }
  func.func @transform_3(%arg0: i32) -> (i32, i32, i32) {
    %c0_i32 = arith.constant 0 : i32
    %c0_i32_0 = arith.constant 0 : i32
    %c0_i32_1 = arith.constant 0 : i32
    return %arg0, %c0_i32, %c0_i32_0 : i32, i32, i32
  }
}

module attributes {stable_mosaic.version = 11 : i64} {
  func.func @_tail_kernel(%arg0: i32, %arg1: memref<1x10x512xbf16, #tpu.memory_space<vmem>>, %arg2: memref<2048x256xbf16, #tpu.memory_space<vmem>>, %arg3: memref<1x256xf32, #tpu.memory_space<vmem>>, %arg4: memref<1024x64xbf16, #tpu.memory_space<vmem>>, %arg5: memref<1x64xf32, #tpu.memory_space<vmem>>, %arg6: memref<1x1x64xf32, #tpu.memory_space<vmem>>) attributes {dimension_semantics = [#tpu.dimension_semantics<parallel>], iteration_bounds = array<i64: 2>, scalar_prefetch = 0 : i64, scratch_operands = 0 : i64, tpu.core_type = #tpu.core_type<tc>, window_params = [{transform_indices = @transform_0, window_bounds = array<i64: 1, 10, 512>}, {pipeline_mode = #tpu.pipeline_mode<synchronous>, transform_indices = @transform_1, window_bounds = array<i64: 2048, 256>}, {pipeline_mode = #tpu.pipeline_mode<synchronous>, transform_indices = @transform_2, window_bounds = array<i64: 1, 256>}, {pipeline_mode = #tpu.pipeline_mode<synchronous>, transform_indices = @transform_3, window_bounds = array<i64: 1024, 64>}, {pipeline_mode = #tpu.pipeline_mode<synchronous>, transform_indices = @transform_4, window_bounds = array<i64: 1, 64>}, {transform_indices = @transform_5, window_bounds = array<i64: 1, 1, 64>}]} {
    %c0 = arith.constant 0 : index
    %c0_0 = arith.constant 0 : index
    %c0_1 = arith.constant 0 : index
    %0 = vector.load %arg1[%c0, %c0_0, %c0_1] : memref<1x10x512xbf16, #tpu.memory_space<vmem>>, vector<1x6x512xbf16>
    %1 = vector.shape_cast %0 : vector<1x6x512xbf16> to vector<6x512xbf16>
    %c0_2 = arith.constant 0 : index
    %c0_3 = arith.constant 0 : index
    %2 = vector.load %arg2[%c0_2, %c0_3] : memref<2048x256xbf16, #tpu.memory_space<vmem>>, vector<512x256xbf16>
    %cst = arith.constant dense<0.000000e+00> : vector<6x256xf32>
    %3 = tpu.matmul %1, %2, %cst {dimension_numbers = #tpu.dot_dimension_numbers<[1], [0], [0], [1], [0, 0, 1, 1], [], []>} : vector<6x512xbf16>, vector<512x256xbf16>, vector<6x256xf32> -> vector<6x256xf32>
    %c0_4 = arith.constant 0 : index
    %c1 = arith.constant 1 : index
    %c0_5 = arith.constant 0 : index
    %4 = vector.load %arg1[%c0_4, %c1, %c0_5] : memref<1x10x512xbf16, #tpu.memory_space<vmem>>, vector<1x6x512xbf16>
    %5 = vector.shape_cast %4 : vector<1x6x512xbf16> to vector<6x512xbf16>
    %c512 = arith.constant 512 : index
    %c0_6 = arith.constant 0 : index
    %6 = vector.load %arg2[%c512, %c0_6] : memref<2048x256xbf16, #tpu.memory_space<vmem>>, vector<512x256xbf16>
    %cst_7 = arith.constant dense<0.000000e+00> : vector<6x256xf32>
    %7 = tpu.matmul %5, %6, %cst_7 {dimension_numbers = #tpu.dot_dimension_numbers<[1], [0], [0], [1], [0, 0, 1, 1], [], []>} : vector<6x512xbf16>, vector<512x256xbf16>, vector<6x256xf32> -> vector<6x256xf32>
    %8 = arith.addf %3, %7 : vector<6x256xf32>
    %c0_8 = arith.constant 0 : index
    %c3 = arith.constant 3 : index
    %c0_9 = arith.constant 0 : index
    %9 = vector.load %arg1[%c0_8, %c3, %c0_9] : memref<1x10x512xbf16, #tpu.memory_space<vmem>>, vector<1x6x512xbf16>
    %10 = vector.shape_cast %9 : vector<1x6x512xbf16> to vector<6x512xbf16>
    %c1024 = arith.constant 1024 : index
    %c0_10 = arith.constant 0 : index
    %11 = vector.load %arg2[%c1024, %c0_10] : memref<2048x256xbf16, #tpu.memory_space<vmem>>, vector<512x256xbf16>
    %cst_11 = arith.constant dense<0.000000e+00> : vector<6x256xf32>
    %12 = tpu.matmul %10, %11, %cst_11 {dimension_numbers = #tpu.dot_dimension_numbers<[1], [0], [0], [1], [0, 0, 1, 1], [], []>} : vector<6x512xbf16>, vector<512x256xbf16>, vector<6x256xf32> -> vector<6x256xf32>
    %13 = arith.addf %8, %12 : vector<6x256xf32>
    %c0_12 = arith.constant 0 : index
    %c4 = arith.constant 4 : index
    %c0_13 = arith.constant 0 : index
    %14 = vector.load %arg1[%c0_12, %c4, %c0_13] : memref<1x10x512xbf16, #tpu.memory_space<vmem>>, vector<1x6x512xbf16>
    %15 = vector.shape_cast %14 : vector<1x6x512xbf16> to vector<6x512xbf16>
    %c1536 = arith.constant 1536 : index
    %c0_14 = arith.constant 0 : index
    %16 = vector.load %arg2[%c1536, %c0_14] : memref<2048x256xbf16, #tpu.memory_space<vmem>>, vector<512x256xbf16>
    %cst_15 = arith.constant dense<0.000000e+00> : vector<6x256xf32>
    %17 = tpu.matmul %15, %16, %cst_15 {dimension_numbers = #tpu.dot_dimension_numbers<[1], [0], [0], [1], [0, 0, 1, 1], [], []>} : vector<6x512xbf16>, vector<512x256xbf16>, vector<6x256xf32> -> vector<6x256xf32>
    %18 = arith.addf %13, %17 : vector<6x256xf32>
    %c0_16 = arith.constant 0 : index
    %c0_17 = arith.constant 0 : index
    %19 = vector.load %arg3[%c0_16, %c0_17] : memref<1x256xf32, #tpu.memory_space<vmem>>, vector<1x256xf32>
    %20 = vector.broadcast %19 : vector<1x256xf32> to vector<6x256xf32>
    %21 = arith.addf %18, %20 : vector<6x256xf32>
    %cst_18 = arith.constant 0.000000e+00 : f32
    %22 = vector.broadcast %cst_18 : f32 to vector<6x256xf32>
    %23 = arith.maximumf %21, %22 : vector<6x256xf32>
    %24 = arith.truncf %23 : vector<6x256xf32> to vector<6x256xbf16>
    %25 = vector.extract_strided_slice %24 {offsets = [0, 0], sizes = [1, 256], strides = [1, 1]} : vector<6x256xbf16> to vector<1x256xbf16>
    %26 = vector.extract_strided_slice %24 {offsets = [1, 0], sizes = [1, 256], strides = [1, 1]} : vector<6x256xbf16> to vector<1x256xbf16>
    %27 = vector.extract_strided_slice %24 {offsets = [3, 0], sizes = [1, 256], strides = [1, 1]} : vector<6x256xbf16> to vector<1x256xbf16>
    %28 = vector.extract_strided_slice %24 {offsets = [4, 0], sizes = [1, 256], strides = [1, 1]} : vector<6x256xbf16> to vector<1x256xbf16>
    %29 = tpu.concatenate %25, %26, %27, %28 in 1 : vector<1x256xbf16>, vector<1x256xbf16>, vector<1x256xbf16>, vector<1x256xbf16> -> vector<1x1024xbf16>
    %c0_19 = arith.constant 0 : index
    %c0_20 = arith.constant 0 : index
    %30 = vector.load %arg4[%c0_19, %c0_20] : memref<1024x64xbf16, #tpu.memory_space<vmem>>, vector<1024x64xbf16>
    %cst_21 = arith.constant dense<0.000000e+00> : vector<1x64xf32>
    %31 = tpu.matmul %29, %30, %cst_21 {dimension_numbers = #tpu.dot_dimension_numbers<[1], [0], [0], [1], [0, 0, 1, 1], [], []>} : vector<1x1024xbf16>, vector<1024x64xbf16>, vector<1x64xf32> -> vector<1x64xf32>
    %c0_22 = arith.constant 0 : index
    %c0_23 = arith.constant 0 : index
    %32 = vector.load %arg5[%c0_22, %c0_23] : memref<1x64xf32, #tpu.memory_space<vmem>>, vector<1x64xf32>
    %33 = arith.addf %31, %32 : vector<1x64xf32>
    %c0_24 = arith.constant 0 : index
    %c0_25 = arith.constant 0 : index
    %c0_26 = arith.constant 0 : index
    %34 = vector.load %arg6[%c0_24, %c0_25, %c0_26] : memref<1x1x64xf32, #tpu.memory_space<vmem>>, vector<1x1x64xf32>
    %35 = vector.shape_cast %34 : vector<1x1x64xf32> to vector<1x64xf32>
    %36 = vector.shape_cast %33 : vector<1x64xf32> to vector<1x1x64xf32>
    tpu.vector_store %arg6[%c0_24, %c0_25, %c0_26], %36 {strides = array<i32>} : memref<1x1x64xf32, #tpu.memory_space<vmem>>, vector<1x1x64xf32>,
    return
  }
  func.func @transform_0(%arg0: i32) -> (i32, i32, i32) {
    %c0_i32 = arith.constant 0 : i32
    %c0_i32_0 = arith.constant 0 : i32
    %c0_i32_1 = arith.constant 0 : i32
    return %arg0, %c0_i32, %c0_i32_0 : i32, i32, i32
  }
  func.func @transform_1(%arg0: i32) -> (i32, i32) {
    %c0_i32 = arith.constant 0 : i32
    %c0_i32_0 = arith.constant 0 : i32
    %c0_i32_1 = arith.constant 0 : i32
    return %c0_i32, %c0_i32_0 : i32, i32
  }
  func.func @transform_2(%arg0: i32) -> (i32, i32) {
    %c0_i32 = arith.constant 0 : i32
    %c0_i32_0 = arith.constant 0 : i32
    %c0_i32_1 = arith.constant 0 : i32
    return %c0_i32, %c0_i32_0 : i32, i32
  }
  func.func @transform_3(%arg0: i32) -> (i32, i32) {
    %c0_i32 = arith.constant 0 : i32
    %c0_i32_0 = arith.constant 0 : i32
    %c0_i32_1 = arith.constant 0 : i32
    return %c0_i32, %c0_i32_0 : i32, i32
  }
  func.func @transform_4(%arg0: i32) -> (i32, i32) {
    %c0_i32 = arith.constant 0 : i32
    %c0_i32_0 = arith.constant 0 : i32
    %c0_i32_1 = arith.constant 0 : i32
    return %c0_i32, %c0_i32_0 : i32, i32
  }
  func.func @transform_5(%arg0: i32) -> (i32, i32, i32) {
    %c0_i32 = arith.constant 0 : i32
    %c0_i32_0 = arith.constant 0 : i32
    %c0_i32_1 = arith.constant 0 : i32
    return %arg0, %c0_i32, %c0_i32_0 : i32, i32, i32
  }
}

</mosaic_0001>

<bundles_post_ra>
// kernel: encoder_forward.4
= control target key start
LH: loop header
LB: loop body
LE: loop exit
PB: predicated region body
PF: predicated region fallthrough
CT: control target
= control target key end

     0   :  { %s8627_s12 = smov 0   ;;  %s9680_s0 = inlined_call_operand.vmem [shape: bf16[2,1025,12], index: 0, kind: input, shape index: {}]   ;;  %s9681_s1 = inlined_call_operand.vmem [shape: bf16[48,32], index: 1, kind: input, shape index: {}]   ;;  %s9682_s2 = inlined_call_operand.vmem [shape: f32[1,32], index: 2, kind: input, shape index: {}]   ;;  %s9683_s3 = inlined_call_operand.vmem [shape: bf16[2,992,32], index: 3, kind: output, shape index: {}]  }
   0x1 LB: > { %s6504_s13 = sadd.s32 4294967295, %s8605_s12   ;;  %p6508_p0 = scmp.ge.s32.totalorder %s8605_s12, 1  ;;  %s8605_s12 = sphi %s8627_s12, %s13_s12  }
   0x2   : > { %p137_p1 = scmp.lt.s32.totalorder %s8605_s12, 3 }
   0x4   : > { %p138_p2 = pnand %p6508_p0, %p137_p1 }
   0x5   : > { %vm1308_vm0 = vcmask (!%p138_p2), 1045504   ;;  %p161_p3 = scmp.lt.s32.totalorder (!%p138_p2), %s6504_s13, 1  ;;  %v8344_v0 = vld [vmem:[%s9681_s1 + $0xc] sm:$0x3f] (!%p138_p2)   ;;  %v8347_v1 = vld [vmem:[%s9681_s1 + $0x4] sm:$0xfc] (!%p138_p2)  }
   0x6   : > { %141 = sbr.rel (%p138_p2) target bundleno = 738 (0x2e2), region = 32  ;;  %8332 = vmatprep.subr.msk.bf16.mxu0 (!%p138_p2), %vm1308_vm0, %v8344_v0  ;;  %v3130_v2 = vsel (!%p138_p2), %vm1308_vm0, %v8344_v0, 0  ;;  %v1120_v3 = vrot.slane (!%p138_p2), %v8347_v1, 2  ;;  %v8350_v4 = vld [vmem:[%s9681_s1] sm:$0x3f] (!%p138_p2)   ;;  %vm1121_vm1 = vcmask (!%p138_p2), 97280  }
   0x7   : > { %7707 = vmatpush3.bf16.msra.mxu0 (!%p138_p2), %v3130_v2  ;;  %v8351_v5 = vld [vmem:[%s9681_s1 + $0x10] sm:$0xfc] (!%p138_p2)   ;;  %vm614_vm2 = vsmask.f32 (!%p138_p2), 7424  ;;  %v1971_v14 = vsel (!%p138_p2), %vm1308_vm0, %v8350_v4, 0  ;;  %vm6324_vm3 = vcmask (!%p138_p2), 257024  }
   0x8   : > { %8330 = vmatprep.subr.msk.bf16.mxu1 (!%p138_p2), %vm1308_vm0, %v1120_v3  ;;  %v1310_v6 = vsel (!%p138_p2), %vm1308_vm0, %v1120_v3, 0  ;;  %v4730_v8 = vrot.slane (!%p138_p2), %v8351_v5, 2 }
   0x9   : > { %7455 = vmatpush3.bf16.msra.mxu1 (!%p138_p2), %v1310_v6 }
   0xa   : > { %8331 = vmatprep.subr.msk.bf16.mxu1 (!%p138_p2), %vm1308_vm0, %v8350_v4  ;;  %8333 = vmatprep.subr.msk.bf16.mxu0 (!%p138_p2), %vm1308_vm0, %v4730_v8  ;;  %v4918_v12 = vsel (!%p138_p2), %vm1308_vm0, %v4730_v8, 0 }
   0xd   : > { %s9685_s13 = smov (!%p161_p3, %s6504_s13), 1 }
   0xe   : > { %s8334_s18 = smul.u32 516, %s9685_s13 }
   0xf   : > { %s8335_s28 = smul.u32 496, %s9685_s13 }
  0x10   : > { %s8655_s25 = scalar_lea.vmem %s9680_s0, %s8334_s18 }
  0x11   : > { %v8345_v7 = vld [vmem:[%s8655_s25 + $0x10] sm:$0xff]   ;;  %v8346_v9 = vld [vmem:[%s8655_s25 + $0x18] sm:$0xff]   ;;  %v8348_v10 = vld [vmem:[%s8655_s25] sm:$0xff]   ;;  %s9282_s4 = scalar_lea.vmem %s9683_s3, %s8335_s28 }
  0x12   : > { %7708 = vmatprep.mubr.msk.bf16.mxu0 %vm1121_vm1, %v8345_v7  ;;  %v8349_v11 = vld [vmem:[%s8655_s25 + $0x8] sm:$0xff]   ;;  %v8352_v13 = vld [vmem:[%s8655_s25 + $0x10] sm:$0xff]   ;;  %v616_v15 = vshrl.u32 %v8348_v10, 16  ;;  %v618_v16 = vshll.u32 %v8348_v10, 16  ;;  %v8353_v20 = vld [vmem:[%s8655_s25 + $0x20] sm:$0xff]  }
  0x13   : > { %7709 = vmatmul.mubr.msk.bf16.vlgmr.msra.gmra.mrb[0].mxu0 %vm1121_vm1, %v8346_v9  ;;  %v623_v17 = vshll.u32 %v8349_v11, 16  ;;  %v627_v18 = vshrl.u32 %v8349_v11, 16  ;;  %v631_v19 = vshll.u32 %v8352_v13, 16  ;;  %v8354_v23 = vld [vmem:[%s8655_s25 + $0x28] sm:$0xff]   ;;  %v8355_v24 = vld [vmem:[%s8655_s25 + $0x18] sm:$0xff]   ;;  %v635_v26 = vshrl.u32 %v8352_v13, 16 }
  0x14   : > { %7833 = vmatpush3.bf16.msra.mxu0 %v4918_v12  ;;  %v620_v21 = vrot.slane %v618_v16, 1  ;;  %7712 = vmatprep.mubr.msk.bf16.mxu0 %vm1121_vm1, %v8353_v20  ;;  %v639_v29 = vshll.u32 %v8355_v24, 16  ;;  %v8356_v30 = vld [vmem:[%s8655_s25 + $0x20] sm:$0xff]   ;;  %v643_v32 = vshrl.u32 %v8355_v24, 16  ;;  %v8357_v33 = vld [vmem:[%s8655_s25 + $0x30] sm:$0xff]   ;;  %v8359_v41 = vld [vmem:[%s8655_s25 + $0x28] sm:$0xff]  }
  0x15   : > { %v625_v22 = vrot.slane %v623_v17, 1  ;;  %v633_v25 = vrot.slane %v631_v19, 1  ;;  %v647_v37 = vshll.u32 %v8356_v30, 16  ;;  %v651_v38 = vshrl.u32 %v8356_v30, 16  ;;  %v8360_v43 = vld [vmem:[%s8655_s25 + $0x30] sm:$0xff]   ;;  %v8358_v44 = vld [vmem:[%s8655_s25 + $0x38] sm:$0xff]  }
  0x16   : > { %v621_v27 = vor.u32 %v620_v21, %v616_v15  ;;  %v641_v36 = vrot.slane %v639_v29, 1  ;;  %v655_v46 = vshll.u32 %v8359_v41, 16  ;;  %v8361_v47 = vld [vmem:[%s8655_s25 + $0x40] sm:$0xff]   ;;  %v8363_v48 = vld [vmem:[%s8655_s25 + $0x38] sm:$0xff]   ;;  %v663_v50 = vshll.u32 %v8360_v43, 16  ;;  %v8362_v59 = vld [vmem:[%s8655_s25 + $0x48] sm:$0xff]  }
  0x17   : > { %v629_v28 = vor.u32 %v627_v18, %v625_v22  ;;  %v637_v31 = vor.u32 %v635_v26, %v633_v25  ;;  %v649_v40 = vrot.slane %v647_v37, 1  ;;  %v659_v52 = vshrl.u32 %v8359_v41, 16  ;;  %v8364_v57 = vld [vmem:[%s8655_s25 + $0x40] sm:$0xff]   ;;  %v8367_v62 = vld [vmem:[%s8655_s25 + $0x48] sm:$0xff]   ;;  %v8365_v63 = vld [vmem:[%s8655_s25 + $0x50] sm:$0xff]  }
  0x18   : > { %v626_v34 = vsel %vm614_vm2, %v621_v27, %v625_v22  ;;  %v645_v42 = vor.u32 %v643_v32, %v641_v36  ;;  %v657_v49 = vrot.slane %v655_v46, 1  ;;  %v667_v54 = vshrl.u32 %v8360_v43, 16  ;;  %v8368_v7 = vld [vmem:[%s8655_s25 + $0x50] sm:$0xff]   ;;  %v8366_v9 = vld [vmem:[%s8655_s25 + $0x58] sm:$0xff]   ;;  %v8369_v13 = vld [vmem:[%s8655_s25 + $0x60] sm:$0xff]  }
  0x19   : > { %v634_v35 = vsel %vm614_vm2, %v629_v28, %v633_v25  ;;  %7456 = vmatprep.mubr.msk.bf16.mxu1 %vm1121_vm1, %v626_v34  ;;  %v642_v39 = vsel %vm614_vm2, %v637_v31, %v641_v36  ;;  %v653_v45 = vor.u32 %v651_v38, %v649_v40  ;;  %v671_v55 = vshll.u32 %v8363_v48, 16  ;;  %v8371_v12 = vld [vmem:[%s8655_s25 + $0x58] sm:$0xff]   ;;  %v8372_v21 = vld [vmem:[%s8655_s25 + $0x60] sm:$0xff]   ;;  %v8375_v26 = vld [vmem:[%s8655_s25 + $0x68] sm:$0xff]  }
  0x1a   : > { %7457 = vmatmul.mubr.msk.bf16.vlgmr.msra.gmra.mrb[0].mxu1 %vm1121_vm1, %v634_v35  ;;  %v650_v51 = vsel %vm614_vm2, %v645_v42, %v649_v40  ;;  %v665_v56 = vrot.slane %v663_v50, 1  ;;  %v661_v58 = vor.u32 %v659_v52, %v657_v49  ;;  %v679_v0 = vshll.u32 %v8364_v57, 16  ;;  %v8373_v27 = vld [vmem:[%s8655_s25 + $0x70] sm:$0xff]   ;;  %v8374_v37 = vld [vmem:[%s8655_s25 + $0x78] sm:$0xff]   ;;  %v8377_v41 = vld [vmem:[%s8655_s25 + $0x80] sm:$0xff]  }
  0x1b   : > { %7713 = vmatmul.mubr.msk.bf16.gmra.mrb[4].mxu0 %vm1121_vm1, %v8354_v23  ;;  %7581 = vmatpush3.bf16.msra.mxu1 %v1971_v14  ;;  %v658_v53 = vsel %vm614_vm2, %v653_v45, %v657_v49  ;;  %v673_v61 = vrot.slane %v671_v55, 1  ;;  %v675_v2 = vshrl.u32 %v8363_v48, 16  ;;  %v683_v4 = vshrl.u32 %v8364_v57, 16  ;;  %v8370_v23 = vld [vmem:[%s8655_s25 + $0x68] sm:$0xff]   ;;  %v8376_v35 = vld [vmem:[%s8655_s25 + $0x70] sm:$0xff]   ;;  %v8379_v40 = vld [vmem:[%s8655_s25 + $0x78] sm:$0xff]  }
  0x1c   : > { %7716 = vmatprep.mubr.msk.bf16.mxu0 %vm1121_vm1, %v8357_v33  ;;  %7460 = vmatprep.mubr.msk.bf16.mxu1 %vm1121_vm1, %v642_v39  ;;  %v669_v60 = vor.u32 %v667_v54, %v665_v56  ;;  %v666_v1 = vsel %vm614_vm2, %v661_v58, %v665_v56  ;;  %v687_v5 = vshll.u32 %v8367_v62, 16  ;;  %v681_v6 = vrot.slane %v679_v0, 1  ;;  %v8380_v49 = vld [vmem:[%s8655_s25 + $0x80] sm:$0xff]   ;;  %v8383_v54 = vld [vmem:[%s8655_s25 + $0x88] sm:$0xff]   ;;  %v8381_v55 = vld [vmem:[%s8655_s25 + $0x90] sm:$0xff]  }
  0x1d   : > { %v677_v8 = vor.u32 %v675_v2, %v673_v61  ;;  %v695_v14 = vshll.u32 %v8368_v7, 16  ;;  %v691_v16 = vshrl.u32 %v8367_v62, 16  ;;  %v699_v18 = vshrl.u32 %v8368_v7, 16 }
  0x1e   : > { %v674_v3 = vsel %vm614_vm2, %v669_v60, %v673_v61  ;;  %v685_v10 = vor.u32 %v683_v4, %v681_v6  ;;  %v689_v11 = vrot.slane %v687_v5, 1  ;;  %v703_v19 = vshll.u32 %v8371_v12, 16  ;;  %v8387_v4 = vld [vmem:[%s8655_s25 + $0x98] sm:$0xff]   ;;  %v8385_v5 = vld [vmem:[%s8655_s25 + $0xa0] sm:$0xff]  }
  0x1f   : > { %v682_v15 = vsel %vm614_vm2, %v677_v8, %v681_v6  ;;  %v697_v20 = vrot.slane %v695_v14, 1  ;;  %v711_v28 = vshll.u32 %v8372_v21, 16  ;;  %v707_v30 = vshrl.u32 %v8371_v12, 16 }
  0x20   : > { %v690_v17 = vsel %vm614_vm2, %v685_v10, %v689_v11  ;;  %v693_v22 = vor.u32 %v691_v16, %v689_v11  ;;  %v705_v25 = vrot.slane %v703_v19, 1  ;;  %v715_v32 = vshrl.u32 %v8372_v21, 16  ;;  %v8389_v19 = vld [vmem:[%s8655_s25 + $0xb0] sm:$0xff]  }
  0x21   : > { %v701_v24 = vor.u32 %v699_v18, %v697_v20  ;;  %v719_v33 = vshll.u32 %v8375_v26, 16  ;;  %v713_v34 = vrot.slane %v711_v28, 1  ;;  %v727_v42 = vshll.u32 %v8376_v35, 16  ;;  %v8391_v18 = vld [vmem:[%s8655_s25 + $0xa8] sm:$0xff]  }
  0x22   : > { %7461 = vmatmul.mubr.msk.bf16.gmra.mrb[4].mxu1 %vm1121_vm1, %v650_v51  ;;  %v698_v29 = vsel %vm614_vm2, %v693_v22, %v697_v20  ;;  %v709_v36 = vor.u32 %v707_v30, %v705_v25  ;;  %v731_v46 = vshrl.u32 %v8376_v35, 16  ;;  %v8378_v51 = vld [vmem:[%s8655_s25 + $0x88] sm:$0xff]   ;;  %v743_v56 = vshll.u32 %v8380_v49, 16 }
  0x23   : > { %7717 = vmatmul.mubr.msk.bf16.gmra.mrb[8].mxu0 %vm1121_vm1, %v8358_v44  ;;  %7464 = vmatprep.mubr.msk.bf16.mxu1 %vm1121_vm1, %v658_v53  ;;  %v706_v31 = vsel %vm614_vm2, %v701_v24, %v705_v25  ;;  %v717_v38 = vor.u32 %v715_v32, %v713_v34  ;;  %v721_v39 = vrot.slane %v719_v33, 1  ;;  %v723_v44 = vshrl.u32 %v8375_v26, 16  ;;  %v8395_v32 = vld [vmem:[%s8655_s25 + $0xb8] sm:$0xff]   ;;  %v8393_v33 = vld [vmem:[%s8655_s25 + $0xc0] sm:$0xff]  }
  0x24   : > { %7720 = vmatprep.mubr.msk.bf16.mxu0 %vm1121_vm1, %v8361_v47  ;;  %v714_v43 = vsel %vm614_vm2, %v709_v36, %v713_v34  ;;  %v735_v47 = vshll.u32 %v8379_v40, 16  ;;  %v729_v48 = vrot.slane %v727_v42, 1  ;;  %v739_v58 = vshrl.u32 %v8379_v40, 16 }
  0x25   : > { %v722_v45 = vsel %vm614_vm2, %v717_v38, %v721_v39  ;;  %v725_v50 = vor.u32 %v723_v44, %v721_v39  ;;  %v747_v60 = vshrl.u32 %v8380_v49, 16  ;;  %v751_v61 = vshll.u32 %v8383_v54, 16 }
  0x26   : > { %v733_v52 = vor.u32 %v731_v46, %v729_v48  ;;  %v737_v53 = vrot.slane %v735_v47, 1  ;;  %v745_v62 = vrot.slane %v743_v56, 1  ;;  %v755_v8 = vshrl.u32 %v8383_v54, 16  ;;  %v8399_v46 = vld [vmem:[%s8655_s25 + $0xc8] sm:$0xff]   ;;  %v8397_v47 = vld [vmem:[%s8655_s25 + $0xd0] sm:$0xff]  }
  0x27   : > { %v730_v57 = vsel %vm614_vm2, %v725_v50, %v729_v48  ;;  %v767_v11 = vshll.u32 %v8387_v4, 16  ;;  %v771_v22 = vshrl.u32 %v8387_v4, 16  ;;  %v783_v25 = vshll.u32 %v8391_v18, 16 }
  0x28   : > { %v741_v0 = vor.u32 %v739_v58, %v737_v53  ;;  %v749_v2 = vor.u32 %v747_v60, %v745_v62  ;;  %v787_v36 = vshrl.u32 %v8391_v18, 16  ;;  %v799_v39 = vshll.u32 %v8395_v32, 16  ;;  %v8403_v60 = vld [vmem:[%s8655_s25 + $0xd8] sm:$0xff]  }
  0x29   : > { %v803_v50 = vshrl.u32 %v8395_v32, 16 }
  0x2a   : > { %7465 = vmatmul.mubr.msk.bf16.gmra.mrb[8].mxu1 %vm1121_vm1, %v666_v1  ;;  %v8382_v1 = vld [vmem:[%s8655_s25 + $0x98] sm:$0xff]   ;;  %v746_v7 = vsel %vm614_vm2, %v741_v0, %v745_v62  ;;  %v819_v0 = vshrl.u32 %v8399_v46, 16 }
  0x2b   : > { %7721 = vmatmul.mubr.msk.bf16.gmra.mrb[12].mxu0 %vm1121_vm1, %v8362_v59  ;;  %7468 = vmatprep.mubr.msk.bf16.mxu1 %vm1121_vm1, %v674_v3  ;;  %v738_v59 = vsel %vm614_vm2, %v733_v52, %v737_v53  ;;  %v753_v3 = vrot.slane %v751_v61, 1  ;;  %v815_v53 = vshll.u32 %v8399_v46, 16  ;;  %v8401_v61 = vld [vmem:[%s8655_s25 + $0xe0] sm:$0xff]  }
  0x2c   : > { %7724 = vmatprep.mubr.msk.bf16.mxu0 %vm1121_vm1, %v8365_v63  ;;  %v8384_v63 = vld [vmem:[%s8655_s25 + $0x90] sm:$0xff]  }
  0x2d   : > { %v759_v6 = vshll.u32 %v8384_v63, 16  ;;  %v763_v10 = vshrl.u32 %v8384_v63, 16  ;;  %v757_v14 = vor.u32 %v755_v8, %v753_v3 }
  0x2f   : > { %v761_v12 = vrot.slane %v759_v6, 1 }
  0x31   : > { %v765_v16 = vor.u32 %v763_v10, %v761_v12  ;;  %v762_v21 = vsel %vm614_vm2, %v757_v14, %v761_v12  ;;  %v8407_v10 = vld [vmem:[%s8655_s25 + $0xe8] sm:$0xff]   ;;  %v835_v14 = vshrl.u32 %v8403_v60, 16 }
  0x32   : > { %7469 = vmatmul.mubr.msk.bf16.gmra.mrb[12].mxu1 %vm1121_vm1, %v682_v15  ;;  %v8386_v15 = vld [vmem:[%s8655_s25 + $0xa8] sm:$0xff]  }
  0x33   : > { %7725 = vmatmul.mubr.msk.bf16.gmra.mrb[16].mxu0 %vm1121_vm1, %v8366_v9  ;;  %7472 = vmatprep.mubr.msk.bf16.mxu1 %vm1121_vm1, %v690_v17  ;;  %v754_v9 = vsel %vm614_vm2, %v749_v2, %v753_v3  ;;  %v769_v17 = vrot.slane %v767_v11, 1  ;;  %v831_v3 = vshll.u32 %v8403_v60, 16  ;;  %v8405_v11 = vld [vmem:[%s8655_s25 + $0xf0] sm:$0xff]  }
  0x34   : > { %7728 = vmatprep.mubr.msk.bf16.mxu0 %vm1121_vm1, %v8369_v13  ;;  %v8388_v13 = vld [vmem:[%s8655_s25 + $0xa0] sm:$0xff]  }
  0x35   : > { %v775_v20 = vshll.u32 %v8388_v13, 16  ;;  %v779_v24 = vshrl.u32 %v8388_v13, 16  ;;  %v773_v28 = vor.u32 %v771_v22, %v769_v17 }
  0x37   : > { %v777_v26 = vrot.slane %v775_v20, 1 }
  0x39   : > { %v781_v30 = vor.u32 %v779_v24, %v777_v26  ;;  %v778_v35 = vsel %vm614_vm2, %v773_v28, %v777_v26  ;;  %v8411_v24 = vld [vmem:[%s8655_s25 + $0xf8] sm:$0xff]   ;;  %v851_v28 = vshrl.u32 %v8407_v10, 16 }
  0x3a   : > { %7473 = vmatmul.mubr.msk.bf16.gmra.mrb[16].mxu1 %vm1121_vm1, %v698_v29  ;;  %v8390_v29 = vld [vmem:[%s8655_s25 + $0xb8] sm:$0xff]  }
  0x3b   : > { %7729 = vmatmul.mubr.msk.bf16.gmra.mrb[20].mxu0 %vm1121_vm1, %v8370_v23  ;;  %7476 = vmatprep.mubr.msk.bf16.mxu1 %vm1121_vm1, %v706_v31  ;;  %v770_v23 = vsel %vm614_vm2, %v765_v16, %v769_v17  ;;  %v785_v31 = vrot.slane %v783_v25, 1  ;;  %v847_v17 = vshll.u32 %v8407_v10, 16  ;;  %v8409_v25 = vld [vmem:[%s8655_s25 + $0x100] sm:$0xff]  }
  0x3c   : > { %7732 = vmatprep.mubr.msk.bf16.mxu0 %vm1121_vm1, %v8373_v27  ;;  %v8392_v27 = vld [vmem:[%s8655_s25 + $0xb0] sm:$0xff]  }
  0x3d   : > { %v791_v34 = vshll.u32 %v8392_v27, 16  ;;  %v795_v38 = vshrl.u32 %v8392_v27, 16  ;;  %v789_v42 = vor.u32 %v787_v36, %v785_v31 }
  0x3f   : > { %v793_v40 = vrot.slane %v791_v34, 1 }
  0x41   : > { %v797_v44 = vor.u32 %v795_v38, %v793_v40  ;;  %v794_v49 = vsel %vm614_vm2, %v789_v42, %v793_v40  ;;  %v8415_v38 = vld [vmem:[%s8655_s25 + $0x108] sm:$0xff]   ;;  %v867_v42 = vshrl.u32 %v8411_v24, 16 }
  0x42   : > { %7477 = vmatmul.mubr.msk.bf16.gmra.mrb[20].mxu1 %vm1121_vm1, %v714_v43  ;;  %v8394_v43 = vld [vmem:[%s8655_s25 + $0xc8] sm:$0xff]  }
  0x43   : > { %7733 = vmatmul.mubr.msk.bf16.gmra.mrb[24].mxu0 %vm1121_vm1, %v8374_v37  ;;  %7480 = vmatprep.mubr.msk.bf16.mxu1 %vm1121_vm1, %v722_v45  ;;  %v786_v37 = vsel %vm614_vm2, %v781_v30, %v785_v31  ;;  %v801_v45 = vrot.slane %v799_v39, 1  ;;  %v863_v31 = vshll.u32 %v8411_v24, 16  ;;  %v8413_v39 = vld [vmem:[%s8655_s25 + $0x110] sm:$0xff]  }
  0x44   : > { %7736 = vmatprep.mubr.msk.bf16.mxu0 %vm1121_vm1, %v8377_v41  ;;  %v8396_v41 = vld [vmem:[%s8655_s25 + $0xc0] sm:$0xff]  }
  0x45   : > { %v807_v48 = vshll.u32 %v8396_v41, 16  ;;  %v811_v52 = vshrl.u32 %v8396_v41, 16  ;;  %v805_v56 = vor.u32 %v803_v50, %v801_v45 }
  0x47   : > { %v809_v54 = vrot.slane %v807_v48, 1 }
  0x49   : > { %v813_v58 = vor.u32 %v811_v52, %v809_v54  ;;  %v810_v63 = vsel %vm614_vm2, %v805_v56, %v809_v54  ;;  %v8419_v52 = vld [vmem:[%s8655_s25 + $0x118] sm:$0xff]   ;;  %v883_v56 = vshrl.u32 %v8415_v38, 16 }
  0x4a   : > { %7481 = vmatmul.mubr.msk.bf16.gmra.mrb[24].mxu1 %vm1121_vm1, %v730_v57  ;;  %v8398_v57 = vld [vmem:[%s8655_s25 + $0xd8] sm:$0xff]  }
  0x4b   : > { %7737 = vmatmul.mubr.msk.bf16.gmra.mrb[28].mxu0 %vm1121_vm1, %v8378_v51  ;;  %7484 = vmatprep.mubr.msk.bf16.mxu1 %vm1121_vm1, %v738_v59  ;;  %v802_v51 = vsel %vm614_vm2, %v797_v44, %v801_v45  ;;  %v817_v59 = vrot.slane %v815_v53, 1  ;;  %v879_v45 = vshll.u32 %v8415_v38, 16  ;;  %v8417_v53 = vld [vmem:[%s8655_s25 + $0x120] sm:$0xff]  }
  0x4c   : > { %7740 = vmatprep.mubr.msk.bf16.mxu0 %vm1121_vm1, %v8381_v55  ;;  %v8400_v55 = vld [vmem:[%s8655_s25 + $0xd0] sm:$0xff]  }
  0x4d   : > { %v823_v62 = vshll.u32 %v8400_v55, 16  ;;  %v827_v2 = vshrl.u32 %v8400_v55, 16  ;;  %v821_v6 = vor.u32 %v819_v0, %v817_v59 }
  0x4f   : > { %v825_v4 = vrot.slane %v823_v62, 1 }
  0x51   : > { %v829_v8 = vor.u32 %v827_v2, %v825_v4  ;;  %v826_v13 = vsel %vm614_vm2, %v821_v6, %v825_v4  ;;  %v8423_v2 = vld [vmem:[%s8655_s25 + $0x128] sm:$0xff]   ;;  %v899_v6 = vshrl.u32 %v8419_v52, 16 }
  0x52   : > { %7485 = vmatmul.mubr.msk.bf16.gmra.mrb[28].mxu1 %vm1121_vm1, %v746_v7  ;;  %v8402_v7 = vld [vmem:[%s8655_s25 + $0xe8] sm:$0xff]  }
  0x53   : > { %7741 = vmatmul.mubr.msk.bf16.gmra.mrb[32].mxu0 %vm1121_vm1, %v8382_v1  ;;  %7488 = vmatprep.mubr.msk.bf16.mxu1 %vm1121_vm1, %v754_v9  ;;  %v818_v1 = vsel %vm614_vm2, %v813_v58, %v817_v59  ;;  %v833_v9 = vrot.slane %v831_v3, 1  ;;  %v895_v59 = vshll.u32 %v8419_v52, 16  ;;  %v8421_v3 = vld [vmem:[%s8655_s25 + $0x130] sm:$0xff]  }
  0x54   : > { %7744 = vmatprep.mubr.msk.bf16.mxu0 %vm1121_vm1, %v8385_v5  ;;  %v8404_v5 = vld [vmem:[%s8655_s25 + $0xe0] sm:$0xff]  }
  0x55   : > { %v839_v12 = vshll.u32 %v8404_v5, 16  ;;  %v843_v16 = vshrl.u32 %v8404_v5, 16  ;;  %v837_v20 = vor.u32 %v835_v14, %v833_v9 }
  0x57   : > { %v841_v18 = vrot.slane %v839_v12, 1 }
  0x59   : > { %v845_v22 = vor.u32 %v843_v16, %v841_v18  ;;  %v842_v27 = vsel %vm614_vm2, %v837_v20, %v841_v18  ;;  %v8427_v16 = vld [vmem:[%s8655_s25 + $0x138] sm:$0xff]   ;;  %v915_v20 = vshrl.u32 %v8423_v2, 16 }
  0x5a   : > { %7489 = vmatmul.mubr.msk.bf16.gmra.mrb[32].mxu1 %vm1121_vm1, %v762_v21  ;;  %v8406_v21 = vld [vmem:[%s8655_s25 + $0xf8] sm:$0xff]  }
  0x5b   : > { %7745 = vmatmul.mubr.msk.bf16.gmra.mrb[36].mxu0 %vm1121_vm1, %v8386_v15  ;;  %7492 = vmatprep.mubr.msk.bf16.mxu1 %vm1121_vm1, %v770_v23  ;;  %v834_v15 = vsel %vm614_vm2, %v829_v8, %v833_v9  ;;  %v849_v23 = vrot.slane %v847_v17, 1  ;;  %v911_v9 = vshll.u32 %v8423_v2, 16  ;;  %v8425_v17 = vld [vmem:[%s8655_s25 + $0x140] sm:$0xff]  }
  0x5c   : > { %7748 = vmatprep.mubr.msk.bf16.mxu0 %vm1121_vm1, %v8389_v19  ;;  %v8408_v19 = vld [vmem:[%s8655_s25 + $0xf0] sm:$0xff]  }
  0x5d   : > { %v855_v26 = vshll.u32 %v8408_v19, 16  ;;  %v859_v30 = vshrl.u32 %v8408_v19, 16  ;;  %v853_v34 = vor.u32 %v851_v28, %v849_v23 }
  0x5f   : > { %v857_v32 = vrot.slane %v855_v26, 1 }
  0x61   : > { %v861_v36 = vor.u32 %v859_v30, %v857_v32  ;;  %v858_v41 = vsel %vm614_vm2, %v853_v34, %v857_v32  ;;  %v8431_v30 = vld [vmem:[%s8655_s25 + $0x148] sm:$0xff]   ;;  %v931_v34 = vshrl.u32 %v8427_v16, 16 }
  0x62   : > { %7493 = vmatmul.mubr.msk.bf16.gmra.mrb[36].mxu1 %vm1121_vm1, %v778_v35  ;;  %v8410_v35 = vld [vmem:[%s8655_s25 + $0x108] sm:$0xff]  }
  0x63   : > { %7749 = vmatmul.mubr.msk.bf16.gmra.mrb[40].mxu0 %vm1121_vm1, %v8390_v29  ;;  %7496 = vmatprep.mubr.msk.bf16.mxu1 %vm1121_vm1, %v786_v37  ;;  %v850_v29 = vsel %vm614_vm2, %v845_v22, %v849_v23  ;;  %v865_v37 = vrot.slane %v863_v31, 1  ;;  %v927_v23 = vshll.u32 %v8427_v16, 16  ;;  %v8429_v31 = vld [vmem:[%s8655_s25 + $0x150] sm:$0xff]  }
  0x64   : > { %7752 = vmatprep.mubr.msk.bf16.mxu0 %vm1121_vm1, %v8393_v33  ;;  %v8412_v33 = vld [vmem:[%s8655_s25 + $0x100] sm:$0xff]  }
  0x65   : > { %v871_v40 = vshll.u32 %v8412_v33, 16  ;;  %v875_v44 = vshrl.u32 %v8412_v33, 16  ;;  %v869_v48 = vor.u32 %v867_v42, %v865_v37 }
  0x67   : > { %v873_v46 = vrot.slane %v871_v40, 1 }
  0x69   : > { %v877_v50 = vor.u32 %v875_v44, %v873_v46  ;;  %v874_v55 = vsel %vm614_vm2, %v869_v48, %v873_v46  ;;  %v8435_v44 = vld [vmem:[%s8655_s25 + $0x158] sm:$0xff]   ;;  %v947_v46 = vshrl.u32 %v8431_v30, 16 }
  0x6a   : > { %7497 = vmatmul.mubr.msk.bf16.gmra.mrb[40].mxu1 %vm1121_vm1, %v794_v49  ;;  %v8414_v49 = vld [vmem:[%s8655_s25 + $0x118] sm:$0xff]  }
  0x6b   : > { %7753 = vmatmul.mubr.msk.bf16.gmra.mrb[44].mxu0 %vm1121_vm1, %v8394_v43  ;;  %7500 = vmatprep.mubr.msk.bf16.mxu1 %vm1121_vm1, %v802_v51  ;;  %v866_v43 = vsel %vm614_vm2, %v861_v36, %v865_v37  ;;  %v881_v51 = vrot.slane %v879_v45, 1  ;;  %v943_v37 = vshll.u32 %v8431_v30, 16  ;;  %v8433_v45 = vld [vmem:[%s8655_s25 + $0x160] sm:$0xff]  }
  0x6c   : > { %7756 = vmatprep.mubr.msk.bf16.mxu0 %vm1121_vm1, %v8397_v47  ;;  %v8416_v47 = vld [vmem:[%s8655_s25 + $0x110] sm:$0xff]  }
  0x6d   : > { %v887_v54 = vshll.u32 %v8416_v47, 16  ;;  %v891_v58 = vshrl.u32 %v8416_v47, 16  ;;  %v885_v62 = vor.u32 %v883_v56, %v881_v51 }
  0x6f   : > { %v889_v60 = vrot.slane %v887_v54, 1  ;;  %v8436_v54 = vld [vmem:[%s8655_s25 + $0x160] sm:$0xff]  }
  0x71   : > { %v893_v0 = vor.u32 %v891_v58, %v889_v60  ;;  %v890_v5 = vsel %vm614_vm2, %v885_v62, %v889_v60  ;;  %v8439_v58 = vld [vmem:[%s8655_s25 + $0x168] sm:$0xff]   ;;  %v963_v60 = vshrl.u32 %v8435_v44, 16 }
  0x72   : > { %7501 = vmatmul.mubr.msk.bf16.gmra.mrb[44].mxu1 %vm1121_vm1, %v810_v63  ;;  %v8418_v63 = vld [vmem:[%s8655_s25 + $0x128] sm:$0xff]  }
  0x73   : > { %7757 = vmatmul.mubr.msk.bf16.gmra.mrb[48].mxu0 %vm1121_vm1, %v8398_v57  ;;  %7504 = vmatprep.mubr.msk.bf16.mxu1 %vm1121_vm1, %v818_v1  ;;  %v882_v57 = vsel %vm614_vm2, %v877_v50, %v881_v51  ;;  %v897_v1 = vrot.slane %v895_v59, 1  ;;  %v959_v51 = vshll.u32 %v8435_v44, 16  ;;  %v8437_v59 = vld [vmem:[%s8655_s25 + $0x170] sm:$0xff]  }
  0x74   : > { %7760 = vmatprep.mubr.msk.bf16.mxu0 %vm1121_vm1, %v8401_v61  ;;  %v8420_v61 = vld [vmem:[%s8655_s25 + $0x120] sm:$0xff]  }
  0x75   : > { %v903_v4 = vshll.u32 %v8420_v61, 16  ;;  %v907_v8 = vshrl.u32 %v8420_v61, 16  ;;  %v901_v12 = vor.u32 %v899_v6, %v897_v1  ;;  %v967_v61 = vshll.u32 %v8436_v54, 16 }
  0x77   : > { %v905_v10 = vrot.slane %v903_v4, 1  ;;  %v969_v2 = vrot.slane %v967_v61, 1  ;;  %v8440_v4 = vld [vmem:[%s8655_s25 + $0x170] sm:$0xff]   ;;  %v8454_v61 = vld [vmem:[%s8655_s25 + $0x1b8] sm:$0xff]  }
  0x79   : > { %v909_v14 = vor.u32 %v907_v8, %v905_v10  ;;  %v906_v19 = vsel %vm614_vm2, %v901_v12, %v905_v10  ;;  %v8443_v8 = vld [vmem:[%s8655_s25 + $0x178] sm:$0xff]   ;;  %v979_v10 = vshrl.u32 %v8439_v58, 16 }
  0x7a   : > { %7505 = vmatmul.mubr.msk.bf16.gmra.mrb[48].mxu1 %vm1121_vm1, %v826_v13  ;;  %v8422_v13 = vld [vmem:[%s8655_s25 + $0x138] sm:$0xff]  }
  0x7b   : > { %7761 = vmatmul.mubr.msk.bf16.gmra.mrb[52].mxu0 %vm1121_vm1, %v8402_v7  ;;  %7508 = vmatprep.mubr.msk.bf16.mxu1 %vm1121_vm1, %v834_v15  ;;  %v898_v7 = vsel %vm614_vm2, %v893_v0, %v897_v1  ;;  %v913_v15 = vrot.slane %v911_v9, 1  ;;  %v971_v0 = vshrl.u32 %v8436_v54, 16  ;;  %v975_v1 = vshll.u32 %v8439_v58, 16  ;;  %v8441_v9 = vld [vmem:[%s8655_s25 + $0x180] sm:$0xff]  }
  0x7c   : > { %7764 = vmatprep.mubr.msk.bf16.mxu0 %vm1121_vm1, %v8405_v11  ;;  %v8424_v11 = vld [vmem:[%s8655_s25 + $0x130] sm:$0xff]  }
  0x7d   : > { %v919_v18 = vshll.u32 %v8424_v11, 16  ;;  %v923_v22 = vshrl.u32 %v8424_v11, 16  ;;  %v917_v26 = vor.u32 %v915_v20, %v913_v15  ;;  %v973_v6 = vor.u32 %v971_v0, %v969_v2  ;;  %v8459_v0 = vld [vmem:[%s8655_s25 + $0x1b8] sm:$0xff]  }
  0x7e   : > { %v983_v11 = vshll.u32 %v8440_v4, 16 }
  0x7f   : > { %v921_v24 = vrot.slane %v919_v18, 1  ;;  %v8444_v18 = vld [vmem:[%s8655_s25 + $0x180] sm:$0xff]  }
  0x80   : > { %v985_v16 = vrot.slane %v983_v11, 1  ;;  %v8458_v11 = vld [vmem:[%s8655_s25 + $0x1c8] sm:$0xff]  }
  0x81   : > { %v925_v28 = vor.u32 %v923_v22, %v921_v24  ;;  %v922_v33 = vsel %vm614_vm2, %v917_v26, %v921_v24  ;;  %v8447_v22 = vld [vmem:[%s8655_s25 + $0x188] sm:$0xff]   ;;  %v995_v24 = vshrl.u32 %v8443_v8, 16 }
  0x82   : > { %7509 = vmatmul.mubr.msk.bf16.gmra.mrb[52].mxu1 %vm1121_vm1, %v842_v27  ;;  %v8426_v27 = vld [vmem:[%s8655_s25 + $0x148] sm:$0xff]  }
  0x83   : > { %7765 = vmatmul.mubr.msk.bf16.gmra.mrb[56].mxu0 %vm1121_vm1, %v8406_v21  ;;  %7512 = vmatprep.mubr.msk.bf16.mxu1 %vm1121_vm1, %v850_v29  ;;  %v914_v21 = vsel %vm614_vm2, %v909_v14, %v913_v15  ;;  %v929_v29 = vrot.slane %v927_v23, 1  ;;  %v987_v14 = vshrl.u32 %v8440_v4, 16  ;;  %v991_v15 = vshll.u32 %v8443_v8, 16  ;;  %v8445_v23 = vld [vmem:[%s8655_s25 + $0x190] sm:$0xff]  }
  0x84   : > { %7768 = vmatprep.mubr.msk.bf16.mxu0 %vm1121_vm1, %v8409_v25  ;;  %v8428_v25 = vld [vmem:[%s8655_s25 + $0x140] sm:$0xff]  }
  0x85   : > { %v935_v32 = vshll.u32 %v8428_v25, 16  ;;  %v939_v36 = vshrl.u32 %v8428_v25, 16  ;;  %v933_v40 = vor.u32 %v931_v34, %v929_v29  ;;  %v989_v20 = vor.u32 %v987_v14, %v985_v16  ;;  %v8463_v14 = vld [vmem:[%s8655_s25 + $0x1c8] sm:$0xff]  }
  0x86   : > { %v999_v25 = vshll.u32 %v8444_v18, 16 }
  0x87   : > { %v937_v38 = vrot.slane %v935_v32, 1  ;;  %v8448_v32 = vld [vmem:[%s8655_s25 + $0x190] sm:$0xff]  }
  0x88   : > { %v1001_v30 = vrot.slane %v999_v25, 1  ;;  %v8462_v25 = vld [vmem:[%s8655_s25 + $0x1d8] sm:$0xff]  }
  0x89   : > { %v941_v42 = vor.u32 %v939_v36, %v937_v38  ;;  %v938_v48 = vsel %vm614_vm2, %v933_v40, %v937_v38  ;;  %v8451_v36 = vld [vmem:[%s8655_s25 + $0x198] sm:$0xff]   ;;  %v1011_v38 = vshrl.u32 %v8447_v22, 16 }
  0x8a   : > { %7513 = vmatmul.mubr.msk.bf16.gmra.mrb[56].mxu1 %vm1121_vm1, %v858_v41  ;;  %v8430_v41 = vld [vmem:[%s8655_s25 + $0x158] sm:$0xff]   ;;  %v1027_v54 = vshrl.u32 %v8451_v36, 16 }
  0x8b   : > { %7769 = vmatmul.mubr.msk.bf16.gmra.mrb[60].mxu0 %vm1121_vm1, %v8410_v35  ;;  %7516 = vmatprep.mubr.msk.bf16.mxu1 %vm1121_vm1, %v866_v43  ;;  %v930_v35 = vsel %vm614_vm2, %v925_v28, %v929_v29  ;;  %v945_v43 = vrot.slane %v943_v37, 1  ;;  %v1003_v28 = vshrl.u32 %v8444_v18, 16  ;;  %v1007_v29 = vshll.u32 %v8447_v22, 16  ;;  %v8449_v37 = vld [vmem:[%s8655_s25 + $0x1a0] sm:$0xff]  }
  0x8c   : > { %7772 = vmatprep.mubr.msk.bf16.mxu0 %vm1121_vm1, %v8413_v39  ;;  %v8432_v39 = vld [vmem:[%s8655_s25 + $0x150] sm:$0xff]   ;;  %v1059_v18 = vshrl.u32 %v8459_v0, 16 }
  0x8d   : > { %v951_v47 = vshll.u32 %v8432_v39, 16  ;;  %v955_v50 = vshrl.u32 %v8432_v39, 16  ;;  %v1005_v34 = vor.u32 %v1003_v28, %v1001_v30  ;;  %v1015_v39 = vshll.u32 %v8448_v32, 16  ;;  %v8467_v28 = vld [vmem:[%s8655_s25 + $0x1d8] sm:$0xff]  }
  0x8f   : > { %v953_v52 = vrot.slane %v951_v47, 1  ;;  %v1017_v44 = vrot.slane %v1015_v39, 1  ;;  %v8474_v39 = vld [vmem:[%s8655_s25 + $0x18] sm:$0xff]  }
  0x91   : > { %v957_v56 = vor.u32 %v955_v50, %v953_v52  ;;  %v8455_v50 = vld [vmem:[%s8655_s25 + $0x1a8] sm:$0xff]  }
  0x92   : > { %7517 = vmatmul.mubr.msk.bf16.gmra.mrb[60].mxu1 %vm1121_vm1, %v874_v55  ;;  %v949_v55 = vor.u32 %v947_v46, %v945_v43  ;;  %v8452_v46 = vld [vmem:[%s8655_s25 + $0x1a0] sm:$0xff]   ;;  %v1043_v4 = vshrl.u32 %v8455_v50, 16 }
  0x93   : > { %7773 = vmatmul.mubr.msk.bf16.gmra.mrb[64].mxu0 %vm1121_vm1, %v8414_v49  ;;  %7520 = vmatprep.mubr.msk.bf16.mxu1 %vm1121_vm1, %v882_v57  ;;  %v946_v49 = vsel %vm614_vm2, %v941_v42, %v945_v43  ;;  %v961_v57 = vrot.slane %v959_v51, 1  ;;  %v1019_v42 = vshrl.u32 %v8448_v32, 16  ;;  %v1023_v43 = vshll.u32 %v8451_v36, 16  ;;  %v8453_v51 = vld [vmem:[%s8655_s25 + $0x1b0] sm:$0xff]  }
  0x94   : > { %7776 = vmatprep.mubr.msk.bf16.mxu0 %vm1121_vm1, %v8417_v53  ;;  %v8434_v53 = vld [vmem:[%s8655_s25 + $0x168] sm:$0xff]   ;;  %v954_v62 = vsel %vm614_vm2, %v949_v55, %v953_v52  ;;  %v1031_v52 = vshll.u32 %v8452_v46, 16  ;;  %v1087_v36 = vshll.u32 %v8467_v28, 16 }
  0x96   : > { %v1033_v58 = vrot.slane %v1031_v52, 1  ;;  %v1091_v52 = vshrl.u32 %v8467_v28, 16 }
  0x9a   : > { %7521 = vmatmul.mubr.msk.bf16.gmra.mrb[64].mxu1 %vm1121_vm1, %v890_v5  ;;  %v965_v5 = vor.u32 %v963_v60, %v961_v57 }
  0x9b   : > { %7777 = vmatmul.mubr.msk.bf16.gmra.mrb[68].mxu0 %vm1121_vm1, %v8418_v63  ;;  %7524 = vmatprep.mubr.msk.bf16.mxu1 %vm1121_vm1, %v898_v7  ;;  %v962_v63 = vsel %vm614_vm2, %v957_v56, %v961_v57  ;;  %v977_v7 = vrot.slane %v975_v1, 1  ;;  %v1035_v56 = vshrl.u32 %v8452_v46, 16  ;;  %v1039_v57 = vshll.u32 %v8455_v50, 16  ;;  %v8457_v1 = vld [vmem:[%s8655_s25 + $0x1c0] sm:$0xff]   ;;  %v8469_v46 = vld [vmem:[%s8655_s25 + $0x1f0] sm:$0xff]  }
  0x9c   : > { %7780 = vmatprep.mubr.msk.bf16.mxu0 %vm1121_vm1, %v8421_v3  ;;  %v8438_v3 = vld [vmem:[%s8655_s25 + $0x178] sm:$0xff]   ;;  %v970_v12 = vsel %vm614_vm2, %v965_v5, %v969_v2  ;;  %v4233_v50 = vshll.u32 %v8474_v39, 16 }
  0xa2   : > { %7525 = vmatmul.mubr.msk.bf16.gmra.mrb[68].mxu1 %vm1121_vm1, %v906_v19  ;;  %v981_v19 = vor.u32 %v979_v10, %v977_v7 }
  0xa3   : > { %7781 = vmatmul.mubr.msk.bf16.gmra.mrb[72].mxu0 %vm1121_vm1, %v8422_v13  ;;  %7528 = vmatprep.mubr.msk.bf16.mxu1 %vm1121_vm1, %v914_v21  ;;  %v978_v13 = vsel %vm614_vm2, %v973_v6, %v977_v7  ;;  %v993_v21 = vrot.slane %v991_v15, 1  ;;  %v1055_v7 = vshll.u32 %v8459_v0, 16  ;;  %v8461_v15 = vld [vmem:[%s8655_s25 + $0x1d0] sm:$0xff]  }
  0xa4   : > { %7784 = vmatprep.mubr.msk.bf16.mxu0 %vm1121_vm1, %v8425_v17  ;;  %v8442_v17 = vld [vmem:[%s8655_s25 + $0x188] sm:$0xff]   ;;  %v986_v26 = vsel %vm614_vm2, %v981_v19, %v985_v16 }
  0xaa   : > { %7529 = vmatmul.mubr.msk.bf16.gmra.mrb[72].mxu1 %vm1121_vm1, %v922_v33  ;;  %v997_v33 = vor.u32 %v995_v24, %v993_v21 }
  0xab   : > { %7785 = vmatmul.mubr.msk.bf16.gmra.mrb[76].mxu0 %vm1121_vm1, %v8426_v27  ;;  %7532 = vmatprep.mubr.msk.bf16.mxu1 %vm1121_vm1, %v930_v35  ;;  %v994_v27 = vsel %vm614_vm2, %v989_v20, %v993_v21  ;;  %v1009_v35 = vrot.slane %v1007_v29, 1  ;;  %v1071_v21 = vshll.u32 %v8463_v14, 16  ;;  %v8465_v29 = vld [vmem:[%s8655_s25 + $0x1e0] sm:$0xff]  }
  0xac   : > { %7788 = vmatprep.mubr.msk.bf16.mxu0 %vm1121_vm1, %v8429_v31  ;;  %v8446_v31 = vld [vmem:[%s8655_s25 + $0x198] sm:$0xff]   ;;  %v1002_v40 = vsel %vm614_vm2, %v997_v33, %v1001_v30  ;;  %v1075_v33 = vshrl.u32 %v8463_v14, 16 }
  0xad   : > { %v1013_v47 = vor.u32 %v1011_v38, %v1009_v35  ;;  %v8468_v38 = vld [vmem:[%s8655_s25 + $0x1e0] sm:$0xff]  }
  0xb2   : > { %7533 = vmatmul.mubr.msk.bf16.gmra.mrb[76].mxu1 %vm1121_vm1, %v938_v48  ;;  %v1021_v48 = vor.u32 %v1019_v42, %v1017_v44  ;;  %v8466_v42 = vld [vmem:[%s8655_s25 + $0x1e8] sm:$0xff]  }
  0xb3   : > { %7789 = vmatmul.mubr.msk.bf16.gmra.mrb[80].mxu0 %vm1121_vm1, %v8430_v41  ;;  %7536 = vmatprep.mubr.msk.bf16.mxu1 %vm1121_vm1, %v946_v49  ;;  %v1010_v41 = vsel %vm614_vm2, %v1005_v34, %v1009_v35  ;;  %v1025_v49 = vrot.slane %v1023_v43, 1 }
  0xb4   : > { %7792 = vmatprep.mubr.msk.bf16.mxu0 %vm1121_vm1, %v8433_v45  ;;  %v8450_v45 = vld [vmem:[%s8655_s25 + $0x1a8] sm:$0xff]  }
  0xb5   : > { %v1026_v55 = vsel %vm614_vm2, %v1021_v48, %v1025_v49  ;;  %v1029_v60 = vor.u32 %v1027_v54, %v1025_v49  ;;  %v1099_v54 = vshrl.u32 %v8468_v38, 16 }
  0xba   : > { %7537 = vmatmul.mubr.msk.bf16.gmra.mrb[80].mxu1 %vm1121_vm1, %v954_v62  ;;  %v1037_v62 = vor.u32 %v1035_v56, %v1033_v58  ;;  %v8475_v56 = vld [vmem:[%s8655_s25 + $0x20] sm:$0xff]  }
  0xbb   : > { %7793 = vmatmul.mubr.msk.bf16.gmra.mrb[84].mxu0 %vm1121_vm1, %v8434_v53  ;;  %7540 = vmatprep.mubr.msk.bf16.mxu1 %vm1121_vm1, %v962_v63  ;;  %v1018_v53 = vsel %vm614_vm2, %v1013_v47, %v1017_v44  ;;  %v1041_v63 = vrot.slane %v1039_v57, 1  ;;  %v1089_v44 = vrot.slane %v1087_v36, 1  ;;  %v1095_v47 = vshll.u32 %v8468_v38, 16 }
  0xbc   : > { %7796 = vmatprep.mubr.msk.bf16.mxu0 %vm1121_vm1, %v8437_v59  ;;  %v8456_v59 = vld [vmem:[%s8655_s25 + $0x1b0] sm:$0xff]  }
  0xbd   : > { %v1047_v2 = vshll.u32 %v8456_v59, 16  ;;  %v1042_v5 = vsel %vm614_vm2, %v1037_v62, %v1041_v63  ;;  %v1051_v6 = vshrl.u32 %v8456_v59, 16  ;;  %v1045_v10 = vor.u32 %v1043_v4, %v1041_v63  ;;  %v8472_v62 = vld [vmem:[%s8655_s25 + $0x1f0] ss:$0 sps:$4 sm:$0x11]   ;;  %v8470_v63 = vld [vmem:[%s8655_s25 + $0x1f8] sm:$0xff]  }
  0xbe   : > { %v1097_v57 = vrot.slane %v1095_v47, 1  ;;  %v4235_v59 = vrot.slane %v4233_v50, 1 }
  0xbf   : > { %v1049_v8 = vrot.slane %v1047_v2, 1  ;;  %v4241_v2 = vshll.u32 %v8475_v56, 16 }
  0xc0   : > { %v1101_v0 = vor.u32 %v1099_v54, %v1097_v57  ;;  %v8483_v54 = vld [vmem:[%s8655_s25 + $0x60] sm:$0xff]  }
  0xc2   : > { %7541 = vmatmul.mubr.msk.bf16.gmra.mrb[84].mxu1 %vm1121_vm1, %v970_v12  ;;  %v1053_v12 = vor.u32 %v1051_v6, %v1049_v8 }
  0xc3   : > { %7797 = vmatmul.mubr.msk.bf16.gmra.mrb[88].mxu0 %vm1121_vm1, %v8438_v3  ;;  %7544 = vmatprep.mubr.msk.bf16.mxu1 %vm1121_vm1, %v978_v13  ;;  %v1034_v3 = vsel %vm614_vm2, %v1029_v60, %v1033_v58  ;;  %v1057_v13 = vrot.slane %v1055_v7, 1  ;;  %v8476_v60 = vld [vmem:[%s8655_s25 + $0x28] sm:$0xff]  }
  0xc4   : > { %7800 = vmatprep.mubr.msk.bf16.mxu0 %vm1121_vm1, %v8441_v9  ;;  %v8460_v9 = vld [vmem:[%s8655_s25 + $0x1c0] sm:$0xff]   ;;  %v4249_v6 = vshll.u32 %v8476_v60, 16 }
  0xc5   : > { %v1063_v16 = vshll.u32 %v8460_v9, 16  ;;  %v1058_v19 = vsel %vm614_vm2, %v1053_v12, %v1057_v13  ;;  %v1067_v20 = vshrl.u32 %v8460_v9, 16  ;;  %v1061_v24 = vor.u32 %v1059_v18, %v1057_v13  ;;  %v8477_v12 = vld [vmem:[%s8655_s25 + $0x30] sm:$0xff]  }
  0xc6   : > { %v1111_v9 = vshll.u32 %v8472_v62, 16 }
  0xc7   : > { %v1065_v22 = vrot.slane %v1063_v16, 1  ;;  %v8478_v16 = vld [vmem:[%s8655_s25 + $0x38] sm:$0xff]  }
  0xc8   : > { %v1113_v18 = vrot.slane %v1111_v9, 1  ;;  %v8486_v9 = vld [vmem:[%s8655_s25 + $0x78] sm:$0xff]  }
  0xc9   : > { %v1066_v32 = vsel %vm614_vm2, %v1061_v24, %v1065_v22  ;;  %v4265_v24 = vshll.u32 %v8478_v16, 16 }
  0xca   : > { %7545 = vmatmul.mubr.msk.bf16.gmra.mrb[88].mxu1 %vm1121_vm1, %v986_v26  ;;  %v1069_v26 = vor.u32 %v1067_v20, %v1065_v22 }
  0xcb   : > { %7801 = vmatmul.mubr.msk.bf16.gmra.mrb[92].mxu0 %vm1121_vm1, %v8442_v17  ;;  %7548 = vmatprep.mubr.msk.bf16.mxu1 %vm1121_vm1, %v994_v27  ;;  %v1050_v17 = vsel %vm614_vm2, %v1045_v10, %v1049_v8  ;;  %v1073_v27 = vrot.slane %v1071_v21, 1  ;;  %v4253_v21 = vshrl.u32 %v8476_v60, 16  ;;  %v8540_v60 = vld [vmem:[%s8655_s25 + $0x20] sm:$0xff]  }
  0xcc   : > { %7804 = vmatprep.mubr.msk.bf16.mxu0 %vm1121_vm1, %v8445_v23  ;;  %v8464_v23 = vld [vmem:[%s8655_s25 + $0x1d0] sm:$0xff]  }
  0xcd   : > { %v1079_v30 = vshll.u32 %v8464_v23, 16  ;;  %v1074_v34 = vsel %vm614_vm2, %v1069_v26, %v1073_v27  ;;  %v1083_v35 = vshrl.u32 %v8464_v23, 16  ;;  %v4261_v23 = vshrl.u32 %v8477_v12, 16 }
  0xd2   : > { %7549 = vmatmul.mubr.msk.bf16.gmra.mrb[92].mxu1 %vm1121_vm1, %v1002_v40 }
  0xd3   : > { %7805 = vmatmul.mubr.msk.bf16.gmra.mrb[96].mxu0 %vm1121_vm1, %v8446_v31  ;;  %7552 = vmatprep.mubr.msk.bf16.mxu1 %vm1121_vm1, %v1010_v41  ;;  %v8473_v31 = vld [vmem:[%s8655_s25 + $0x10] sm:$0xff]   ;;  %v1077_v41 = vor.u32 %v1075_v33, %v1073_v27  ;;  %v8479_v27 = vld [vmem:[%s8655_s25 + $0x40] sm:$0xff]  }
  0xd4   : > { %7808 = vmatprep.mubr.msk.bf16.mxu0 %vm1121_vm1, %v8449_v37  ;;  %v1081_v37 = vrot.slane %v1079_v30, 1  ;;  %v4228_v40 = vshll.u32 %v8473_v31, 16  ;;  %v4226_v48 = vshrl.u32 %v8473_v31, 16  ;;  %v4267_v30 = vrot.slane %v4265_v24, 1  ;;  %v8480_v31 = vld [vmem:[%s8655_s25 + $0x48] sm:$0xff]   ;;  %v8544_v24 = vld [vmem:[%s8655_s25 + $0x40] sm:$0xff]  }
  0xd5   : > { %v4273_v33 = vshll.u32 %v8479_v27, 16  ;;  %v4281_v38 = vshll.u32 %v8480_v31, 16 }
  0xd6   : > { %v1085_v43 = vor.u32 %v1083_v35, %v1081_v37  ;;  %v4230_v49 = vrot.slane %v4228_v40, 1  ;;  %v4269_v35 = vshrl.u32 %v8478_v16, 16  ;;  %v8481_v40 = vld [vmem:[%s8655_s25 + $0x50] sm:$0xff]   ;;  %v4329_v16 = vshll.u32 %v8486_v9, 16 }
  0xd7   : > { %v4289_v47 = vshll.u32 %v8481_v40, 16 }
  0xd8   : > { %v4231_v58 = vor.u32 %v4230_v49, %v4226_v48  ;;  %v4285_v49 = vshrl.u32 %v8480_v31, 16 }
  0xda   : > { %7553 = vmatmul.mubr.msk.bf16.gmra.mrb[96].mxu1 %vm1121_vm1, %v1018_v53  ;;  %v1090_v53 = vsel %vm614_vm2, %v1085_v43, %v1089_v44  ;;  %v4236_v4 = vsel %vm614_vm2, %v4231_v58, %v4235_v59 }
  0xdb   : > { %7809 = vmatmul.mubr.msk.bf16.gmra.mrb[100].mxu0 %vm1121_vm1, %v8450_v45  ;;  %7556 = vmatprep.mubr.msk.bf16.mxu1 %vm1121_vm1, %v1026_v55  ;;  %v8471_v45 = vld [vmem:[%s8655_s25 + $0x1e8] sm:$0xff]  }
  0xdc   : > { %7812 = vmatprep.mubr.msk.bf16.mxu0 %vm1121_vm1, %v8453_v51  ;;  %v1082_v51 = vsel %vm614_vm2, %v1077_v41, %v1081_v37  ;;  %v1103_v55 = vshll.u32 %v8471_v45, 16  ;;  %v1107_v8 = vshrl.u32 %v8471_v45, 16  ;;  %v4277_v37 = vshrl.u32 %v8479_v27, 16  ;;  %v8482_v45 = vld [vmem:[%s8655_s25 + $0x58] sm:$0xff]  }
  0xdd   : > { %v4271_v41 = vor.u32 %v4269_v35, %v4267_v30  ;;  %v4333_v27 = vshrl.u32 %v8486_v9, 16 }
  0xe2   : > { %7557 = vmatmul.mubr.msk.bf16.gmra.mrb[100].mxu1 %vm1121_vm1, %v1034_v3  ;;  %v4237_v3 = vshrl.u32 %v8474_v39, 16  ;;  %v4275_v39 = vrot.slane %v4273_v33, 1 }
  0xe3   : > { %7813 = vmatmul.mubr.msk.bf16.gmra.mrb[104].mxu0 %vm1121_vm1, %v8454_v61  ;;  %7560 = vmatprep.mubr.msk.bf16.mxu1 %vm1121_vm1, %v1042_v5  ;;  %v1093_v61 = vor.u32 %v1091_v52, %v1089_v44  ;;  %v4245_v5 = vshrl.u32 %v8475_v56, 16  ;;  %v4283_v44 = vrot.slane %v4281_v38, 1  ;;  %v4297_v52 = vshll.u32 %v8482_v45, 16  ;;  %v8539_v56 = vld [vmem:[%s8655_s25 + $0x18] sm:$0xff]   ;;  %v8546_v38 = vld [vmem:[%s8655_s25 + $0x50] sm:$0xff]  }
  0xe4   : > { %7816 = vmatprep.mubr.msk.bf16.mxu0 %vm1121_vm1, %v8457_v1  ;;  %v1105_v1 = vrot.slane %v1103_v55, 1  ;;  %v4239_v13 = vor.u32 %v4237_v3, %v4235_v59  ;;  %v4279_v43 = vor.u32 %v4277_v37, %v4275_v39  ;;  %v4276_v48 = vsel %vm614_vm2, %v4271_v41, %v4275_v39  ;;  %v8484_v59 = vld [vmem:[%s8655_s25 + $0x68] sm:$0xff]   ;;  %v8490_v37 = vld [vmem:[%s8655_s25 + $0x98] sm:$0xff]  }
  0xe5   : > { %v1098_v7 = vsel %vm614_vm2, %v1093_v61, %v1097_v57  ;;  %v4287_v55 = vor.u32 %v4285_v49, %v4283_v44  ;;  %v4299_v58 = vrot.slane %v4297_v52, 1  ;;  %v4305_v61 = vshll.u32 %v8483_v54, 16  ;;  %v8548_v52 = vld [vmem:[%s8655_s25 + $0x60] sm:$0xff]  }
  0xe6   : > { %v1106_v10 = vsel %vm614_vm2, %v1101_v0, %v1105_v1  ;;  %v4284_v50 = vsel %vm614_vm2, %v4279_v43, %v4283_v44  ;;  %v4361_v44 = vshll.u32 %v8490_v37, 16 }
  0xe7   : > { %v4307_v3 = vrot.slane %v4305_v61, 1 }
  0xea   : > { %7561 = vmatmul.mubr.msk.bf16.gmra.mrb[104].mxu1 %vm1121_vm1, %v1050_v17  ;;  %v1109_v17 = vor.u32 %v1107_v8, %v1105_v1  ;;  %v4309_v1 = vshrl.u32 %v8483_v54, 16 }
  0xeb   : > { %7817 = vmatmul.mubr.msk.bf16.gmra.mrb[108].mxu0 %vm1121_vm1, %v8458_v11  ;;  %7564 = vmatprep.mubr.msk.bf16.mxu1 %vm1121_vm1, %v1058_v19  ;;  %v4243_v11 = vrot.slane %v4241_v2, 1  ;;  %v4257_v19 = vshll.u32 %v8477_v12, 16  ;;  %v4313_v2 = vshll.u32 %v8484_v59, 16 }
  0xec   : > { %7820 = vmatprep.mubr.msk.bf16.mxu0 %vm1121_vm1, %v8461_v15  ;;  %v4251_v15 = vrot.slane %v4249_v6, 1  ;;  %v8541_v6 = vld [vmem:[%s8655_s25 + $0x28] sm:$0xff]  }
  0xed   : > { %v4247_v14 = vor.u32 %v4245_v5, %v4243_v11  ;;  %v4244_v20 = vsel %vm614_vm2, %v4239_v13, %v4243_v11  ;;  %v4259_v26 = vrot.slane %v4257_v19, 1  ;;  %v4315_v8 = vrot.slane %v4313_v2, 1  ;;  %v8550_v2 = vld [vmem:[%s8655_s25 + $0x70] sm:$0xff]  }
  0xee   : > { %v4255_v28 = vor.u32 %v4253_v21, %v4251_v15  ;;  %v4317_v13 = vshrl.u32 %v8484_v59, 16 }
  0xef   : > { %v4252_v22 = vsel %vm614_vm2, %v4247_v14, %v4251_v15 }
  0xf0   : > { %v4319_v19 = vor.u32 %v4317_v13, %v4315_v8 }
  0xf2   : > { %7565 = vmatmul.mubr.msk.bf16.gmra.mrb[108].mxu1 %vm1121_vm1, %v1066_v32  ;;  %v8536_v32 = vld [vmem:[%s8655_s25] sm:$0xff]  }
  0xf3   : > { %7821 = vmatmul.mubr.msk.bf16.gmra.mrb[112].mxu0 %vm1121_vm1, %v8462_v25  ;;  %7568 = vmatprep.mubr.msk.bf16.mxu1 %vm1121_vm1, %v1074_v34  ;;  %v1114_v25 = vsel %vm614_vm2, %v1109_v17, %v1113_v18  ;;  %v4260_v34 = vsel %vm614_vm2, %v4255_v28, %v4259_v26  ;;  %v8487_v18 = vld [vmem:[%s8655_s25 + $0x80] sm:$0xff]  }
  0xf4   : > { %7824 = vmatprep.mubr.msk.bf16.mxu0 %vm1121_vm1, %v8465_v29  ;;  %v4263_v29 = vor.u32 %v4261_v23, %v4259_v26  ;;  %v8488_v23 = vld [vmem:[%s8655_s25 + $0x88] sm:$0xff]  }
  0xf5   : > { %v4349_v41 = vshrl.u32 %v8488_v23, 16 }
  0xf6   : > { %v4268_v36 = vsel %vm614_vm2, %v4263_v29, %v4267_v30  ;;  %v4341_v29 = vshrl.u32 %v8487_v18, 16  ;;  %v4345_v30 = vshll.u32 %v8488_v23, 16 }
  0xfa   : > { %7569 = vmatmul.mubr.msk.bf16.gmra.mrb[112].mxu1 %vm1121_vm1, %v1082_v51  ;;  %v4293_v51 = vshrl.u32 %v8481_v40, 16 }
  0xfb   : > { %7825 = vmatmul.mubr.msk.bf16.gmra.mrb[116].mxu0 %vm1121_vm1, %v8466_v42  ;;  %7572 = vmatprep.mubr.msk.bf16.mxu1 %vm1121_vm1, %v1090_v53  ;;  %v8537_v42 = vld [vmem:[%s8655_s25 + $0x8] sm:$0xff]   ;;  %v4291_v53 = vrot.slane %v4289_v47, 1 }
  0xfc   : > { %7828 = vmatprep.mubr.msk.bf16.mxu0 %vm1121_vm1, %v8469_v46  ;;  %v8538_v46 = vld [vmem:[%s8655_s25 + $0x10] sm:$0xff]  }
  0xfd   : > { %v4295_v57 = vor.u32 %v4293_v51, %v4291_v53  ;;  %v4292_v62 = vsel %vm614_vm2, %v4287_v55, %v4291_v53  ;;  %v8492_v51 = vld [vmem:[%s8655_s25 + $0xa8] sm:$0xff]   ;;  %v4365_v55 = vshrl.u32 %v8490_v37, 16 }
  0xff   : > { %v4300_v0 = vsel %vm614_vm2, %v4295_v57, %v4299_v58 }
 0x102   : > { %7573 = vmatmul.mubr.msk.bf16.gmra.mrb[116].mxu1 %vm1121_vm1, %v1098_v7  ;;  %v4311_v7 = vor.u32 %v4309_v1, %v4307_v3  ;;  %v8494_v1 = vld [vmem:[%s8655_s25 + $0xb8] sm:$0xff]  }
 0x103   : > { %7829 = vmatmul.mubr.msk.bf16.gmra.mrb[120].mxu0 %vm1121_vm1, %v8470_v63  ;;  %7576 = vmatprep.mubr.msk.bf16.mxu1 %vm1121_vm1, %v1106_v10  ;;  %v4301_v63 = vshrl.u32 %v8482_v45, 16  ;;  %v8542_v10 = vld [vmem:[%s8655_s25 + $0x30] sm:$0xff]  }
 0x104   : > { %7834 = vmatprep.mubr.msk.bf16.mxu0 %vm1121_vm1, %v4236_v4  ;;  %v8485_v4 = vld [vmem:[%s8655_s25 + $0x70] sm:$0xff]   ;;  %v4316_v14 = vsel %vm614_vm2, %v4311_v7, %v4315_v8  ;;  %v4393_v8 = vshll.u32 %v8494_v1, 16 }
 0x105   : > { %v4303_v5 = vor.u32 %v4301_v63, %v4299_v58  ;;  %v4321_v11 = vshll.u32 %v8485_v4, 16  ;;  %v4325_v15 = vshrl.u32 %v8485_v4, 16  ;;  %v4377_v58 = vshll.u32 %v8492_v51, 16 }
 0x107   : > { %v4308_v12 = vsel %vm614_vm2, %v4303_v5, %v4307_v3  ;;  %v4323_v17 = vrot.slane %v4321_v11, 1  ;;  %v4381_v5 = vshrl.u32 %v8492_v51, 16 }
 0x109   : > { %v4327_v21 = vor.u32 %v4325_v15, %v4323_v17  ;;  %v4324_v26 = vsel %vm614_vm2, %v4319_v19, %v4323_v17  ;;  %v8496_v15 = vld [vmem:[%s8655_s25 + $0xc8] sm:$0xff]   ;;  %v4397_v19 = vshrl.u32 %v8494_v1, 16 }
 0x10a   : > { %7577 = vmatmul.mubr.msk.bf16.gmra.mrb[120].mxu1 %vm1121_vm1, %v1114_v25  ;;  %v4337_v25 = vshll.u32 %v8487_v18, 16 }
 0x10b   : > { %7835 = vmatmul.mubr.msk.bf16.vlgmr.msra.gmra.mrb[0].mxu0 %vm1121_vm1, %v4244_v20  ;;  %7582 = vmatprep.mubr.msk.bf16.mxu1 %vm1121_vm1, %v8536_v32  ;;  %v8543_v20 = vld [vmem:[%s8655_s25 + $0x38] sm:$0xff]   ;;  %v8489_v32 = vld [vmem:[%s8655_s25 + $0x90] sm:$0xff]  }
 0x10c   : > { %7838 = vmatprep.mubr.msk.bf16.mxu0 %vm1121_vm1, %v4252_v22  ;;  %v4331_v22 = vrot.slane %v4329_v16, 1  ;;  %v4339_v31 = vrot.slane %v4337_v25, 1  ;;  %v4353_v39 = vshll.u32 %v8489_v32, 16  ;;  %v4357_v43 = vshrl.u32 %v8489_v32, 16  ;;  %v8552_v16 = vld [vmem:[%s8655_s25 + $0x80] sm:$0xff]  }
 0x10e   : > { %v4332_v28 = vsel %vm614_vm2, %v4327_v21, %v4331_v22  ;;  %v4335_v33 = vor.u32 %v4333_v27, %v4331_v22  ;;  %v4343_v35 = vor.u32 %v4341_v29, %v4339_v31  ;;  %v4355_v45 = vrot.slane %v4353_v39, 1  ;;  %v8498_v29 = vld [vmem:[%s8655_s25 + $0xd8] sm:$0xff]  }
 0x10f   : > { %v4409_v22 = vshll.u32 %v8496_v15, 16 }
 0x110   : > { %v4340_v40 = vsel %vm614_vm2, %v4335_v33, %v4339_v31  ;;  %v4359_v49 = vor.u32 %v4357_v43, %v4355_v45  ;;  %v4413_v33 = vshrl.u32 %v8496_v15, 16  ;;  %v8500_v43 = vld [vmem:[%s8655_s25 + $0xe8] sm:$0xff]  }
 0x112   : > { %7583 = vmatmul.mubr.msk.bf16.vlgmr.msra.gmra.mrb[0].mxu1 %vm1121_vm1, %v8537_v42 }
 0x113   : > { %7839 = vmatmul.mubr.msk.bf16.gmra.mrb[4].mxu0 %vm1121_vm1, %v4260_v34  ;;  %7586 = vmatprep.mubr.msk.bf16.mxu1 %vm1121_vm1, %v8538_v46  ;;  %v8545_v34 = vld [vmem:[%s8655_s25 + $0x48] sm:$0xff]   ;;  %v8491_v46 = vld [vmem:[%s8655_s25 + $0xa0] sm:$0xff]  }
 0x114   : > { %7842 = vmatprep.mubr.msk.bf16.mxu0 %vm1121_vm1, %v4268_v36  ;;  %v4347_v36 = vrot.slane %v4345_v30, 1  ;;  %v4369_v53 = vshll.u32 %v8491_v46, 16  ;;  %v4373_v57 = vshrl.u32 %v8491_v46, 16  ;;  %v8554_v30 = vld [vmem:[%s8655_s25 + $0x90] sm:$0xff]  }
 0x116   : > { %v4348_v42 = vsel %vm614_vm2, %v4343_v35, %v4347_v36  ;;  %v4351_v47 = vor.u32 %v4349_v41, %v4347_v36  ;;  %v4371_v59 = vrot.slane %v4369_v53, 1  ;;  %v4425_v36 = vshll.u32 %v8498_v29, 16 }
 0x118   : > { %v4356_v54 = vsel %vm614_vm2, %v4351_v47, %v4355_v45  ;;  %v4375_v63 = vor.u32 %v4373_v57, %v4371_v59  ;;  %v4429_v47 = vshrl.u32 %v8498_v29, 16  ;;  %v8502_v57 = vld [vmem:[%s8655_s25 + $0xf8] sm:$0xff]  }
 0x11a   : > { %7587 = vmatmul.mubr.msk.bf16.gmra.mrb[4].mxu1 %vm1121_vm1, %v8539_v56 }
 0x11b   : > { %7843 = vmatmul.mubr.msk.bf16.gmra.mrb[8].mxu0 %vm1121_vm1, %v4276_v48  ;;  %7590 = vmatprep.mubr.msk.bf16.mxu1 %vm1121_vm1, %v8540_v60  ;;  %v8547_v48 = vld [vmem:[%s8655_s25 + $0x58] sm:$0xff]   ;;  %v8493_v60 = vld [vmem:[%s8655_s25 + $0xb0] sm:$0xff]  }
 0x11c   : > { %7846 = vmatprep.mubr.msk.bf16.mxu0 %vm1121_vm1, %v4284_v50  ;;  %v4363_v50 = vrot.slane %v4361_v44, 1  ;;  %v4385_v3 = vshll.u32 %v8493_v60, 16  ;;  %v4389_v7 = vshrl.u32 %v8493_v60, 16  ;;  %v8556_v44 = vld [vmem:[%s8655_s25 + $0xa0] sm:$0xff]  }
 0x11e   : > { %v4364_v56 = vsel %vm614_vm2, %v4359_v49, %v4363_v50  ;;  %v4367_v61 = vor.u32 %v4365_v55, %v4363_v50  ;;  %v4387_v9 = vrot.slane %v4385_v3, 1  ;;  %v4441_v50 = vshll.u32 %v8500_v43, 16 }
 0x120   : > { %v4372_v4 = vsel %vm614_vm2, %v4367_v61, %v4371_v59  ;;  %v4391_v13 = vor.u32 %v4389_v7, %v4387_v9  ;;  %v4445_v61 = vshrl.u32 %v8500_v43, 16  ;;  %v8504_v7 = vld [vmem:[%s8655_s25 + $0x108] sm:$0xff]  }
 0x122   : > { %7591 = vmatmul.mubr.msk.bf16.gmra.mrb[8].mxu1 %vm1121_vm1, %v8541_v6 }
 0x123   : > { %7847 = vmatmul.mubr.msk.bf16.gmra.mrb[12].mxu0 %vm1121_vm1, %v4292_v62  ;;  %7594 = vmatprep.mubr.msk.bf16.mxu1 %vm1121_vm1, %v8542_v10  ;;  %v8549_v62 = vld [vmem:[%s8655_s25 + $0x68] sm:$0xff]   ;;  %v8495_v10 = vld [vmem:[%s8655_s25 + $0xc0] sm:$0xff]  }
 0x124   : > { %7850 = vmatprep.mubr.msk.bf16.mxu0 %vm1121_vm1, %v4300_v0  ;;  %v4379_v0 = vrot.slane %v4377_v58, 1  ;;  %v4401_v17 = vshll.u32 %v8495_v10, 16  ;;  %v4405_v21 = vshrl.u32 %v8495_v10, 16  ;;  %v8558_v58 = vld [vmem:[%s8655_s25 + $0xb0] sm:$0xff]  }
 0x126   : > { %v4380_v6 = vsel %vm614_vm2, %v4375_v63, %v4379_v0  ;;  %v4383_v11 = vor.u32 %v4381_v5, %v4379_v0  ;;  %v4403_v23 = vrot.slane %v4401_v17, 1  ;;  %v4457_v0 = vshll.u32 %v8502_v57, 16 }
 0x128   : > { %v4388_v18 = vsel %vm614_vm2, %v4383_v11, %v4387_v9  ;;  %v4407_v27 = vor.u32 %v4405_v21, %v4403_v23  ;;  %v4461_v11 = vshrl.u32 %v8502_v57, 16  ;;  %v8506_v21 = vld [vmem:[%s8655_s25 + $0x118] sm:$0xff]  }
 0x12a   : > { %7595 = vmatmul.mubr.msk.bf16.gmra.mrb[12].mxu1 %vm1121_vm1, %v8543_v20 }
 0x12b   : > { %7851 = vmatmul.mubr.msk.bf16.gmra.mrb[16].mxu0 %vm1121_vm1, %v4308_v12  ;;  %7598 = vmatprep.mubr.msk.bf16.mxu1 %vm1121_vm1, %v8544_v24  ;;  %v8551_v12 = vld [vmem:[%s8655_s25 + $0x78] sm:$0xff]   ;;  %v8497_v24 = vld [vmem:[%s8655_s25 + $0xd0] sm:$0xff]  }
 0x12c   : > { %7854 = vmatprep.mubr.msk.bf16.mxu0 %vm1121_vm1, %v4316_v14  ;;  %v4395_v14 = vrot.slane %v4393_v8, 1  ;;  %v4417_v31 = vshll.u32 %v8497_v24, 16  ;;  %v4421_v35 = vshrl.u32 %v8497_v24, 16  ;;  %v8560_v8 = vld [vmem:[%s8655_s25 + $0xc0] sm:$0xff]  }
 0x12e   : > { %v4396_v20 = vsel %vm614_vm2, %v4391_v13, %v4395_v14  ;;  %v4399_v25 = vor.u32 %v4397_v19, %v4395_v14  ;;  %v4419_v37 = vrot.slane %v4417_v31, 1  ;;  %v4473_v14 = vshll.u32 %v8504_v7, 16 }
 0x130   : > { %v4404_v32 = vsel %vm614_vm2, %v4399_v25, %v4403_v23  ;;  %v4423_v41 = vor.u32 %v4421_v35, %v4419_v37  ;;  %v4477_v25 = vshrl.u32 %v8504_v7, 16  ;;  %v8508_v35 = vld [vmem:[%s8655_s25 + $0x128] sm:$0xff]  }
 0x132   : > { %7599 = vmatmul.mubr.msk.bf16.gmra.mrb[16].mxu1 %vm1121_vm1, %v8545_v34 }
 0x133   : > { %7855 = vmatmul.mubr.msk.bf16.gmra.mrb[20].mxu0 %vm1121_vm1, %v4324_v26  ;;  %7602 = vmatprep.mubr.msk.bf16.mxu1 %vm1121_vm1, %v8546_v38  ;;  %v8553_v26 = vld [vmem:[%s8655_s25 + $0x88] sm:$0xff]   ;;  %v8499_v38 = vld [vmem:[%s8655_s25 + $0xe0] sm:$0xff]  }
 0x134   : > { %7858 = vmatprep.mubr.msk.bf16.mxu0 %vm1121_vm1, %v4332_v28  ;;  %v4411_v28 = vrot.slane %v4409_v22, 1  ;;  %v4433_v45 = vshll.u32 %v8499_v38, 16  ;;  %v4437_v49 = vshrl.u32 %v8499_v38, 16  ;;  %v8562_v22 = vld [vmem:[%s8655_s25 + $0xd0] sm:$0xff]  }
 0x136   : > { %v4412_v34 = vsel %vm614_vm2, %v4407_v27, %v4411_v28  ;;  %v4415_v39 = vor.u32 %v4413_v33, %v4411_v28  ;;  %v4435_v51 = vrot.slane %v4433_v45, 1  ;;  %v4489_v28 = vshll.u32 %v8506_v21, 16 }
 0x138   : > { %v4420_v46 = vsel %vm614_vm2, %v4415_v39, %v4419_v37  ;;  %v4439_v55 = vor.u32 %v4437_v49, %v4435_v51  ;;  %v4493_v39 = vshrl.u32 %v8506_v21, 16  ;;  %v8510_v49 = vld [vmem:[%s8655_s25 + $0x138] sm:$0xff]  }
 0x13a   : > { %7603 = vmatmul.mubr.msk.bf16.gmra.mrb[20].mxu1 %vm1121_vm1, %v8547_v48 }
 0x13b   : > { %7859 = vmatmul.mubr.msk.bf16.gmra.mrb[24].mxu0 %vm1121_vm1, %v4340_v40  ;;  %7606 = vmatprep.mubr.msk.bf16.mxu1 %vm1121_vm1, %v8548_v52  ;;  %v8555_v40 = vld [vmem:[%s8655_s25 + $0x98] sm:$0xff]   ;;  %v8501_v52 = vld [vmem:[%s8655_s25 + $0xf0] sm:$0xff]  }
 0x13c   : > { %7862 = vmatprep.mubr.msk.bf16.mxu0 %vm1121_vm1, %v4348_v42  ;;  %v4427_v42 = vrot.slane %v4425_v36, 1  ;;  %v4449_v59 = vshll.u32 %v8501_v52, 16  ;;  %v4453_v63 = vshrl.u32 %v8501_v52, 16  ;;  %v8564_v36 = vld [vmem:[%s8655_s25 + $0xe0] sm:$0xff]  }
 0x13e   : > { %v4428_v48 = vsel %vm614_vm2, %v4423_v41, %v4427_v42  ;;  %v4431_v53 = vor.u32 %v4429_v47, %v4427_v42  ;;  %v4451_v1 = vrot.slane %v4449_v59, 1  ;;  %v4505_v42 = vshll.u32 %v8508_v35, 16 }
 0x140   : > { %v4436_v60 = vsel %vm614_vm2, %v4431_v53, %v4435_v51  ;;  %v4455_v5 = vor.u32 %v4453_v63, %v4451_v1  ;;  %v4509_v53 = vshrl.u32 %v8508_v35, 16  ;;  %v8512_v63 = vld [vmem:[%s8655_s25 + $0x148] sm:$0xff]  }
 0x142   : > { %7607 = vmatmul.mubr.msk.bf16.gmra.mrb[24].mxu1 %vm1121_vm1, %v8549_v62 }
 0x143   : > { %7863 = vmatmul.mubr.msk.bf16.gmra.mrb[28].mxu0 %vm1121_vm1, %v4356_v54  ;;  %7610 = vmatprep.mubr.msk.bf16.mxu1 %vm1121_vm1, %v8550_v2  ;;  %v8557_v54 = vld [vmem:[%s8655_s25 + $0xa8] sm:$0xff]   ;;  %v8503_v2 = vld [vmem:[%s8655_s25 + $0x100] sm:$0xff]  }
 0x144   : > { %7866 = vmatprep.mubr.msk.bf16.mxu0 %vm1121_vm1, %v4364_v56  ;;  %v4443_v56 = vrot.slane %v4441_v50, 1  ;;  %v4465_v9 = vshll.u32 %v8503_v2, 16  ;;  %v4469_v13 = vshrl.u32 %v8503_v2, 16  ;;  %v8566_v50 = vld [vmem:[%s8655_s25 + $0xf0] sm:$0xff]  }
 0x146   : > { %v4444_v62 = vsel %vm614_vm2, %v4439_v55, %v4443_v56  ;;  %v4447_v3 = vor.u32 %v4445_v61, %v4443_v56  ;;  %v4467_v15 = vrot.slane %v4465_v9, 1  ;;  %v4521_v56 = vshll.u32 %v8510_v49, 16 }
 0x148   : > { %v4452_v10 = vsel %vm614_vm2, %v4447_v3, %v4451_v1  ;;  %v4471_v19 = vor.u32 %v4469_v13, %v4467_v15  ;;  %v4525_v3 = vshrl.u32 %v8510_v49, 16  ;;  %v8514_v13 = vld [vmem:[%s8655_s25 + $0x158] sm:$0xff]  }
 0x14a   : > { %7611 = vmatmul.mubr.msk.bf16.gmra.mrb[28].mxu1 %vm1121_vm1, %v8551_v12 }
 0x14b   : > { %7867 = vmatmul.mubr.msk.bf16.gmra.mrb[32].mxu0 %vm1121_vm1, %v4372_v4  ;;  %7614 = vmatprep.mubr.msk.bf16.mxu1 %vm1121_vm1, %v8552_v16  ;;  %v8559_v4 = vld [vmem:[%s8655_s25 + $0xb8] sm:$0xff]   ;;  %v8505_v16 = vld [vmem:[%s8655_s25 + $0x110] sm:$0xff]  }
 0x14c   : > { %7870 = vmatprep.mubr.msk.bf16.mxu0 %vm1121_vm1, %v4380_v6  ;;  %v4459_v6 = vrot.slane %v4457_v0, 1  ;;  %v4481_v23 = vshll.u32 %v8505_v16, 16  ;;  %v4485_v27 = vshrl.u32 %v8505_v16, 16  ;;  %v8568_v0 = vld [vmem:[%s8655_s25 + $0x100] sm:$0xff]  }
 0x14e   : > { %v4460_v12 = vsel %vm614_vm2, %v4455_v5, %v4459_v6  ;;  %v4463_v17 = vor.u32 %v4461_v11, %v4459_v6  ;;  %v4483_v29 = vrot.slane %v4481_v23, 1  ;;  %v4537_v6 = vshll.u32 %v8512_v63, 16 }
 0x150   : > { %v4468_v24 = vsel %vm614_vm2, %v4463_v17, %v4467_v15  ;;  %v4487_v33 = vor.u32 %v4485_v27, %v4483_v29  ;;  %v4541_v17 = vshrl.u32 %v8512_v63, 16  ;;  %v8516_v27 = vld [vmem:[%s8655_s25 + $0x168] sm:$0xff]  }
 0x152   : > { %7615 = vmatmul.mubr.msk.bf16.gmra.mrb[32].mxu1 %vm1121_vm1, %v8553_v26 }
 0x153   : > { %7871 = vmatmul.mubr.msk.bf16.gmra.mrb[36].mxu0 %vm1121_vm1, %v4388_v18  ;;  %7618 = vmatprep.mubr.msk.bf16.mxu1 %vm1121_vm1, %v8554_v30  ;;  %v8561_v18 = vld [vmem:[%s8655_s25 + $0xc8] sm:$0xff]   ;;  %v8507_v30 = vld [vmem:[%s8655_s25 + $0x120] sm:$0xff]  }
 0x154   : > { %7874 = vmatprep.mubr.msk.bf16.mxu0 %vm1121_vm1, %v4396_v20  ;;  %v4475_v20 = vrot.slane %v4473_v14, 1  ;;  %v4497_v37 = vshll.u32 %v8507_v30, 16  ;;  %v4501_v41 = vshrl.u32 %v8507_v30, 16  ;;  %v8570_v14 = vld [vmem:[%s8655_s25 + $0x110] sm:$0xff]  }
 0x156   : > { %v4476_v26 = vsel %vm614_vm2, %v4471_v19, %v4475_v20  ;;  %v4479_v31 = vor.u32 %v4477_v25, %v4475_v20  ;;  %v4499_v43 = vrot.slane %v4497_v37, 1  ;;  %v4553_v20 = vshll.u32 %v8514_v13, 16 }
 0x158   : > { %v4484_v38 = vsel %vm614_vm2, %v4479_v31, %v4483_v29  ;;  %v4503_v47 = vor.u32 %v4501_v41, %v4499_v43  ;;  %v4557_v31 = vshrl.u32 %v8514_v13, 16  ;;  %v8518_v41 = vld [vmem:[%s8655_s25 + $0x178] sm:$0xff]  }
 0x15a   : > { %7619 = vmatmul.mubr.msk.bf16.gmra.mrb[36].mxu1 %vm1121_vm1, %v8555_v40 }
 0x15b   : > { %7875 = vmatmul.mubr.msk.bf16.gmra.mrb[40].mxu0 %vm1121_vm1, %v4404_v32  ;;  %7622 = vmatprep.mubr.msk.bf16.mxu1 %vm1121_vm1, %v8556_v44  ;;  %v8563_v32 = vld [vmem:[%s8655_s25 + $0xd8] sm:$0xff]   ;;  %v8509_v44 = vld [vmem:[%s8655_s25 + $0x130] sm:$0xff]  }
 0x15c   : > { %7878 = vmatprep.mubr.msk.bf16.mxu0 %vm1121_vm1, %v4412_v34  ;;  %v4491_v34 = vrot.slane %v4489_v28, 1  ;;  %v4513_v51 = vshll.u32 %v8509_v44, 16  ;;  %v4517_v55 = vshrl.u32 %v8509_v44, 16  ;;  %v8572_v28 = vld [vmem:[%s8655_s25 + $0x120] sm:$0xff]  }
 0x15e   : > { %v4492_v40 = vsel %vm614_vm2, %v4487_v33, %v4491_v34  ;;  %v4495_v45 = vor.u32 %v4493_v39, %v4491_v34  ;;  %v4515_v57 = vrot.slane %v4513_v51, 1  ;;  %v4569_v34 = vshll.u32 %v8516_v27, 16 }
 0x160   : > { %v4500_v52 = vsel %vm614_vm2, %v4495_v45, %v4499_v43  ;;  %v4519_v61 = vor.u32 %v4517_v55, %v4515_v57  ;;  %v4573_v45 = vshrl.u32 %v8516_v27, 16  ;;  %v8520_v55 = vld [vmem:[%s8655_s25 + $0x188] sm:$0xff]  }
 0x162   : > { %7623 = vmatmul.mubr.msk.bf16.gmra.mrb[40].mxu1 %vm1121_vm1, %v8557_v54 }
 0x163   : > { %7879 = vmatmul.mubr.msk.bf16.gmra.mrb[44].mxu0 %vm1121_vm1, %v4420_v46  ;;  %7626 = vmatprep.mubr.msk.bf16.mxu1 %vm1121_vm1, %v8558_v58  ;;  %v8565_v46 = vld [vmem:[%s8655_s25 + $0xe8] sm:$0xff]   ;;  %v8511_v58 = vld [vmem:[%s8655_s25 + $0x140] sm:$0xff]  }
 0x164   : > { %7882 = vmatprep.mubr.msk.bf16.mxu0 %vm1121_vm1, %v4428_v48  ;;  %v4507_v48 = vrot.slane %v4505_v42, 1  ;;  %v4529_v1 = vshll.u32 %v8511_v58, 16  ;;  %v4533_v5 = vshrl.u32 %v8511_v58, 16  ;;  %v8574_v42 = vld [vmem:[%s8655_s25 + $0x130] sm:$0xff]  }
 0x166   : > { %v4508_v54 = vsel %vm614_vm2, %v4503_v47, %v4507_v48  ;;  %v4511_v59 = vor.u32 %v4509_v53, %v4507_v48  ;;  %v4531_v7 = vrot.slane %v4529_v1, 1  ;;  %v4585_v48 = vshll.u32 %v8518_v41, 16 }
 0x168   : > { %v4516_v2 = vsel %vm614_vm2, %v4511_v59, %v4515_v57  ;;  %v4535_v11 = vor.u32 %v4533_v5, %v4531_v7  ;;  %v4589_v59 = vshrl.u32 %v8518_v41, 16  ;;  %v8522_v5 = vld [vmem:[%s8655_s25 + $0x198] sm:$0xff]  }
 0x16a   : > { %7627 = vmatmul.mubr.msk.bf16.gmra.mrb[44].mxu1 %vm1121_vm1, %v8559_v4 }
 0x16b   : > { %7883 = vmatmul.mubr.msk.bf16.gmra.mrb[48].mxu0 %vm1121_vm1, %v4436_v60  ;;  %7630 = vmatprep.mubr.msk.bf16.mxu1 %vm1121_vm1, %v8560_v8  ;;  %v8567_v60 = vld [vmem:[%s8655_s25 + $0xf8] sm:$0xff]   ;;  %v8513_v8 = vld [vmem:[%s8655_s25 + $0x150] sm:$0xff]  }
 0x16c   : > { %7886 = vmatprep.mubr.msk.bf16.mxu0 %vm1121_vm1, %v4444_v62  ;;  %v4523_v62 = vrot.slane %v4521_v56, 1  ;;  %v4545_v15 = vshll.u32 %v8513_v8, 16  ;;  %v4549_v19 = vshrl.u32 %v8513_v8, 16  ;;  %v8576_v56 = vld [vmem:[%s8655_s25 + $0x140] sm:$0xff]  }
 0x16e   : > { %v4524_v4 = vsel %vm614_vm2, %v4519_v61, %v4523_v62  ;;  %v4527_v9 = vor.u32 %v4525_v3, %v4523_v62  ;;  %v4547_v21 = vrot.slane %v4545_v15, 1  ;;  %v4601_v62 = vshll.u32 %v8520_v55, 16 }
 0x170   : > { %v4532_v16 = vsel %vm614_vm2, %v4527_v9, %v4531_v7  ;;  %v4551_v25 = vor.u32 %v4549_v19, %v4547_v21  ;;  %v4605_v9 = vshrl.u32 %v8520_v55, 16  ;;  %v8524_v19 = vld [vmem:[%s8655_s25 + $0x1a8] sm:$0xff]  }
 0x172   : > { %7631 = vmatmul.mubr.msk.bf16.gmra.mrb[48].mxu1 %vm1121_vm1, %v8561_v18 }
 0x173   : > { %7887 = vmatmul.mubr.msk.bf16.gmra.mrb[52].mxu0 %vm1121_vm1, %v4452_v10  ;;  %7634 = vmatprep.mubr.msk.bf16.mxu1 %vm1121_vm1, %v8562_v22  ;;  %v8569_v10 = vld [vmem:[%s8655_s25 + $0x108] sm:$0xff]   ;;  %v8515_v22 = vld [vmem:[%s8655_s25 + $0x160] sm:$0xff]  }
 0x174   : > { %7890 = vmatprep.mubr.msk.bf16.mxu0 %vm1121_vm1, %v4460_v12  ;;  %v4539_v12 = vrot.slane %v4537_v6, 1  ;;  %v4561_v29 = vshll.u32 %v8515_v22, 16  ;;  %v4565_v33 = vshrl.u32 %v8515_v22, 16  ;;  %v8578_v6 = vld [vmem:[%s8655_s25 + $0x150] sm:$0xff]  }
 0x176   : > { %v4540_v18 = vsel %vm614_vm2, %v4535_v11, %v4539_v12  ;;  %v4543_v23 = vor.u32 %v4541_v17, %v4539_v12  ;;  %v4563_v35 = vrot.slane %v4561_v29, 1  ;;  %v4617_v12 = vshll.u32 %v8522_v5, 16 }
 0x178   : > { %v4548_v30 = vsel %vm614_vm2, %v4543_v23, %v4547_v21  ;;  %v4567_v39 = vor.u32 %v4565_v33, %v4563_v35  ;;  %v4621_v23 = vshrl.u32 %v8522_v5, 16  ;;  %v8526_v33 = vld [vmem:[%s8655_s25 + $0x1b8] sm:$0xff]  }
 0x17a   : > { %7635 = vmatmul.mubr.msk.bf16.gmra.mrb[52].mxu1 %vm1121_vm1, %v8563_v32 }
 0x17b   : > { %7891 = vmatmul.mubr.msk.bf16.gmra.mrb[56].mxu0 %vm1121_vm1, %v4468_v24  ;;  %7638 = vmatprep.mubr.msk.bf16.mxu1 %vm1121_vm1, %v8564_v36  ;;  %v8571_v24 = vld [vmem:[%s8655_s25 + $0x118] sm:$0xff]   ;;  %v8517_v36 = vld [vmem:[%s8655_s25 + $0x170] sm:$0xff]  }
 0x17c   : > { %7894 = vmatprep.mubr.msk.bf16.mxu0 %vm1121_vm1, %v4476_v26  ;;  %v4555_v26 = vrot.slane %v4553_v20, 1  ;;  %v4577_v43 = vshll.u32 %v8517_v36, 16  ;;  %v4581_v47 = vshrl.u32 %v8517_v36, 16  ;;  %v8580_v20 = vld [vmem:[%s8655_s25 + $0x160] sm:$0xff]  }
 0x17e   : > { %v4556_v32 = vsel %vm614_vm2, %v4551_v25, %v4555_v26  ;;  %v4559_v37 = vor.u32 %v4557_v31, %v4555_v26  ;;  %v4579_v49 = vrot.slane %v4577_v43, 1  ;;  %v4633_v26 = vshll.u32 %v8524_v19, 16 }
 0x180   : > { %v4564_v44 = vsel %vm614_vm2, %v4559_v37, %v4563_v35  ;;  %v4583_v53 = vor.u32 %v4581_v47, %v4579_v49  ;;  %v4637_v37 = vshrl.u32 %v8524_v19, 16  ;;  %v8528_v47 = vld [vmem:[%s8655_s25 + $0x1c8] sm:$0xff]  }
 0x182   : > { %7639 = vmatmul.mubr.msk.bf16.gmra.mrb[56].mxu1 %vm1121_vm1, %v8565_v46 }
 0x183   : > { %7895 = vmatmul.mubr.msk.bf16.gmra.mrb[60].mxu0 %vm1121_vm1, %v4484_v38  ;;  %7642 = vmatprep.mubr.msk.bf16.mxu1 %vm1121_vm1, %v8566_v50  ;;  %v8573_v38 = vld [vmem:[%s8655_s25 + $0x128] sm:$0xff]   ;;  %v8519_v50 = vld [vmem:[%s8655_s25 + $0x180] sm:$0xff]  }
 0x184   : > { %7898 = vmatprep.mubr.msk.bf16.mxu0 %vm1121_vm1, %v4492_v40  ;;  %v4571_v40 = vrot.slane %v4569_v34, 1  ;;  %v4593_v57 = vshll.u32 %v8519_v50, 16  ;;  %v4597_v61 = vshrl.u32 %v8519_v50, 16  ;;  %v8582_v34 = vld [vmem:[%s8655_s25 + $0x170] sm:$0xff]  }
 0x186   : > { %v4572_v46 = vsel %vm614_vm2, %v4567_v39, %v4571_v40  ;;  %v4575_v51 = vor.u32 %v4573_v45, %v4571_v40  ;;  %v4595_v63 = vrot.slane %v4593_v57, 1  ;;  %v4649_v40 = vshll.u32 %v8526_v33, 16 }
 0x188   : > { %v4580_v58 = vsel %vm614_vm2, %v4575_v51, %v4579_v49  ;;  %v4599_v3 = vor.u32 %v4597_v61, %v4595_v63  ;;  %v4653_v51 = vshrl.u32 %v8526_v33, 16  ;;  %v8530_v61 = vld [vmem:[%s8655_s25 + $0x1d8] sm:$0xff]  }
 0x18a   : > { %7643 = vmatmul.mubr.msk.bf16.gmra.mrb[60].mxu1 %vm1121_vm1, %v8567_v60 }
 0x18b   : > { %7899 = vmatmul.mubr.msk.bf16.gmra.mrb[64].mxu0 %vm1121_vm1, %v4500_v52  ;;  %7646 = vmatprep.mubr.msk.bf16.mxu1 %vm1121_vm1, %v8568_v0  ;;  %v8575_v52 = vld [vmem:[%s8655_s25 + $0x138] sm:$0xff]   ;;  %v8521_v0 = vld [vmem:[%s8655_s25 + $0x190] sm:$0xff]  }
 0x18c   : > { %7902 = vmatprep.mubr.msk.bf16.mxu0 %vm1121_vm1, %v4508_v54  ;;  %v4587_v54 = vrot.slane %v4585_v48, 1  ;;  %v4609_v7 = vshll.u32 %v8521_v0, 16  ;;  %v4613_v11 = vshrl.u32 %v8521_v0, 16  ;;  %v8584_v48 = vld [vmem:[%s8655_s25 + $0x180] sm:$0xff]  }
 0x18e   : > { %v4588_v60 = vsel %vm614_vm2, %v4583_v53, %v4587_v54  ;;  %v4591_v1 = vor.u32 %v4589_v59, %v4587_v54  ;;  %v4611_v13 = vrot.slane %v4609_v7, 1  ;;  %v4665_v54 = vshll.u32 %v8528_v47, 16 }
 0x190   : > { %v4596_v8 = vsel %vm614_vm2, %v4591_v1, %v4595_v63  ;;  %v4615_v17 = vor.u32 %v4613_v11, %v4611_v13  ;;  %v4669_v1 = vshrl.u32 %v8528_v47, 16  ;;  %v8532_v11 = vld [vmem:[%s8655_s25 + $0x1e8] sm:$0xff]  }
 0x191   : > { %v4701_v33 = vshrl.u32 %v8532_v11, 16 }
 0x192   : > { %7647 = vmatmul.mubr.msk.bf16.gmra.mrb[64].mxu1 %vm1121_vm1, %v8569_v10 }
 0x193   : > { %7903 = vmatmul.mubr.msk.bf16.gmra.mrb[68].mxu0 %vm1121_vm1, %v4516_v2  ;;  %7650 = vmatprep.mubr.msk.bf16.mxu1 %vm1121_vm1, %v8570_v14  ;;  %v8577_v2 = vld [vmem:[%s8655_s25 + $0x148] sm:$0xff]   ;;  %v8523_v14 = vld [vmem:[%s8655_s25 + $0x1a0] sm:$0xff]  }
 0x194   : > { %7906 = vmatprep.mubr.msk.bf16.mxu0 %vm1121_vm1, %v4524_v4  ;;  %v4603_v4 = vrot.slane %v4601_v62, 1  ;;  %v4625_v21 = vshll.u32 %v8523_v14, 16  ;;  %v4629_v25 = vshrl.u32 %v8523_v14, 16  ;;  %v8586_v62 = vld [vmem:[%s8655_s25 + $0x190] sm:$0xff]  }
 0x196   : > { %v4604_v10 = vsel %vm614_vm2, %v4599_v3, %v4603_v4  ;;  %v4607_v15 = vor.u32 %v4605_v9, %v4603_v4  ;;  %v4627_v27 = vrot.slane %v4625_v21, 1  ;;  %v4681_v4 = vshll.u32 %v8530_v61, 16 }
 0x198   : > { %v4612_v22 = vsel %vm614_vm2, %v4607_v15, %v4611_v13  ;;  %v4631_v31 = vor.u32 %v4629_v25, %v4627_v27  ;;  %v8588_v13 = vld [vmem:[%s8655_s25 + $0x1a0] sm:$0xff]  }
 0x19a   : > { %7651 = vmatmul.mubr.msk.bf16.gmra.mrb[68].mxu1 %vm1121_vm1, %v8571_v24 }
 0x19b   : > { %7907 = vmatmul.mubr.msk.bf16.gmra.mrb[72].mxu0 %vm1121_vm1, %v4532_v16  ;;  %7654 = vmatprep.mubr.msk.bf16.mxu1 %vm1121_vm1, %v8572_v28  ;;  %v8579_v16 = vld [vmem:[%s8655_s25 + $0x158] sm:$0xff]   ;;  %v8525_v28 = vld [vmem:[%s8655_s25 + $0x1b0] sm:$0xff]  }
 0x19c   : > { %7910 = vmatprep.mubr.msk.bf16.mxu0 %vm1121_vm1, %v4540_v18  ;;  %v4619_v18 = vrot.slane %v4617_v12, 1  ;;  %v4641_v35 = vshll.u32 %v8525_v28, 16  ;;  %v4645_v39 = vshrl.u32 %v8525_v28, 16 }
 0x19e   : > { %v4620_v24 = vsel %vm614_vm2, %v4615_v17, %v4619_v18  ;;  %v4623_v29 = vor.u32 %v4621_v23, %v4619_v18  ;;  %v4643_v41 = vrot.slane %v4641_v35, 1  ;;  %v4685_v18 = vshrl.u32 %v8530_v61, 16 }
 0x1a0   : > { %v4628_v36 = vsel %vm614_vm2, %v4623_v29, %v4627_v27  ;;  %v4647_v45 = vor.u32 %v4645_v39, %v4643_v41  ;;  %v9258_v29 = vld [vmem:[%s8655_s25 + $0x1f8] sm:$0xff]  }
 0x1a2   : > { %7655 = vmatmul.mubr.msk.bf16.gmra.mrb[72].mxu1 %vm1121_vm1, %v8573_v38 }
 0x1a3   : > { %7911 = vmatmul.mubr.msk.bf16.gmra.mrb[76].mxu0 %vm1121_vm1, %v4548_v30  ;;  %7658 = vmatprep.mubr.msk.bf16.mxu1 %vm1121_vm1, %v8574_v42  ;;  %v8581_v30 = vld [vmem:[%s8655_s25 + $0x168] sm:$0xff]   ;;  %v8527_v42 = vld [vmem:[%s8655_s25 + $0x1c0] sm:$0xff]  }
 0x1a4   : > { %7914 = vmatprep.mubr.msk.bf16.mxu0 %vm1121_vm1, %v4556_v32  ;;  %v4635_v32 = vrot.slane %v4633_v26, 1  ;;  %v4657_v49 = vshll.u32 %v8527_v42, 16  ;;  %v4661_v53 = vshrl.u32 %v8527_v42, 16  ;;  %v8589_v26 = vld [vmem:[%s8655_s25 + $0x1a8] sm:$0xff]  }
 0x1a6   : > { %v4636_v38 = vsel %vm614_vm2, %v4631_v31, %v4635_v32  ;;  %v4639_v43 = vor.u32 %v4637_v37, %v4635_v32  ;;  %v4659_v55 = vrot.slane %v4657_v49, 1  ;;  %v8590_v31 = vld [vmem:[%s8655_s25 + $0x1b0] sm:$0xff]  }
 0x1a8   : > { %v4644_v50 = vsel %vm614_vm2, %v4639_v43, %v4643_v41  ;;  %v4663_v59 = vor.u32 %v4661_v53, %v4659_v55 }
 0x1aa   : > { %7659 = vmatmul.mubr.msk.bf16.gmra.mrb[76].mxu1 %vm1121_vm1, %v8575_v52 }
 0x1ab   : > { %7915 = vmatmul.mubr.msk.bf16.gmra.mrb[80].mxu0 %vm1121_vm1, %v4564_v44  ;;  %7662 = vmatprep.mubr.msk.bf16.mxu1 %vm1121_vm1, %v8576_v56  ;;  %v8583_v44 = vld [vmem:[%s8655_s25 + $0x178] sm:$0xff]   ;;  %v8529_v56 = vld [vmem:[%s8655_s25 + $0x1d0] sm:$0xff]  }
 0x1ac   : > { %7918 = vmatprep.mubr.msk.bf16.mxu0 %vm1121_vm1, %v4572_v46  ;;  %v4651_v46 = vrot.slane %v4649_v40, 1  ;;  %v4673_v63 = vshll.u32 %v8529_v56, 16  ;;  %v4677_v3 = vshrl.u32 %v8529_v56, 16 }
 0x1ae   : > { %v4652_v52 = vsel %vm614_vm2, %v4647_v45, %v4651_v46  ;;  %v4655_v57 = vor.u32 %v4653_v51, %v4651_v46  ;;  %v4675_v5 = vrot.slane %v4673_v63, 1  ;;  %v8592_v63 = vld [vmem:[%s8655_s25 + $0x1c0] sm:$0xff]  }
 0x1b0   : > { %v4660_v0 = vsel %vm614_vm2, %v4655_v57, %v4659_v55  ;;  %v4679_v9 = vor.u32 %v4677_v3, %v4675_v5  ;;  %v8591_v57 = vld [vmem:[%s8655_s25 + $0x1b8] sm:$0xff]  }
 0x1b2   : > { %7663 = vmatmul.mubr.msk.bf16.gmra.mrb[80].mxu1 %vm1121_vm1, %v8577_v2 }
 0x1b3   : > { %7919 = vmatmul.mubr.msk.bf16.gmra.mrb[84].mxu0 %vm1121_vm1, %v4580_v58  ;;  %7666 = vmatprep.mubr.msk.bf16.mxu1 %vm1121_vm1, %v8578_v6  ;;  %v8585_v58 = vld [vmem:[%s8655_s25 + $0x188] sm:$0xff]   ;;  %v8531_v6 = vld [vmem:[%s8655_s25 + $0x1e0] sm:$0xff]  }
 0x1b4   : > { %7922 = vmatprep.mubr.msk.bf16.mxu0 %vm1121_vm1, %v4588_v60  ;;  %v4667_v60 = vrot.slane %v4665_v54, 1  ;;  %v4689_v15 = vshll.u32 %v8531_v6, 16  ;;  %v4693_v21 = vshrl.u32 %v8531_v6, 16  ;;  %v8535_v54 = vld [vmem:[%s8655_s25 + $0x200] ss:$0 sps:$4 sm:$0x11]  }
 0x1b6   : > { %v4668_v2 = vsel %vm614_vm2, %v4663_v59, %v4667_v60  ;;  %v4671_v7 = vor.u32 %v4669_v1, %v4667_v60  ;;  %v4691_v23 = vrot.slane %v4689_v15, 1 }
 0x1b8   : > { %v4676_v17 = vsel %vm614_vm2, %v4671_v7, %v4675_v5  ;;  %v4695_v27 = vor.u32 %v4693_v21, %v4691_v23 }
 0x1ba   : > { %7667 = vmatmul.mubr.msk.bf16.gmra.mrb[84].mxu1 %vm1121_vm1, %v8579_v16 }
 0x1bb   : > { %7923 = vmatmul.mubr.msk.bf16.gmra.mrb[88].mxu0 %vm1121_vm1, %v4596_v8  ;;  %7670 = vmatprep.mubr.msk.bf16.mxu1 %vm1121_vm1, %v8580_v20  ;;  %v8587_v8 = vld [vmem:[%s8655_s25 + $0x198] sm:$0xff]  }
 0x1bc   : > { %7926 = vmatprep.mubr.msk.bf16.mxu0 %vm1121_vm1, %v4604_v10  ;;  %v4683_v10 = vrot.slane %v4681_v4, 1 }
 0x1be   : > { %v4684_v20 = vsel %vm614_vm2, %v4679_v9, %v4683_v10  ;;  %v4687_v25 = vor.u32 %v4685_v18, %v4683_v10  ;;  %v4721_v9 = vshll.u32 %v8535_v54, 16 }
 0x1c2   : > { %7671 = vmatmul.mubr.msk.bf16.gmra.mrb[88].mxu1 %vm1121_vm1, %v8581_v30 }
 0x1c3   : > { %7927 = vmatmul.mubr.msk.bf16.gmra.mrb[92].mxu0 %vm1121_vm1, %v4612_v22  ;;  %7674 = vmatprep.mubr.msk.bf16.mxu1 %vm1121_vm1, %v8582_v34  ;;  %v4697_v22 = vshll.u32 %v8532_v11, 16 }
 0x1c4   : > { %7930 = vmatprep.mubr.msk.bf16.mxu0 %vm1121_vm1, %v4620_v24  ;;  %v8533_v24 = vld [vmem:[%s8655_s25 + $0x1f0] sm:$0xff]  }
 0x1c5   : > { %v4699_v28 = vrot.slane %v4697_v22, 1  ;;  %v4705_v34 = vshll.u32 %v8533_v24, 16  ;;  %v4709_v43 = vshrl.u32 %v8533_v24, 16  ;;  %v4723_v24 = vrot.slane %v4721_v9, 1 }
 0x1c7   : > { %v4700_v42 = vsel %vm614_vm2, %v4695_v27, %v4699_v28  ;;  %v4707_v51 = vrot.slane %v4705_v34, 1  ;;  %v8593_v27 = vld [vmem:[%s8655_s25 + $0x1c8] sm:$0xff]  }
 0x1ca   : > { %7675 = vmatmul.mubr.msk.bf16.gmra.mrb[92].mxu1 %vm1121_vm1, %v8583_v44  ;;  %v4713_v44 = vshll.u32 %v9258_v29, 16 }
 0x1cb   : > { %7931 = vmatmul.mubr.msk.bf16.gmra.mrb[96].mxu0 %vm1121_vm1, %v4628_v36  ;;  %7678 = vmatprep.mubr.msk.bf16.mxu1 %vm1121_vm1, %v8584_v48  ;;  %v9265_v36 = vld [vmem:[%s9682_s2] ss:$0 sm:$0xff] }
 0x1cc   : > { %7934 = vmatprep.mubr.msk.bf16.mxu0 %vm1121_vm1, %v4636_v38  ;;  %v4692_v38 = vsel %vm614_vm2, %v4687_v25, %v4691_v23  ;;  %v4715_v59 = vrot.slane %v4713_v44, 1 }
 0x1d2   : > { %7679 = vmatmul.mubr.msk.bf16.gmra.mrb[96].mxu1 %vm1121_vm1, %v8585_v58  ;;  %v4711_v58 = vor.u32 %v4709_v43, %v4707_v51 }
 0x1d3   : > { %7935 = vmatmul.mubr.msk.bf16.gmra.mrb[100].mxu0 %vm1121_vm1, %v4644_v50  ;;  %7682 = vmatprep.mubr.msk.bf16.mxu1 %vm1121_vm1, %v8586_v62  ;;  %v4703_v50 = vor.u32 %v4701_v33, %v4699_v28 }
 0x1d4   : > { %7938 = vmatprep.mubr.msk.bf16.mxu0 %vm1121_vm1, %v4652_v52 }
 0x1d5   : > { %v4708_v3 = vsel %vm614_vm2, %v4703_v50, %v4707_v51 }
 0x1da   : > { %7683 = vmatmul.mubr.msk.bf16.gmra.mrb[100].mxu1 %vm1121_vm1, %v8587_v8  ;;  %v4717_v8 = vshrl.u32 %v9258_v29, 16 }
 0x1db   : > { %7939 = vmatmul.mubr.msk.bf16.gmra.mrb[104].mxu0 %vm1121_vm1, %v4660_v0  ;;  %7686 = vmatprep.mubr.msk.bf16.mxu1 %vm1121_vm1, %v8588_v13 }
 0x1dc   : > { %7942 = vmatprep.mubr.msk.bf16.mxu0 %vm1121_vm1, %v4668_v2  ;;  %v4719_v23 = vor.u32 %v4717_v8, %v4715_v59 }
 0x1de   : > { %v7836_v12 = vpop.f32.mrb[0].mxu0 }
 0x1df   : > { %v4954_v14 = vpop.f32.mrb[1].mxu0 }
 0x1e0   : > { %v7837_v16 = vpop.f32.mrb[2].mxu0 }
 0x1e1   : > { %v4957_v19 = vpop.f32.mrb[3].mxu0 }
 0x1e2   : > { %7687 = vmatmul.mubr.msk.bf16.gmra.mrb[104].mxu1 %vm1121_vm1, %v8589_v26 }
 0x1e3   : > { %7943 = vmatmul.mubr.msk.bf16.gmra.mrb[108].mxu0 %vm1121_vm1, %v4676_v17  ;;  %7690 = vmatprep.mubr.msk.bf16.mxu1 %vm1121_vm1, %v8590_v31  ;;  %v8594_v31 = vld [vmem:[%s8655_s25 + $0x1d0] sm:$0xff]  }
 0x1e4   : > { %7946 = vmatprep.mubr.msk.bf16.mxu0 %vm1121_vm1, %v4684_v20 }
 0x1e5   : > { %v7584_v35 = vpop.f32.mrb[0].mxu1 }
 0x1e6   : > { %v7840_v30 = vpop.f32.mrb[4].mxu0  ;;  %v7958_v39 = vadd.f32 %v7836_v12, %v7584_v35  ;;  %v2007_v40 = vpop.f32.mrb[1].mxu1 }
 0x1e7   : > { %v4970_v32 = vpop.f32.mrb[5].mxu0  ;;  %v7959_v45 = vadd.f32 %v4954_v14, %v2007_v40  ;;  %v7585_v46 = vpop.f32.mrb[2].mxu1  ;;  %v4716_v14 = vsel %vm614_vm2, %v4711_v58, %v4715_v59  ;;  %v4724_v40 = vsel %vm614_vm2, %v4719_v23, %v4723_v24  ;;  %v8596_v59 = vld [vmem:[%s8655_s25 + $0x1e0] sm:$0xff]  }
 0x1e8   : > { %v7841_v37 = vpop.f32.mrb[6].mxu0  ;;  %v5582_v47 = vadd.f32 %v7958_v39, %v9265_v36  ;;  %v7960_v48 = vadd.f32 %v7837_v16, %v7585_v46  ;;  %v2010_v49 = vpop.f32.mrb[3].mxu1 }
 0x1e9   : > { %v4973_v41 = vpop.f32.mrb[7].mxu0  ;;  %v5580_v52 = vadd.f32 %v7959_v45, %v9265_v36  ;;  %v7961_v53 = vadd.f32 %v4957_v19, %v2010_v49 }
 0x1ea   : > { %v5706_v55 = vmax.f32 %v5582_v47, 0.0  ;;  %v5583_v56 = vadd.f32 %v7960_v48, %v9265_v36  ;;  %7691 = vmatmul.mubr.msk.bf16.gmra.mrb[108].mxu1 %vm1121_vm1, %v8591_v57 }
 0x1eb   : > { %7947 = vmatmul.mubr.msk.bf16.gmra.mrb[112].mxu0 %vm1121_vm1, %v4692_v38  ;;  %v5704_v60 = vmax.f32 %v5580_v52, 0.0  ;;  %v5581_v61 = vadd.f32 %v7961_v53, %v9265_v36  ;;  %7694 = vmatprep.mubr.msk.bf16.mxu1 %vm1121_vm1, %v8592_v63 }
 0x1ec   : > { %7950 = vmatprep.mubr.msk.bf16.mxu0 %vm1121_vm1, %v4700_v42  ;;  %v7080_v0 = vpack.c.bf16 %v5706_v55, %v5706_v55  ;;  %v5707_v1 = vmax.f32 %v5583_v56, 0.0  ;;  %v8595_v55 = vld [vmem:[%s8655_s25 + $0x1d8] sm:$0xff]  }
 0x1ed   : > { %v7078_v4 = vpack.c.bf16 %v5704_v60, %v5704_v60  ;;  %v5705_v5 = vmax.f32 %v5581_v61, 0.0  ;;  %v7588_v6 = vpop.f32.mrb[4].mxu1 }
 0x1ee   : > { %v7844_v62 = vpop.f32.mrb[8].mxu0  ;;  %6327 = vst.msk [vmem:[%s9282_s4 + $0x8] sm:$0xf] %vm6324_vm3, %v7080_v0  ;;  %v7081_v10 = vpack.c.bf16 %v5707_v1, %v5707_v1  ;;  %v7962_v11 = vadd.f32 %v7840_v30, %v7588_v6  ;;  %v2023_v12 = vpop.f32.mrb[5].mxu1 }
 0x1ef   : > { %v4986_v2 = vpop.f32.mrb[9].mxu0  ;;  %6325 = vst.msk [vmem:[%s9282_s4] sm:$0xf] %vm6324_vm3, %v7078_v4  ;;  %v7079_v15 = vpack.c.bf16 %v5705_v5, %v5705_v5  ;;  %v7963_v16 = vadd.f32 %v4970_v32, %v2023_v12  ;;  %v7589_v17 = vpop.f32.mrb[6].mxu1 }
 0x1f0   : > { %v7845_v7 = vpop.f32.mrb[10].mxu0  ;;  %6328 = vst.msk [vmem:[%s9282_s4 + $0xc] sm:$0xf] %vm6324_vm3, %v7081_v10  ;;  %v5586_v18 = vadd.f32 %v7962_v11, %v9265_v36  ;;  %v7964_v19 = vadd.f32 %v7841_v37, %v7589_v17  ;;  %v2026_v20 = vpop.f32.mrb[7].mxu1  ;;  %v8597_v17 = vld [vmem:[%s8655_s25 + $0x1e8] sm:$0xff]  }
 0x1f1   : > { %v4989_v13 = vpop.f32.mrb[11].mxu0  ;;  %6326 = vst.msk [vmem:[%s9282_s4 + $0x4] sm:$0xf] %vm6324_vm3, %v7079_v15  ;;  %v5584_v21 = vadd.f32 %v7963_v16, %v9265_v36  ;;  %v7965_v22 = vadd.f32 %v4973_v41, %v2026_v20 }
 0x1f2   : > { %v5710_v25 = vmax.f32 %v5586_v18, 0.0  ;;  %v5587_v26 = vadd.f32 %v7964_v19, %v9265_v36  ;;  %7695 = vmatmul.mubr.msk.bf16.gmra.mrb[112].mxu1 %vm1121_vm1, %v8593_v27 }
 0x1f3   : > { %7951 = vmatmul.mubr.msk.bf16.gmra.mrb[116].mxu0 %vm1121_vm1, %v4708_v3  ;;  %v5708_v28 = vmax.f32 %v5584_v21, 0.0  ;;  %v5585_v29 = vadd.f32 %v7965_v22, %v9265_v36  ;;  %7698 = vmatprep.mubr.msk.bf16.mxu1 %vm1121_vm1, %v8594_v31 }
 0x1f4   : > { %7954 = vmatprep.mubr.msk.bf16.mxu0 %vm1121_vm1, %v4716_v14  ;;  %v7084_v32 = vpack.c.bf16 %v5710_v25, %v5710_v25  ;;  %v5711_v33 = vmax.f32 %v5587_v26, 0.0 }
 0x1f5   : > { %v7082_v35 = vpack.c.bf16 %v5708_v28, %v5708_v28  ;;  %v5709_v37 = vmax.f32 %v5585_v29, 0.0  ;;  %v7592_v38 = vpop.f32.mrb[8].mxu1 }
 0x1f6   : > { %v7848_v30 = vpop.f32.mrb[12].mxu0  ;;  %6331 = vst.msk [vmem:[%s9282_s4 + $0x18] sm:$0xf] %vm6324_vm3, %v7084_v32  ;;  %v7085_v41 = vpack.c.bf16 %v5711_v33, %v5711_v33  ;;  %v7966_v42 = vadd.f32 %v7844_v62, %v7592_v38  ;;  %v2039_v43 = vpop.f32.mrb[9].mxu1 }
 0x1f7   : > { %v5002_v34 = vpop.f32.mrb[13].mxu0  ;;  %6329 = vst.msk [vmem:[%s9282_s4 + $0x10] sm:$0xf] %vm6324_vm3, %v7082_v35  ;;  %v7083_v45 = vpack.c.bf16 %v5709_v37, %v5709_v37  ;;  %v7967_v46 = vadd.f32 %v4986_v2, %v2039_v43  ;;  %v7593_v47 = vpop.f32.mrb[10].mxu1 }
 0x1f8   : > { %v7849_v39 = vpop.f32.mrb[14].mxu0  ;;  %6332 = vst.msk [vmem:[%s9282_s4 + $0x1c] sm:$0xf] %vm6324_vm3, %v7085_v41  ;;  %v5590_v48 = vadd.f32 %v7966_v42, %v9265_v36  ;;  %v7968_v49 = vadd.f32 %v7845_v7, %v7593_v47  ;;  %v2042_v50 = vpop.f32.mrb[11].mxu1 }
 0x1f9   : > { %v5005_v44 = vpop.f32.mrb[15].mxu0  ;;  %6330 = vst.msk [vmem:[%s9282_s4 + $0x14] sm:$0xf] %vm6324_vm3, %v7083_v45  ;;  %v5588_v51 = vadd.f32 %v7967_v46, %v9265_v36  ;;  %v7969_v52 = vadd.f32 %v4989_v13, %v2042_v50 }
 0x1fa   : > { %v5714_v53 = vmax.f32 %v5590_v48, 0.0  ;;  %v5591_v54 = vadd.f32 %v7968_v49, %v9265_v36  ;;  %7699 = vmatmul.mubr.msk.bf16.gmra.mrb[116].mxu1 %vm1121_vm1, %v8595_v55 }
 0x1fb   : > { %7955 = vmatmul.mubr.msk.bf16.gmra.mrb[120].mxu0 %vm1121_vm1, %v4724_v40  ;;  %v5712_v56 = vmax.f32 %v5588_v51, 0.0  ;;  %v5589_v57 = vadd.f32 %v7969_v52, %v9265_v36  ;;  %7702 = vmatprep.mubr.msk.bf16.mxu1 %vm1121_vm1, %v8596_v59 }
 0x1fc   : > { %v7088_v60 = vpack.c.bf16 %v5714_v53, %v5714_v53  ;;  %v5715_v61 = vmax.f32 %v5591_v54, 0.0 }
 0x1fd   : > { %v7086_v63 = vpack.c.bf16 %v5712_v56, %v5712_v56  ;;  %v5713_v0 = vmax.f32 %v5589_v57, 0.0  ;;  %v7596_v1 = vpop.f32.mrb[12].mxu1 }
 0x1fe   : > { %v7852_v58 = vpop.f32.mrb[16].mxu0  ;;  %6335 = vst.msk [vmem:[%s9282_s4 + $0x28] sm:$0xf] %vm6324_vm3, %v7088_v60  ;;  %v7089_v3 = vpack.c.bf16 %v5715_v61, %v5715_v61  ;;  %v7970_v4 = vadd.f32 %v7848_v30, %v7596_v1  ;;  %v2055_v5 = vpop.f32.mrb[13].mxu1 }
 0x1ff   : > { %v5018_v62 = vpop.f32.mrb[17].mxu0  ;;  %6333 = vst.msk [vmem:[%s9282_s4 + $0x20] sm:$0xf] %vm6324_vm3, %v7086_v63  ;;  %v7087_v7 = vpack.c.bf16 %v5713_v0, %v5713_v0  ;;  %v7971_v8 = vadd.f32 %v5002_v34, %v2055_v5  ;;  %v7597_v9 = vpop.f32.mrb[14].mxu1 }
 0x200   : > { %v7853_v2 = vpop.f32.mrb[18].mxu0  ;;  %6336 = vst.msk [vmem:[%s9282_s4 + $0x2c] sm:$0xf] %vm6324_vm3, %v7089_v3  ;;  %v5594_v10 = vadd.f32 %v7970_v4, %v9265_v36  ;;  %v7972_v11 = vadd.f32 %v7849_v39, %v7597_v9  ;;  %v2058_v12 = vpop.f32.mrb[15].mxu1 }
 0x201   : > { %v5021_v6 = vpop.f32.mrb[19].mxu0  ;;  %6334 = vst.msk [vmem:[%s9282_s4 + $0x24] sm:$0xf] %vm6324_vm3, %v7087_v7  ;;  %v5592_v13 = vadd.f32 %v7971_v8, %v9265_v36  ;;  %v7973_v14 = vadd.f32 %v5005_v44, %v2058_v12 }
 0x202   : > { %v5718_v15 = vmax.f32 %v5594_v10, 0.0  ;;  %v5595_v16 = vadd.f32 %v7972_v11, %v9265_v36  ;;  %7703 = vmatmul.mubr.msk.bf16.gmra.mrb[120].mxu1 %vm1121_vm1, %v8597_v17 }
 0x203   : > { %v5716_v18 = vmax.f32 %v5592_v13, 0.0  ;;  %v5593_v19 = vadd.f32 %v7973_v14, %v9265_v36 }
 0x204   : > { %v7092_v21 = vpack.c.bf16 %v5718_v15, %v5718_v15  ;;  %v5719_v22 = vmax.f32 %v5595_v16, 0.0 }
 0x205   : > { %v7090_v24 = vpack.c.bf16 %v5716_v18, %v5716_v18  ;;  %v5717_v25 = vmax.f32 %v5593_v19, 0.0  ;;  %v7600_v26 = vpop.f32.mrb[16].mxu1 }
 0x206   : > { %v7856_v20 = vpop.f32.mrb[20].mxu0  ;;  %6339 = vst.msk [vmem:[%s9282_s4 + $0x38] sm:$0xf] %vm6324_vm3, %v7092_v21  ;;  %v7093_v28 = vpack.c.bf16 %v5719_v22, %v5719_v22  ;;  %v7974_v29 = vadd.f32 %v7852_v58, %v7600_v26  ;;  %v2071_v30 = vpop.f32.mrb[17].mxu1 }
 0x207   : > { %v5034_v23 = vpop.f32.mrb[21].mxu0  ;;  %6337 = vst.msk [vmem:[%s9282_s4 + $0x30] sm:$0xf] %vm6324_vm3, %v7090_v24  ;;  %v7091_v32 = vpack.c.bf16 %v5717_v25, %v5717_v25  ;;  %v7975_v33 = vadd.f32 %v5018_v62, %v2071_v30  ;;  %v7601_v34 = vpop.f32.mrb[18].mxu1 }
 0x208   : > { %v7857_v27 = vpop.f32.mrb[22].mxu0  ;;  %6340 = vst.msk [vmem:[%s9282_s4 + $0x3c] sm:$0xf] %vm6324_vm3, %v7093_v28  ;;  %v5598_v35 = vadd.f32 %v7974_v29, %v9265_v36  ;;  %v7976_v37 = vadd.f32 %v7853_v2, %v7601_v34  ;;  %v2074_v38 = vpop.f32.mrb[19].mxu1 }
 0x209   : > { %v5037_v31 = vpop.f32.mrb[23].mxu0  ;;  %6338 = vst.msk [vmem:[%s9282_s4 + $0x34] sm:$0xf] %vm6324_vm3, %v7091_v32  ;;  %v5596_v39 = vadd.f32 %v7975_v33, %v9265_v36  ;;  %v7977_v40 = vadd.f32 %v5021_v6, %v2074_v38 }
 0x20a   : > { %v5722_v41 = vmax.f32 %v5598_v35, 0.0  ;;  %v5599_v42 = vadd.f32 %v7976_v37, %v9265_v36 }
 0x20b   : > { %v5720_v43 = vmax.f32 %v5596_v39, 0.0  ;;  %v5597_v44 = vadd.f32 %v7977_v40, %v9265_v36 }
 0x20c   : > { %v7096_v46 = vpack.c.bf16 %v5722_v41, %v5722_v41  ;;  %v5723_v47 = vmax.f32 %v5599_v42, 0.0 }
 0x20d   : > { %v7094_v49 = vpack.c.bf16 %v5720_v43, %v5720_v43  ;;  %v5721_v50 = vmax.f32 %v5597_v44, 0.0  ;;  %v7604_v51 = vpop.f32.mrb[20].mxu1 }
 0x20e   : > { %v7860_v45 = vpop.f32.mrb[24].mxu0  ;;  %6343 = vst.msk [vmem:[%s9282_s4 + $0x48] sm:$0xf] %vm6324_vm3, %v7096_v46  ;;  %v7097_v53 = vpack.c.bf16 %v5723_v47, %v5723_v47  ;;  %v7978_v54 = vadd.f32 %v7856_v20, %v7604_v51  ;;  %v2087_v55 = vpop.f32.mrb[21].mxu1 }
 0x20f   : > { %v5050_v48 = vpop.f32.mrb[25].mxu0  ;;  %6341 = vst.msk [vmem:[%s9282_s4 + $0x40] sm:$0xf] %vm6324_vm3, %v7094_v49  ;;  %v7095_v57 = vpack.c.bf16 %v5721_v50, %v5721_v50  ;;  %v7979_v58 = vadd.f32 %v5034_v23, %v2087_v55  ;;  %v7605_v59 = vpop.f32.mrb[22].mxu1 }
 0x210   : > { %v7861_v52 = vpop.f32.mrb[26].mxu0  ;;  %6344 = vst.msk [vmem:[%s9282_s4 + $0x4c] sm:$0xf] %vm6324_vm3, %v7097_v53  ;;  %v5602_v60 = vadd.f32 %v7978_v54, %v9265_v36  ;;  %v7980_v61 = vadd.f32 %v7857_v27, %v7605_v59  ;;  %v2090_v62 = vpop.f32.mrb[23].mxu1 }
 0x211   : > { %v5053_v56 = vpop.f32.mrb[27].mxu0  ;;  %6342 = vst.msk [vmem:[%s9282_s4 + $0x44] sm:$0xf] %vm6324_vm3, %v7095_v57  ;;  %v5600_v63 = vadd.f32 %v7979_v58, %v9265_v36  ;;  %v7981_v0 = vadd.f32 %v5037_v31, %v2090_v62 }
 0x212   : > { %v5726_v1 = vmax.f32 %v5602_v60, 0.0  ;;  %v5603_v2 = vadd.f32 %v7980_v61, %v9265_v36 }
 0x213   : > { %v5724_v3 = vmax.f32 %v5600_v63, 0.0  ;;  %v5601_v4 = vadd.f32 %v7981_v0, %v9265_v36 }
 0x214   : > { %v7100_v6 = vpack.c.bf16 %v5726_v1, %v5726_v1  ;;  %v5727_v7 = vmax.f32 %v5603_v2, 0.0 }
 0x215   : > { %v7098_v9 = vpack.c.bf16 %v5724_v3, %v5724_v3  ;;  %v5725_v10 = vmax.f32 %v5601_v4, 0.0  ;;  %v7608_v11 = vpop.f32.mrb[24].mxu1 }
 0x216   : > { %v7864_v5 = vpop.f32.mrb[28].mxu0  ;;  %6347 = vst.msk [vmem:[%s9282_s4 + $0x58] sm:$0xf] %vm6324_vm3, %v7100_v6  ;;  %v7101_v13 = vpack.c.bf16 %v5727_v7, %v5727_v7  ;;  %v7982_v14 = vadd.f32 %v7860_v45, %v7608_v11  ;;  %v2103_v15 = vpop.f32.mrb[25].mxu1 }
 0x217   : > { %v5066_v8 = vpop.f32.mrb[29].mxu0  ;;  %6345 = vst.msk [vmem:[%s9282_s4 + $0x50] sm:$0xf] %vm6324_vm3, %v7098_v9  ;;  %v7099_v17 = vpack.c.bf16 %v5725_v10, %v5725_v10  ;;  %v7983_v18 = vadd.f32 %v5050_v48, %v2103_v15  ;;  %v7609_v19 = vpop.f32.mrb[26].mxu1 }
 0x218   : > { %v7865_v12 = vpop.f32.mrb[30].mxu0  ;;  %6348 = vst.msk [vmem:[%s9282_s4 + $0x5c] sm:$0xf] %vm6324_vm3, %v7101_v13  ;;  %v5606_v20 = vadd.f32 %v7982_v14, %v9265_v36  ;;  %v7984_v21 = vadd.f32 %v7861_v52, %v7609_v19  ;;  %v2106_v22 = vpop.f32.mrb[27].mxu1 }
 0x219   : > { %v5069_v16 = vpop.f32.mrb[31].mxu0  ;;  %6346 = vst.msk [vmem:[%s9282_s4 + $0x54] sm:$0xf] %vm6324_vm3, %v7099_v17  ;;  %v5604_v23 = vadd.f32 %v7983_v18, %v9265_v36  ;;  %v7985_v24 = vadd.f32 %v5053_v56, %v2106_v22 }
 0x21a   : > { %v5730_v25 = vmax.f32 %v5606_v20, 0.0  ;;  %v5607_v26 = vadd.f32 %v7984_v21, %v9265_v36 }
 0x21b   : > { %v5728_v27 = vmax.f32 %v5604_v23, 0.0  ;;  %v5605_v28 = vadd.f32 %v7985_v24, %v9265_v36 }
 0x21c   : > { %v7104_v30 = vpack.c.bf16 %v5730_v25, %v5730_v25  ;;  %v5731_v31 = vmax.f32 %v5607_v26, 0.0 }
 0x21d   : > { %v7102_v33 = vpack.c.bf16 %v5728_v27, %v5728_v27  ;;  %v5729_v34 = vmax.f32 %v5605_v28, 0.0  ;;  %v7612_v35 = vpop.f32.mrb[28].mxu1 }
 0x21e   : > { %v7868_v29 = vpop.f32.mrb[32].mxu0  ;;  %6351 = vst.msk [vmem:[%s9282_s4 + $0x68] sm:$0xf] %vm6324_vm3, %v7104_v30  ;;  %v7105_v38 = vpack.c.bf16 %v5731_v31, %v5731_v31  ;;  %v7986_v39 = vadd.f32 %v7864_v5, %v7612_v35  ;;  %v2119_v40 = vpop.f32.mrb[29].mxu1 }
 0x21f   : > { %v5082_v32 = vpop.f32.mrb[33].mxu0  ;;  %6349 = vst.msk [vmem:[%s9282_s4 + $0x60] sm:$0xf] %vm6324_vm3, %v7102_v33  ;;  %v7103_v42 = vpack.c.bf16 %v5729_v34, %v5729_v34  ;;  %v7987_v43 = vadd.f32 %v5066_v8, %v2119_v40  ;;  %v7613_v44 = vpop.f32.mrb[30].mxu1 }
 0x220   : > { %v7869_v37 = vpop.f32.mrb[34].mxu0  ;;  %6352 = vst.msk [vmem:[%s9282_s4 + $0x6c] sm:$0xf] %vm6324_vm3, %v7105_v38  ;;  %v5610_v45 = vadd.f32 %v7986_v39, %v9265_v36  ;;  %v7988_v46 = vadd.f32 %v7865_v12, %v7613_v44  ;;  %v2122_v47 = vpop.f32.mrb[31].mxu1 }
 0x221   : > { %v5085_v41 = vpop.f32.mrb[35].mxu0  ;;  %6350 = vst.msk [vmem:[%s9282_s4 + $0x64] sm:$0xf] %vm6324_vm3, %v7103_v42  ;;  %v5608_v48 = vadd.f32 %v7987_v43, %v9265_v36  ;;  %v7989_v49 = vadd.f32 %v5069_v16, %v2122_v47 }
 0x222   : > { %v5734_v50 = vmax.f32 %v5610_v45, 0.0  ;;  %v5611_v51 = vadd.f32 %v7988_v46, %v9265_v36 }
 0x223   : > { %v5732_v52 = vmax.f32 %v5608_v48, 0.0  ;;  %v5609_v53 = vadd.f32 %v7989_v49, %v9265_v36 }
 0x224   : > { %v7108_v55 = vpack.c.bf16 %v5734_v50, %v5734_v50  ;;  %v5735_v56 = vmax.f32 %v5611_v51, 0.0 }
 0x225   : > { %v7106_v58 = vpack.c.bf16 %v5732_v52, %v5732_v52  ;;  %v5733_v59 = vmax.f32 %v5609_v53, 0.0  ;;  %v7616_v60 = vpop.f32.mrb[32].mxu1 }
 0x226   : > { %v7872_v54 = vpop.f32.mrb[36].mxu0  ;;  %6355 = vst.msk [vmem:[%s9282_s4 + $0x78] sm:$0xf] %vm6324_vm3, %v7108_v55  ;;  %v7109_v62 = vpack.c.bf16 %v5735_v56, %v5735_v56  ;;  %v7990_v63 = vadd.f32 %v7868_v29, %v7616_v60  ;;  %v2135_v0 = vpop.f32.mrb[33].mxu1 }
 0x227   : > { %v5098_v57 = vpop.f32.mrb[37].mxu0  ;;  %6353 = vst.msk [vmem:[%s9282_s4 + $0x70] sm:$0xf] %vm6324_vm3, %v7106_v58  ;;  %v7107_v2 = vpack.c.bf16 %v5733_v59, %v5733_v59  ;;  %v7991_v3 = vadd.f32 %v5082_v32, %v2135_v0  ;;  %v7617_v4 = vpop.f32.mrb[34].mxu1 }
 0x228   : > { %v7873_v61 = vpop.f32.mrb[38].mxu0  ;;  %6356 = vst.msk [vmem:[%s9282_s4 + $0x7c] sm:$0xf] %vm6324_vm3, %v7109_v62  ;;  %v5614_v5 = vadd.f32 %v7990_v63, %v9265_v36  ;;  %v7992_v6 = vadd.f32 %v7869_v37, %v7617_v4  ;;  %v2138_v7 = vpop.f32.mrb[35].mxu1 }
 0x229   : > { %v5101_v1 = vpop.f32.mrb[39].mxu0  ;;  %6354 = vst.msk [vmem:[%s9282_s4 + $0x74] sm:$0xf] %vm6324_vm3, %v7107_v2  ;;  %v5612_v8 = vadd.f32 %v7991_v3, %v9265_v36  ;;  %v7993_v9 = vadd.f32 %v5085_v41, %v2138_v7 }
 0x22a   : > { %v5738_v10 = vmax.f32 %v5614_v5, 0.0  ;;  %v5615_v11 = vadd.f32 %v7992_v6, %v9265_v36 }
 0x22b   : > { %v5736_v12 = vmax.f32 %v5612_v8, 0.0  ;;  %v5613_v13 = vadd.f32 %v7993_v9, %v9265_v36 }
 0x22c   : > { %v7112_v15 = vpack.c.bf16 %v5738_v10, %v5738_v10  ;;  %v5739_v16 = vmax.f32 %v5615_v11, 0.0 }
 0x22d   : > { %v7110_v18 = vpack.c.bf16 %v5736_v12, %v5736_v12  ;;  %v5737_v19 = vmax.f32 %v5613_v13, 0.0  ;;  %v7620_v20 = vpop.f32.mrb[36].mxu1 }
 0x22e   : > { %v7876_v14 = vpop.f32.mrb[40].mxu0  ;;  %6359 = vst.msk [vmem:[%s9282_s4 + $0x88] sm:$0xf] %vm6324_vm3, %v7112_v15  ;;  %v7113_v22 = vpack.c.bf16 %v5739_v16, %v5739_v16  ;;  %v7994_v23 = vadd.f32 %v7872_v54, %v7620_v20  ;;  %v2151_v24 = vpop.f32.mrb[37].mxu1 }
 0x22f   : > { %v5114_v17 = vpop.f32.mrb[41].mxu0  ;;  %6357 = vst.msk [vmem:[%s9282_s4 + $0x80] sm:$0xf] %vm6324_vm3, %v7110_v18  ;;  %v7111_v26 = vpack.c.bf16 %v5737_v19, %v5737_v19  ;;  %v7995_v27 = vadd.f32 %v5098_v57, %v2151_v24  ;;  %v7621_v28 = vpop.f32.mrb[38].mxu1 }
 0x230   : > { %v7877_v21 = vpop.f32.mrb[42].mxu0  ;;  %6360 = vst.msk [vmem:[%s9282_s4 + $0x8c] sm:$0xf] %vm6324_vm3, %v7113_v22  ;;  %v5618_v29 = vadd.f32 %v7994_v23, %v9265_v36  ;;  %v7996_v30 = vadd.f32 %v7873_v61, %v7621_v28  ;;  %v2154_v31 = vpop.f32.mrb[39].mxu1 }
 0x231   : > { %v5117_v25 = vpop.f32.mrb[43].mxu0  ;;  %6358 = vst.msk [vmem:[%s9282_s4 + $0x84] sm:$0xf] %vm6324_vm3, %v7111_v26  ;;  %v5616_v32 = vadd.f32 %v7995_v27, %v9265_v36  ;;  %v7997_v33 = vadd.f32 %v5101_v1, %v2154_v31 }
 0x232   : > { %v5742_v34 = vmax.f32 %v5618_v29, 0.0  ;;  %v5619_v35 = vadd.f32 %v7996_v30, %v9265_v36 }
 0x233   : > { %v5740_v37 = vmax.f32 %v5616_v32, 0.0  ;;  %v5617_v38 = vadd.f32 %v7997_v33, %v9265_v36 }
 0x234   : > { %v7116_v40 = vpack.c.bf16 %v5742_v34, %v5742_v34  ;;  %v5743_v41 = vmax.f32 %v5619_v35, 0.0 }
 0x235   : > { %v7114_v43 = vpack.c.bf16 %v5740_v37, %v5740_v37  ;;  %v5741_v44 = vmax.f32 %v5617_v38, 0.0  ;;  %v7624_v45 = vpop.f32.mrb[40].mxu1 }
 0x236   : > { %v7880_v39 = vpop.f32.mrb[44].mxu0  ;;  %6363 = vst.msk [vmem:[%s9282_s4 + $0x98] sm:$0xf] %vm6324_vm3, %v7116_v40  ;;  %v7117_v47 = vpack.c.bf16 %v5743_v41, %v5743_v41  ;;  %v7998_v48 = vadd.f32 %v7876_v14, %v7624_v45  ;;  %v2167_v49 = vpop.f32.mrb[41].mxu1 }
 0x237   : > { %v5130_v42 = vpop.f32.mrb[45].mxu0  ;;  %6361 = vst.msk [vmem:[%s9282_s4 + $0x90] sm:$0xf] %vm6324_vm3, %v7114_v43  ;;  %v7115_v51 = vpack.c.bf16 %v5741_v44, %v5741_v44  ;;  %v7999_v52 = vadd.f32 %v5114_v17, %v2167_v49  ;;  %v7625_v53 = vpop.f32.mrb[42].mxu1 }
 0x238   : > { %v7881_v46 = vpop.f32.mrb[46].mxu0  ;;  %6364 = vst.msk [vmem:[%s9282_s4 + $0x9c] sm:$0xf] %vm6324_vm3, %v7117_v47  ;;  %v5622_v54 = vadd.f32 %v7998_v48, %v9265_v36  ;;  %v8000_v55 = vadd.f32 %v7877_v21, %v7625_v53  ;;  %v2170_v56 = vpop.f32.mrb[43].mxu1 }
 0x239   : > { %v5133_v50 = vpop.f32.mrb[47].mxu0  ;;  %6362 = vst.msk [vmem:[%s9282_s4 + $0x94] sm:$0xf] %vm6324_vm3, %v7115_v51  ;;  %v5620_v57 = vadd.f32 %v7999_v52, %v9265_v36  ;;  %v8001_v58 = vadd.f32 %v5117_v25, %v2170_v56 }
 0x23a   : > { %v5746_v59 = vmax.f32 %v5622_v54, 0.0  ;;  %v5623_v60 = vadd.f32 %v8000_v55, %v9265_v36 }
 0x23b   : > { %v5744_v61 = vmax.f32 %v5620_v57, 0.0  ;;  %v5621_v62 = vadd.f32 %v8001_v58, %v9265_v36 }
 0x23c   : > { %v7120_v0 = vpack.c.bf16 %v5746_v59, %v5746_v59  ;;  %v5747_v1 = vmax.f32 %v5623_v60, 0.0 }
 0x23d   : > { %v7118_v3 = vpack.c.bf16 %v5744_v61, %v5744_v61  ;;  %v5745_v4 = vmax.f32 %v5621_v62, 0.0  ;;  %v7628_v5 = vpop.f32.mrb[44].mxu1 }
 0x23e   : > { %v7884_v63 = vpop.f32.mrb[48].mxu0  ;;  %6367 = vst.msk [vmem:[%s9282_s4 + $0xa8] sm:$0xf] %vm6324_vm3, %v7120_v0  ;;  %v7121_v7 = vpack.c.bf16 %v5747_v1, %v5747_v1  ;;  %v8002_v8 = vadd.f32 %v7880_v39, %v7628_v5  ;;  %v2183_v9 = vpop.f32.mrb[45].mxu1 }
 0x23f   : > { %v5146_v2 = vpop.f32.mrb[49].mxu0  ;;  %6365 = vst.msk [vmem:[%s9282_s4 + $0xa0] sm:$0xf] %vm6324_vm3, %v7118_v3  ;;  %v7119_v11 = vpack.c.bf16 %v5745_v4, %v5745_v4  ;;  %v8003_v12 = vadd.f32 %v5130_v42, %v2183_v9  ;;  %v7629_v13 = vpop.f32.mrb[46].mxu1 }
 0x240   : > { %v7885_v6 = vpop.f32.mrb[50].mxu0  ;;  %6368 = vst.msk [vmem:[%s9282_s4 + $0xac] sm:$0xf] %vm6324_vm3, %v7121_v7  ;;  %v5626_v14 = vadd.f32 %v8002_v8, %v9265_v36  ;;  %v8004_v15 = vadd.f32 %v7881_v46, %v7629_v13  ;;  %v2186_v16 = vpop.f32.mrb[47].mxu1 }
 0x241   : > { %v5149_v10 = vpop.f32.mrb[51].mxu0  ;;  %6366 = vst.msk [vmem:[%s9282_s4 + $0xa4] sm:$0xf] %vm6324_vm3, %v7119_v11  ;;  %v5624_v17 = vadd.f32 %v8003_v12, %v9265_v36  ;;  %v8005_v18 = vadd.f32 %v5133_v50, %v2186_v16 }
 0x242   : > { %v5750_v19 = vmax.f32 %v5626_v14, 0.0  ;;  %v5627_v20 = vadd.f32 %v8004_v15, %v9265_v36 }
 0x243   : > { %v5748_v21 = vmax.f32 %v5624_v17, 0.0  ;;  %v5625_v22 = vadd.f32 %v8005_v18, %v9265_v36 }
 0x244   : > { %v7124_v24 = vpack.c.bf16 %v5750_v19, %v5750_v19  ;;  %v5751_v25 = vmax.f32 %v5627_v20, 0.0 }
 0x245   : > { %v7122_v27 = vpack.c.bf16 %v5748_v21, %v5748_v21  ;;  %v5749_v28 = vmax.f32 %v5625_v22, 0.0  ;;  %v7632_v29 = vpop.f32.mrb[48].mxu1 }
 0x246   : > { %v7888_v23 = vpop.f32.mrb[52].mxu0  ;;  %6371 = vst.msk [vmem:[%s9282_s4 + $0xb8] sm:$0xf] %vm6324_vm3, %v7124_v24  ;;  %v7125_v31 = vpack.c.bf16 %v5751_v25, %v5751_v25  ;;  %v8006_v32 = vadd.f32 %v7884_v63, %v7632_v29  ;;  %v2199_v33 = vpop.f32.mrb[49].mxu1 }
 0x247   : > { %v5162_v26 = vpop.f32.mrb[53].mxu0  ;;  %6369 = vst.msk [vmem:[%s9282_s4 + $0xb0] sm:$0xf] %vm6324_vm3, %v7122_v27  ;;  %v7123_v35 = vpack.c.bf16 %v5749_v28, %v5749_v28  ;;  %v8007_v37 = vadd.f32 %v5146_v2, %v2199_v33  ;;  %v7633_v38 = vpop.f32.mrb[50].mxu1 }
 0x248   : > { %v7889_v30 = vpop.f32.mrb[54].mxu0  ;;  %6372 = vst.msk [vmem:[%s9282_s4 + $0xbc] sm:$0xf] %vm6324_vm3, %v7125_v31  ;;  %v5630_v39 = vadd.f32 %v8006_v32, %v9265_v36  ;;  %v8008_v40 = vadd.f32 %v7885_v6, %v7633_v38  ;;  %v2202_v41 = vpop.f32.mrb[51].mxu1 }
 0x249   : > { %v5165_v34 = vpop.f32.mrb[55].mxu0  ;;  %6370 = vst.msk [vmem:[%s9282_s4 + $0xb4] sm:$0xf] %vm6324_vm3, %v7123_v35  ;;  %v5628_v42 = vadd.f32 %v8007_v37, %v9265_v36  ;;  %v8009_v43 = vadd.f32 %v5149_v10, %v2202_v41 }
 0x24a   : > { %v5754_v44 = vmax.f32 %v5630_v39, 0.0  ;;  %v5631_v45 = vadd.f32 %v8008_v40, %v9265_v36 }
 0x24b   : > { %v5752_v46 = vmax.f32 %v5628_v42, 0.0  ;;  %v5629_v47 = vadd.f32 %v8009_v43, %v9265_v36 }
 0x24c   : > { %v7128_v49 = vpack.c.bf16 %v5754_v44, %v5754_v44  ;;  %v5755_v50 = vmax.f32 %v5631_v45, 0.0 }
 0x24d   : > { %v7126_v52 = vpack.c.bf16 %v5752_v46, %v5752_v46  ;;  %v5753_v53 = vmax.f32 %v5629_v47, 0.0  ;;  %v7636_v54 = vpop.f32.mrb[52].mxu1 }
 0x24e   : > { %v7892_v48 = vpop.f32.mrb[56].mxu0  ;;  %6375 = vst.msk [vmem:[%s9282_s4 + $0xc8] sm:$0xf] %vm6324_vm3, %v7128_v49  ;;  %v7129_v56 = vpack.c.bf16 %v5755_v50, %v5755_v50  ;;  %v8010_v57 = vadd.f32 %v7888_v23, %v7636_v54  ;;  %v2215_v58 = vpop.f32.mrb[53].mxu1 }
 0x24f   : > { %v5178_v51 = vpop.f32.mrb[57].mxu0  ;;  %6373 = vst.msk [vmem:[%s9282_s4 + $0xc0] sm:$0xf] %vm6324_vm3, %v7126_v52  ;;  %v7127_v60 = vpack.c.bf16 %v5753_v53, %v5753_v53  ;;  %v8011_v61 = vadd.f32 %v5162_v26, %v2215_v58  ;;  %v7637_v62 = vpop.f32.mrb[54].mxu1 }
 0x250   : > { %v7893_v55 = vpop.f32.mrb[58].mxu0  ;;  %6376 = vst.msk [vmem:[%s9282_s4 + $0xcc] sm:$0xf] %vm6324_vm3, %v7129_v56  ;;  %v5634_v63 = vadd.f32 %v8010_v57, %v9265_v36  ;;  %v8012_v0 = vadd.f32 %v7889_v30, %v7637_v62  ;;  %v2218_v1 = vpop.f32.mrb[55].mxu1 }
 0x251   : > { %v5181_v59 = vpop.f32.mrb[59].mxu0  ;;  %6374 = vst.msk [vmem:[%s9282_s4 + $0xc4] sm:$0xf] %vm6324_vm3, %v7127_v60  ;;  %v5632_v2 = vadd.f32 %v8011_v61, %v9265_v36  ;;  %v8013_v3 = vadd.f32 %v5165_v34, %v2218_v1 }
 0x252   : > { %v5758_v4 = vmax.f32 %v5634_v63, 0.0  ;;  %v5635_v5 = vadd.f32 %v8012_v0, %v9265_v36 }
 0x253   : > { %v5756_v6 = vmax.f32 %v5632_v2, 0.0  ;;  %v5633_v7 = vadd.f32 %v8013_v3, %v9265_v36 }
 0x254   : > { %v7132_v9 = vpack.c.bf16 %v5758_v4, %v5758_v4  ;;  %v5759_v10 = vmax.f32 %v5635_v5, 0.0 }
 0x255   : > { %v7130_v12 = vpack.c.bf16 %v5756_v6, %v5756_v6  ;;  %v5757_v13 = vmax.f32 %v5633_v7, 0.0  ;;  %v7640_v14 = vpop.f32.mrb[56].mxu1 }
 0x256   : > { %v7896_v8 = vpop.f32.mrb[60].mxu0  ;;  %6379 = vst.msk [vmem:[%s9282_s4 + $0xd8] sm:$0xf] %vm6324_vm3, %v7132_v9  ;;  %v7133_v16 = vpack.c.bf16 %v5759_v10, %v5759_v10  ;;  %v8014_v17 = vadd.f32 %v7892_v48, %v7640_v14  ;;  %v2231_v18 = vpop.f32.mrb[57].mxu1 }
 0x257   : > { %v5194_v11 = vpop.f32.mrb[61].mxu0  ;;  %6377 = vst.msk [vmem:[%s9282_s4 + $0xd0] sm:$0xf] %vm6324_vm3, %v7130_v12  ;;  %v7131_v20 = vpack.c.bf16 %v5757_v13, %v5757_v13  ;;  %v8015_v21 = vadd.f32 %v5178_v51, %v2231_v18  ;;  %v7641_v22 = vpop.f32.mrb[58].mxu1 }
 0x258   : > { %v7897_v15 = vpop.f32.mrb[62].mxu0  ;;  %6380 = vst.msk [vmem:[%s9282_s4 + $0xdc] sm:$0xf] %vm6324_vm3, %v7133_v16  ;;  %v5638_v23 = vadd.f32 %v8014_v17, %v9265_v36  ;;  %v8016_v24 = vadd.f32 %v7893_v55, %v7641_v22  ;;  %v2234_v25 = vpop.f32.mrb[59].mxu1 }
 0x259   : > { %v5197_v19 = vpop.f32.mrb[63].mxu0  ;;  %6378 = vst.msk [vmem:[%s9282_s4 + $0xd4] sm:$0xf] %vm6324_vm3, %v7131_v20  ;;  %v5636_v26 = vadd.f32 %v8015_v21, %v9265_v36  ;;  %v8017_v27 = vadd.f32 %v5181_v59, %v2234_v25 }
 0x25a   : > { %v5762_v28 = vmax.f32 %v5638_v23, 0.0  ;;  %v5639_v29 = vadd.f32 %v8016_v24, %v9265_v36 }
 0x25b   : > { %v5760_v30 = vmax.f32 %v5636_v26, 0.0  ;;  %v5637_v31 = vadd.f32 %v8017_v27, %v9265_v36 }
 0x25c   : > { %v7136_v33 = vpack.c.bf16 %v5762_v28, %v5762_v28  ;;  %v5763_v34 = vmax.f32 %v5639_v29, 0.0 }
 0x25d   : > { %v7134_v37 = vpack.c.bf16 %v5760_v30, %v5760_v30  ;;  %v5761_v38 = vmax.f32 %v5637_v31, 0.0  ;;  %v7644_v39 = vpop.f32.mrb[60].mxu1  ;;  %v9505_v31 = vld [vmem:[%s9682_s2] ss:$0 sm:$0xff] }
 0x25e   : > { %v7900_v32 = vpop.f32.mrb[64].mxu0  ;;  %6383 = vst.msk [vmem:[%s9282_s4 + $0xe8] sm:$0xf] %vm6324_vm3, %v7136_v33  ;;  %v7137_v41 = vpack.c.bf16 %v5763_v34, %v5763_v34  ;;  %v8018_v42 = vadd.f32 %v7896_v8, %v7644_v39  ;;  %v2247_v43 = vpop.f32.mrb[61].mxu1 }
 0x25f   : > { %v5210_v35 = vpop.f32.mrb[65].mxu0  ;;  %6381 = vst.msk [vmem:[%s9282_s4 + $0xe0] sm:$0xf] %vm6324_vm3, %v7134_v37  ;;  %v7135_v45 = vpack.c.bf16 %v5761_v38, %v5761_v38  ;;  %v8019_v46 = vadd.f32 %v5194_v11, %v2247_v43  ;;  %v7645_v47 = vpop.f32.mrb[62].mxu1 }
 0x260   : > { %v7901_v40 = vpop.f32.mrb[66].mxu0  ;;  %6384 = vst.msk [vmem:[%s9282_s4 + $0xec] sm:$0xf] %vm6324_vm3, %v7137_v41  ;;  %v5642_v48 = vadd.f32 %v8018_v42, %v9265_v36  ;;  %v8020_v49 = vadd.f32 %v7897_v15, %v7645_v47  ;;  %v2250_v50 = vpop.f32.mrb[63].mxu1 }
 0x261   : > { %v5213_v44 = vpop.f32.mrb[67].mxu0  ;;  %6382 = vst.msk [vmem:[%s9282_s4 + $0xe4] sm:$0xf] %vm6324_vm3, %v7135_v45  ;;  %v5640_v51 = vadd.f32 %v8019_v46, %v9265_v36  ;;  %v8021_v52 = vadd.f32 %v5197_v19, %v2250_v50 }
 0x262   : > { %v5766_v53 = vmax.f32 %v5642_v48, 0.0  ;;  %v5643_v54 = vadd.f32 %v8020_v49, %v9265_v36 }
 0x263   : > { %v5764_v55 = vmax.f32 %v5640_v51, 0.0  ;;  %v5641_v56 = vadd.f32 %v8021_v52, %v9265_v36 }
 0x264   : > { %v7140_v58 = vpack.c.bf16 %v5766_v53, %v5766_v53  ;;  %v5767_v59 = vmax.f32 %v5643_v54, 0.0 }
 0x265   : > { %v7138_v61 = vpack.c.bf16 %v5764_v55, %v5764_v55  ;;  %v5765_v62 = vmax.f32 %v5641_v56, 0.0  ;;  %v7648_v63 = vpop.f32.mrb[64].mxu1 }
 0x266   : > { %v7904_v57 = vpop.f32.mrb[68].mxu0  ;;  %6387 = vst.msk [vmem:[%s9282_s4 + $0xf8] sm:$0xf] %vm6324_vm3, %v7140_v58  ;;  %v7141_v1 = vpack.c.bf16 %v5767_v59, %v5767_v59  ;;  %v8022_v2 = vadd.f32 %v7900_v32, %v7648_v63  ;;  %v2263_v3 = vpop.f32.mrb[65].mxu1 }
 0x267   : > { %v5226_v60 = vpop.f32.mrb[69].mxu0  ;;  %6385 = vst.msk [vmem:[%s9282_s4 + $0xf0] sm:$0xf] %vm6324_vm3, %v7138_v61  ;;  %v7139_v5 = vpack.c.bf16 %v5765_v62, %v5765_v62  ;;  %v8023_v6 = vadd.f32 %v5210_v35, %v2263_v3  ;;  %v7649_v7 = vpop.f32.mrb[66].mxu1 }
 0x268   : > { %v7905_v0 = vpop.f32.mrb[70].mxu0  ;;  %6388 = vst.msk [vmem:[%s9282_s4 + $0xfc] sm:$0xf] %vm6324_vm3, %v7141_v1  ;;  %v5646_v8 = vadd.f32 %v8022_v2, %v9265_v36  ;;  %v8024_v9 = vadd.f32 %v7901_v40, %v7649_v7  ;;  %v2266_v10 = vpop.f32.mrb[67].mxu1 }
 0x269   : > { %v5229_v4 = vpop.f32.mrb[71].mxu0  ;;  %6386 = vst.msk [vmem:[%s9282_s4 + $0xf4] sm:$0xf] %vm6324_vm3, %v7139_v5  ;;  %v5644_v11 = vadd.f32 %v8023_v6, %v9265_v36  ;;  %v8025_v12 = vadd.f32 %v5213_v44, %v2266_v10 }
 0x26a   : > { %v5770_v13 = vmax.f32 %v5646_v8, 0.0  ;;  %v5647_v14 = vadd.f32 %v8024_v9, %v9265_v36 }
 0x26b   : > { %v5768_v15 = vmax.f32 %v5644_v11, 0.0  ;;  %v5645_v16 = vadd.f32 %v8025_v12, %v9265_v36 }
 0x26c   : > { %v7144_v18 = vpack.c.bf16 %v5770_v13, %v5770_v13  ;;  %v5771_v19 = vmax.f32 %v5647_v14, 0.0 }
 0x26d   : > { %v7142_v21 = vpack.c.bf16 %v5768_v15, %v5768_v15  ;;  %v5769_v22 = vmax.f32 %v5645_v16, 0.0  ;;  %v7652_v23 = vpop.f32.mrb[68].mxu1 }
 0x26e   : > { %v7908_v17 = vpop.f32.mrb[72].mxu0  ;;  %6391 = vst.msk [vmem:[%s9282_s4 + $0x108] sm:$0xf] %vm6324_vm3, %v7144_v18  ;;  %v7145_v25 = vpack.c.bf16 %v5771_v19, %v5771_v19  ;;  %v8026_v26 = vadd.f32 %v7904_v57, %v7652_v23  ;;  %v2279_v27 = vpop.f32.mrb[69].mxu1 }
 0x26f   : > { %v5242_v20 = vpop.f32.mrb[73].mxu0  ;;  %6389 = vst.msk [vmem:[%s9282_s4 + $0x100] sm:$0xf] %vm6324_vm3, %v7142_v21  ;;  %v7143_v29 = vpack.c.bf16 %v5769_v22, %v5769_v22  ;;  %v8027_v36 = vadd.f32 %v5226_v60, %v2279_v27  ;;  %v7653_v30 = vpop.f32.mrb[70].mxu1 }
 0x270   : > { %v7909_v24 = vpop.f32.mrb[74].mxu0  ;;  %6392 = vst.msk [vmem:[%s9282_s4 + $0x10c] sm:$0xf] %vm6324_vm3, %v7145_v25  ;;  %v5650_v32 = vadd.f32 %v9505_v31, %v8026_v26  ;;  %v8028_v33 = vadd.f32 %v7905_v0, %v7653_v30  ;;  %v2282_v34 = vpop.f32.mrb[71].mxu1 }
 0x271   : > { %v5245_v28 = vpop.f32.mrb[75].mxu0  ;;  %6390 = vst.msk [vmem:[%s9282_s4 + $0x104] sm:$0xf] %vm6324_vm3, %v7143_v29  ;;  %v5648_v35 = vadd.f32 %v9505_v31, %v8027_v36  ;;  %v8029_v37 = vadd.f32 %v5229_v4, %v2282_v34 }
 0x272   : > { %v5774_v38 = vmax.f32 %v5650_v32, 0.0  ;;  %v5651_v39 = vadd.f32 %v9505_v31, %v8028_v33 }
 0x273   : > { %v5772_v40 = vmax.f32 %v5648_v35, 0.0  ;;  %v5649_v41 = vadd.f32 %v9505_v31, %v8029_v37 }
 0x274   : > { %v7148_v43 = vpack.c.bf16 %v5774_v38, %v5774_v38  ;;  %v5775_v44 = vmax.f32 %v5651_v39, 0.0 }
 0x275   : > { %v7146_v46 = vpack.c.bf16 %v5772_v40, %v5772_v40  ;;  %v5773_v47 = vmax.f32 %v5649_v41, 0.0  ;;  %v7656_v48 = vpop.f32.mrb[72].mxu1 }
 0x276   : > { %v7912_v42 = vpop.f32.mrb[76].mxu0  ;;  %6395 = vst.msk [vmem:[%s9282_s4 + $0x118] sm:$0xf] %vm6324_vm3, %v7148_v43  ;;  %v7149_v50 = vpack.c.bf16 %v5775_v44, %v5775_v44  ;;  %v8030_v51 = vadd.f32 %v7908_v17, %v7656_v48  ;;  %v2295_v52 = vpop.f32.mrb[73].mxu1 }
 0x277   : > { %v5258_v45 = vpop.f32.mrb[77].mxu0  ;;  %6393 = vst.msk [vmem:[%s9282_s4 + $0x110] sm:$0xf] %vm6324_vm3, %v7146_v46  ;;  %v7147_v54 = vpack.c.bf16 %v5773_v47, %v5773_v47  ;;  %v8031_v55 = vadd.f32 %v5242_v20, %v2295_v52  ;;  %v7657_v56 = vpop.f32.mrb[74].mxu1 }
 0x278   : > { %v7913_v49 = vpop.f32.mrb[78].mxu0  ;;  %6396 = vst.msk [vmem:[%s9282_s4 + $0x11c] sm:$0xf] %vm6324_vm3, %v7149_v50  ;;  %v5654_v57 = vadd.f32 %v9505_v31, %v8030_v51  ;;  %v8032_v58 = vadd.f32 %v7909_v24, %v7657_v56  ;;  %v2298_v59 = vpop.f32.mrb[75].mxu1 }
 0x279   : > { %v5261_v53 = vpop.f32.mrb[79].mxu0  ;;  %6394 = vst.msk [vmem:[%s9282_s4 + $0x114] sm:$0xf] %vm6324_vm3, %v7147_v54  ;;  %v5652_v60 = vadd.f32 %v9505_v31, %v8031_v55  ;;  %v8033_v61 = vadd.f32 %v5245_v28, %v2298_v59 }
 0x27a   : > { %v5778_v62 = vmax.f32 %v5654_v57, 0.0  ;;  %v5655_v63 = vadd.f32 %v9505_v31, %v8032_v58 }
 0x27b   : > { %v5776_v0 = vmax.f32 %v5652_v60, 0.0  ;;  %v5653_v1 = vadd.f32 %v9505_v31, %v8033_v61 }
 0x27c   : > { %v7152_v3 = vpack.c.bf16 %v5778_v62, %v5778_v62  ;;  %v5779_v4 = vmax.f32 %v5655_v63, 0.0 }
 0x27d   : > { %v7150_v6 = vpack.c.bf16 %v5776_v0, %v5776_v0  ;;  %v5777_v7 = vmax.f32 %v5653_v1, 0.0  ;;  %v7660_v8 = vpop.f32.mrb[76].mxu1 }
 0x27e   : > { %v7916_v2 = vpop.f32.mrb[80].mxu0  ;;  %6399 = vst.msk [vmem:[%s9282_s4 + $0x128] sm:$0xf] %vm6324_vm3, %v7152_v3  ;;  %v7153_v10 = vpack.c.bf16 %v5779_v4, %v5779_v4  ;;  %v8034_v11 = vadd.f32 %v7912_v42, %v7660_v8  ;;  %v2311_v12 = vpop.f32.mrb[77].mxu1 }
 0x27f   : > { %v5274_v5 = vpop.f32.mrb[81].mxu0  ;;  %6397 = vst.msk [vmem:[%s9282_s4 + $0x120] sm:$0xf] %vm6324_vm3, %v7150_v6  ;;  %v7151_v14 = vpack.c.bf16 %v5777_v7, %v5777_v7  ;;  %v8035_v15 = vadd.f32 %v5258_v45, %v2311_v12  ;;  %v7661_v16 = vpop.f32.mrb[78].mxu1 }
 0x280   : > { %v7917_v9 = vpop.f32.mrb[82].mxu0  ;;  %6400 = vst.msk [vmem:[%s9282_s4 + $0x12c] sm:$0xf] %vm6324_vm3, %v7153_v10  ;;  %v5658_v17 = vadd.f32 %v9505_v31, %v8034_v11  ;;  %v8036_v18 = vadd.f32 %v7913_v49, %v7661_v16  ;;  %v2314_v19 = vpop.f32.mrb[79].mxu1 }
 0x281   : > { %v5277_v13 = vpop.f32.mrb[83].mxu0  ;;  %6398 = vst.msk [vmem:[%s9282_s4 + $0x124] sm:$0xf] %vm6324_vm3, %v7151_v14  ;;  %v5656_v20 = vadd.f32 %v9505_v31, %v8035_v15  ;;  %v8037_v21 = vadd.f32 %v5261_v53, %v2314_v19 }
 0x282   : > { %v5782_v22 = vmax.f32 %v5658_v17, 0.0  ;;  %v5659_v23 = vadd.f32 %v9505_v31, %v8036_v18 }
 0x283   : > { %v5780_v24 = vmax.f32 %v5656_v20, 0.0  ;;  %v5657_v25 = vadd.f32 %v9505_v31, %v8037_v21 }
 0x284   : > { %v7156_v27 = vpack.c.bf16 %v5782_v22, %v5782_v22  ;;  %v5783_v28 = vmax.f32 %v5659_v23, 0.0 }
 0x285   : > { %v7154_v36 = vpack.c.bf16 %v5780_v24, %v5780_v24  ;;  %v5781_v30 = vmax.f32 %v5657_v25, 0.0  ;;  %v7664_v32 = vpop.f32.mrb[80].mxu1 }
 0x286   : > { %v7920_v26 = vpop.f32.mrb[84].mxu0  ;;  %6403 = vst.msk [vmem:[%s9282_s4 + $0x138] sm:$0xf] %vm6324_vm3, %v7156_v27  ;;  %v7157_v34 = vpack.c.bf16 %v5783_v28, %v5783_v28  ;;  %v8038_v35 = vadd.f32 %v7916_v2, %v7664_v32  ;;  %v2327_v37 = vpop.f32.mrb[81].mxu1 }
 0x287   : > { %v5290_v29 = vpop.f32.mrb[85].mxu0  ;;  %6401 = vst.msk [vmem:[%s9282_s4 + $0x130] sm:$0xf] %vm6324_vm3, %v7154_v36  ;;  %v7155_v39 = vpack.c.bf16 %v5781_v30, %v5781_v30  ;;  %v8039_v40 = vadd.f32 %v5274_v5, %v2327_v37  ;;  %v7665_v41 = vpop.f32.mrb[82].mxu1 }
 0x288   : > { %v7921_v33 = vpop.f32.mrb[86].mxu0  ;;  %6404 = vst.msk [vmem:[%s9282_s4 + $0x13c] sm:$0xf] %vm6324_vm3, %v7157_v34  ;;  %v5662_v42 = vadd.f32 %v9505_v31, %v8038_v35  ;;  %v8040_v43 = vadd.f32 %v7917_v9, %v7665_v41  ;;  %v2330_v44 = vpop.f32.mrb[83].mxu1 }
 0x289   : > { %v5293_v38 = vpop.f32.mrb[87].mxu0  ;;  %6402 = vst.msk [vmem:[%s9282_s4 + $0x134] sm:$0xf] %vm6324_vm3, %v7155_v39  ;;  %v5660_v45 = vadd.f32 %v9505_v31, %v8039_v40  ;;  %v8041_v46 = vadd.f32 %v5277_v13, %v2330_v44 }
 0x28a   : > { %v5786_v47 = vmax.f32 %v5662_v42, 0.0  ;;  %v5663_v48 = vadd.f32 %v9505_v31, %v8040_v43 }
 0x28b   : > { %v5784_v49 = vmax.f32 %v5660_v45, 0.0  ;;  %v5661_v50 = vadd.f32 %v9505_v31, %v8041_v46 }
 0x28c   : > { %v7160_v52 = vpack.c.bf16 %v5786_v47, %v5786_v47  ;;  %v5787_v53 = vmax.f32 %v5663_v48, 0.0 }
 0x28d   : > { %v7158_v55 = vpack.c.bf16 %v5784_v49, %v5784_v49  ;;  %v5785_v56 = vmax.f32 %v5661_v50, 0.0  ;;  %v7668_v57 = vpop.f32.mrb[84].mxu1 }
 0x28e   : > { %v7924_v51 = vpop.f32.mrb[88].mxu0  ;;  %6407 = vst.msk [vmem:[%s9282_s4 + $0x148] sm:$0xf] %vm6324_vm3, %v7160_v52  ;;  %v7161_v59 = vpack.c.bf16 %v5787_v53, %v5787_v53  ;;  %v8042_v60 = vadd.f32 %v7920_v26, %v7668_v57  ;;  %v2343_v61 = vpop.f32.mrb[85].mxu1 }
 0x28f   : > { %v5306_v54 = vpop.f32.mrb[89].mxu0  ;;  %6405 = vst.msk [vmem:[%s9282_s4 + $0x140] sm:$0xf] %vm6324_vm3, %v7158_v55  ;;  %v7159_v63 = vpack.c.bf16 %v5785_v56, %v5785_v56  ;;  %v8043_v0 = vadd.f32 %v5290_v29, %v2343_v61  ;;  %v7669_v1 = vpop.f32.mrb[86].mxu1 }
 0x290   : > { %v7925_v58 = vpop.f32.mrb[90].mxu0  ;;  %6408 = vst.msk [vmem:[%s9282_s4 + $0x14c] sm:$0xf] %vm6324_vm3, %v7161_v59  ;;  %v5666_v2 = vadd.f32 %v9505_v31, %v8042_v60  ;;  %v8044_v3 = vadd.f32 %v7921_v33, %v7669_v1  ;;  %v2346_v4 = vpop.f32.mrb[87].mxu1 }
 0x291   : > { %v5309_v62 = vpop.f32.mrb[91].mxu0  ;;  %6406 = vst.msk [vmem:[%s9282_s4 + $0x144] sm:$0xf] %vm6324_vm3, %v7159_v63  ;;  %v5664_v5 = vadd.f32 %v9505_v31, %v8043_v0  ;;  %v8045_v6 = vadd.f32 %v5293_v38, %v2346_v4 }
 0x292   : > { %v5790_v7 = vmax.f32 %v5666_v2, 0.0  ;;  %v5667_v8 = vadd.f32 %v9505_v31, %v8044_v3 }
 0x293   : > { %v5788_v9 = vmax.f32 %v5664_v5, 0.0  ;;  %v5665_v10 = vadd.f32 %v9505_v31, %v8045_v6 }
 0x294   : > { %v7164_v12 = vpack.c.bf16 %v5790_v7, %v5790_v7  ;;  %v5791_v13 = vmax.f32 %v5667_v8, 0.0 }
 0x295   : > { %v7162_v15 = vpack.c.bf16 %v5788_v9, %v5788_v9  ;;  %v5789_v16 = vmax.f32 %v5665_v10, 0.0  ;;  %v7672_v17 = vpop.f32.mrb[88].mxu1 }
 0x296   : > { %v7928_v11 = vpop.f32.mrb[92].mxu0  ;;  %6411 = vst.msk [vmem:[%s9282_s4 + $0x158] sm:$0xf] %vm6324_vm3, %v7164_v12  ;;  %v7165_v19 = vpack.c.bf16 %v5791_v13, %v5791_v13  ;;  %v8046_v20 = vadd.f32 %v7924_v51, %v7672_v17  ;;  %v2359_v21 = vpop.f32.mrb[89].mxu1 }
 0x297   : > { %v5322_v14 = vpop.f32.mrb[93].mxu0  ;;  %6409 = vst.msk [vmem:[%s9282_s4 + $0x150] sm:$0xf] %vm6324_vm3, %v7162_v15  ;;  %v7163_v23 = vpack.c.bf16 %v5789_v16, %v5789_v16  ;;  %v8047_v24 = vadd.f32 %v5306_v54, %v2359_v21  ;;  %v7673_v25 = vpop.f32.mrb[90].mxu1 }
 0x298   : > { %v7929_v18 = vpop.f32.mrb[94].mxu0  ;;  %6412 = vst.msk [vmem:[%s9282_s4 + $0x15c] sm:$0xf] %vm6324_vm3, %v7165_v19  ;;  %v5670_v26 = vadd.f32 %v9505_v31, %v8046_v20  ;;  %v8048_v27 = vadd.f32 %v7925_v58, %v7673_v25  ;;  %v2362_v28 = vpop.f32.mrb[91].mxu1 }
 0x299   : > { %v5325_v22 = vpop.f32.mrb[95].mxu0  ;;  %6410 = vst.msk [vmem:[%s9282_s4 + $0x154] sm:$0xf] %vm6324_vm3, %v7163_v23  ;;  %v5668_v29 = vadd.f32 %v9505_v31, %v8047_v24  ;;  %v8049_v36 = vadd.f32 %v5309_v62, %v2362_v28 }
 0x29a   : > { %v5794_v30 = vmax.f32 %v5670_v26, 0.0  ;;  %v5671_v32 = vadd.f32 %v9505_v31, %v8048_v27 }
 0x29b   : > { %v5792_v33 = vmax.f32 %v5668_v29, 0.0  ;;  %v5669_v34 = vadd.f32 %v9505_v31, %v8049_v36 }
 0x29c   : > { %v7168_v37 = vpack.c.bf16 %v5794_v30, %v5794_v30  ;;  %v5795_v38 = vmax.f32 %v5671_v32, 0.0 }
 0x29d   : > { %v7166_v40 = vpack.c.bf16 %v5792_v33, %v5792_v33  ;;  %v5793_v41 = vmax.f32 %v5669_v34, 0.0  ;;  %v7676_v42 = vpop.f32.mrb[92].mxu1 }
 0x29e   : > { %v7932_v35 = vpop.f32.mrb[96].mxu0  ;;  %6415 = vst.msk [vmem:[%s9282_s4 + $0x168] sm:$0xf] %vm6324_vm3, %v7168_v37  ;;  %v7169_v44 = vpack.c.bf16 %v5795_v38, %v5795_v38  ;;  %v8050_v45 = vadd.f32 %v7928_v11, %v7676_v42  ;;  %v2375_v46 = vpop.f32.mrb[93].mxu1 }
 0x29f   : > { %v5338_v39 = vpop.f32.mrb[97].mxu0  ;;  %6413 = vst.msk [vmem:[%s9282_s4 + $0x160] sm:$0xf] %vm6324_vm3, %v7166_v40  ;;  %v7167_v48 = vpack.c.bf16 %v5793_v41, %v5793_v41  ;;  %v8051_v49 = vadd.f32 %v5322_v14, %v2375_v46  ;;  %v7677_v50 = vpop.f32.mrb[94].mxu1 }
 0x2a0   : > { %v7933_v43 = vpop.f32.mrb[98].mxu0  ;;  %6416 = vst.msk [vmem:[%s9282_s4 + $0x16c] sm:$0xf] %vm6324_vm3, %v7169_v44  ;;  %v5674_v51 = vadd.f32 %v9505_v31, %v8050_v45  ;;  %v8052_v52 = vadd.f32 %v7929_v18, %v7677_v50  ;;  %v2378_v53 = vpop.f32.mrb[95].mxu1 }
 0x2a1   : > { %v5341_v47 = vpop.f32.mrb[99].mxu0  ;;  %6414 = vst.msk [vmem:[%s9282_s4 + $0x164] sm:$0xf] %vm6324_vm3, %v7167_v48  ;;  %v5672_v54 = vadd.f32 %v9505_v31, %v8051_v49  ;;  %v8053_v55 = vadd.f32 %v5325_v22, %v2378_v53 }
 0x2a2   : > { %v5798_v56 = vmax.f32 %v5674_v51, 0.0  ;;  %v5675_v57 = vadd.f32 %v9505_v31, %v8052_v52 }
 0x2a3   : > { %v5796_v58 = vmax.f32 %v5672_v54, 0.0  ;;  %v5673_v59 = vadd.f32 %v9505_v31, %v8053_v55 }
 0x2a4   : > { %v7172_v61 = vpack.c.bf16 %v5798_v56, %v5798_v56  ;;  %v5799_v62 = vmax.f32 %v5675_v57, 0.0 }
 0x2a5   : > { %v7170_v0 = vpack.c.bf16 %v5796_v58, %v5796_v58  ;;  %v5797_v1 = vmax.f32 %v5673_v59, 0.0  ;;  %v7680_v2 = vpop.f32.mrb[96].mxu1 }
 0x2a6   : > { %v7936_v60 = vpop.f32.mrb[100].mxu0  ;;  %6419 = vst.msk [vmem:[%s9282_s4 + $0x178] sm:$0xf] %vm6324_vm3, %v7172_v61  ;;  %v7173_v4 = vpack.c.bf16 %v5799_v62, %v5799_v62  ;;  %v8054_v5 = vadd.f32 %v7932_v35, %v7680_v2  ;;  %v2391_v6 = vpop.f32.mrb[97].mxu1 }
 0x2a7   : > { %v5354_v63 = vpop.f32.mrb[101].mxu0  ;;  %6417 = vst.msk [vmem:[%s9282_s4 + $0x170] sm:$0xf] %vm6324_vm3, %v7170_v0  ;;  %v7171_v8 = vpack.c.bf16 %v5797_v1, %v5797_v1  ;;  %v8055_v9 = vadd.f32 %v5338_v39, %v2391_v6  ;;  %v7681_v10 = vpop.f32.mrb[98].mxu1 }
 0x2a8   : > { %v7937_v3 = vpop.f32.mrb[102].mxu0  ;;  %6420 = vst.msk [vmem:[%s9282_s4 + $0x17c] sm:$0xf] %vm6324_vm3, %v7173_v4  ;;  %v5678_v11 = vadd.f32 %v9505_v31, %v8054_v5  ;;  %v8056_v12 = vadd.f32 %v7933_v43, %v7681_v10  ;;  %v2394_v13 = vpop.f32.mrb[99].mxu1 }
 0x2a9   : > { %v5357_v7 = vpop.f32.mrb[103].mxu0  ;;  %6418 = vst.msk [vmem:[%s9282_s4 + $0x174] sm:$0xf] %vm6324_vm3, %v7171_v8  ;;  %v5676_v14 = vadd.f32 %v9505_v31, %v8055_v9  ;;  %v8057_v15 = vadd.f32 %v5341_v47, %v2394_v13 }
 0x2aa   : > { %v5802_v16 = vmax.f32 %v5678_v11, 0.0  ;;  %v5679_v17 = vadd.f32 %v9505_v31, %v8056_v12 }
 0x2ab   : > { %v5800_v18 = vmax.f32 %v5676_v14, 0.0  ;;  %v5677_v19 = vadd.f32 %v9505_v31, %v8057_v15 }
 0x2ac   : > { %v7176_v21 = vpack.c.bf16 %v5802_v16, %v5802_v16  ;;  %v5803_v22 = vmax.f32 %v5679_v17, 0.0 }
 0x2ad   : > { %v7174_v24 = vpack.c.bf16 %v5800_v18, %v5800_v18  ;;  %v5801_v25 = vmax.f32 %v5677_v19, 0.0  ;;  %v7684_v26 = vpop.f32.mrb[100].mxu1 }
 0x2ae   : > { %v7940_v20 = vpop.f32.mrb[104].mxu0  ;;  %6423 = vst.msk [vmem:[%s9282_s4 + $0x188] sm:$0xf] %vm6324_vm3, %v7176_v21  ;;  %v7177_v28 = vpack.c.bf16 %v5803_v22, %v5803_v22  ;;  %v8058_v29 = vadd.f32 %v7936_v60, %v7684_v26  ;;  %v2407_v36 = vpop.f32.mrb[101].mxu1 }
 0x2af   : > { %v5370_v23 = vpop.f32.mrb[105].mxu0  ;;  %6421 = vst.msk [vmem:[%s9282_s4 + $0x180] sm:$0xf] %vm6324_vm3, %v7174_v24  ;;  %v7175_v32 = vpack.c.bf16 %v5801_v25, %v5801_v25  ;;  %v8059_v33 = vadd.f32 %v5354_v63, %v2407_v36  ;;  %v7685_v34 = vpop.f32.mrb[102].mxu1 }
 0x2b0   : > { %v7941_v27 = vpop.f32.mrb[106].mxu0  ;;  %6424 = vst.msk [vmem:[%s9282_s4 + $0x18c] sm:$0xf] %vm6324_vm3, %v7177_v28  ;;  %v5682_v35 = vadd.f32 %v9505_v31, %v8058_v29  ;;  %v8060_v37 = vadd.f32 %v7937_v3, %v7685_v34  ;;  %v2410_v38 = vpop.f32.mrb[103].mxu1 }
 0x2b1   : > { %v5373_v30 = vpop.f32.mrb[107].mxu0  ;;  %6422 = vst.msk [vmem:[%s9282_s4 + $0x184] sm:$0xf] %vm6324_vm3, %v7175_v32  ;;  %v5680_v39 = vadd.f32 %v9505_v31, %v8059_v33  ;;  %v8061_v40 = vadd.f32 %v5357_v7, %v2410_v38 }
 0x2b2   : > { %v5806_v41 = vmax.f32 %v5682_v35, 0.0  ;;  %v5683_v42 = vadd.f32 %v9505_v31, %v8060_v37 }
 0x2b3   : > { %v5804_v43 = vmax.f32 %v5680_v39, 0.0  ;;  %v5681_v44 = vadd.f32 %v9505_v31, %v8061_v40 }
 0x2b4   : > { %v7180_v46 = vpack.c.bf16 %v5806_v41, %v5806_v41  ;;  %v5807_v47 = vmax.f32 %v5683_v42, 0.0 }
 0x2b5   : > { %v7178_v49 = vpack.c.bf16 %v5804_v43, %v5804_v43  ;;  %v5805_v50 = vmax.f32 %v5681_v44, 0.0  ;;  %v7688_v51 = vpop.f32.mrb[104].mxu1 }
 0x2b6   : > { %v7944_v45 = vpop.f32.mrb[108].mxu0  ;;  %6427 = vst.msk [vmem:[%s9282_s4 + $0x198] sm:$0xf] %vm6324_vm3, %v7180_v46  ;;  %v7181_v53 = vpack.c.bf16 %v5807_v47, %v5807_v47  ;;  %v8062_v54 = vadd.f32 %v7940_v20, %v7688_v51  ;;  %v2423_v55 = vpop.f32.mrb[105].mxu1 }
 0x2b7   : > { %v5386_v48 = vpop.f32.mrb[109].mxu0  ;;  %6425 = vst.msk [vmem:[%s9282_s4 + $0x190] sm:$0xf] %vm6324_vm3, %v7178_v49  ;;  %v7179_v57 = vpack.c.bf16 %v5805_v50, %v5805_v50  ;;  %v8063_v58 = vadd.f32 %v5370_v23, %v2423_v55  ;;  %v7689_v59 = vpop.f32.mrb[106].mxu1 }
 0x2b8   : > { %v7945_v52 = vpop.f32.mrb[110].mxu0  ;;  %6428 = vst.msk [vmem:[%s9282_s4 + $0x19c] sm:$0xf] %vm6324_vm3, %v7181_v53  ;;  %v5686_v60 = vadd.f32 %v9505_v31, %v8062_v54  ;;  %v8064_v61 = vadd.f32 %v7941_v27, %v7689_v59  ;;  %v2426_v62 = vpop.f32.mrb[107].mxu1 }
 0x2b9   : > { %v5389_v56 = vpop.f32.mrb[111].mxu0  ;;  %6426 = vst.msk [vmem:[%s9282_s4 + $0x194] sm:$0xf] %vm6324_vm3, %v7179_v57  ;;  %v5684_v63 = vadd.f32 %v9505_v31, %v8063_v58  ;;  %v8065_v0 = vadd.f32 %v5373_v30, %v2426_v62 }
 0x2ba   : > { %v5810_v1 = vmax.f32 %v5686_v60, 0.0  ;;  %v5687_v2 = vadd.f32 %v9505_v31, %v8064_v61 }
 0x2bb   : > { %v5808_v3 = vmax.f32 %v5684_v63, 0.0  ;;  %v5685_v4 = vadd.f32 %v9505_v31, %v8065_v0 }
 0x2bc   : > { %v7184_v6 = vpack.c.bf16 %v5810_v1, %v5810_v1  ;;  %v5811_v7 = vmax.f32 %v5687_v2, 0.0 }
 0x2bd   : > { %v7182_v9 = vpack.c.bf16 %v5808_v3, %v5808_v3  ;;  %v5809_v10 = vmax.f32 %v5685_v4, 0.0  ;;  %v7692_v11 = vpop.f32.mrb[108].mxu1 }
 0x2be   : > { %v7948_v5 = vpop.f32.mrb[112].mxu0  ;;  %6431 = vst.msk [vmem:[%s9282_s4 + $0x1a8] sm:$0xf] %vm6324_vm3, %v7184_v6  ;;  %v7185_v13 = vpack.c.bf16 %v5811_v7, %v5811_v7  ;;  %v8066_v14 = vadd.f32 %v7944_v45, %v7692_v11  ;;  %v2439_v15 = vpop.f32.mrb[109].mxu1 }
 0x2bf   : > { %v5402_v8 = vpop.f32.mrb[113].mxu0  ;;  %6429 = vst.msk [vmem:[%s9282_s4 + $0x1a0] sm:$0xf] %vm6324_vm3, %v7182_v9  ;;  %v7183_v17 = vpack.c.bf16 %v5809_v10, %v5809_v10  ;;  %v8067_v18 = vadd.f32 %v5386_v48, %v2439_v15  ;;  %v7693_v19 = vpop.f32.mrb[110].mxu1 }
 0x2c0   : > { %v7949_v12 = vpop.f32.mrb[114].mxu0  ;;  %6432 = vst.msk [vmem:[%s9282_s4 + $0x1ac] sm:$0xf] %vm6324_vm3, %v7185_v13  ;;  %v5690_v20 = vadd.f32 %v9505_v31, %v8066_v14  ;;  %v8068_v21 = vadd.f32 %v7945_v52, %v7693_v19  ;;  %v2442_v22 = vpop.f32.mrb[111].mxu1 }
 0x2c1   : > { %v5405_v16 = vpop.f32.mrb[115].mxu0  ;;  %6430 = vst.msk [vmem:[%s9282_s4 + $0x1a4] sm:$0xf] %vm6324_vm3, %v7183_v17  ;;  %v5688_v23 = vadd.f32 %v9505_v31, %v8067_v18  ;;  %v8069_v24 = vadd.f32 %v5389_v56, %v2442_v22 }
 0x2c2   : > { %v5814_v25 = vmax.f32 %v5690_v20, 0.0  ;;  %v5691_v26 = vadd.f32 %v9505_v31, %v8068_v21 }
 0x2c3   : > { %v5812_v27 = vmax.f32 %v5688_v23, 0.0  ;;  %v5689_v28 = vadd.f32 %v9505_v31, %v8069_v24 }
 0x2c4   : > { %v7188_v36 = vpack.c.bf16 %v5814_v25, %v5814_v25  ;;  %v5815_v30 = vmax.f32 %v5691_v26, 0.0 }
 0x2c5   : > { %v7186_v33 = vpack.c.bf16 %v5812_v27, %v5812_v27  ;;  %v5813_v34 = vmax.f32 %v5689_v28, 0.0  ;;  %v7696_v35 = vpop.f32.mrb[112].mxu1 }
 0x2c6   : > { %v7952_v29 = vpop.f32.mrb[116].mxu0  ;;  %6435 = vst.msk [vmem:[%s9282_s4 + $0x1b8] sm:$0xf] %vm6324_vm3, %v7188_v36  ;;  %v7189_v38 = vpack.c.bf16 %v5815_v30, %v5815_v30  ;;  %v8070_v39 = vadd.f32 %v7948_v5, %v7696_v35  ;;  %v2455_v40 = vpop.f32.mrb[113].mxu1 }
 0x2c7   : > { %v5418_v32 = vpop.f32.mrb[117].mxu0  ;;  %6433 = vst.msk [vmem:[%s9282_s4 + $0x1b0] sm:$0xf] %vm6324_vm3, %v7186_v33  ;;  %v7187_v42 = vpack.c.bf16 %v5813_v34, %v5813_v34  ;;  %v8071_v43 = vadd.f32 %v5402_v8, %v2455_v40  ;;  %v7697_v44 = vpop.f32.mrb[114].mxu1 }
 0x2c8   : > { %v7953_v37 = vpop.f32.mrb[118].mxu0  ;;  %6436 = vst.msk [vmem:[%s9282_s4 + $0x1bc] sm:$0xf] %vm6324_vm3, %v7189_v38  ;;  %v5694_v45 = vadd.f32 %v9505_v31, %v8070_v39  ;;  %v8072_v46 = vadd.f32 %v7949_v12, %v7697_v44  ;;  %v2458_v47 = vpop.f32.mrb[115].mxu1 }
 0x2c9   : > { %v5421_v41 = vpop.f32.mrb[119].mxu0  ;;  %6434 = vst.msk [vmem:[%s9282_s4 + $0x1b4] sm:$0xf] %vm6324_vm3, %v7187_v42  ;;  %v5692_v48 = vadd.f32 %v9505_v31, %v8071_v43  ;;  %v8073_v49 = vadd.f32 %v5405_v16, %v2458_v47 }
 0x2ca   : > { %v5818_v50 = vmax.f32 %v5694_v45, 0.0  ;;  %v5695_v51 = vadd.f32 %v9505_v31, %v8072_v46 }
 0x2cb   : > { %v5816_v52 = vmax.f32 %v5692_v48, 0.0  ;;  %v5693_v53 = vadd.f32 %v9505_v31, %v8073_v49 }
 0x2cc   : > { %v7192_v55 = vpack.c.bf16 %v5818_v50, %v5818_v50  ;;  %v5819_v56 = vmax.f32 %v5695_v51, 0.0 }
 0x2cd   : > { %v7190_v58 = vpack.c.bf16 %v5816_v52, %v5816_v52  ;;  %v5817_v59 = vmax.f32 %v5693_v53, 0.0  ;;  %v7700_v60 = vpop.f32.mrb[116].mxu1 }
 0x2ce   : > { %v7956_v54 = vpop.f32.mrb[120].mxu0  ;;  %6439 = vst.msk [vmem:[%s9282_s4 + $0x1c8] sm:$0xf] %vm6324_vm3, %v7192_v55  ;;  %v7193_v62 = vpack.c.bf16 %v5819_v56, %v5819_v56  ;;  %v8074_v63 = vadd.f32 %v7952_v29, %v7700_v60  ;;  %v2471_v0 = vpop.f32.mrb[117].mxu1 }
 0x2cf   : > { %v5434_v57 = vpop.f32.mrb[121].mxu0  ;;  %6437 = vst.msk [vmem:[%s9282_s4 + $0x1c0] sm:$0xf] %vm6324_vm3, %v7190_v58  ;;  %v7191_v2 = vpack.c.bf16 %v5817_v59, %v5817_v59  ;;  %v8075_v3 = vadd.f32 %v5418_v32, %v2471_v0  ;;  %v7701_v4 = vpop.f32.mrb[118].mxu1 }
 0x2d0   : > { %v7957_v61 = vpop.f32.mrb[122].mxu0  ;;  %6440 = vst.msk [vmem:[%s9282_s4 + $0x1cc] sm:$0xf] %vm6324_vm3, %v7193_v62  ;;  %v5698_v5 = vadd.f32 %v9505_v31, %v8074_v63  ;;  %v8076_v6 = vadd.f32 %v7953_v37, %v7701_v4  ;;  %v2474_v7 = vpop.f32.mrb[119].mxu1 }
 0x2d1   : > { %v5437_v1 = vpop.f32.mrb[123].mxu0  ;;  %6438 = vst.msk [vmem:[%s9282_s4 + $0x1c4] sm:$0xf] %vm6324_vm3, %v7191_v2  ;;  %v5696_v8 = vadd.f32 %v9505_v31, %v8075_v3  ;;  %v8077_v9 = vadd.f32 %v5421_v41, %v2474_v7 }
 0x2d2   : > { %v5822_v10 = vmax.f32 %v5698_v5, 0.0  ;;  %v5699_v11 = vadd.f32 %v9505_v31, %v8076_v6 }
 0x2d3   : > { %v5820_v12 = vmax.f32 %v5696_v8, 0.0  ;;  %v5697_v13 = vadd.f32 %v9505_v31, %v8077_v9 }
 0x2d4   : > { %v7196_v14 = vpack.c.bf16 %v5822_v10, %v5822_v10  ;;  %v5823_v15 = vmax.f32 %v5699_v11, 0.0 }
 0x2d5   : > { %v7194_v16 = vpack.c.bf16 %v5820_v12, %v5820_v12  ;;  %v5821_v17 = vmax.f32 %v5697_v13, 0.0  ;;  %v7704_v18 = vpop.f32.mrb[120].mxu1 }
 0x2d6   : > { %6443 = vst.msk [vmem:[%s9282_s4 + $0x1d8] sm:$0xf] %vm6324_vm3, %v7196_v14  ;;  %v7197_v19 = vpack.c.bf16 %v5823_v15, %v5823_v15  ;;  %v8078_v20 = vadd.f32 %v7956_v54, %v7704_v18  ;;  %v2487_v21 = vpop.f32.mrb[121].mxu1 }
 0x2d7   : > { %6441 = vst.msk [vmem:[%s9282_s4 + $0x1d0] sm:$0xf] %vm6324_vm3, %v7194_v16  ;;  %v7195_v22 = vpack.c.bf16 %v5821_v17, %v5821_v17  ;;  %v8079_v23 = vadd.f32 %v5434_v57, %v2487_v21  ;;  %v7705_v24 = vpop.f32.mrb[122].mxu1 }
 0x2d8   : > { %6444 = vst.msk [vmem:[%s9282_s4 + $0x1dc] sm:$0xf] %vm6324_vm3, %v7197_v19  ;;  %v5702_v25 = vadd.f32 %v9505_v31, %v8078_v20  ;;  %v8080_v26 = vadd.f32 %v7957_v61, %v7705_v24  ;;  %v2490_v27 = vpop.f32.mrb[123].mxu1 }
 0x2d9   : > { %6442 = vst.msk [vmem:[%s9282_s4 + $0x1d4] sm:$0xf] %vm6324_vm3, %v7195_v22  ;;  %v5700_v28 = vadd.f32 %v9505_v31, %v8079_v23  ;;  %v8081_v29 = vadd.f32 %v5437_v1, %v2490_v27 }
 0x2da   : > { %v5826_v36 = vmax.f32 %v5702_v25, 0.0  ;;  %v5703_v30 = vadd.f32 %v9505_v31, %v8080_v26 }
 0x2db   : > { %v5824_v32 = vmax.f32 %v5700_v28, 0.0  ;;  %v5701_v33 = vadd.f32 %v9505_v31, %v8081_v29 }
 0x2dc   : > { %v7200_v34 = vpack.c.bf16 %v5826_v36, %v5826_v36  ;;  %v5827_v35 = vmax.f32 %v5703_v30, 0.0 }
 0x2dd   : > { %v7198_v37 = vpack.c.bf16 %v5824_v32, %v5824_v32  ;;  %v5825_v38 = vmax.f32 %v5701_v33, 0.0 }
 0x2de   : > { %6447 = vst.msk [vmem:[%s9282_s4 + $0x1e8] sm:$0xf] %vm6324_vm3, %v7200_v34  ;;  %v7201_v39 = vpack.c.bf16 %v5827_v35, %v5827_v35 }
 0x2df   : > { %6445 = vst.msk [vmem:[%s9282_s4 + $0x1e0] sm:$0xf] %vm6324_vm3, %v7198_v37  ;;  %v7199_v40 = vpack.c.bf16 %v5825_v38, %v5825_v38 }
 0x2e0   : > { %6448 = vst.msk [vmem:[%s9282_s4 + $0x1ec] sm:$0xf] %vm6324_vm3, %v7201_v39 }
 0x2e1   : > { %6446 = vst.msk [vmem:[%s9282_s4 + $0x1e4] sm:$0xf] %vm6324_vm3, %v7199_v40 }
 0x2e2 PF: > { %s13_s12 = sadd.s32 1, %s8605_s12  }
 0x2e3   : > { %p10_p4 = scmp.ge.s32.totalorder %s13_s12, 4  }
 0x2e5   :  { %12 = sbr.rel (!%p10_p4) target bundleno = 1 (0x1), region = 62 }

// kernel: encoder_forward.5
= control target key start
LH: loop header
LB: loop body
LE: loop exit
PB: predicated region body
PF: predicated region fallthrough
CT: control target
= control target key end

     0   :  { %s2405_s12 = smov 0   ;;  %s2872_s0 = inlined_call_operand.vmem [shape: bf16[2,226,128], index: 0, kind: input, shape index: {}]   ;;  %s2873_s1 = inlined_call_operand.vmem [shape: bf16[512,64], index: 1, kind: input, shape index: {}]   ;;  %s2874_s2 = inlined_call_operand.vmem [shape: f32[1,64], index: 2, kind: input, shape index: {}]   ;;  %s2875_s3 = inlined_call_operand.vmem [shape: bf16[2,210,64], index: 3, kind: output, shape index: {}]  }
   0x1 LB: > { %s1817_s13 = sadd.s32 4294967295, %s2383_s12   ;;  %p1821_p0 = scmp.ge.s32.totalorder %s2383_s12, 1  ;;  %s2383_s12 = sphi %s2405_s12, %s13_s12  }
   0x2   : > { %p137_p1 = scmp.lt.s32.totalorder %s2383_s12, 3 }
   0x4   : > { %p138_p2 = pnand %p1821_p0, %p137_p1 }
   0x6   : > { %141 = sbr.rel (%p138_p2) target bundleno = 378 (0x17a), region = 32 }
   0xd   : > { %v2302_v0 = vld [vmem:[%s2873_s1 + $0x40] sm:$0xff]   ;;  %v2304_v2 = vld [vmem:[%s2873_s1 + $0x48] sm:$0xff]   ;;  %p161_p3 = scmp.lt.s32.totalorder %s1817_s13, 1  ;;  %v2306_v4 = vld [vmem:[%s2873_s1 + $0x50] sm:$0xff]   ;;  %vm300_vm0 = vsmask.f32 7424 }
   0xe   : > { %v2303_v1 = vld [vmem:[%s2873_s1 + $0x80] sm:$0xff]   ;;  %2044 = vmatprep.subr.bf16.mxu1 %v2302_v0  ;;  %v2305_v3 = vld [vmem:[%s2873_s1 + $0x88] sm:$0xff]   ;;  %v2307_v5 = vld [vmem:[%s2873_s1 + $0x90] sm:$0xff]   ;;  %vm941_vm1 = vsmask.f32 4352  ;;  %vm1733_vm2 = vcmask 519168  }
   0xf   : > { %2132 = vmatprep.subr.bf16.mxu0 %v2303_v1  ;;  %2045 = vmatpush3.bf16.msra.mxu1 %v2302_v0  ;;  %s2883_s13 = smov (!%p161_p3, %s1817_s13), 1  ;;  %v2308_v6 = vld [vmem:[%s2873_s1 + $0x58] sm:$0xff]   ;;  %v2310_v8 = vld [vmem:[%s2873_s1 + $0x60] sm:$0xff]   ;;  %v2312_v10 = vld [vmem:[%s2873_s1 + $0x68] sm:$0xff]   ;;  %vm1760_vm3 = vcmask 516096  }
  0x10   : > { %2133 = vmatpush3.bf16.msra.mxu0 %v2303_v1  ;;  %2046 = vmatprep.subr.bf16.mxu1 %v2304_v2  ;;  %v2309_v7 = vld [vmem:[%s2873_s1 + $0x98] sm:$0xff]   ;;  %s2292_s30 = smul.u32 116, %s2883_s13  ;;  %v2311_v9 = vld [vmem:[%s2873_s1 + $0xa0] sm:$0xff]   ;;  %v2313_v11 = vld [vmem:[%s2873_s1 + $0xa8] sm:$0xff]  }
  0x11   : > { %2134 = vmatprep.subr.bf16.mxu0 %v2305_v3  ;;  %v2314_v14 = vld [vmem:[%s2873_s1 + $0x70] sm:$0xff]   ;;  %v2316_v31 = vld [vmem:[%s2873_s1 + $0x78] sm:$0xff]   ;;  %v2324_v49 = vld [vmem:[%s2873_s1] sm:$0xff]   ;;  %s2293_s7 = smul.u32 108, %s2883_s13 }
  0x12   : > { %s2452_s14 = scalar_lea.vmem %s2872_s0, %s2292_s30  ;;  %v2315_v18 = vld [vmem:[%s2873_s1 + $0xb0] sm:$0xff]   ;;  %v2317_v35 = vld [vmem:[%s2873_s1 + $0xb8] sm:$0xff]   ;;  %v2326_v62 = vld [vmem:[%s2873_s1 + $0xc0] sm:$0xff]  }
  0x13   : > { %2047 = vmatpush3.bf16.msra.mxu1 %v2304_v2  ;;  %v2458_v12 = vld [vmem:[%s2452_s14] sm:$0xff]   ;;  %v2461_v13 = vld [vmem:[%s2452_s14 + $0x8] sm:$0xff]   ;;  %v2480_v22 = vld [vmem:[%s2452_s14 + $0x10] sm:$0xf]  ;;  %s2784_s10 = scalar_lea.vmem %s2875_s3, %s2293_s7 }
  0x14   : > { %2135 = vmatpush3.bf16.msra.mxu0 %v2305_v3  ;;  %2048 = vmatprep.subr.bf16.mxu1 %v2306_v4  ;;  %v827_v15 = vld [vmem:[%s2452_s14 + $0x4] sm:$0x8]  ;;  %v2468_v16 = vld [vmem:[%s2452_s14 + $0x8] sm:$0xf]  ;;  %v2471_v17 = vld [vmem:[%s2452_s14 + $0xc] sm:$0xf] }
  0x15   : > { %2136 = vmatprep.subr.bf16.mxu0 %v2307_v5  ;;  %v302_v19 = vshrl.u32 %v2458_v12, 16  ;;  %v304_v20 = vshll.u32 %v2458_v12, 16  ;;  %v309_v21 = vshll.u32 %v2461_v13, 16  ;;  %v1855_v23 = vcombine.low %v827_v15, %v2468_v16  ;;  %v2484_v24 = vld [vmem:[%s2452_s14 + $0x10] sm:$0xff]   ;;  %v2500_v42 = vld [vmem:[%s2452_s14 + $0x18] sm:$0xf] }
  0x16   : > { %v2487_v25 = vld [vmem:[%s2452_s14 + $0x14] sm:$0xf]  ;;  %v1856_v26 = vcombine.low %v2471_v17, %v2480_v22  ;;  %v313_v34 = vshrl.u32 %v2461_v13, 16  ;;  %v317_v39 = vshll.u32 %v2484_v24, 16  ;;  %v2506_v46 = vld [vmem:[%s2452_s14 + $0x18] sm:$0xff]   ;;  %v321_v50 = vshrl.u32 %v2484_v24, 16 }
  0x17   : > { %2049 = vmatpush3.bf16.msra.mxu1 %v2306_v4  ;;  %v306_v27 = vrot.slane %v304_v20, 1  ;;  %v311_v28 = vrot.slane %v309_v21, 1  ;;  %v943_v29 = vshrl.u32 %v1855_v23, 16  ;;  %v946_v30 = vshll.u32 %v1855_v23, 16  ;;  %v2514_v55 = vld [vmem:[%s2452_s14 + $0x20] sm:$0xff]  }
  0x18   : > { %2137 = vmatpush3.bf16.msra.mxu0 %v2307_v5  ;;  %2050 = vmatprep.subr.bf16.mxu1 %v2308_v6  ;;  %v951_v32 = vshrl.u32 %v1856_v26, 16  ;;  %v954_v33 = vshll.u32 %v1856_v26, 16  ;;  %v1857_v45 = vcombine.low %v2487_v25, %v2500_v42  ;;  %v319_v48 = vrot.slane %v317_v39, 1  ;;  %v2518_v58 = vld [vmem:[%s2452_s14 + $0x1c] sm:$0xf]  ;;  %v2333_v26 = vld [vmem:[%s2873_s1 + $0x10] sm:$0xff]  }
  0x19   : > { %2138 = vmatprep.subr.bf16.mxu0 %v2309_v7  ;;  %v307_v36 = vor.u32 %v306_v27, %v302_v19  ;;  %v945_v37 = vrot.slane %v943_v29, 3  ;;  %v948_v38 = vrot.slane %v946_v30, 4  ;;  %v315_v51 = vor.u32 %v313_v34, %v311_v28  ;;  %v2521_v59 = vld [vmem:[%s2452_s14 + $0x20] sm:$0xf]  ;;  %v2531_v3 = vld [vmem:[%s2452_s14 + $0x24] sm:$0xf] }
  0x1a   : > { %v953_v40 = vrot.slane %v951_v32, 3  ;;  %v956_v41 = vrot.slane %v954_v33, 4  ;;  %v960_v52 = vshrl.u32 %v1857_v45, 16  ;;  %v963_v53 = vshll.u32 %v1857_v45, 16  ;;  %v2534_v4 = vld [vmem:[%s2452_s14 + $0x28] sm:$0xf] }
  0x1b   : > { %2051 = vmatpush3.bf16.msra.mxu1 %v2308_v6  ;;  %v312_v43 = vsel %vm300_vm0, %v307_v36, %v311_v28  ;;  %v949_v44 = vor.u32 %v948_v38, %v945_v37  ;;  %v325_v54 = vshll.u32 %v2506_v46, 16  ;;  %v323_v57 = vor.u32 %v321_v50, %v319_v48  ;;  %v2551_v27 = vld [vmem:[%s2452_s14 + $0x28] sm:$0xff]   ;;  %v2558_v32 = vld [vmem:[%s2452_s14 + $0x30] sm:$0xf]  ;;  %v2565_v38 = vld [vmem:[%s2452_s14 + $0x34] sm:$0xf] }
  0x1c   : > { %2139 = vmatpush3.bf16.msra.mxu0 %v2309_v7  ;;  %2052 = vmatprep.subr.bf16.mxu1 %v2310_v8  ;;  %v957_v47 = vor.u32 %v956_v41, %v953_v40  ;;  %v962_v60 = vrot.slane %v960_v52, 3  ;;  %v965_v61 = vrot.slane %v963_v53, 4  ;;  %v1858_v0 = vcombine.low %v2518_v58, %v2521_v59  ;;  %v2328_v7 = vld [vmem:[%s2873_s1 + $0x8] sm:$0xff]   ;;  %v2562_v37 = vld [vmem:[%s2452_s14 + $0x30] sm:$0xff]   ;;  %v2339_v53 = vld [vmem:[%s2873_s1 + $0x18] sm:$0xff]  }
  0x1d   : > { %2140 = vmatprep.subr.bf16.mxu0 %v2311_v9  ;;  %2060 = vmatprep.mubr.bf16.mxu1 %v312_v43  ;;  %v327_v63 = vrot.slane %v325_v54, 1  ;;  %v329_v1 = vshrl.u32 %v2506_v46, 16  ;;  %v333_v2 = vshll.u32 %v2514_v55, 16  ;;  %v320_v5 = vsel %vm300_vm0, %v315_v51, %v319_v48  ;;  %v2555_v29 = vld [vmem:[%s2452_s14 + $0x2c] sm:$0xf]  ;;  %v2585_v54 = vld [vmem:[%s2452_s14 + $0x38] sm:$0xff]  }
  0x1e   : > { %v958_v56 = vsel %vm941_vm1, %v949_v44, %v957_v47  ;;  %v966_v6 = vor.u32 %v965_v61, %v962_v60  ;;  %v337_v28 = vshrl.u32 %v2514_v55, 16  ;;  %v341_v36 = vshll.u32 %v2551_v27, 16  ;;  %v2572_v43 = vld [vmem:[%s2452_s14 + $0x38] sm:$0xf]  ;;  %v2338_v44 = vld [vmem:[%s2873_s1 + $0xd0] sm:$0xff]   ;;  %v2590_v61 = vld [vmem:[%s2452_s14 + $0x40] sm:$0xff]  }
  0x1f   : > { %2053 = vmatpush3.bf16.msra.mxu1 %v2310_v8  ;;  %2148 = vmatprep.mubr.bf16.mxu0 %v958_v56  ;;  %v969_v8 = vshrl.u32 %v1858_v0, 16  ;;  %v1860_v40 = vcombine.low %v2555_v29, %v2558_v32  ;;  %v345_v41 = vshrl.u32 %v2551_v27, 16  ;;  %v349_v48 = vshll.u32 %v2562_v37, 16 }
  0x20   : > { %2141 = vmatpush3.bf16.msra.mxu0 %v2311_v9  ;;  %2054 = vmatprep.subr.bf16.mxu1 %v2312_v10  ;;  %v972_v9 = vshll.u32 %v1858_v0, 16  ;;  %v967_v15 = vsel %vm941_vm1, %v957_v47, %v966_v6  ;;  %v343_v47 = vrot.slane %v341_v36, 1  ;;  %v2345_v36 = vld [vmem:[%s2873_s1 + $0x20] sm:$0xff]  }
  0x21   : > { %2142 = vmatprep.subr.bf16.mxu0 %v2313_v11  ;;  %v971_v19 = vrot.slane %v969_v8, 3  ;;  %v987_v51 = vshrl.u32 %v1860_v40, 16  ;;  %v990_v52 = vshll.u32 %v1860_v40, 16  ;;  %v351_v60 = vrot.slane %v349_v48, 1  ;;  %v2598_v8 = vld [vmem:[%s2452_s14 + $0x40] sm:$0xf] }
  0x22   : > { %v974_v20 = vrot.slane %v972_v9, 4 }
  0x23   : > { %2055 = vmatpush3.bf16.msra.mxu1 %v2312_v10  ;;  %v335_v10 = vrot.slane %v333_v2, 1  ;;  %v2593_v2 = vld [vmem:[%s2452_s14 + $0x3c] sm:$0xf] }
  0x24   : > { %2143 = vmatpush3.bf16.msra.mxu0 %v2313_v11  ;;  %2056 = vmatprep.subr.bf16.mxu1 %v2314_v14  ;;  %v1859_v11 = vcombine.low %v2531_v3, %v2534_v4  ;;  %v975_v30 = vor.u32 %v974_v20, %v971_v19  ;;  %v361_v20 = vshrl.u32 %v2585_v54, 16 }
  0x25   : > { %2144 = vmatprep.subr.bf16.mxu0 %v2315_v18 }
  0x26   : > { %v978_v21 = vshrl.u32 %v1859_v11, 16  ;;  %v981_v23 = vshll.u32 %v1859_v11, 16  ;;  %v976_v39 = vsel %vm941_vm1, %v966_v6, %v975_v30  ;;  %v353_v6 = vshrl.u32 %v2562_v37, 16 }
  0x27   : > { %2057 = vmatpush3.bf16.msra.mxu1 %v2314_v14  ;;  %v2332_v14 = vld [vmem:[%s2873_s1 + $0xc8] sm:$0xff]  }
  0x28   : > { %2145 = vmatpush3.bf16.msra.mxu0 %v2315_v18  ;;  %2058 = vmatprep.subr.bf16.mxu1 %v2316_v31  ;;  %v328_v18 = vsel %vm300_vm0, %v323_v57, %v327_v63  ;;  %v980_v33 = vrot.slane %v978_v21, 3  ;;  %v983_v34 = vrot.slane %v981_v23, 4  ;;  %v365_v21 = vshll.u32 %v2590_v61, 16  ;;  %v2608_v23 = vld [vmem:[%s2452_s14 + $0x48] sm:$0xf] }
  0x29   : > { %2146 = vmatprep.subr.bf16.mxu0 %v2317_v35 }
  0x2a   : > { %v984_v45 = vor.u32 %v983_v34, %v980_v33  ;;  %v367_v34 = vrot.slane %v365_v21, 1  ;;  %v2351_v21 = vld [vmem:[%s2873_s1 + $0x28] sm:$0xff]  }
  0x2b   : > { %2059 = vmatpush3.bf16.msra.mxu1 %v2316_v31  ;;  %v331_v31 = vor.u32 %v329_v1, %v327_v63  ;;  %v992_v63 = vrot.slane %v990_v52, 4 }
  0x2c   : > { %2147 = vmatpush3.bf16.msra.mxu0 %v2317_v35  ;;  %2088 = vmatprep.subr.bf16.mxu1 %v2324_v49  ;;  %v339_v35 = vor.u32 %v337_v28, %v335_v10  ;;  %v985_v56 = vsel %vm941_vm1, %v975_v30, %v984_v45  ;;  %v2344_v28 = vld [vmem:[%s2873_s1 + $0xd8] sm:$0xff]  }
  0x2d   : > { %2176 = vmatprep.subr.bf16.mxu0 %v2326_v62  ;;  %v336_v50 = vsel %vm300_vm0, %v331_v31, %v335_v10 }
  0x2e   : > { %2061 = vmatmul.mubr.bf16.vlgmr.msra.gmra.mrb[0].mxu1 %v320_v5  ;;  %v344_v57 = vsel %vm300_vm0, %v339_v35, %v343_v47  ;;  %v347_v5 = vor.u32 %v345_v41, %v343_v47 }
  0x2f   : > { %2149 = vmatmul.mubr.bf16.vlgmr.msra.gmra.mrb[0].mxu0 %v967_v15  ;;  %2089 = vmatpush3.bf16.msra.mxu1 %v2324_v49  ;;  %v1861_v49 = vcombine.low %v2565_v38, %v2572_v43  ;;  %v2603_v15 = vld [vmem:[%s2452_s14 + $0x44] sm:$0xf] }
  0x30   : > { %2177 = vmatpush3.bf16.msra.mxu0 %v2326_v62  ;;  %2064 = vmatprep.mubr.bf16.mxu1 %v328_v18  ;;  %v989_v62 = vrot.slane %v987_v51, 3  ;;  %v355_v18 = vor.u32 %v353_v6, %v351_v60  ;;  %v1863_v35 = vcombine.low %v2603_v15, %v2608_v23  ;;  %v2627_v51 = vld [vmem:[%s2452_s14 + $0x4c] sm:$0xf] }
  0x31   : > { %2090 = vmatprep.subr.bf16.mxu1 %v2328_v7  ;;  %2178 = vmatprep.subr.bf16.mxu0 %v2332_v14  ;;  %v996_v0 = vshrl.u32 %v1861_v49, 16  ;;  %v999_v1 = vshll.u32 %v1861_v49, 16  ;;  %v2623_v49 = vld [vmem:[%s2452_s14 + $0x48] sm:$0xff]  }
  0x32   : > { %2152 = vmatprep.mubr.bf16.mxu0 %v976_v39  ;;  %v993_v9 = vor.u32 %v992_v63, %v989_v62  ;;  %v352_v39 = vsel %vm300_vm0, %v347_v5, %v351_v60  ;;  %v1014_v47 = vshrl.u32 %v1863_v35, 16  ;;  %v1017_v48 = vshll.u32 %v1863_v35, 16  ;;  %v2634_v63 = vld [vmem:[%s2452_s14 + $0x50] sm:$0xff]  }
  0x33   : > { %2091 = vmatpush3.bf16.msra.mxu1 %v2328_v7  ;;  %v357_v7 = vshll.u32 %v2585_v54, 16  ;;  %v998_v10 = vrot.slane %v996_v0, 3  ;;  %v1001_v11 = vrot.slane %v999_v1, 4  ;;  %v2637_v0 = vld [vmem:[%s2452_s14 + $0x54] sm:$0xf] }
  0x34   : > { %2179 = vmatpush3.bf16.msra.mxu0 %v2332_v14  ;;  %2092 = vmatprep.subr.bf16.mxu1 %v2333_v26  ;;  %v1862_v14 = vcombine.low %v2593_v2, %v2598_v8  ;;  %v994_v30 = vsel %vm941_vm1, %v984_v45, %v993_v9  ;;  %v1016_v60 = vrot.slane %v1014_v47, 3  ;;  %v1019_v62 = vrot.slane %v1017_v48, 4  ;;  %v2670_v47 = vld [vmem:[%s2452_s14 + $0x60] sm:$0xf] }
  0x35   : > { %2180 = vmatprep.subr.bf16.mxu0 %v2338_v44  ;;  %v359_v19 = vrot.slane %v357_v7, 1  ;;  %v1002_v31 = vor.u32 %v1001_v11, %v998_v10  ;;  %v2643_v7 = vld [vmem:[%s2452_s14 + $0x58] sm:$0xf] }
  0x36   : > { %2065 = vmatmul.mubr.bf16.gmra.mrb[4].mxu1 %v336_v50  ;;  %v1005_v33 = vshrl.u32 %v1862_v14, 16  ;;  %v369_v50 = vshrl.u32 %v2590_v61, 16  ;;  %v1020_v10 = vor.u32 %v1019_v62, %v1016_v60 }
  0x37   : > { %2153 = vmatmul.mubr.bf16.gmra.mrb[4].mxu0 %v985_v56  ;;  %2068 = vmatprep.mubr.bf16.mxu1 %v344_v57  ;;  %v360_v40 = vsel %vm300_vm0, %v355_v18, %v359_v19  ;;  %v1003_v45 = vsel %vm941_vm1, %v993_v9, %v1002_v31  ;;  %v2630_v56 = vld [vmem:[%s2452_s14 + $0x50] sm:$0xf]  ;;  %v363_v57 = vor.u32 %v361_v20, %v359_v19  ;;  %v2350_v9 = vld [vmem:[%s2873_s1 + $0xe0] sm:$0xff]  }
  0x38   : > { %2093 = vmatpush3.bf16.msra.mxu1 %v2333_v26  ;;  %2181 = vmatpush3.bf16.msra.mxu0 %v2338_v44  ;;  %v1008_v26 = vshll.u32 %v1862_v14, 16  ;;  %v1007_v41 = vrot.slane %v1005_v33, 3  ;;  %v371_v5 = vor.u32 %v369_v50, %v367_v34  ;;  %v1864_v6 = vcombine.low %v2627_v51, %v2630_v56  ;;  %v2354_v33 = vld [vmem:[%s2873_s1 + $0xe8] sm:$0xff]  }
  0x39   : > { %2094 = vmatprep.subr.bf16.mxu1 %v2339_v53  ;;  %2156 = vmatprep.mubr.bf16.mxu0 %v994_v30  ;;  %v377_v14 = vshrl.u32 %v2623_v49, 16  ;;  %v1865_v18 = vcombine.low %v2637_v0, %v2643_v7  ;;  %v368_v30 = vsel %vm300_vm0, %v363_v57, %v367_v34  ;;  %v385_v34 = vshrl.u32 %v2634_v63, 16 }
  0x3a   : > { %2182 = vmatprep.subr.bf16.mxu0 %v2344_v28  ;;  %v1010_v44 = vrot.slane %v1008_v26, 4  ;;  %v1023_v19 = vshrl.u32 %v1864_v6, 16  ;;  %v1026_v20 = vshll.u32 %v1864_v6, 16 }
  0x3c   : > { %2095 = vmatpush3.bf16.msra.mxu1 %v2339_v53  ;;  %2183 = vmatpush3.bf16.msra.mxu0 %v2344_v28  ;;  %v1011_v52 = vor.u32 %v1010_v44, %v1007_v41  ;;  %v373_v53 = vshll.u32 %v2623_v49, 16  ;;  %v2655_v28 = vld [vmem:[%s2452_s14 + $0x58] sm:$0xff]   ;;  %v1025_v26 = vrot.slane %v1023_v19, 3  ;;  %v1028_v35 = vrot.slane %v1026_v20, 4  ;;  %v2682_v19 = vld [vmem:[%s2452_s14 + $0x64] sm:$0xf] }
  0x3d   : > { %2096 = vmatprep.subr.bf16.mxu1 %v2345_v36  ;;  %2184 = vmatprep.subr.bf16.mxu0 %v2350_v9  ;;  %v2685_v20 = vld [vmem:[%s2452_s14 + $0x68] sm:$0xf] }
  0x3e   : > { %2069 = vmatmul.mubr.bf16.gmra.mrb[8].mxu1 %v352_v39  ;;  %v1012_v1 = vsel %vm941_vm1, %v1002_v31, %v1011_v52  ;;  %v375_v11 = vrot.slane %v373_v53, 1  ;;  %v381_v31 = vshll.u32 %v2634_v63, 16  ;;  %v1035_v39 = vshll.u32 %v1865_v18, 16  ;;  %v2675_v53 = vld [vmem:[%s2452_s14 + $0x60] sm:$0xff]  }
  0x3f   : > { %2157 = vmatmul.mubr.bf16.gmra.mrb[8].mxu0 %v1003_v45  ;;  %2072 = vmatprep.mubr.bf16.mxu1 %v360_v40  ;;  %v2663_v40 = vld [vmem:[%s2452_s14 + $0x5c] sm:$0xf]  ;;  %v1021_v41 = vsel %vm941_vm1, %v1011_v52, %v1020_v10  ;;  %v389_v45 = vshll.u32 %v2655_v28, 16  ;;  %v1029_v48 = vor.u32 %v1028_v35, %v1025_v26  ;;  %2878 = vst [vmem:[#allocation2_spill] sm:$0xff] %v2675_v53  ;;  %v397_v26 = vshll.u32 %v2675_v53, 16 }
  0x40   : > { %2160 = vmatprep.mubr.bf16.mxu0 %v1012_v1  ;;  %2097 = vmatpush3.bf16.msra.mxu1 %v2345_v36  ;;  %v1032_v36 = vshrl.u32 %v1865_v18, 16  ;;  %v376_v44 = vsel %vm300_vm0, %v371_v5, %v375_v11  ;;  %v1037_v57 = vrot.slane %v1035_v39, 4  ;;  %v1866_v60 = vcombine.low %v2663_v40, %v2670_v47  ;;  %v2357_v1 = vld [vmem:[%s2873_s1 + $0x30] sm:$0xff]  }
  0x41   : > { %2185 = vmatpush3.bf16.msra.mxu0 %v2350_v9  ;;  %2098 = vmatprep.subr.bf16.mxu1 %v2351_v21  ;;  %v383_v52 = vrot.slane %v381_v31, 1  ;;  %v391_v62 = vrot.slane %v389_v45, 1  ;;  %v1030_v5 = vsel %vm941_vm1, %v1020_v10, %v1029_v48  ;;  %v379_v6 = vor.u32 %v377_v14, %v375_v11  ;;  %v2358_v10 = vld [vmem:[%s2873_s1 + $0xf0] sm:$0xff]   ;;  %v2698_v45 = vld [vmem:[%s2452_s14 + $0x6c] sm:$0xf] }
  0x42   : > { %2186 = vmatprep.subr.bf16.mxu0 %v2354_v33  ;;  %v1034_v50 = vrot.slane %v1032_v36, 3  ;;  %v1041_v9 = vshrl.u32 %v1866_v60, 16  ;;  %v1044_v18 = vshll.u32 %v1866_v60, 16  ;;  %v393_v31 = vshrl.u32 %v2655_v28, 16 }
  0x43   : > { %v401_v39 = vshrl.u32 %v2675_v53, 16 }
  0x44   : > { %2099 = vmatpush3.bf16.msra.mxu1 %v2351_v21  ;;  %v1038_v21 = vor.u32 %v1037_v57, %v1034_v50  ;;  %v1043_v11 = vrot.slane %v1041_v9, 3  ;;  %v1046_v14 = vrot.slane %v1044_v18, 4  ;;  %v2361_v50 = vld [vmem:[%s2873_s1 + $0x38] sm:$0xff]   ;;  %v2706_v9 = vld [vmem:[%s2452_s14 + $0x70] sm:$0x1] }
  0x45   : > { %2187 = vmatpush3.bf16.msra.mxu0 %v2354_v33  ;;  %v1867_v33 = vcombine.low %v2682_v19, %v2685_v20  ;;  %2100 = vmatprep.subr.bf16.mxu1 %v2357_v1  ;;  %2879 = vst [vmem:[#allocation3_spill] sm:$0xff] %v2706_v9 }
  0x46   : > { %2073 = vmatmul.mubr.bf16.gmra.mrb[12].mxu1 %v368_v30  ;;  %v387_v30 = vor.u32 %v385_v34, %v383_v52  ;;  %2188 = vmatprep.subr.bf16.mxu0 %v2358_v10  ;;  %v2359_v34 = vld [vmem:[%s2452_s14 + $0x68] ss:$0 sps:$4 sm:$0x33]   ;;  %v1039_v57 = vsel %vm941_vm1, %v1029_v48, %v1038_v21  ;;  %v395_v48 = vor.u32 %v393_v31, %v391_v62 }
  0x47   : > { %2161 = vmatmul.mubr.bf16.gmra.mrb[12].mxu0 %v1021_v41  ;;  %2076 = vmatprep.mubr.bf16.mxu1 %v376_v44  ;;  %v1050_v35 = vshrl.u32 %v1867_v33, 16  ;;  %v1053_v36 = vshll.u32 %v1867_v33, 16  ;;  %v384_v41 = vsel %vm300_vm0, %v379_v6, %v383_v52  ;;  %v1047_v44 = vor.u32 %v1046_v14, %v1043_v11 }
  0x48   : > { %2164 = vmatprep.mubr.bf16.mxu0 %v1030_v5  ;;  %2101 = vmatpush3.bf16.msra.mxu1 %v2357_v1  ;;  %v392_v60 = vsel %vm300_vm0, %v387_v30, %v391_v62  ;;  %v405_v52 = vshll.u32 %v2359_v34, 16  ;;  %v1868_v6 = vcombine.low %v2698_v45, %v2706_v9  ;;  %v399_v33 = vrot.slane %v397_v26, 1 }
  0x49   : > { %2189 = vmatpush3.bf16.msra.mxu0 %v2358_v10  ;;  %v1052_v1 = vrot.slane %v1050_v35, 3  ;;  %v1055_v5 = vrot.slane %v1053_v36, 4  ;;  %v1048_v18 = vsel %vm941_vm1, %v1038_v21, %v1047_v44  ;;  %2102 = vmatprep.subr.bf16.mxu1 %v2361_v50  ;;  %v2362_v10 = vld [vmem:[%s2873_s1 + $0xf8] sm:$0xff]   ;;  %v409_v31 = vshrl.u32 %v2359_v34, 16 }
  0x4a   : > { %v1059_v30 = vshrl.u32 %v1868_v6, 16  ;;  %v1062_v11 = vshll.u32 %v1868_v6, 16  ;;  %v403_v35 = vor.u32 %v401_v39, %v399_v33  ;;  %v407_v21 = vrot.slane %v405_v52, 1  ;;  %2190 = vmatprep.subr.bf16.mxu0 %v2362_v10 }
  0x4b   : > { %v1056_v14 = vor.u32 %v1055_v5, %v1052_v1  ;;  %v400_v26 = vsel %vm300_vm0, %v395_v48, %v399_v33 }
  0x4c   : > { %2103 = vmatpush3.bf16.msra.mxu1 %v2361_v50  ;;  %v1061_v36 = vrot.slane %v1059_v30, 3  ;;  %v1064_v53 = vrot.slane %v1062_v11, 4  ;;  %v411_v39 = vor.u32 %v409_v31, %v407_v21  ;;  %v1877_v50 = vcombine.low %v2468_v16, %v2471_v17 }
  0x4d   : > { %2191 = vmatpush3.bf16.msra.mxu0 %v2362_v10  ;;  %v1057_v9 = vsel %vm941_vm1, %v1047_v44, %v1056_v14  ;;  %v1879_v44 = vcombine.low %v2500_v42, %v2518_v58  ;;  %v1880_v16 = vcombine.low %v2521_v59, %v2531_v3  ;;  %v1881_v17 = vcombine.low %v2534_v4, %v2555_v29  ;;  %v2880_v58 = vld [vmem:[#allocation2_spill] sm:$0xff]  ;;  %v2374_v59 = vld [vmem:[%s2452_s14 + $0x68] ss:$0 sps:$4 sm:$0x11]  }
  0x4e   : > { %2077 = vmatmul.mubr.bf16.gmra.mrb[16].mxu1 %v384_v41  ;;  %v1065_v41 = vor.u32 %v1064_v53, %v1061_v36  ;;  %v1878_v53 = vcombine.low %v2480_v22, %v2487_v25  ;;  %v1884_v22 = vcombine.low %v2598_v8, %v2603_v15  ;;  %v1886_v25 = vcombine.low %v2630_v56, %v2637_v0  ;;  %v2881_v3 = vld [vmem:[#allocation3_spill] sm:$0xff]  ;;  %v2775_v15 = vld [vmem:[%s2874_s2] ss:$0 sm:$0xff] }
  0x4f   : > { %2165 = vmatmul.mubr.bf16.gmra.mrb[16].mxu0 %v1039_v57  ;;  %2080 = vmatprep.mubr.bf16.mxu1 %v392_v60  ;;  %v408_v57 = vsel %vm300_vm0, %v403_v35, %v407_v21  ;;  %v1887_v42 = vcombine.low %v2643_v7, %v2663_v40  ;;  %v1890_v4 = vcombine.low %v2881_v3, %v2881_v3 }
  0x50   : > { %2168 = vmatprep.mubr.bf16.mxu0 %v1048_v18  ;;  %v1066_v62 = vsel %vm941_vm1, %v1056_v14, %v1065_v41 }
  0x56   : > { %2081 = vmatmul.mubr.bf16.gmra.mrb[20].mxu1 %v400_v26 }
  0x57   : > { %2169 = vmatmul.mubr.bf16.gmra.mrb[20].mxu0 %v1057_v9  ;;  %2084 = vmatprep.mubr.bf16.mxu1 %v408_v57 }
  0x58   : > { %2172 = vmatprep.mubr.bf16.mxu0 %v1066_v62 }
  0x5e   : > { %2085 = vmatmul.mubr.bf16.gmra.mrb[24].mxu1 %v411_v39 }
  0x5f   : > { %2173 = vmatmul.mubr.bf16.gmra.mrb[24].mxu0 %v1065_v41  ;;  %2104 = vmatprep.mubr.bf16.mxu1 %v2458_v12  ;;  %v1882_v12 = vcombine.low %v2558_v32, %v2565_v38 }
  0x60   : > { %2192 = vmatprep.mubr.bf16.mxu0 %v1877_v50 }
  0x66   : > { %2105 = vmatmul.mubr.bf16.vlgmr.msra.gmra.mrb[0].mxu1 %v2461_v13  ;;  %v1883_v13 = vcombine.low %v2572_v43, %v2593_v2 }
  0x67   : > { %2193 = vmatmul.mubr.bf16.vlgmr.msra.gmra.mrb[0].mxu0 %v1878_v53  ;;  %2108 = vmatprep.mubr.bf16.mxu1 %v2484_v24  ;;  %v1885_v24 = vcombine.low %v2608_v23, %v2627_v51 }
  0x68   : > { %2196 = vmatprep.mubr.bf16.mxu0 %v1879_v44 }
  0x6e   : > { %2109 = vmatmul.mubr.bf16.gmra.mrb[4].mxu1 %v2506_v46  ;;  %v1888_v46 = vcombine.low %v2670_v47, %v2682_v19 }
  0x6f   : > { %2197 = vmatmul.mubr.bf16.gmra.mrb[4].mxu0 %v1880_v16  ;;  %2112 = vmatprep.mubr.bf16.mxu1 %v2514_v55  ;;  %v1889_v55 = vcombine.low %v2685_v20, %v2698_v45 }
  0x70   : > { %2200 = vmatprep.mubr.bf16.mxu0 %v1881_v17 }
  0x76   : > { %2113 = vmatmul.mubr.bf16.gmra.mrb[8].mxu1 %v2551_v27 }
  0x77   : > { %2201 = vmatmul.mubr.bf16.gmra.mrb[8].mxu0 %v1882_v12  ;;  %2116 = vmatprep.mubr.bf16.mxu1 %v2562_v37 }
  0x78   : > { %2204 = vmatprep.mubr.bf16.mxu0 %v1883_v13 }
  0x7e   : > { %2117 = vmatmul.mubr.bf16.gmra.mrb[12].mxu1 %v2585_v54 }
  0x7f   : > { %2205 = vmatmul.mubr.bf16.gmra.mrb[12].mxu0 %v1884_v22  ;;  %2120 = vmatprep.mubr.bf16.mxu1 %v2590_v61 }
  0x80   : > { %2208 = vmatprep.mubr.bf16.mxu0 %v1885_v24 }
  0x86   : > { %2121 = vmatmul.mubr.bf16.gmra.mrb[16].mxu1 %v2623_v49 }
  0x87   : > { %2209 = vmatmul.mubr.bf16.gmra.mrb[16].mxu0 %v1886_v25  ;;  %2124 = vmatprep.mubr.bf16.mxu1 %v2634_v63 }
  0x88   : > { %2212 = vmatprep.mubr.bf16.mxu0 %v1887_v42 }
  0x8e   : > { %2125 = vmatmul.mubr.bf16.gmra.mrb[20].mxu1 %v2655_v28 }
  0x8f   : > { %2213 = vmatmul.mubr.bf16.gmra.mrb[20].mxu0 %v1888_v46  ;;  %2128 = vmatprep.mubr.bf16.mxu1 %v2880_v58 }
  0x90   : > { %2216 = vmatprep.mubr.bf16.mxu0 %v1889_v55 }
  0x96   : > { %2129 = vmatmul.mubr.bf16.gmra.mrb[28].mxu1 %v2374_v59 }
  0x97   : > { %2217 = vmatmul.mubr.bf16.gmra.mrb[28].mxu0 %v1890_v4 }
 0x131   : > { %v2760_v27 = vpop.f32.mrb[24].mxu1 }
 0x132   : > { %v2762_v29 = vpop.f32.mrb[25].mxu1  ;;  %v2764_v32 = vpop.f32.mrb[24].mxu0 }
 0x133   : > { %v2087_v37 = vpop.f32.mrb[26].mxu1  ;;  %v2766_v38 = vpop.f32.mrb[25].mxu0 }
 0x134   : > { %v2768_v43 = vpop.f32.mrb[27].mxu1  ;;  %v2175_v54 = vpop.f32.mrb[26].mxu0 }
 0x135   : > { %v2770_v61 = vpop.f32.mrb[27].mxu0 }
 0x139   : > { %v2106_v2 = vpop.f32.mrb[0].mxu1 }
 0x13a   : > { %v2194_v8 = vpop.f32.mrb[0].mxu0  ;;  %v717_v23 = vpop.f32.mrb[1].mxu1 }
 0x13b   : > { %v2220_v49 = vadd.f32 %v2194_v8, %v2106_v2  ;;  %v1426_v51 = vpop.f32.mrb[1].mxu0  ;;  %v2107_v56 = vpop.f32.mrb[2].mxu1 }
 0x13c   : > { %v2221_v63 = vadd.f32 %v1426_v51, %v717_v23  ;;  %v2195_v0 = vpop.f32.mrb[2].mxu0  ;;  %v720_v7 = vpop.f32.mrb[3].mxu1 }
 0x13d   : > { %v1572_v28 = vadd.f32 %v2220_v49, %v2775_v15  ;;  %v2222_v40 = vadd.f32 %v2195_v0, %v2107_v56  ;;  %v1429_v47 = vpop.f32.mrb[3].mxu0 }
 0x13e   : > { %v1570_v19 = vadd.f32 %v2221_v63, %v2775_v15  ;;  %v2223_v20 = vadd.f32 %v1429_v47, %v720_v7 }
 0x13f   : > { %v1599_v34 = vmax.f32 %v1572_v28, 0.0  ;;  %v1573_v45 = vadd.f32 %v2222_v40, %v2775_v15 }
 0x140   : > { %v1597_v60 = vmax.f32 %v1570_v19, 0.0  ;;  %v1571_v1 = vadd.f32 %v2223_v20, %v2775_v15 }
 0x141   : > { %v1931_v5 = vpack.c.bf16 %v1599_v34, %v1599_v34  ;;  %v1600_v9 = vmax.f32 %v1573_v45, 0.0  ;;  %v2110_v18 = vpop.f32.mrb[4].mxu1 }
 0x142   : > { %v1929_v52 = vpack.c.bf16 %v1597_v60, %v1597_v60  ;;  %v1598_v6 = vmax.f32 %v1571_v1, 0.0  ;;  %v2198_v33 = vpop.f32.mrb[4].mxu0  ;;  %v733_v10 = vpop.f32.mrb[5].mxu1 }
 0x143   : > { %1736 = vst.msk [vmem:[%s2784_s10 + $0x8] sm:$0xf] %vm1733_vm2, %v1931_v5  ;;  %v1932_v48 = vpack.c.bf16 %v1600_v9, %v1600_v9  ;;  %v2224_v30 = vadd.f32 %v2198_v33, %v2110_v18  ;;  %v1442_v11 = vpop.f32.mrb[5].mxu0  ;;  %v2111_v14 = vpop.f32.mrb[6].mxu1 }
 0x144   : > { %1734 = vst.msk [vmem:[%s2784_s10] sm:$0xf] %vm1733_vm2, %v1929_v52  ;;  %v1930_v35 = vpack.c.bf16 %v1598_v6, %v1598_v6  ;;  %v2225_v21 = vadd.f32 %v1442_v11, %v733_v10  ;;  %v2199_v36 = vpop.f32.mrb[6].mxu0  ;;  %v736_v26 = vpop.f32.mrb[7].mxu1 }
 0x145   : > { %1737 = vst.msk [vmem:[%s2784_s10 + $0xc] sm:$0xf] %vm1733_vm2, %v1932_v48  ;;  %v1576_v41 = vadd.f32 %v2224_v30, %v2775_v15  ;;  %v2226_v57 = vadd.f32 %v2199_v36, %v2111_v14  ;;  %v1445_v62 = vpop.f32.mrb[7].mxu0 }
 0x146   : > { %1735 = vst.msk [vmem:[%s2784_s10 + $0x4] sm:$0xf] %vm1733_vm2, %v1930_v35  ;;  %v1574_v31 = vadd.f32 %v2225_v21, %v2775_v15  ;;  %v2227_v39 = vadd.f32 %v1445_v62, %v736_v26 }
 0x147   : > { %v1603_v50 = vmax.f32 %v1576_v41, 0.0  ;;  %v1577_v53 = vadd.f32 %v2226_v57, %v2775_v15 }
 0x148   : > { %v1601_v44 = vmax.f32 %v1574_v31, 0.0  ;;  %v1575_v16 = vadd.f32 %v2227_v39, %v2775_v15 }
 0x149   : > { %v1935_v17 = vpack.c.bf16 %v1603_v50, %v1603_v50  ;;  %v1604_v12 = vmax.f32 %v1577_v53, 0.0  ;;  %v2114_v13 = vpop.f32.mrb[8].mxu1 }
 0x14a   : > { %v1933_v22 = vpack.c.bf16 %v1601_v44, %v1601_v44  ;;  %v1602_v24 = vmax.f32 %v1575_v16, 0.0  ;;  %v2202_v25 = vpop.f32.mrb[8].mxu0  ;;  %v749_v42 = vpop.f32.mrb[9].mxu1 }
 0x14b   : > { %1740 = vst.msk [vmem:[%s2784_s10 + $0x18] sm:$0xf] %vm1733_vm2, %v1935_v17  ;;  %v1936_v46 = vpack.c.bf16 %v1604_v12, %v1604_v12  ;;  %v2228_v55 = vadd.f32 %v2202_v25, %v2114_v13  ;;  %v1458_v58 = vpop.f32.mrb[9].mxu0  ;;  %v2115_v59 = vpop.f32.mrb[10].mxu1 }
 0x14c   : > { %1738 = vst.msk [vmem:[%s2784_s10 + $0x10] sm:$0xf] %vm1733_vm2, %v1933_v22  ;;  %v1934_v3 = vpack.c.bf16 %v1602_v24, %v1602_v24  ;;  %v2229_v4 = vadd.f32 %v1458_v58, %v749_v42  ;;  %v2203_v37 = vpop.f32.mrb[10].mxu0  ;;  %v752_v54 = vpop.f32.mrb[11].mxu1 }
 0x14d   : > { %1741 = vst.msk [vmem:[%s2784_s10 + $0x1c] sm:$0xf] %vm1733_vm2, %v1936_v46  ;;  %v1580_v2 = vadd.f32 %v2228_v55, %v2775_v15  ;;  %v2230_v8 = vadd.f32 %v2203_v37, %v2115_v59  ;;  %v1461_v23 = vpop.f32.mrb[11].mxu0 }
 0x14e   : > { %1739 = vst.msk [vmem:[%s2784_s10 + $0x14] sm:$0xf] %vm1733_vm2, %v1934_v3  ;;  %v1578_v49 = vadd.f32 %v2229_v4, %v2775_v15  ;;  %v2231_v51 = vadd.f32 %v1461_v23, %v752_v54 }
 0x14f   : > { %v1607_v56 = vmax.f32 %v1580_v2, 0.0  ;;  %v1581_v63 = vadd.f32 %v2230_v8, %v2775_v15 }
 0x150   : > { %v1605_v0 = vmax.f32 %v1578_v49, 0.0  ;;  %v1579_v7 = vadd.f32 %v2231_v51, %v2775_v15 }
 0x151   : > { %v1939_v28 = vpack.c.bf16 %v1607_v56, %v1607_v56  ;;  %v1608_v40 = vmax.f32 %v1581_v63, 0.0  ;;  %v2118_v47 = vpop.f32.mrb[12].mxu1 }
 0x152   : > { %v1937_v19 = vpack.c.bf16 %v1605_v0, %v1605_v0  ;;  %v1606_v20 = vmax.f32 %v1579_v7, 0.0  ;;  %v2206_v34 = vpop.f32.mrb[12].mxu0  ;;  %v765_v45 = vpop.f32.mrb[13].mxu1 }
 0x153   : > { %1744 = vst.msk [vmem:[%s2784_s10 + $0x28] sm:$0xf] %vm1733_vm2, %v1939_v28  ;;  %v1940_v60 = vpack.c.bf16 %v1608_v40, %v1608_v40  ;;  %v2232_v1 = vadd.f32 %v2206_v34, %v2118_v47  ;;  %v1474_v5 = vpop.f32.mrb[13].mxu0  ;;  %v2119_v9 = vpop.f32.mrb[14].mxu1 }
 0x154   : > { %1742 = vst.msk [vmem:[%s2784_s10 + $0x20] sm:$0xf] %vm1733_vm2, %v1937_v19  ;;  %v1938_v18 = vpack.c.bf16 %v1606_v20, %v1606_v20  ;;  %v2233_v52 = vadd.f32 %v1474_v5, %v765_v45  ;;  %v2207_v6 = vpop.f32.mrb[14].mxu0  ;;  %v768_v33 = vpop.f32.mrb[15].mxu1 }
 0x155   : > { %1745 = vst.msk [vmem:[%s2784_s10 + $0x2c] sm:$0xf] %vm1733_vm2, %v1940_v60  ;;  %v1584_v10 = vadd.f32 %v2232_v1, %v2775_v15  ;;  %v2234_v48 = vadd.f32 %v2207_v6, %v2119_v9  ;;  %v1477_v30 = vpop.f32.mrb[15].mxu0 }
 0x156   : > { %1743 = vst.msk [vmem:[%s2784_s10 + $0x24] sm:$0xf] %vm1733_vm2, %v1938_v18  ;;  %v1582_v11 = vadd.f32 %v2233_v52, %v2775_v15  ;;  %v2235_v14 = vadd.f32 %v1477_v30, %v768_v33 }
 0x157   : > { %v1611_v35 = vmax.f32 %v1584_v10, 0.0  ;;  %v1585_v21 = vadd.f32 %v2234_v48, %v2775_v15 }
 0x158   : > { %v1609_v36 = vmax.f32 %v1582_v11, 0.0  ;;  %v1583_v26 = vadd.f32 %v2235_v14, %v2775_v15 }
 0x159   : > { %v1943_v41 = vpack.c.bf16 %v1611_v35, %v1611_v35  ;;  %v1612_v57 = vmax.f32 %v1585_v21, 0.0  ;;  %v2122_v62 = vpop.f32.mrb[16].mxu1 }
 0x15a   : > { %v1941_v31 = vpack.c.bf16 %v1609_v36, %v1609_v36  ;;  %v1610_v39 = vmax.f32 %v1583_v26, 0.0  ;;  %v2210_v50 = vpop.f32.mrb[16].mxu0  ;;  %v781_v53 = vpop.f32.mrb[17].mxu1 }
 0x15b   : > { %1748 = vst.msk [vmem:[%s2784_s10 + $0x38] sm:$0xf] %vm1733_vm2, %v1943_v41  ;;  %v1944_v44 = vpack.c.bf16 %v1612_v57, %v1612_v57  ;;  %v2236_v16 = vadd.f32 %v2210_v50, %v2122_v62  ;;  %v1490_v17 = vpop.f32.mrb[17].mxu0  ;;  %v2123_v12 = vpop.f32.mrb[18].mxu1 }
 0x15c   : > { %1746 = vst.msk [vmem:[%s2784_s10 + $0x30] sm:$0xf] %vm1733_vm2, %v1941_v31  ;;  %v1942_v13 = vpack.c.bf16 %v1610_v39, %v1610_v39  ;;  %v2237_v22 = vadd.f32 %v1490_v17, %v781_v53  ;;  %v2211_v24 = vpop.f32.mrb[18].mxu0  ;;  %v784_v25 = vpop.f32.mrb[19].mxu1 }
 0x15d   : > { %1749 = vst.msk [vmem:[%s2784_s10 + $0x3c] sm:$0xf] %vm1733_vm2, %v1944_v44  ;;  %v1588_v42 = vadd.f32 %v2236_v16, %v2775_v15  ;;  %v2238_v46 = vadd.f32 %v2211_v24, %v2123_v12  ;;  %v1493_v55 = vpop.f32.mrb[19].mxu0 }
 0x15e   : > { %1747 = vst.msk [vmem:[%s2784_s10 + $0x34] sm:$0xf] %vm1733_vm2, %v1942_v13  ;;  %v1586_v58 = vadd.f32 %v2237_v22, %v2775_v15  ;;  %v2239_v59 = vadd.f32 %v1493_v55, %v784_v25 }
 0x15f   : > { %v1615_v3 = vmax.f32 %v1588_v42, 0.0  ;;  %v1589_v4 = vadd.f32 %v2238_v46, %v2775_v15 }
 0x160   : > { %v1613_v37 = vmax.f32 %v1586_v58, 0.0  ;;  %v1587_v54 = vadd.f32 %v2239_v59, %v2775_v15 }
 0x161   : > { %v1947_v2 = vpack.c.bf16 %v1615_v3, %v1615_v3  ;;  %v1616_v8 = vmax.f32 %v1589_v4, 0.0  ;;  %v2126_v23 = vpop.f32.mrb[20].mxu1 }
 0x162   : > { %v1945_v49 = vpack.c.bf16 %v1613_v37, %v1613_v37  ;;  %v1614_v51 = vmax.f32 %v1587_v54, 0.0  ;;  %v2214_v56 = vpop.f32.mrb[20].mxu0  ;;  %v797_v63 = vpop.f32.mrb[21].mxu1 }
 0x163   : > { %1752 = vst.msk [vmem:[%s2784_s10 + $0x48] sm:$0xf] %vm1733_vm2, %v1947_v2  ;;  %v1948_v0 = vpack.c.bf16 %v1616_v8, %v1616_v8  ;;  %v2240_v7 = vadd.f32 %v2214_v56, %v2126_v23  ;;  %v1506_v28 = vpop.f32.mrb[21].mxu0  ;;  %v2127_v40 = vpop.f32.mrb[22].mxu1 }
 0x164   : > { %1750 = vst.msk [vmem:[%s2784_s10 + $0x40] sm:$0xf] %vm1733_vm2, %v1945_v49  ;;  %v1946_v47 = vpack.c.bf16 %v1614_v51, %v1614_v51  ;;  %v2241_v19 = vadd.f32 %v1506_v28, %v797_v63  ;;  %v2215_v20 = vpop.f32.mrb[22].mxu0  ;;  %v800_v34 = vpop.f32.mrb[23].mxu1 }
 0x165   : > { %1753 = vst.msk [vmem:[%s2784_s10 + $0x4c] sm:$0xf] %vm1733_vm2, %v1948_v0  ;;  %v1592_v45 = vadd.f32 %v2240_v7, %v2775_v15  ;;  %v2242_v60 = vadd.f32 %v2215_v20, %v2127_v40  ;;  %v1509_v1 = vpop.f32.mrb[23].mxu0 }
 0x166   : > { %1751 = vst.msk [vmem:[%s2784_s10 + $0x44] sm:$0xf] %vm1733_vm2, %v1946_v47  ;;  %v1590_v5 = vadd.f32 %v2241_v19, %v2775_v15  ;;  %v2243_v9 = vadd.f32 %v1509_v1, %v800_v34 }
 0x167   : > { %v1619_v18 = vmax.f32 %v1592_v45, 0.0  ;;  %v1593_v52 = vadd.f32 %v2242_v60, %v2775_v15 }
 0x168   : > { %v1617_v6 = vmax.f32 %v1590_v5, 0.0  ;;  %v1591_v33 = vadd.f32 %v2243_v9, %v2775_v15 }
 0x169   : > { %v1951_v10 = vpack.c.bf16 %v1619_v18, %v1619_v18  ;;  %v1620_v48 = vmax.f32 %v1593_v52, 0.0  ;;  %v2130_v30 = vpop.f32.mrb[28].mxu1 }
 0x16a   : > { %v1949_v11 = vpack.c.bf16 %v1617_v6, %v1617_v6  ;;  %v1618_v14 = vmax.f32 %v1591_v33, 0.0  ;;  %v822_v35 = vadd.f32 %v2130_v30, %v2760_v27  ;;  %v813_v21 = vpop.f32.mrb[29].mxu1  ;;  %v2218_v36 = vpop.f32.mrb[28].mxu0 }
 0x16b   : > { %1756 = vst.msk [vmem:[%s2784_s10 + $0x58] sm:$0xf] %vm1733_vm2, %v1951_v10  ;;  %v1952_v26 = vpack.c.bf16 %v1620_v48, %v1620_v48  ;;  %v814_v41 = vadd.f32 %v813_v21, %v2762_v29  ;;  %v2131_v57 = vpop.f32.mrb[30].mxu1  ;;  %v1522_v62 = vpop.f32.mrb[29].mxu0 }
 0x16c   : > { %1754 = vst.msk [vmem:[%s2784_s10 + $0x50] sm:$0xf] %vm1733_vm2, %v1949_v11  ;;  %v1950_v31 = vpack.c.bf16 %v1618_v14, %v1618_v14  ;;  %v1299_v39 = vadd.f32 %v2764_v32, %v822_v35  ;;  %v816_v50 = vpop.f32.mrb[31].mxu1  ;;  %v2219_v53 = vpop.f32.mrb[30].mxu0 }
 0x16d   : > { %1757 = vst.msk [vmem:[%s2784_s10 + $0x5c] sm:$0xf] %vm1733_vm2, %v1952_v26  ;;  %v817_v27 = vadd.f32 %v816_v50, %v2768_v43  ;;  %v1297_v44 = vadd.f32 %v2766_v38, %v814_v41  ;;  %v1525_v16 = vpop.f32.mrb[31].mxu0 }
 0x16e   : > { %1755 = vst.msk [vmem:[%s2784_s10 + $0x54] sm:$0xf] %vm1733_vm2, %v1950_v31  ;;  %v1562_v29 = vadd.f32 %v2218_v36, %v1299_v39 }
 0x16f   : > { %v1560_v17 = vadd.f32 %v1522_v62, %v1297_v44  ;;  %v1298_v12 = vadd.f32 %v2770_v61, %v817_v27 }
 0x170   : > { %v1596_v32 = vadd.f32 %v2775_v15, %v1562_v29 }
 0x171   : > { %v1594_v13 = vadd.f32 %v2775_v15, %v1560_v17  ;;  %v1561_v22 = vadd.f32 %v1525_v16, %v1298_v12 }
 0x172   : > { %v1623_v24 = vmax.f32 %v1596_v32, 0.0 }
 0x173   : > { %v1621_v43 = vmax.f32 %v1594_v13, 0.0  ;;  %v1595_v38 = vadd.f32 %v2775_v15, %v1561_v22 }
 0x174   : > { %v1955_v25 = vpack.c.bf16 %v1623_v24, %v1623_v24 }
 0x175   : > { %v1953_v42 = vpack.c.bf16 %v1621_v43, %v1621_v43  ;;  %v1622_v46 = vmax.f32 %v1595_v38, 0.0 }
 0x176   : > { %1761 = vst.msk [vmem:[%s2784_s10 + $0x68] sm:$0x1] %vm1760_vm3, %v1955_v25 }
 0x177   : > { %1758 = vst.msk [vmem:[%s2784_s10 + $0x60] sm:$0xf] %vm1733_vm2, %v1953_v42  ;;  %v1954_v55 = vpack.c.bf16 %v1622_v46, %v1622_v46 }
 0x179   : > { %1759 = vst.msk [vmem:[%s2784_s10 + $0x64] sm:$0xf] %vm1733_vm2, %v1954_v55 }
 0x17a PF: > { %s13_s12 = sadd.s32 1, %s2383_s12  }
 0x17b   : > { %p10_p4 = scmp.ge.s32.totalorder %s13_s12, 4  }
 0x17d   :  { %12 = sbr.rel (!%p10_p4) target bundleno = 1 (0x1), region = 62 }

// kernel: encoder_forward.6
= control target key start
LH: loop header
LB: loop body
LE: loop exit
PB: predicated region body
PF: predicated region fallthrough
CT: control target
= control target key end

     0   :  { %s1617_s12 = smov 0   ;;  %s1917_s0 = inlined_call_operand.vmem [shape: bf16[2,50,256], index: 0, kind: input, shape index: {}]   ;;  %s1918_s1 = inlined_call_operand.vmem [shape: bf16[1024,128], index: 1, kind: input, shape index: {}]   ;;  %s1919_s2 = inlined_call_operand.vmem [shape: f32[1,128], index: 2, kind: input, shape index: {}]   ;;  %s1920_s3 = inlined_call_operand.vmem [shape: bf16[2,42,128], index: 3, kind: output, shape index: {}]  }
   0x1 LB: > { %s1240_s13 = sadd.s32 4294967295, %s1595_s12   ;;  %p1244_p0 = scmp.ge.s32.totalorder %s1595_s12, 1  ;;  %s1595_s12 = sphi %s1617_s12, %s13_s12  }
   0x2   : > { %p137_p1 = scmp.lt.s32.totalorder %s1595_s12, 3 }
   0x4   : > { %p138_p2 = pnand %p1244_p0, %p137_p1 }
   0x5   : > { %v1505_v0 = vld [vmem:[%s1918_s1 + $0xc0] sm:$0xff] (!%p138_p2)   ;;  %v1509_v4 = vld [vmem:[%s1918_s1 + $0xc8] sm:$0xff] (!%p138_p2)   ;;  %v1513_v8 = vld [vmem:[%s1918_s1 + $0xd0] sm:$0xff] (!%p138_p2)   ;;  %p161_p3 = scmp.lt.s32.totalorder (!%p138_p2), %s1240_s13, 1  ;;  %vm267_vm0 = vsmask.f32 (!%p138_p2), 7424 }
   0x6   : > { %141 = sbr.rel (%p138_p2) target bundleno = 315 (0x13b), region = 32  ;;  %v1506_v1 = vld [vmem:[%s1918_s1 + $0x40] sm:$0xff] (!%p138_p2)   ;;  %1359 = vmatprep.subr.bf16.mxu0 (!%p138_p2), %v1505_v0  ;;  %v1510_v5 = vld [vmem:[%s1918_s1 + $0x48] sm:$0xff] (!%p138_p2)   ;;  %v1514_v9 = vld [vmem:[%s1918_s1 + $0x50] sm:$0xff] (!%p138_p2)   ;;  %vm705_vm1 = vsmask.f32 (!%p138_p2), 4352 }
   0x7   : > { %v1507_v2 = vld [vmem:[%s1918_s1 + $0x80] sm:$0xff] (!%p138_p2)   ;;  %1393 = vmatprep.subr.bf16.mxu1 (!%p138_p2), %v1506_v1  ;;  %v1511_v6 = vld [vmem:[%s1918_s1 + $0x88] sm:$0xff] (!%p138_p2)   ;;  %v1515_v10 = vld [vmem:[%s1918_s1 + $0x90] sm:$0xff] (!%p138_p2)  }
   0x8   : > { %v1508_v3 = vld [vmem:[%s1918_s1] sm:$0xff] (!%p138_p2)   ;;  %1360 = vmatpush3.bf16.msra.mxu0 (!%p138_p2), %v1507_v2  ;;  %v1512_v7 = vld [vmem:[%s1918_s1 + $0x8] sm:$0xff] (!%p138_p2)   ;;  %v1516_v11 = vld [vmem:[%s1918_s1 + $0x10] sm:$0xff] (!%p138_p2)  }
   0x9   : > { %1394 = vmatpush3.bf16.msra.mxu1 (!%p138_p2), %v1508_v3  ;;  %1361 = vmatprep.subr.bf16.mxu0 (!%p138_p2), %v1509_v4  ;;  %v1517_v12 = vld [vmem:[%s1918_s1 + $0xd8] sm:$0xff] (!%p138_p2)   ;;  %v1521_v16 = vld [vmem:[%s1918_s1 + $0xe0] sm:$0xff] (!%p138_p2)   ;;  %v1525_v20 = vld [vmem:[%s1918_s1 + $0xe8] sm:$0xff] (!%p138_p2)  }
   0xa   : > { %1395 = vmatprep.subr.bf16.mxu1 (!%p138_p2), %v1510_v5  ;;  %v1518_v13 = vld [vmem:[%s1918_s1 + $0x58] sm:$0xff] (!%p138_p2)   ;;  %v1522_v17 = vld [vmem:[%s1918_s1 + $0x60] sm:$0xff] (!%p138_p2)   ;;  %v1526_v21 = vld [vmem:[%s1918_s1 + $0x68] sm:$0xff] (!%p138_p2)  }
   0xb   : > { %v1519_v14 = vld [vmem:[%s1918_s1 + $0x98] sm:$0xff] (!%p138_p2)   ;;  %v1523_v18 = vld [vmem:[%s1918_s1 + $0xa0] sm:$0xff] (!%p138_p2)   ;;  %v1527_v22 = vld [vmem:[%s1918_s1 + $0xa8] sm:$0xff] (!%p138_p2)  }
   0xc   : > { %1362 = vmatpush3.bf16.msra.mxu0 (!%p138_p2), %v1511_v6  ;;  %v1520_v15 = vld [vmem:[%s1918_s1 + $0x18] sm:$0xff] (!%p138_p2)   ;;  %v1524_v19 = vld [vmem:[%s1918_s1 + $0x20] sm:$0xff] (!%p138_p2)   ;;  %v1528_v23 = vld [vmem:[%s1918_s1 + $0x28] sm:$0xff] (!%p138_p2)  }
   0xd   : > { %1396 = vmatpush3.bf16.msra.mxu1 %v1512_v7  ;;  %1363 = vmatprep.subr.bf16.mxu0 %v1513_v8  ;;  %s1922_s13 = smov (!%p161_p3, %s1240_s13), 1  ;;  %v1529_v24 = vld [vmem:[%s1918_s1 + $0xf0] sm:$0xff]   ;;  %v1533_v28 = vld [vmem:[%s1918_s1 + $0xf8] sm:$0xff]   ;;  %v1541_v40 = vld [vmem:[%s1918_s1 + $0x140] sm:$0xff]  }
   0xe   : > { %1397 = vmatprep.subr.bf16.mxu1 %v1514_v9  ;;  %v1530_v25 = vld [vmem:[%s1918_s1 + $0x70] sm:$0xff]   ;;  %s1495_s16 = smul.u32 56, %s1922_s13  ;;  %v1534_v29 = vld [vmem:[%s1918_s1 + $0x78] sm:$0xff]   ;;  %v1542_v45 = vld [vmem:[%s1918_s1 + $0x1c0] sm:$0xff]  }
   0xf   : > { %v1531_v26 = vld [vmem:[%s1918_s1 + $0xb0] sm:$0xff]   ;;  %v1535_v30 = vld [vmem:[%s1918_s1 + $0xb8] sm:$0xff]   ;;  %v1543_v52 = vld [vmem:[%s1918_s1 + $0x100] sm:$0xff]   ;;  %s1496_s24 = smul.u32 24, %s1922_s13 }
  0x10   : > { %1364 = vmatpush3.bf16.msra.mxu0 %v1515_v10  ;;  %v1532_v27 = vld [vmem:[%s1918_s1 + $0x30] sm:$0xff]   ;;  %s1725_s27 = scalar_lea.vmem %s1917_s0, %s1495_s16  ;;  %v1536_v31 = vld [vmem:[%s1918_s1 + $0x38] sm:$0xff]   ;;  %v1544_v53 = vld [vmem:[%s1918_s1 + $0x180] sm:$0xff]  }
  0x11   : > { %1398 = vmatpush3.bf16.msra.mxu1 %v1516_v11  ;;  %1365 = vmatprep.subr.bf16.mxu0 %v1517_v12  ;;  %v172_v32 = vld [vmem:[%s1725_s27] sm:$0xff]  ;;  %v1735_v33 = vld [vmem:[%s1725_s27 + $0x8] sm:$0xff]  ;;  %v1738_v34 = vld [vmem:[%s1725_s27 + $0x10] sm:$0xff]  ;;  %s1908_s28 = scalar_lea.vmem %s1920_s3, %s1496_s24 }
  0x12   : > { %1399 = vmatprep.subr.bf16.mxu1 %v1518_v13  ;;  %v1741_v35 = vld [vmem:[%s1725_s27 + $0x18] sm:$0xff]  ;;  %v1248_v36 = vcombine.high %v172_v32, %v1735_v33  ;;  %v1247_v37 = vcombine.low %v172_v32, %v1735_v33  ;;  %v1546_v56 = vld [vmem:[%s1918_s1 + $0x1c8] sm:$0xff]   ;;  %v1550_v62 = vld [vmem:[%s1918_s1 + $0x1d0] sm:$0xff]  }
  0x13   : > { %v1747_v38 = vcombine.high %v1738_v34, %v1741_v35  ;;  %v1751_v39 = vcombine.low %v1738_v34, %v1741_v35  ;;  %v1545_v59 = vld [vmem:[%s1918_s1 + $0x148] sm:$0xff]   ;;  %v1549_v0 = vld [vmem:[%s1918_s1 + $0x150] sm:$0xff]   ;;  %v1802_v4 = vld [vmem:[%s1725_s27 + $0x20] sm:$0xff] }
  0x14   : > { %1366 = vmatpush3.bf16.msra.mxu0 %v1519_v14  ;;  %v281_v41 = vshrl.u32 %v1248_v36, 16  ;;  %v283_v42 = vshll.u32 %v1248_v36, 16  ;;  %612 = vmatprep.mubr.bf16.mxu1 %v1248_v36  ;;  %v269_v43 = vshrl.u32 %v1247_v37, 16  ;;  %v271_v44 = vshll.u32 %v1247_v37, 16  ;;  %v1548_v60 = vld [vmem:[%s1918_s1 + $0x188] sm:$0xff]   ;;  %v1551_v2 = vld [vmem:[%s1918_s1 + $0x110] sm:$0xff]  }
  0x15   : > { %1400 = vmatpush3.bf16.msra.mxu1 %v1520_v15  ;;  %1367 = vmatprep.subr.bf16.mxu0 %v1521_v16  ;;  %v288_v46 = vshll.u32 %v1747_v38, 16  ;;  %v276_v47 = vshll.u32 %v1751_v39, 16  ;;  %v1547_v61 = vld [vmem:[%s1918_s1 + $0x108] sm:$0xff]   ;;  %v300_v63 = vshrl.u32 %v1747_v38, 16  ;;  %v292_v1 = vshrl.u32 %v1751_v39, 16  ;;  %v1552_v3 = vld [vmem:[%s1918_s1 + $0x190] sm:$0xff]  }
  0x16   : > { %1401 = vmatprep.subr.bf16.mxu1 %v1522_v17  ;;  %v285_v48 = vrot.slane %v283_v42, 1  ;;  %v273_v49 = vrot.slane %v271_v44, 1  ;;  %v210_v5 = vld [vmem:[%s1725_s27 + $0x28] sm:$0x33]  ;;  %v1554_v7 = vld [vmem:[%s1918_s1 + $0x158] sm:$0xff]   ;;  %v1570_v42 = vld [vmem:[%s1918_s1 + $0x1f0] sm:$0xff]  }
  0x17   : > { %v290_v50 = vrot.slane %v288_v46, 1  ;;  %v278_v51 = vrot.slane %v276_v47, 1  ;;  %v1252_v6 = vcombine.high %v1802_v4, %v210_v5  ;;  %v1251_v8 = vcombine.low %v1802_v4, %v210_v5  ;;  %v1555_v9 = vld [vmem:[%s1918_s1 + $0x1d8] sm:$0xff]   ;;  %v1565_v32 = vld [vmem:[%s1918_s1 + $0x1e8] sm:$0xff]   ;;  %v1571_v44 = vld [vmem:[%s1918_s1 + $0x130] sm:$0xff]  }
  0x18   : > { %1368 = vmatpush3.bf16.msra.mxu0 %v1523_v18  ;;  %v286_v54 = vor.u32 %v285_v48, %v281_v41  ;;  %v274_v55 = vor.u32 %v273_v49, %v269_v43  ;;  %v1557_v14 = vld [vmem:[%s1918_s1 + $0x118] sm:$0xff]   ;;  %v1567_v36 = vld [vmem:[%s1918_s1 + $0x128] sm:$0xff]   ;;  %v1569_v41 = vld [vmem:[%s1918_s1 + $0x170] sm:$0xff]   ;;  %v734_v43 = vrot.slane %v300_v63, 3  ;;  %v717_v49 = vrot.slane %v292_v1, 3 }
  0x19   : > { %1402 = vmatpush3.bf16.msra.mxu1 %v1524_v19  ;;  %1369 = vmatprep.subr.bf16.mxu0 %v1525_v20  ;;  %v302_v10 = vor.u32 %v300_v63, %v290_v50  ;;  %v304_v11 = vshll.u32 %v1252_v6, 16  ;;  %v294_v12 = vor.u32 %v292_v1, %v278_v51  ;;  %v296_v13 = vshll.u32 %v1251_v8, 16  ;;  %v1558_v18 = vld [vmem:[%s1918_s1 + $0x198] sm:$0xff]   ;;  %v1559_v19 = vld [vmem:[%s1918_s1 + $0x160] sm:$0xff]   ;;  %v1572_v48 = vld [vmem:[%s1918_s1 + $0x1b0] sm:$0xff]  }
  0x1a   : > { %1403 = vmatprep.subr.bf16.mxu1 %v1526_v21  ;;  %v291_v57 = vsel %vm267_vm0, %v286_v54, %v290_v50  ;;  %v279_v58 = vsel %vm267_vm0, %v274_v55, %v278_v51  ;;  %v311_v15 = vshrl.u32 %v1252_v6, 16  ;;  %v1573_v50 = vld [vmem:[%s1918_s1 + $0x178] sm:$0xff]   ;;  %v720_v51 = vrot.slane %v276_v47, 4 }
  0x1b   : > { %448 = vmatprep.mubr.bf16.mxu0 %v291_v57  ;;  %v306_v16 = vrot.slane %v304_v11, 1  ;;  %v298_v17 = vrot.slane %v296_v13, 1  ;;  %v1311_v54 = vcombine.low %v1735_v33, %v1738_v34  ;;  %v642_v57 = vld [vmem:[%s1725_s27 + $0x28] sm:$0xff] }
  0x1c   : > { %1370 = vmatpush3.bf16.msra.mxu0 %v1527_v22  ;;  %v1560_v22 = vld [vmem:[%s1918_s1 + $0x1e0] sm:$0xff]  }
  0x1d   : > { %1404 = vmatpush3.bf16.msra.mxu1 %v1528_v23  ;;  %1371 = vmatprep.subr.bf16.mxu0 %v1529_v24  ;;  %v307_v20 = vsel %vm267_vm0, %v302_v10, %v306_v16  ;;  %v299_v21 = vsel %vm267_vm0, %v294_v12, %v298_v17  ;;  %v313_v23 = vor.u32 %v311_v15, %v306_v16  ;;  %v1561_v24 = vld [vmem:[%s1918_s1 + $0x120] sm:$0xff]  }
  0x1e   : > { %1405 = vmatprep.subr.bf16.mxu1 %v1530_v25  ;;  %v1562_v25 = vld [vmem:[%s1918_s1 + $0x1a0] sm:$0xff]  }
  0x20   : > { %1372 = vmatpush3.bf16.msra.mxu0 %v1531_v26  ;;  %v177_v26 = vld [vmem:[%s1725_s27 + $0x28] sm:$0x11] }
  0x21   : > { %1406 = vmatpush3.bf16.msra.mxu1 %v1532_v27  ;;  %1373 = vmatprep.subr.bf16.mxu0 %v1533_v28  ;;  %v308_v27 = vshrl.u32 %v1251_v8, 16  ;;  %v1270_v28 = vcombine.high %v1802_v4, %v177_v26 }
  0x22   : > { %1407 = vmatprep.subr.bf16.mxu1 %v1534_v29  ;;  %v1564_v29 = vld [vmem:[%s1918_s1 + $0x168] sm:$0xff]  }
  0x24   : > { %1374 = vmatpush3.bf16.msra.mxu0 %v1535_v30  ;;  %v1269_v30 = vcombine.low %v1802_v4, %v177_v26 }
  0x25   : > { %1408 = vmatpush3.bf16.msra.mxu1 %v1536_v31  ;;  %1427 = vmatprep.subr.bf16.mxu0 %v1541_v40  ;;  %v1312_v31 = vcombine.high %v1735_v33, %v1738_v34  ;;  %v1568_v40 = vld [vmem:[%s1918_s1 + $0x1a8] sm:$0xff]   ;;  %v1291_v34 = vcombine.low %v1802_v4, %v642_v57 }
  0x26   : > { %1461 = vmatprep.subr.bf16.mxu1 %v1542_v45  ;;  %v737_v45 = vrot.slane %v288_v46, 4  ;;  %v1576_v46 = vld [vmem:[%s1918_s1 + $0x1b8] sm:$0xff]  }
  0x27   : > { %449 = vmatmul.mubr.bf16.vlgmr.msra.gmra.mrb[0].mxu0 %v279_v58  ;;  %v1314_v58 = vcombine.high %v1741_v35, %v1802_v4  ;;  %v744_v5 = vshll.u32 %v1291_v34, 16 }
  0x28   : > { %613 = vmatmul.mubr.bf16.vlgmr.msra.gmra.mrb[0].mxu1 %v1247_v37  ;;  %1428 = vmatpush3.bf16.msra.mxu0 %v1543_v52  ;;  %v310_v37 = vor.u32 %v308_v27, %v298_v17  ;;  %v637_v52 = vld [vmem:[%s1725_s27] sm:$0x88] }
  0x29   : > { %620 = vmatprep.mubr.bf16.mxu1 %v1747_v38  ;;  %1462 = vmatpush3.bf16.msra.mxu1 %v1544_v53  ;;  %v1574_v38 = vld [vmem:[%s1918_s1 + $0x1f8] sm:$0xff]   ;;  %v738_v53 = vor.u32 %v737_v45, %v734_v43  ;;  %v1287_v47 = vcombine.low %v637_v52, %v1735_v33  ;;  %v1288_v55 = vcombine.high %v637_v52, %v1735_v33  ;;  %v741_v33 = vshrl.u32 %v1291_v34, 16 }
  0x2a   : > { %1463 = vmatprep.subr.bf16.mxu1 %v1546_v56  ;;  %1429 = vmatprep.subr.bf16.mxu0 %v1545_v59  ;;  %v721_v56 = vor.u32 %v720_v51, %v717_v49  ;;  %v643_v59 = vld [vmem:[%s1725_s27 + $0x30] sm:$0x11]  ;;  %v746_v16 = vrot.slane %v744_v5, 4 }
  0x2b   : > { %456 = vmatprep.mubr.bf16.mxu0 %v307_v20  ;;  %v727_v63 = vshll.u32 %v1288_v55, 16  ;;  %v710_v1 = vshll.u32 %v1287_v47, 16  ;;  %v743_v15 = vrot.slane %v741_v33, 3 }
  0x2c   : > { %1430 = vmatpush3.bf16.msra.mxu0 %v1547_v61  ;;  %v1294_v61 = vcombine.high %v643_v59, %v643_v59 }
  0x2d   : > { %1464 = vmatpush3.bf16.msra.mxu1 %v1548_v60  ;;  %1431 = vmatprep.subr.bf16.mxu0 %v1549_v0  ;;  %v1292_v60 = vcombine.high %v1802_v4, %v642_v57  ;;  %v707_v0 = vshrl.u32 %v1287_v47, 16 }
  0x2e   : > { %1465 = vmatprep.subr.bf16.mxu1 %v1550_v62  ;;  %v724_v62 = vshrl.u32 %v1288_v55, 16  ;;  %v764_v20 = vshll.u32 %v1294_v61, 16 }
  0x2f   : > { %457 = vmatmul.mubr.bf16.gmra.mrb[4].mxu0 %v299_v21  ;;  %v709_v8 = vrot.slane %v707_v0, 3 }
  0x30   : > { %621 = vmatmul.mubr.bf16.gmra.mrb[4].mxu1 %v1751_v39  ;;  %1432 = vmatpush3.bf16.msra.mxu0 %v1551_v2  ;;  %v1575_v39 = vld [vmem:[%s1918_s1 + $0x138] sm:$0xff]   ;;  %v750_v2 = vshrl.u32 %v1292_v60, 16  ;;  %v726_v6 = vrot.slane %v724_v62, 3 }
  0x31   : > { %1466 = vmatpush3.bf16.msra.mxu1 %v1552_v3  ;;  %1433 = vmatprep.subr.bf16.mxu0 %v1554_v7  ;;  %v753_v3 = vshll.u32 %v1292_v60, 16  ;;  %v729_v7 = vrot.slane %v727_v63, 4 }
  0x32   : > { %1467 = vmatprep.subr.bf16.mxu1 %v1555_v9  ;;  %464 = vmatprep.mubr.bf16.mxu0 %v313_v23  ;;  %v712_v9 = vrot.slane %v710_v1, 4  ;;  %v752_v10 = vrot.slane %v750_v2, 3  ;;  %v747_v23 = vor.u32 %v746_v16, %v743_v15 }
  0x33   : > { %628 = vmatprep.mubr.bf16.mxu1 %v1270_v28  ;;  %v755_v11 = vrot.slane %v753_v3, 4  ;;  %v730_v12 = vor.u32 %v729_v7, %v726_v6 }
  0x34   : > { %1434 = vmatpush3.bf16.msra.mxu0 %v1557_v14  ;;  %v713_v13 = vor.u32 %v712_v9, %v709_v8  ;;  %v748_v26 = vsel %vm705_vm1, %v721_v56, %v747_v23 }
  0x35   : > { %1468 = vmatpush3.bf16.msra.mxu1 %v1558_v18  ;;  %1435 = vmatprep.subr.bf16.mxu0 %v1559_v19  ;;  %v756_v14 = vor.u32 %v755_v11, %v752_v10  ;;  %v739_v17 = vsel %vm705_vm1, %v730_v12, %v738_v53  ;;  %v1313_v19 = vcombine.low %v1741_v35, %v1802_v4 }
  0x36   : > { %1469 = vmatprep.subr.bf16.mxu1 %v1560_v22  ;;  %v722_v18 = vsel %vm705_vm1, %v713_v13, %v721_v56  ;;  %v1316_v22 = vcombine.high %v642_v57, %v643_v59 }
  0x37   : > { %465 = vmatmul.mubr.bf16.gmra.mrb[8].mxu0 %v310_v37  ;;  %v757_v21 = vsel %vm705_vm1, %v738_v53, %v756_v14 }
  0x38   : > { %629 = vmatmul.mubr.bf16.gmra.mrb[8].mxu1 %v1269_v30  ;;  %1436 = vmatpush3.bf16.msra.mxu0 %v1561_v24  ;;  %v1293_v24 = vcombine.low %v643_v59, %v643_v59 }
  0x39   : > { %1470 = vmatpush3.bf16.msra.mxu1 %v1562_v25  ;;  %1105 = vmatprep.mubr.bf16.mxu1 %v1312_v31  ;;  %v766_v25 = vrot.slane %v764_v20, 4 }
  0x3a   : > { %1471 = vmatprep.subr.bf16.mxu1 %v1565_v32  ;;  %1437 = vmatprep.subr.bf16.mxu0 %v1564_v29  ;;  %v759_v27 = vshll.u32 %v1293_v24, 16  ;;  %v1315_v29 = vcombine.low %v642_v57, %v643_v59 }
  0x3b   : > { %902 = vmatprep.mubr.bf16.mxu0 %v739_v17  ;;  %v767_v28 = vsel %vm705_vm1, %v756_v14, %v766_v25 }
  0x3c   : > { %1438 = vmatpush3.bf16.msra.mxu0 %v1567_v36  ;;  %v761_v35 = vrot.slane %v759_v27, 4  ;;  %v1333_v27 = vld [vmem:[%s1919_s2] ss:$0 sm:$0xff] }
  0x3d   : > { %1472 = vmatpush3.bf16.msra.mxu1 %v1568_v40  ;;  %1439 = vmatprep.subr.bf16.mxu0 %v1569_v41 }
  0x3e   : > { %1473 = vmatprep.subr.bf16.mxu1 %v1570_v42  ;;  %v762_v4 = vsel %vm705_vm1, %v747_v23, %v761_v35 }
  0x40   : > { %1440 = vmatpush3.bf16.msra.mxu0 %v1571_v44 }
  0x41   : > { %1474 = vmatpush3.bf16.msra.mxu1 %v1572_v48  ;;  %1441 = vmatprep.subr.bf16.mxu0 %v1573_v50 }
  0x42   : > { %1475 = vmatprep.subr.bf16.mxu1 %v1574_v38 }
  0x44   : > { %1442 = vmatpush3.bf16.msra.mxu0 %v1575_v39 }
  0x45   : > { %1476 = vmatpush3.bf16.msra.mxu1 %v1576_v46 }
  0x47   : > { %903 = vmatmul.mubr.bf16.vlgmr.msra.gmra.mrb[12].mxu0 %v722_v18 }
  0x48   : > { %1106 = vmatmul.mubr.bf16.vlgmr.msra.gmra.mrb[12].mxu1 %v1311_v54  ;;  %910 = vmatprep.mubr.bf16.mxu0 %v757_v21 }
  0x49   : > { %1113 = vmatprep.mubr.bf16.mxu1 %v1314_v58 }
  0x4f   : > { %911 = vmatmul.mubr.bf16.gmra.mrb[16].mxu0 %v748_v26 }
  0x50   : > { %1114 = vmatmul.mubr.bf16.gmra.mrb[16].mxu1 %v1313_v19  ;;  %918 = vmatprep.mubr.bf16.mxu0 %v767_v28 }
  0x51   : > { %1121 = vmatprep.mubr.bf16.mxu1 %v1316_v22 }
  0x57   : > { %919 = vmatmul.mubr.bf16.gmra.mrb[20].mxu0 %v762_v4 }
  0x58   : > { %1122 = vmatmul.mubr.bf16.gmra.mrb[20].mxu1 %v1315_v29 }
  0xfa   : > { %v1375_v41 = vpop.f32.mrb[0].mxu0 }
  0xfb   : > { %v1409_v30 = vpop.f32.mrb[0].mxu1  ;;  %v1376_v42 = vpop.f32.mrb[1].mxu0 }
  0xfc   : > { %v1410_v31 = vpop.f32.mrb[1].mxu1  ;;  %v1377_v43 = vadd.f32 %v1376_v42, %v1375_v41  ;;  %v1378_v44 = vpop.f32.mrb[2].mxu0 }
  0xfd   : > { %v1411_v32 = vadd.f32 %v1410_v31, %v1409_v30  ;;  %v1412_v36 = vpop.f32.mrb[2].mxu1  ;;  %v1379_v48 = vpop.f32.mrb[3].mxu0 }
  0xfe   : > { %v1413_v37 = vpop.f32.mrb[3].mxu1  ;;  %v1380_v51 = vadd.f32 %v1379_v48, %v1378_v44 }
  0xff   : > { %v1414_v40 = vadd.f32 %v1413_v37, %v1412_v36  ;;  %v615_v50 = vadd.f32 %v1411_v32, %v1377_v43 }
 0x101   : > { %v618_v53 = vadd.f32 %v1414_v40, %v1380_v51 }
 0x102   : > { %v1381_v39 = vpop.f32.mrb[4].mxu0 }
 0x103   : > { %v1415_v45 = vpop.f32.mrb[4].mxu1  ;;  %v1382_v47 = vpop.f32.mrb[5].mxu0 }
 0x104   : > { %v1416_v49 = vpop.f32.mrb[5].mxu1  ;;  %v1383_v55 = vadd.f32 %v1382_v47, %v1381_v39  ;;  %v1384_v56 = vpop.f32.mrb[6].mxu0 }
 0x105   : > { %v1417_v38 = vadd.f32 %v1416_v49, %v1415_v45  ;;  %v1418_v46 = vpop.f32.mrb[6].mxu1  ;;  %v1385_v57 = vpop.f32.mrb[7].mxu0 }
 0x106   : > { %v1419_v52 = vpop.f32.mrb[7].mxu1  ;;  %v1386_v59 = vadd.f32 %v1385_v57, %v1384_v56 }
 0x107   : > { %v1420_v54 = vadd.f32 %v1419_v52, %v1418_v46  ;;  %v623_v58 = vadd.f32 %v1417_v38, %v1383_v55 }
 0x109   : > { %v626_v61 = vadd.f32 %v1420_v54, %v1386_v59 }
 0x10a   : > { %v1387_v1 = vpop.f32.mrb[8].mxu0 }
 0x10b   : > { %v1421_v60 = vpop.f32.mrb[8].mxu1  ;;  %v1388_v3 = vpop.f32.mrb[9].mxu0 }
 0x10c   : > { %v1422_v34 = vpop.f32.mrb[9].mxu1  ;;  %v1389_v33 = vadd.f32 %v1388_v3, %v1387_v1  ;;  %v1390_v5 = vpop.f32.mrb[10].mxu0 }
 0x10d   : > { %v1423_v62 = vadd.f32 %v1422_v34, %v1421_v60  ;;  %v1424_v63 = vpop.f32.mrb[10].mxu1  ;;  %v1391_v6 = vpop.f32.mrb[11].mxu0 }
 0x10e   : > { %v1425_v0 = vpop.f32.mrb[11].mxu1  ;;  %v1392_v8 = vadd.f32 %v1391_v6, %v1390_v5 }
 0x10f   : > { %v1426_v2 = vadd.f32 %v1425_v0, %v1424_v63  ;;  %v631_v7 = vadd.f32 %v1423_v62, %v1389_v33 }
 0x111   : > { %v634_v9 = vadd.f32 %v1426_v2, %v1392_v8 }
 0x11a   : > { %v1443_v16 = vpop.f32.mrb[12].mxu0 }
 0x11b   : > { %v1477_v10 = vpop.f32.mrb[12].mxu1  ;;  %v1444_v17 = vpop.f32.mrb[13].mxu0 }
 0x11c   : > { %v1478_v11 = vpop.f32.mrb[13].mxu1  ;;  %v1445_v18 = vadd.f32 %v1444_v17, %v1443_v16  ;;  %v1446_v19 = vpop.f32.mrb[14].mxu0 }
 0x11d   : > { %v1479_v12 = vadd.f32 %v1478_v11, %v1477_v10  ;;  %v1480_v13 = vpop.f32.mrb[14].mxu1  ;;  %v1447_v21 = vpop.f32.mrb[15].mxu0 }
 0x11e   : > { %v1481_v14 = vpop.f32.mrb[15].mxu1  ;;  %v927_v23 = vadd.f32 %v1445_v18, %v615_v50  ;;  %v1448_v24 = vadd.f32 %v1447_v21, %v1446_v19 }
 0x11f   : > { %v1482_v15 = vadd.f32 %v1481_v14, %v1480_v13 }
 0x120   : > { %v1130_v29 = vadd.f32 %v1479_v12, %v927_v23  ;;  %v928_v35 = vadd.f32 %v1448_v24, %v618_v53 }
 0x122   : > { %v1143_v30 = vadd.f32 %v1333_v27, %v1130_v29  ;;  %v1131_v31 = vadd.f32 %v1482_v15, %v928_v35  ;;  %v1449_v32 = vpop.f32.mrb[16].mxu0 }
 0x123   : > { %v1483_v20 = vpop.f32.mrb[16].mxu1  ;;  %v1450_v36 = vpop.f32.mrb[17].mxu0 }
 0x124   : > { %v1484_v22 = vpop.f32.mrb[17].mxu1  ;;  %v1144_v37 = vadd.f32 %v1333_v27, %v1131_v31  ;;  %v1451_v40 = vadd.f32 %v1450_v36, %v1449_v32  ;;  %v1452_v41 = vpop.f32.mrb[18].mxu0  ;;  %v1149_v43 = vmax.f32 %v1143_v30, 0.0 }
 0x125   : > { %v1485_v25 = vadd.f32 %v1484_v22, %v1483_v20  ;;  %v1486_v26 = vpop.f32.mrb[18].mxu1  ;;  %v1453_v44 = vpop.f32.mrb[19].mxu0 }
 0x126   : > { %v1487_v28 = vpop.f32.mrb[19].mxu1  ;;  %v1150_v48 = vmax.f32 %v1144_v37, 0.0  ;;  %v929_v49 = vadd.f32 %v1451_v40, %v623_v58  ;;  %v1454_v50 = vadd.f32 %v1453_v44, %v1452_v41 }
 0x127   : > { %v1488_v4 = vadd.f32 %v1487_v28, %v1486_v26 }
 0x128   : > { %v1351_v52 = vpack.c.bf16 %v1150_v48, %v1149_v43  ;;  %v1132_v53 = vadd.f32 %v1485_v25, %v929_v49  ;;  %v930_v54 = vadd.f32 %v1454_v50, %v626_v61 }
 0x12a   : > { %1352 = vst [vmem:[%s1908_s28] sm:$0xff] %v1351_v52   ;;  %v1145_v47 = vadd.f32 %v1333_v27, %v1132_v53  ;;  %v1133_v55 = vadd.f32 %v1488_v4, %v930_v54  ;;  %v1455_v56 = vpop.f32.mrb[20].mxu0 }
 0x12b   : > { %v1489_v42 = vpop.f32.mrb[20].mxu1  ;;  %v1456_v57 = vpop.f32.mrb[21].mxu0 }
 0x12c   : > { %v1490_v45 = vpop.f32.mrb[21].mxu1  ;;  %v1146_v58 = vadd.f32 %v1333_v27, %v1133_v55  ;;  %v1457_v59 = vadd.f32 %v1456_v57, %v1455_v56  ;;  %v1458_v60 = vpop.f32.mrb[22].mxu0  ;;  %v1151_v62 = vmax.f32 %v1145_v47, 0.0 }
 0x12d   : > { %v1491_v51 = vadd.f32 %v1490_v45, %v1489_v42  ;;  %v1492_v38 = vpop.f32.mrb[22].mxu1  ;;  %v1459_v34 = vpop.f32.mrb[23].mxu0 }
 0x12e   : > { %v1493_v46 = vpop.f32.mrb[23].mxu1  ;;  %v1152_v63 = vmax.f32 %v1146_v58, 0.0  ;;  %v931_v0 = vadd.f32 %v1457_v59, %v631_v7  ;;  %v1460_v1 = vadd.f32 %v1459_v34, %v1458_v60 }
 0x12f   : > { %v1494_v39 = vadd.f32 %v1493_v46, %v1492_v38 }
 0x130   : > { %v1356_v2 = vpack.c.bf16 %v1152_v63, %v1151_v62  ;;  %v1134_v3 = vadd.f32 %v1491_v51, %v931_v0  ;;  %v932_v61 = vadd.f32 %v1460_v1, %v634_v9 }
 0x132   : > { %1358 = vst [vmem:[%s1908_s28 + $0x8] sm:$0xff] %v1356_v2   ;;  %v1147_v33 = vadd.f32 %v1333_v27, %v1134_v3  ;;  %v1135_v5 = vadd.f32 %v1494_v39, %v932_v61 }
 0x134   : > { %v1153_v6 = vmax.f32 %v1147_v33, 0.0  ;;  %v1148_v8 = vadd.f32 %v1333_v27, %v1135_v5 }
 0x136   : > { %v1346_v10 = vpack.c.bf16 %v1153_v6, %v1153_v6  ;;  %v1154_v11 = vmax.f32 %v1148_v8, 0.0 }
 0x138   : > { %1183 = vst [vmem:[%s1908_s28 + $0x10] sm:$0xf] %v1346_v10  ;;  %v1347_v12 = vpack.c.bf16 %v1154_v11, %v1154_v11 }
 0x13a   : > { %1184 = vst [vmem:[%s1908_s28 + $0x14] sm:$0x1] %v1347_v12 }
 0x13b PF: > { %s13_s12 = sadd.s32 1, %s1595_s12  }
 0x13c   : > { %p10_p4 = scmp.ge.s32.totalorder %s13_s12, 4  }
 0x13e   :  { %12 = sbr.rel (!%p10_p4) target bundleno = 1 (0x1), region = 62 }

// kernel: encoder_forward.7
= control target key start
LH: loop header
LB: loop body
LE: loop exit
PB: predicated region body
PF: predicated region fallthrough
CT: control target
= control target key end

     0   :  { %s3928_s18 = smov 0   ;;  %s4976_s0 = inlined_call_operand.vmem [shape: bf16[2,10,512], index: 0, kind: input, shape index: {}]   ;;  %s4977_s1 = inlined_call_operand.vmem [shape: bf16[2048,256], index: 1, kind: input, shape index: {}]   ;;  %s4978_s2 = inlined_call_operand.vmem [shape: f32[1,256], index: 2, kind: input, shape index: {}]   ;;  %s4979_s3 = inlined_call_operand.vmem [shape: bf16[1024,64], index: 3, kind: input, shape index: {}]   ;;  %s4980_s4 = inlined_call_operand.vmem [shape: f32[1,64], index: 4, kind: input, shape index: {}]   ;;  %s4981_s5 = inlined_call_operand.vmem [shape: f32[2,1,64], index: 5, kind: output, shape index: {}]  }
   0x1 LB: > { %s2984_s19 = sadd.s32 4294967295, %s3896_s18   ;;  %p2988_p0 = scmp.ge.s32.totalorder %s3896_s18, 1  ;;  %s3896_s18 = sphi %s3928_s18, %s15_s18  }
   0x2   : > { %p187_p1 = scmp.lt.s32.totalorder %s3896_s18, 3 }
   0x4   : > { %p188_p2 = pnand %p2988_p0, %p187_p1 }
   0x5   : > { %v3426_v0 = vld [vmem:[%s4977_s1 + $0x204] ss:$8 sps:$4 sm:$0xff] (!%p188_p2)   ;;  %v3430_v2 = vld [vmem:[%s4977_s1 + $0x200] ss:$8 sps:$4 sm:$0xff] (!%p188_p2)   ;;  %v3432_v4 = vld [vmem:[%s4977_s1 + $0x214] ss:$8 sps:$4 sm:$0xff] (!%p188_p2)  }
   0x6   : > { %191 = sbr.rel (%p188_p2) target bundleno = 739 (0x2e3), region = 40  ;;  %v3428_v1 = vld [vmem:[%s4977_s1 + $0x304] ss:$8 sps:$4 sm:$0xff] (!%p188_p2)   ;;  %716 = vmatprep.subr.bf16.mxu0 (!%p188_p2), %v3426_v0  ;;  %v3431_v3 = vld [vmem:[%s4977_s1 + $0x300] ss:$8 sps:$4 sm:$0xff] (!%p188_p2)   ;;  %p213_p3 = scmp.lt.s32.totalorder (!%p188_p2), %s2984_s19, 1 }
   0x7   : > { %757 = vmatprep.subr.bf16.mxu1 (!%p188_p2), %v3428_v1  ;;  %717 = vmatpush1.bf16.msra.mxu0 (!%p188_p2), %v3430_v2  ;;  %v3434_v5 = vld [vmem:[%s4977_s1 + $0x314] ss:$8 sps:$4 sm:$0xff] (!%p188_p2)   ;;  %v3436_v6 = vld [vmem:[%s4977_s1 + $0x210] ss:$8 sps:$4 sm:$0xff] (!%p188_p2)   ;;  %v3438_v8 = vld [vmem:[%s4977_s1 + $0x224] ss:$8 sps:$4 sm:$0xff] (!%p188_p2)  }
   0x8   : > { %758 = vmatpush1.bf16.msra.mxu1 (!%p188_p2), %v3431_v3  ;;  %718 = vmatprep.subr.bf16.mxu0 (!%p188_p2), %v3432_v4  ;;  %v3437_v7 = vld [vmem:[%s4977_s1 + $0x310] ss:$8 sps:$4 sm:$0xff] (!%p188_p2)   ;;  %v3440_v9 = vld [vmem:[%s4977_s1 + $0x324] ss:$8 sps:$4 sm:$0xff] (!%p188_p2)   ;;  %v3442_v10 = vld [vmem:[%s4977_s1 + $0x220] ss:$8 sps:$4 sm:$0xff] (!%p188_p2)  }
   0x9   : > { %759 = vmatprep.subr.bf16.mxu1 (!%p188_p2), %v3434_v5  ;;  %v3443_v11 = vld [vmem:[%s4977_s1 + $0x320] ss:$8 sps:$4 sm:$0xff] (!%p188_p2)   ;;  %v3444_v12 = vld [vmem:[%s4977_s1 + $0x234] ss:$8 sps:$4 sm:$0xff] (!%p188_p2)   ;;  %v3448_v14 = vld [vmem:[%s4977_s1 + $0x230] ss:$8 sps:$4 sm:$0xff] (!%p188_p2)  }
   0xa   : > { %v3446_v13 = vld [vmem:[%s4977_s1 + $0x334] ss:$8 sps:$4 sm:$0xff] (!%p188_p2)   ;;  %v3449_v15 = vld [vmem:[%s4977_s1 + $0x330] ss:$8 sps:$4 sm:$0xff] (!%p188_p2)   ;;  %v3450_v16 = vld [vmem:[%s4977_s1 + $0x244] ss:$8 sps:$4 sm:$0xff] (!%p188_p2)  }
   0xb   : > { %719 = vmatpush1.bf16.msra.mxu0 (!%p188_p2), %v3436_v6  ;;  %v3452_v17 = vld [vmem:[%s4977_s1 + $0x344] ss:$8 sps:$4 sm:$0xff] (!%p188_p2)   ;;  %v3454_v18 = vld [vmem:[%s4977_s1 + $0x240] ss:$8 sps:$4 sm:$0xff] (!%p188_p2)   ;;  %v3456_v20 = vld [vmem:[%s4977_s1 + $0x254] ss:$8 sps:$4 sm:$0xff] (!%p188_p2)  }
   0xc   : > { %760 = vmatpush1.bf16.msra.mxu1 (!%p188_p2), %v3437_v7  ;;  %720 = vmatprep.subr.bf16.mxu0 (!%p188_p2), %v3438_v8  ;;  %v3455_v19 = vld [vmem:[%s4977_s1 + $0x340] ss:$8 sps:$4 sm:$0xff] (!%p188_p2)   ;;  %v3458_v21 = vld [vmem:[%s4977_s1 + $0x354] ss:$8 sps:$4 sm:$0xff] (!%p188_p2)   ;;  %v3460_v22 = vld [vmem:[%s4977_s1 + $0x250] ss:$8 sps:$4 sm:$0xff] (!%p188_p2)  }
   0xd   : > { %761 = vmatprep.subr.bf16.mxu1 %v3440_v9  ;;  %v3461_v23 = vld [vmem:[%s4977_s1 + $0x350] ss:$8 sps:$4 sm:$0xff]   ;;  %v3462_v24 = vld [vmem:[%s4977_s1 + $0x264] ss:$8 sps:$4 sm:$0xff]   ;;  %v3466_v26 = vld [vmem:[%s4977_s1 + $0x260] ss:$8 sps:$4 sm:$0xff]  }
   0xe   : > { %v3464_v25 = vld [vmem:[%s4977_s1 + $0x364] ss:$8 sps:$4 sm:$0xff]   ;;  %v3467_v27 = vld [vmem:[%s4977_s1 + $0x360] ss:$8 sps:$4 sm:$0xff]   ;;  %v3468_v28 = vld [vmem:[%s4977_s1 + $0x274] ss:$8 sps:$4 sm:$0xff]  }
   0xf   : > { %721 = vmatpush1.bf16.msra.mxu0 %v3442_v10  ;;  %v3470_v29 = vld [vmem:[%s4977_s1 + $0x374] ss:$8 sps:$4 sm:$0xff]   ;;  %v3472_v30 = vld [vmem:[%s4977_s1 + $0x270] ss:$8 sps:$4 sm:$0xff]   ;;  %v3474_v32 = vld [vmem:[%s4977_s1 + $0x284] ss:$8 sps:$4 sm:$0xff]  }
  0x10   : > { %762 = vmatpush1.bf16.msra.mxu1 %v3443_v11  ;;  %722 = vmatprep.subr.bf16.mxu0 %v3444_v12  ;;  %v3473_v31 = vld [vmem:[%s4977_s1 + $0x370] ss:$8 sps:$4 sm:$0xff]   ;;  %v3476_v33 = vld [vmem:[%s4977_s1 + $0x384] ss:$8 sps:$4 sm:$0xff]   ;;  %v3478_v34 = vld [vmem:[%s4977_s1 + $0x280] ss:$8 sps:$4 sm:$0xff]  }
  0x11   : > { %763 = vmatprep.subr.bf16.mxu1 %v3446_v13  ;;  %v3479_v35 = vld [vmem:[%s4977_s1 + $0x380] ss:$8 sps:$4 sm:$0xff]   ;;  %v3480_v36 = vld [vmem:[%s4977_s1 + $0x294] ss:$8 sps:$4 sm:$0xff]   ;;  %s4983_s19 = smov (!%p213_p3, %s2984_s19), 1  ;;  %vm2935_vm0 = vcmask 516096  }
  0x12   : > { %v3482_v37 = vld [vmem:[%s4977_s1 + $0x394] ss:$8 sps:$4 sm:$0xff]   ;;  %v3484_v38 = vld [vmem:[%s4977_s1 + $0x290] ss:$8 sps:$4 sm:$0xff]   ;;  %v3486_v40 = vld [vmem:[%s4977_s1 + $0x2a4] ss:$8 sps:$4 sm:$0xff]  }
  0x13   : > { %723 = vmatpush1.bf16.msra.mxu0 %v3448_v14  ;;  %v3485_v39 = vld [vmem:[%s4977_s1 + $0x390] ss:$8 sps:$4 sm:$0xff]   ;;  %s3329_s8 = sshll.u32 %s4983_s19, 5  ;;  %v3488_v41 = vld [vmem:[%s4977_s1 + $0x3a4] ss:$8 sps:$4 sm:$0xff]  }
  0x14   : > { %764 = vmatpush1.bf16.msra.mxu1 %v3449_v15  ;;  %724 = vmatprep.subr.bf16.mxu0 %v3450_v16  ;;  %v3490_v42 = vld [vmem:[%s4977_s1 + $0x2a0] ss:$8 sps:$4 sm:$0xff]   ;;  %s4078_s17 = scalar_lea.vmem %s4976_s0, %s3329_s8  ;;  %v3492_v44 = vld [vmem:[%s4977_s1 + $0x2b4] ss:$8 sps:$4 sm:$0xff]   ;;  %v3496_v46 = vld [vmem:[%s4977_s1 + $0x2b0] ss:$8 sps:$4 sm:$0xff]  }
  0x15   : > { %765 = vmatprep.subr.bf16.mxu1 %v3452_v17  ;;  %v3491_v43 = vld [vmem:[%s4977_s1 + $0x3a0] ss:$8 sps:$4 sm:$0xff]   ;;  %v3494_v45 = vld [vmem:[%s4977_s1 + $0x3b4] ss:$8 sps:$4 sm:$0xff]   ;;  %v3497_v50 = vld [vmem:[%s4977_s1 + $0x3b0] ss:$8 sps:$4 sm:$0xff]  }
  0x16   : > { %v288_v47 = vld [vmem:[%s4078_s17] sm:$0xff]  ;;  %v289_v49 = vld [vmem:[%s4078_s17 + $0x8] sm:$0xff]  ;;  %v3504_v62 = vld [vmem:[%s4977_s1 + $0x2d4] ss:$8 sps:$4 sm:$0xff]  }
  0x17   : > { %725 = vmatpush1.bf16.msra.mxu0 %v3454_v18  ;;  %v2992_v48 = vcombine.high %v288_v47, %v288_v47  ;;  %v3498_v51 = vld [vmem:[%s4977_s1 + $0x2c4] ss:$8 sps:$4 sm:$0xff]   ;;  %v2994_v52 = vcombine.high %v289_v49, %v289_v49  ;;  %v3502_v59 = vld [vmem:[%s4977_s1 + $0x2c0] ss:$8 sps:$4 sm:$0xff]   ;;  %v3506_v63 = vld [vmem:[%s4977_s1 + $0x3d4] ss:$8 sps:$4 sm:$0xff]   ;;  %v2991_v2 = vcombine.low %v288_v47, %v288_v47  ;;  %v2993_v3 = vcombine.low %v289_v49, %v289_v49 }
  0x18   : > { %766 = vmatpush1.bf16.msra.mxu1 %v3455_v19  ;;  %726 = vmatprep.subr.bf16.mxu0 %v3456_v20  ;;  %v3500_v53 = vld [vmem:[%s4977_s1 + $0x3c4] ss:$8 sps:$4 sm:$0xff]   ;;  %v3503_v60 = vld [vmem:[%s4977_s1 + $0x3c0] ss:$8 sps:$4 sm:$0xff]   ;;  %v3508_v4 = vld [vmem:[%s4977_s1 + $0x2d0] ss:$8 sps:$4 sm:$0xff]  }
  0x19   : > { %767 = vmatprep.subr.bf16.mxu1 %v3458_v21  ;;  %v372_v54 = vshrl.u32 %v2992_v48, 16  ;;  %v374_v55 = vshll.u32 %v2992_v48, 16  ;;  %v386_v56 = vshrl.u32 %v2994_v52, 16  ;;  %v388_v57 = vshll.u32 %v2994_v52, 16  ;;  %v3509_v5 = vld [vmem:[%s4977_s1 + $0x3d0] ss:$8 sps:$4 sm:$0xff]  }
  0x1a   : > { %v3510_v6 = vld [vmem:[%s4977_s1 + $0x2e4] ss:$8 sps:$4 sm:$0xff]   ;;  %v367_v8 = vshll.u32 %v2991_v2, 16  ;;  %v381_v9 = vshll.u32 %v2993_v3, 16  ;;  %v3514_v10 = vld [vmem:[%s4977_s1 + $0x2e0] ss:$8 sps:$4 sm:$0xff]  }
  0x1b   : > { %727 = vmatpush1.bf16.msra.mxu0 %v3460_v22  ;;  %v376_v58 = vrot.slane %v374_v55, 1  ;;  %v390_v61 = vrot.slane %v388_v57, 1  ;;  %v3512_v7 = vld [vmem:[%s4977_s1 + $0x3e4] ss:$8 sps:$4 sm:$0xff]   ;;  %v3515_v11 = vld [vmem:[%s4977_s1 + $0x3e0] ss:$8 sps:$4 sm:$0xff]  }
  0x1c   : > { %768 = vmatpush1.bf16.msra.mxu1 %v3461_v23  ;;  %728 = vmatprep.subr.bf16.mxu0 %v3462_v24  ;;  %v3516_v12 = vld [vmem:[%s4977_s1 + $0x2f4] ss:$8 sps:$4 sm:$0xff]   ;;  %v365_v14 = vshrl.u32 %v2991_v2, 16  ;;  %v369_v15 = vrot.slane %v367_v8, 1  ;;  %v379_v16 = vshrl.u32 %v2993_v3, 16  ;;  %v383_v17 = vrot.slane %v381_v9, 1 }
  0x1d   : > { %769 = vmatprep.subr.bf16.mxu1 %v3464_v25  ;;  %v377_v0 = vor.u32 %v376_v58, %v372_v54  ;;  %v391_v1 = vor.u32 %v390_v61, %v386_v56  ;;  %v3518_v13 = vld [vmem:[%s4977_s1 + $0x3f4] ss:$8 sps:$4 sm:$0xff]   ;;  %v3520_v18 = vld [vmem:[%s4977_s1 + $0x2f0] ss:$8 sps:$4 sm:$0xff]   ;;  %v3528_v20 = vld [vmem:[%s4977_s1 + $0x4] ss:$8 sps:$4 sm:$0xff]  }
  0x1e   : > { %v3521_v19 = vld [vmem:[%s4977_s1 + $0x3f0] ss:$8 sps:$4 sm:$0xff]   ;;  %v3531_v21 = vld [vmem:[%s4977_s1 + $0x104] ss:$8 sps:$4 sm:$0xff]   ;;  %v370_v22 = vor.u32 %v369_v15, %v365_v14  ;;  %v384_v23 = vor.u32 %v383_v17, %v379_v16  ;;  %v3526_v24 = vld [vmem:[%s4977_s1] ss:$8 sps:$4 sm:$0xff]  }
  0x1f   : > { %729 = vmatpush1.bf16.msra.mxu0 %v3466_v26  ;;  %748 = vmatprep.mubr.bf16.mxu0 %v377_v0  ;;  %v3529_v25 = vld [vmem:[%s4977_s1 + $0x100] ss:$8 sps:$4 sm:$0xff]   ;;  %v3534_v26 = vld [vmem:[%s4977_s1 + $0x14] ss:$8 sps:$4 sm:$0xff]   ;;  %v3567_v47 = vld [vmem:[%s4977_s1 + $0x164] ss:$8 sps:$4 sm:$0xff]  }
  0x20   : > { %770 = vmatpush1.bf16.msra.mxu1 %v3467_v27  ;;  %730 = vmatprep.subr.bf16.mxu0 %v3468_v28  ;;  %v3537_v27 = vld [vmem:[%s4977_s1 + $0x114] ss:$8 sps:$4 sm:$0xff]   ;;  %v3532_v28 = vld [vmem:[%s4977_s1 + $0x10] ss:$8 sps:$4 sm:$0xff]   ;;  %v3562_v48 = vld [vmem:[%s4977_s1 + $0x60] ss:$8 sps:$4 sm:$0xff]  }
  0x21   : > { %771 = vmatprep.subr.bf16.mxu1 %v3470_v29  ;;  %789 = vmatprep.mubr.bf16.mxu1 %v391_v1  ;;  %v3535_v29 = vld [vmem:[%s4977_s1 + $0x110] ss:$8 sps:$4 sm:$0xff]   ;;  %v3565_v49 = vld [vmem:[%s4977_s1 + $0x160] ss:$8 sps:$4 sm:$0xff]   ;;  %v3570_v52 = vld [vmem:[%s4977_s1 + $0x74] ss:$8 sps:$4 sm:$0xff]  }
  0x22   : > { %v3573_v54 = vld [vmem:[%s4977_s1 + $0x174] ss:$8 sps:$4 sm:$0xff]   ;;  %v3568_v56 = vld [vmem:[%s4977_s1 + $0x70] ss:$8 sps:$4 sm:$0xff]   ;;  %v3576_v58 = vld [vmem:[%s4977_s1 + $0x84] ss:$8 sps:$4 sm:$0xff]  }
  0x23   : > { %731 = vmatpush1.bf16.msra.mxu0 %v3472_v30  ;;  %v3540_v30 = vld [vmem:[%s4977_s1 + $0x24] ss:$8 sps:$4 sm:$0xff]   ;;  %v3571_v57 = vld [vmem:[%s4977_s1 + $0x170] ss:$8 sps:$4 sm:$0xff]   ;;  %v3577_v61 = vld [vmem:[%s4977_s1 + $0x180] ss:$8 sps:$4 sm:$0xff]  }
  0x24   : > { %772 = vmatpush1.bf16.msra.mxu1 %v3473_v31  ;;  %732 = vmatprep.subr.bf16.mxu0 %v3474_v32  ;;  %v3543_v31 = vld [vmem:[%s4977_s1 + $0x124] ss:$8 sps:$4 sm:$0xff]   ;;  %v3538_v32 = vld [vmem:[%s4977_s1 + $0x20] ss:$8 sps:$4 sm:$0xff]   ;;  %v3580_v0 = vld [vmem:[%s4977_s1 + $0x90] ss:$8 sps:$4 sm:$0xff]  }
  0x25   : > { %773 = vmatprep.subr.bf16.mxu1 %v3476_v33  ;;  %v3541_v33 = vld [vmem:[%s4977_s1 + $0x120] ss:$8 sps:$4 sm:$0xff]   ;;  %v3583_v1 = vld [vmem:[%s4977_s1 + $0x190] ss:$8 sps:$4 sm:$0xff]   ;;  %v3588_v2 = vld [vmem:[%s4977_s1 + $0xa4] ss:$8 sps:$4 sm:$0xff]  }
  0x26   : > { %v3591_v3 = vld [vmem:[%s4977_s1 + $0x1a4] ss:$8 sps:$4 sm:$0xff]   ;;  %v3592_v8 = vld [vmem:[%s4977_s1 + $0xb0] ss:$8 sps:$4 sm:$0xff]   ;;  %v3606_v14 = vld [vmem:[%s4977_s1 + $0xd4] ss:$8 sps:$4 sm:$0xff]  }
  0x27   : > { %733 = vmatpush1.bf16.msra.mxu0 %v3478_v34  ;;  %v3546_v34 = vld [vmem:[%s4977_s1 + $0x34] ss:$8 sps:$4 sm:$0xff]   ;;  %v3595_v9 = vld [vmem:[%s4977_s1 + $0x1b0] ss:$8 sps:$4 sm:$0xff]  }
  0x28   : > { %774 = vmatpush1.bf16.msra.mxu1 %v3479_v35  ;;  %734 = vmatprep.subr.bf16.mxu0 %v3480_v36  ;;  %v3549_v35 = vld [vmem:[%s4977_s1 + $0x134] ss:$8 sps:$4 sm:$0xff]   ;;  %v3544_v36 = vld [vmem:[%s4977_s1 + $0x30] ss:$8 sps:$4 sm:$0xff]  }
  0x29   : > { %775 = vmatprep.subr.bf16.mxu1 %v3482_v37  ;;  %v3547_v37 = vld [vmem:[%s4977_s1 + $0x130] ss:$8 sps:$4 sm:$0xff]   ;;  %v3609_v15 = vld [vmem:[%s4977_s1 + $0x1d4] ss:$8 sps:$4 sm:$0xff]  }
  0x2a   : > { %v3604_v16 = vld [vmem:[%s4977_s1 + $0xd0] ss:$8 sps:$4 sm:$0xff]  }
  0x2b   : > { %735 = vmatpush1.bf16.msra.mxu0 %v3484_v38  ;;  %v3552_v38 = vld [vmem:[%s4977_s1 + $0x44] ss:$8 sps:$4 sm:$0xff]   ;;  %v3607_v17 = vld [vmem:[%s4977_s1 + $0x1d0] ss:$8 sps:$4 sm:$0xff]  }
  0x2c   : > { %776 = vmatpush1.bf16.msra.mxu1 %v3485_v39  ;;  %736 = vmatprep.subr.bf16.mxu0 %v3486_v40  ;;  %v3555_v39 = vld [vmem:[%s4977_s1 + $0x144] ss:$8 sps:$4 sm:$0xff]   ;;  %v3550_v40 = vld [vmem:[%s4977_s1 + $0x40] ss:$8 sps:$4 sm:$0xff]  }
  0x2d   : > { %777 = vmatprep.subr.bf16.mxu1 %v3488_v41  ;;  %v3553_v41 = vld [vmem:[%s4977_s1 + $0x140] ss:$8 sps:$4 sm:$0xff]  }
  0x2f   : > { %737 = vmatpush1.bf16.msra.mxu0 %v3490_v42  ;;  %v3558_v42 = vld [vmem:[%s4977_s1 + $0x54] ss:$8 sps:$4 sm:$0xff]  }
  0x30   : > { %778 = vmatpush1.bf16.msra.mxu1 %v3491_v43  ;;  %738 = vmatprep.subr.bf16.mxu0 %v3492_v44  ;;  %v3561_v43 = vld [vmem:[%s4977_s1 + $0x154] ss:$8 sps:$4 sm:$0xff]   ;;  %v3556_v44 = vld [vmem:[%s4977_s1 + $0x50] ss:$8 sps:$4 sm:$0xff]  }
  0x31   : > { %779 = vmatprep.subr.bf16.mxu1 %v3494_v45  ;;  %v3559_v45 = vld [vmem:[%s4977_s1 + $0x150] ss:$8 sps:$4 sm:$0xff]  }
  0x33   : > { %739 = vmatpush1.bf16.msra.mxu0 %v3496_v46  ;;  %v3564_v46 = vld [vmem:[%s4977_s1 + $0x64] ss:$8 sps:$4 sm:$0xff]  }
  0x34   : > { %780 = vmatpush1.bf16.msra.mxu1 %v3497_v50  ;;  %740 = vmatprep.subr.bf16.mxu0 %v3498_v51  ;;  %v4227_v50 = vld [vmem:[%s4078_s17] sm:$0x77]  ;;  %v4230_v51 = vld [vmem:[%s4078_s17 + $0x8] sm:$0x77] }
  0x35   : > { %781 = vmatprep.subr.bf16.mxu1 %v3500_v53  ;;  %v3060_v53 = vcombine.high %v4227_v50, %v4227_v50  ;;  %v3062_v55 = vcombine.high %v4230_v51, %v4230_v51 }
  0x37   : > { %741 = vmatpush1.bf16.msra.mxu0 %v3502_v59  ;;  %v3579_v59 = vld [vmem:[%s4977_s1 + $0x184] ss:$8 sps:$4 sm:$0xff]  }
  0x38   : > { %782 = vmatpush1.bf16.msra.mxu1 %v3503_v60  ;;  %742 = vmatprep.subr.bf16.mxu0 %v3504_v62  ;;  %v3574_v60 = vld [vmem:[%s4977_s1 + $0x80] ss:$8 sps:$4 sm:$0xff]   ;;  %v3582_v62 = vld [vmem:[%s4977_s1 + $0x94] ss:$8 sps:$4 sm:$0xff]  }
  0x39   : > { %783 = vmatprep.subr.bf16.mxu1 %v3506_v63  ;;  %v3585_v63 = vld [vmem:[%s4977_s1 + $0x194] ss:$8 sps:$4 sm:$0xff]  }
  0x3b   : > { %743 = vmatpush1.bf16.msra.mxu0 %v3508_v4  ;;  %v3586_v4 = vld [vmem:[%s4977_s1 + $0xa0] ss:$8 sps:$4 sm:$0xff]  }
  0x3c   : > { %784 = vmatpush1.bf16.msra.mxu1 %v3509_v5  ;;  %744 = vmatprep.subr.bf16.mxu0 %v3510_v6  ;;  %v3589_v5 = vld [vmem:[%s4977_s1 + $0x1a0] ss:$8 sps:$4 sm:$0xff]   ;;  %v3594_v6 = vld [vmem:[%s4977_s1 + $0xb4] ss:$8 sps:$4 sm:$0xff]  }
  0x3d   : > { %785 = vmatprep.subr.bf16.mxu1 %v3512_v7  ;;  %v3597_v7 = vld [vmem:[%s4977_s1 + $0x1b4] ss:$8 sps:$4 sm:$0xff]  }
  0x3f   : > { %745 = vmatpush1.bf16.msra.mxu0 %v3514_v10  ;;  %v3600_v10 = vld [vmem:[%s4977_s1 + $0xc4] ss:$8 sps:$4 sm:$0xff]  }
  0x40   : > { %786 = vmatpush1.bf16.msra.mxu1 %v3515_v11  ;;  %746 = vmatprep.subr.bf16.mxu0 %v3516_v12  ;;  %v3603_v11 = vld [vmem:[%s4977_s1 + $0x1c4] ss:$8 sps:$4 sm:$0xff]   ;;  %v3598_v12 = vld [vmem:[%s4977_s1 + $0xc0] ss:$8 sps:$4 sm:$0xff]  }
  0x41   : > { %787 = vmatprep.subr.bf16.mxu1 %v3518_v13  ;;  %v3601_v13 = vld [vmem:[%s4977_s1 + $0x1c0] ss:$8 sps:$4 sm:$0xff]  }
  0x43   : > { %747 = vmatpush1.bf16.msra.mxu0 %v3520_v18  ;;  %v3612_v18 = vld [vmem:[%s4977_s1 + $0xe4] ss:$8 sps:$4 sm:$0xff]  }
  0x44   : > { %788 = vmatpush1.bf16.msra.mxu1 %v3521_v19  ;;  %1132 = vmatprep.subr.bf16.mxu0 %v3528_v20  ;;  %v3615_v19 = vld [vmem:[%s4977_s1 + $0x1e4] ss:$8 sps:$4 sm:$0xff]   ;;  %v3610_v20 = vld [vmem:[%s4977_s1 + $0xe0] ss:$8 sps:$4 sm:$0xff]  }
  0x45   : > { %1173 = vmatprep.subr.bf16.mxu1 %v3531_v21  ;;  %v3613_v21 = vld [vmem:[%s4977_s1 + $0x1e0] ss:$8 sps:$4 sm:$0xff]  }
  0x46   : > { %749 = vmatmul.mubr.bf16.vlgmr.msra.gmra.mrb[0].mxu0 %v370_v22  ;;  %v3618_v22 = vld [vmem:[%s4977_s1 + $0xf4] ss:$8 sps:$4 sm:$0xff]  }
  0x47   : > { %790 = vmatmul.mubr.bf16.vlgmr.msra.gmra.mrb[0].mxu1 %v384_v23  ;;  %1133 = vmatpush1.bf16.msra.mxu0 %v3526_v24  ;;  %v3621_v23 = vld [vmem:[%s4977_s1 + $0x1f4] ss:$8 sps:$4 sm:$0xff]   ;;  %v3616_v24 = vld [vmem:[%s4977_s1 + $0xf0] ss:$8 sps:$4 sm:$0xff]  }
  0x48   : > { %1174 = vmatpush1.bf16.msra.mxu1 %v3529_v25  ;;  %1134 = vmatprep.subr.bf16.mxu0 %v3534_v26  ;;  %v3619_v25 = vld [vmem:[%s4977_s1 + $0x1f0] ss:$8 sps:$4 sm:$0xff]   ;;  %v3628_v26 = vld [vmem:[%s4977_s1 + $0x404] ss:$8 sps:$4 sm:$0xff]  }
  0x49   : > { %1175 = vmatprep.subr.bf16.mxu1 %v3537_v27  ;;  %1164 = vmatprep.mubr.bf16.mxu0 %v3060_v53  ;;  %v3631_v27 = vld [vmem:[%s4977_s1 + $0x504] ss:$8 sps:$4 sm:$0xff]   ;;  %v3649_v53 = vld [vmem:[%s4977_s1 + $0x534] ss:$8 sps:$4 sm:$0xff]  }
  0x4a   : > { %1205 = vmatprep.mubr.bf16.mxu1 %v3062_v55 }
  0x4b   : > { %1135 = vmatpush1.bf16.msra.mxu0 %v3532_v28  ;;  %v3059_v28 = vcombine.low %v4227_v50, %v4227_v50 }
  0x4c   : > { %1176 = vmatpush1.bf16.msra.mxu1 %v3535_v29  ;;  %1136 = vmatprep.subr.bf16.mxu0 %v3540_v30  ;;  %v3061_v29 = vcombine.low %v4230_v51, %v4230_v51  ;;  %v3626_v30 = vld [vmem:[%s4977_s1 + $0x400] ss:$8 sps:$4 sm:$0xff]  }
  0x4d   : > { %1177 = vmatprep.subr.bf16.mxu1 %v3543_v31  ;;  %v3629_v31 = vld [vmem:[%s4977_s1 + $0x500] ss:$8 sps:$4 sm:$0xff]  }
  0x4f   : > { %1137 = vmatpush1.bf16.msra.mxu0 %v3538_v32  ;;  %v3634_v32 = vld [vmem:[%s4977_s1 + $0x414] ss:$8 sps:$4 sm:$0xff]  }
  0x50   : > { %1178 = vmatpush1.bf16.msra.mxu1 %v3541_v33  ;;  %1138 = vmatprep.subr.bf16.mxu0 %v3546_v34  ;;  %v3637_v33 = vld [vmem:[%s4977_s1 + $0x514] ss:$8 sps:$4 sm:$0xff]   ;;  %v3632_v34 = vld [vmem:[%s4977_s1 + $0x410] ss:$8 sps:$4 sm:$0xff]  }
  0x51   : > { %1179 = vmatprep.subr.bf16.mxu1 %v3549_v35  ;;  %v3635_v35 = vld [vmem:[%s4977_s1 + $0x510] ss:$8 sps:$4 sm:$0xff]  }
  0x53   : > { %1139 = vmatpush1.bf16.msra.mxu0 %v3544_v36  ;;  %v4373_v36 = vld [vmem:[%s4078_s17] sm:$0xee] }
  0x54   : > { %1180 = vmatpush1.bf16.msra.mxu1 %v3547_v37  ;;  %1140 = vmatprep.subr.bf16.mxu0 %v3552_v38  ;;  %v4376_v37 = vld [vmem:[%s4078_s17 + $0x10] sm:$0x11]  ;;  %v4379_v38 = vld [vmem:[%s4078_s17 + $0x8] sm:$0xee] }
  0x55   : > { %1181 = vmatprep.subr.bf16.mxu1 %v3555_v39  ;;  %v4382_v39 = vld [vmem:[%s4078_s17 + $0x18] sm:$0x11] }
  0x57   : > { %1141 = vmatpush1.bf16.msra.mxu0 %v3550_v40  ;;  %v3640_v40 = vld [vmem:[%s4977_s1 + $0x424] ss:$8 sps:$4 sm:$0xff]  }
  0x58   : > { %1182 = vmatpush1.bf16.msra.mxu1 %v3553_v41  ;;  %1142 = vmatprep.subr.bf16.mxu0 %v3558_v42  ;;  %v3128_v41 = vcombine.high %v4373_v36, %v4376_v37  ;;  %v3643_v42 = vld [vmem:[%s4977_s1 + $0x524] ss:$8 sps:$4 sm:$0xff]  }
  0x59   : > { %1183 = vmatprep.subr.bf16.mxu1 %v3561_v43  ;;  %v3130_v43 = vcombine.high %v4379_v38, %v4382_v39 }
  0x5b   : > { %1143 = vmatpush1.bf16.msra.mxu0 %v3556_v44  ;;  %v1307_v44 = vshrl.u32 %v3128_v41, 16 }
  0x5c   : > { %1184 = vmatpush1.bf16.msra.mxu1 %v3559_v45  ;;  %1144 = vmatprep.subr.bf16.mxu0 %v3564_v46  ;;  %v1310_v45 = vshll.u32 %v3128_v41, 16  ;;  %v3638_v46 = vld [vmem:[%s4977_s1 + $0x420] ss:$8 sps:$4 sm:$0xff]  }
  0x5d   : > { %1185 = vmatprep.subr.bf16.mxu1 %v3567_v47  ;;  %v1323_v47 = vshrl.u32 %v3130_v43, 16  ;;  %v1309_v50 = vrot.slane %v1307_v44, 1  ;;  %v4531_v44 = vld [vmem:[%s4078_s17] sm:$0xcc] }
  0x5e   : > { %v1312_v51 = vrot.slane %v1310_v45, 2  ;;  %v4534_v45 = vld [vmem:[%s4078_s17 + $0x8] sm:$0xcc]  ;;  %s220_s17 = scalar_lea.vmem %s4981_s5, %s4983_s19 }
  0x5f   : > { %1145 = vmatpush1.bf16.msra.mxu0 %v3562_v48  ;;  %v1326_v48 = vshll.u32 %v3130_v43, 16 }
  0x60   : > { %1186 = vmatpush1.bf16.msra.mxu1 %v3565_v49  ;;  %1146 = vmatprep.subr.bf16.mxu0 %v3570_v52  ;;  %v3641_v49 = vld [vmem:[%s4977_s1 + $0x520] ss:$8 sps:$4 sm:$0xff]   ;;  %v3646_v52 = vld [vmem:[%s4977_s1 + $0x434] ss:$8 sps:$4 sm:$0xff]  }
  0x61   : > { %1187 = vmatprep.subr.bf16.mxu1 %v3573_v54  ;;  %v1325_v54 = vrot.slane %v1323_v47, 1  ;;  %v1328_v55 = vrot.slane %v1326_v48, 2  ;;  %v3707_v47 = vld [vmem:[%s4977_s1 + $0x5d0] ss:$8 sps:$4 sm:$0xff]   ;;  %v3196_v48 = vcombine.high %v4531_v44, %v4376_v37 }
  0x63   : > { %1147 = vmatpush1.bf16.msra.mxu0 %v3568_v56  ;;  %v1313_v56 = vor.u32 %v1312_v51, %v1309_v50  ;;  %v3712_v50 = vld [vmem:[%s4977_s1 + $0x4e4] ss:$8 sps:$4 sm:$0xff]  }
  0x64   : > { %1188 = vmatpush1.bf16.msra.mxu1 %v3571_v57  ;;  %1148 = vmatprep.subr.bf16.mxu0 %v3576_v58  ;;  %v3644_v57 = vld [vmem:[%s4977_s1 + $0x430] ss:$8 sps:$4 sm:$0xff]   ;;  %v1329_v58 = vor.u32 %v1328_v55, %v1325_v54  ;;  %v3715_v51 = vld [vmem:[%s4977_s1 + $0x5e4] ss:$8 sps:$4 sm:$0xff]   ;;  %v1815_v54 = vrot.slane %v3196_v48, 2 }
  0x65   : > { %1189 = vmatprep.subr.bf16.mxu1 %v3579_v59  ;;  %v3647_v59 = vld [vmem:[%s4977_s1 + $0x530] ss:$8 sps:$4 sm:$0xff]   ;;  %v3794_v48 = vld [vmem:[%s4977_s1 + $0x6b4] ss:$8 sps:$4 sm:$0xff]  }
  0x67   : > { %1149 = vmatpush1.bf16.msra.mxu0 %v3574_v60  ;;  %v3652_v60 = vld [vmem:[%s4977_s1 + $0x444] ss:$8 sps:$4 sm:$0xff]  }
  0x68   : > { %1190 = vmatpush1.bf16.msra.mxu1 %v3577_v61  ;;  %1150 = vmatprep.subr.bf16.mxu0 %v3582_v62  ;;  %v3655_v61 = vld [vmem:[%s4977_s1 + $0x544] ss:$8 sps:$4 sm:$0xff]   ;;  %v3650_v62 = vld [vmem:[%s4977_s1 + $0x440] ss:$8 sps:$4 sm:$0xff]  }
  0x69   : > { %1191 = vmatprep.subr.bf16.mxu1 %v3585_v63  ;;  %v3653_v63 = vld [vmem:[%s4977_s1 + $0x540] ss:$8 sps:$4 sm:$0xff]  }
  0x6b   : > { %1151 = vmatpush1.bf16.msra.mxu0 %v3580_v0  ;;  %v3658_v0 = vld [vmem:[%s4977_s1 + $0x454] ss:$8 sps:$4 sm:$0xff]  }
  0x6c   : > { %1192 = vmatpush1.bf16.msra.mxu1 %v3583_v1  ;;  %1152 = vmatprep.subr.bf16.mxu0 %v3588_v2  ;;  %v3661_v1 = vld [vmem:[%s4977_s1 + $0x554] ss:$8 sps:$4 sm:$0xff]   ;;  %v3656_v2 = vld [vmem:[%s4977_s1 + $0x450] ss:$8 sps:$4 sm:$0xff]  }
  0x6d   : > { %1193 = vmatprep.subr.bf16.mxu1 %v3591_v3  ;;  %v3659_v3 = vld [vmem:[%s4977_s1 + $0x550] ss:$8 sps:$4 sm:$0xff]  }
  0x6f   : > { %1153 = vmatpush1.bf16.msra.mxu0 %v3586_v4  ;;  %v3664_v4 = vld [vmem:[%s4977_s1 + $0x464] ss:$8 sps:$4 sm:$0xff]  }
  0x70   : > { %1194 = vmatpush1.bf16.msra.mxu1 %v3589_v5  ;;  %1154 = vmatprep.subr.bf16.mxu0 %v3594_v6  ;;  %v3667_v5 = vld [vmem:[%s4977_s1 + $0x564] ss:$8 sps:$4 sm:$0xff]   ;;  %v3662_v6 = vld [vmem:[%s4977_s1 + $0x460] ss:$8 sps:$4 sm:$0xff]  }
  0x71   : > { %1195 = vmatprep.subr.bf16.mxu1 %v3597_v7  ;;  %v3665_v7 = vld [vmem:[%s4977_s1 + $0x560] ss:$8 sps:$4 sm:$0xff]  }
  0x73   : > { %1155 = vmatpush1.bf16.msra.mxu0 %v3592_v8  ;;  %v3670_v8 = vld [vmem:[%s4977_s1 + $0x474] ss:$8 sps:$4 sm:$0xff]  }
  0x74   : > { %1196 = vmatpush1.bf16.msra.mxu1 %v3595_v9  ;;  %1156 = vmatprep.subr.bf16.mxu0 %v3600_v10  ;;  %v3673_v9 = vld [vmem:[%s4977_s1 + $0x574] ss:$8 sps:$4 sm:$0xff]   ;;  %v3668_v10 = vld [vmem:[%s4977_s1 + $0x470] ss:$8 sps:$4 sm:$0xff]  }
  0x75   : > { %1197 = vmatprep.subr.bf16.mxu1 %v3603_v11  ;;  %v3671_v11 = vld [vmem:[%s4977_s1 + $0x570] ss:$8 sps:$4 sm:$0xff]  }
  0x77   : > { %1157 = vmatpush1.bf16.msra.mxu0 %v3598_v12  ;;  %v3676_v12 = vld [vmem:[%s4977_s1 + $0x484] ss:$8 sps:$4 sm:$0xff]  }
  0x78   : > { %1198 = vmatpush1.bf16.msra.mxu1 %v3601_v13  ;;  %1158 = vmatprep.subr.bf16.mxu0 %v3606_v14  ;;  %v3679_v13 = vld [vmem:[%s4977_s1 + $0x584] ss:$8 sps:$4 sm:$0xff]   ;;  %v3674_v14 = vld [vmem:[%s4977_s1 + $0x480] ss:$8 sps:$4 sm:$0xff]  }
  0x79   : > { %1199 = vmatprep.subr.bf16.mxu1 %v3609_v15  ;;  %v3677_v15 = vld [vmem:[%s4977_s1 + $0x580] ss:$8 sps:$4 sm:$0xff]  }
  0x7b   : > { %1159 = vmatpush1.bf16.msra.mxu0 %v3604_v16  ;;  %v3682_v16 = vld [vmem:[%s4977_s1 + $0x494] ss:$8 sps:$4 sm:$0xff]  }
  0x7c   : > { %1200 = vmatpush1.bf16.msra.mxu1 %v3607_v17  ;;  %1160 = vmatprep.subr.bf16.mxu0 %v3612_v18  ;;  %v3685_v17 = vld [vmem:[%s4977_s1 + $0x594] ss:$8 sps:$4 sm:$0xff]   ;;  %v3680_v18 = vld [vmem:[%s4977_s1 + $0x490] ss:$8 sps:$4 sm:$0xff]  }
  0x7d   : > { %1201 = vmatprep.subr.bf16.mxu1 %v3615_v19  ;;  %v3683_v19 = vld [vmem:[%s4977_s1 + $0x590] ss:$8 sps:$4 sm:$0xff]  }
  0x7f   : > { %1161 = vmatpush1.bf16.msra.mxu0 %v3610_v20  ;;  %v3688_v20 = vld [vmem:[%s4977_s1 + $0x4a4] ss:$8 sps:$4 sm:$0xff]  }
  0x80   : > { %1202 = vmatpush1.bf16.msra.mxu1 %v3613_v21  ;;  %1162 = vmatprep.subr.bf16.mxu0 %v3618_v22  ;;  %v3691_v21 = vld [vmem:[%s4977_s1 + $0x5a4] ss:$8 sps:$4 sm:$0xff]   ;;  %v3686_v22 = vld [vmem:[%s4977_s1 + $0x4a0] ss:$8 sps:$4 sm:$0xff]  }
  0x81   : > { %1203 = vmatprep.subr.bf16.mxu1 %v3621_v23  ;;  %v3689_v23 = vld [vmem:[%s4977_s1 + $0x5a0] ss:$8 sps:$4 sm:$0xff]  }
  0x83   : > { %1163 = vmatpush1.bf16.msra.mxu0 %v3616_v24  ;;  %v3694_v24 = vld [vmem:[%s4977_s1 + $0x4b4] ss:$8 sps:$4 sm:$0xff]  }
  0x84   : > { %1204 = vmatpush1.bf16.msra.mxu1 %v3619_v25  ;;  %1654 = vmatprep.subr.bf16.mxu0 %v3628_v26  ;;  %v3127_v25 = vcombine.low %v4373_v36, %v4376_v37  ;;  %v3697_v26 = vld [vmem:[%s4977_s1 + $0x5b4] ss:$8 sps:$4 sm:$0xff]  }
  0x85   : > { %1695 = vmatprep.subr.bf16.mxu1 %v3631_v27  ;;  %v3692_v27 = vld [vmem:[%s4977_s1 + $0x4b0] ss:$8 sps:$4 sm:$0xff]   ;;  %v3706_v36 = vld [vmem:[%s4977_s1 + $0x4d4] ss:$8 sps:$4 sm:$0xff]  }
  0x86   : > { %1165 = vmatmul.mubr.bf16.vlgmr.msra.gmra.mrb[4].mxu0 %v3059_v28  ;;  %v3695_v28 = vld [vmem:[%s4977_s1 + $0x5b0] ss:$8 sps:$4 sm:$0xff]  }
  0x87   : > { %1206 = vmatmul.mubr.bf16.vlgmr.msra.gmra.mrb[4].mxu1 %v3061_v29  ;;  %1655 = vmatpush1.bf16.msra.mxu0 %v3626_v30  ;;  %v3700_v29 = vld [vmem:[%s4977_s1 + $0x4c4] ss:$8 sps:$4 sm:$0xff]   ;;  %v3129_v30 = vcombine.low %v4379_v38, %v4382_v39  ;;  %v3709_v38 = vld [vmem:[%s4977_s1 + $0x5d4] ss:$8 sps:$4 sm:$0xff]  }
  0x88   : > { %1696 = vmatpush1.bf16.msra.mxu1 %v3629_v31  ;;  %1656 = vmatprep.subr.bf16.mxu0 %v3634_v32  ;;  %v1299_v31 = vshrl.u32 %v3127_v25, 16  ;;  %v1302_v32 = vshll.u32 %v3127_v25, 16  ;;  %v3767_v25 = vld [vmem:[%s4977_s1 + $0x764] ss:$8 sps:$4 sm:$0xff]  }
  0x89   : > { %1697 = vmatprep.subr.bf16.mxu1 %v3637_v33  ;;  %1686 = vmatprep.mubr.bf16.mxu0 %v1313_v56  ;;  %v3703_v33 = vld [vmem:[%s4977_s1 + $0x5c4] ss:$8 sps:$4 sm:$0xff]   ;;  %v1318_v43 = vshll.u32 %v3129_v30, 16  ;;  %v3710_v56 = vld [vmem:[%s4977_s1 + $0x4e0] ss:$8 sps:$4 sm:$0xff]  }
  0x8a   : > { %1727 = vmatprep.mubr.bf16.mxu1 %v1329_v58  ;;  %v1304_v41 = vrot.slane %v1302_v32, 2  ;;  %v3718_v58 = vld [vmem:[%s4977_s1 + $0x4f4] ss:$8 sps:$4 sm:$0xff]   ;;  %v3776_v32 = vld [vmem:[%s4977_s1 + $0x684] ss:$8 sps:$4 sm:$0xff]  }
  0x8b   : > { %1657 = vmatpush1.bf16.msra.mxu0 %v3632_v34  ;;  %v3698_v34 = vld [vmem:[%s4977_s1 + $0x4c0] ss:$8 sps:$4 sm:$0xff]  }
  0x8c   : > { %1698 = vmatpush1.bf16.msra.mxu1 %v3635_v35  ;;  %1658 = vmatprep.subr.bf16.mxu0 %v3640_v40  ;;  %v3701_v35 = vld [vmem:[%s4977_s1 + $0x5c0] ss:$8 sps:$4 sm:$0xff]   ;;  %v1301_v40 = vrot.slane %v1299_v31, 1  ;;  %v3771_v31 = vld [vmem:[%s4977_s1 + $0x770] ss:$8 sps:$4 sm:$0xff]  }
  0x8d   : > { %1699 = vmatprep.subr.bf16.mxu1 %v3643_v42  ;;  %v1315_v42 = vshrl.u32 %v3129_v30, 16  ;;  %v3768_v30 = vld [vmem:[%s4977_s1 + $0x670] ss:$8 sps:$4 sm:$0xff]  }
  0x8f   : > { %1659 = vmatpush1.bf16.msra.mxu0 %v3638_v46  ;;  %v3704_v46 = vld [vmem:[%s4977_s1 + $0x4d0] ss:$8 sps:$4 sm:$0xff]  }
  0x90   : > { %1700 = vmatpush1.bf16.msra.mxu1 %v3641_v49  ;;  %1660 = vmatprep.subr.bf16.mxu0 %v3646_v52  ;;  %v3198_v49 = vcombine.high %v4534_v45, %v4382_v39  ;;  %v1317_v52 = vrot.slane %v1315_v42, 1  ;;  %v3788_v42 = vld [vmem:[%s4977_s1 + $0x6a4] ss:$8 sps:$4 sm:$0xff]  }
  0x91   : > { %1701 = vmatprep.subr.bf16.mxu1 %v3649_v53  ;;  %v1320_v53 = vrot.slane %v1318_v43, 2  ;;  %v3791_v43 = vld [vmem:[%s4977_s1 + $0x7a4] ss:$8 sps:$4 sm:$0xff]  }
  0x92   : > { %v1817_v55 = vrot.slane %v3198_v49, 2  ;;  %v3797_v49 = vld [vmem:[%s4977_s1 + $0x7b4] ss:$8 sps:$4 sm:$0xff]  }
  0x93   : > { %1661 = vmatpush1.bf16.msra.mxu0 %v3644_v57  ;;  %v3713_v57 = vld [vmem:[%s4977_s1 + $0x5e0] ss:$8 sps:$4 sm:$0xff]  }
  0x94   : > { %1702 = vmatpush1.bf16.msra.mxu1 %v3647_v59  ;;  %1662 = vmatprep.subr.bf16.mxu0 %v3652_v60  ;;  %v3721_v59 = vld [vmem:[%s4977_s1 + $0x5f4] ss:$8 sps:$4 sm:$0xff]   ;;  %v3716_v60 = vld [vmem:[%s4977_s1 + $0x4f0] ss:$8 sps:$4 sm:$0xff]  }
  0x95   : > { %1703 = vmatprep.subr.bf16.mxu1 %v3655_v61  ;;  %v3719_v61 = vld [vmem:[%s4977_s1 + $0x5f0] ss:$8 sps:$4 sm:$0xff]  }
  0x97   : > { %1663 = vmatpush1.bf16.msra.mxu0 %v3650_v62  ;;  %v3728_v62 = vld [vmem:[%s4977_s1 + $0x604] ss:$8 sps:$4 sm:$0xff]  }
  0x98   : > { %1704 = vmatpush1.bf16.msra.mxu1 %v3653_v63  ;;  %1664 = vmatprep.subr.bf16.mxu0 %v3658_v0  ;;  %v3731_v63 = vld [vmem:[%s4977_s1 + $0x704] ss:$8 sps:$4 sm:$0xff]   ;;  %v3726_v0 = vld [vmem:[%s4977_s1 + $0x600] ss:$8 sps:$4 sm:$0xff]  }
  0x99   : > { %1705 = vmatprep.subr.bf16.mxu1 %v3661_v1  ;;  %v3729_v1 = vld [vmem:[%s4977_s1 + $0x700] ss:$8 sps:$4 sm:$0xff]  }
  0x9b   : > { %1665 = vmatpush1.bf16.msra.mxu0 %v3656_v2  ;;  %v1305_v2 = vor.u32 %v1304_v41, %v1301_v40  ;;  %v3780_v40 = vld [vmem:[%s4977_s1 + $0x690] ss:$8 sps:$4 sm:$0xff]  }
  0x9c   : > { %1706 = vmatpush1.bf16.msra.mxu1 %v3659_v3  ;;  %1666 = vmatprep.subr.bf16.mxu0 %v3664_v4  ;;  %v1321_v3 = vor.u32 %v1320_v53, %v1317_v52  ;;  %v3734_v4 = vld [vmem:[%s4977_s1 + $0x614] ss:$8 sps:$4 sm:$0xff]   ;;  %v3783_v41 = vld [vmem:[%s4977_s1 + $0x790] ss:$8 sps:$4 sm:$0xff]   ;;  %v3800_v52 = vld [vmem:[%s4977_s1 + $0x6c4] ss:$8 sps:$4 sm:$0xff]  }
  0x9d   : > { %1707 = vmatprep.subr.bf16.mxu1 %v3667_v5  ;;  %v3737_v5 = vld [vmem:[%s4977_s1 + $0x714] ss:$8 sps:$4 sm:$0xff]   ;;  %v3803_v53 = vld [vmem:[%s4977_s1 + $0x7c4] ss:$8 sps:$4 sm:$0xff]  }
  0x9f   : > { %1667 = vmatpush1.bf16.msra.mxu0 %v3662_v6  ;;  %v3732_v6 = vld [vmem:[%s4977_s1 + $0x610] ss:$8 sps:$4 sm:$0xff]  }
  0xa0   : > { %1708 = vmatpush1.bf16.msra.mxu1 %v3665_v7  ;;  %1668 = vmatprep.subr.bf16.mxu0 %v3670_v8  ;;  %v3735_v7 = vld [vmem:[%s4977_s1 + $0x710] ss:$8 sps:$4 sm:$0xff]   ;;  %v3740_v8 = vld [vmem:[%s4977_s1 + $0x624] ss:$8 sps:$4 sm:$0xff]  }
  0xa1   : > { %1709 = vmatprep.subr.bf16.mxu1 %v3673_v9  ;;  %v3743_v9 = vld [vmem:[%s4977_s1 + $0x724] ss:$8 sps:$4 sm:$0xff]  }
  0xa3   : > { %1669 = vmatpush1.bf16.msra.mxu0 %v3668_v10  ;;  %v3738_v10 = vld [vmem:[%s4977_s1 + $0x620] ss:$8 sps:$4 sm:$0xff]  }
  0xa4   : > { %1710 = vmatpush1.bf16.msra.mxu1 %v3671_v11  ;;  %1670 = vmatprep.subr.bf16.mxu0 %v3676_v12  ;;  %v3741_v11 = vld [vmem:[%s4977_s1 + $0x720] ss:$8 sps:$4 sm:$0xff]   ;;  %v3746_v12 = vld [vmem:[%s4977_s1 + $0x634] ss:$8 sps:$4 sm:$0xff]  }
  0xa5   : > { %1711 = vmatprep.subr.bf16.mxu1 %v3679_v13  ;;  %v3749_v13 = vld [vmem:[%s4977_s1 + $0x734] ss:$8 sps:$4 sm:$0xff]  }
  0xa7   : > { %1671 = vmatpush1.bf16.msra.mxu0 %v3674_v14  ;;  %v3744_v14 = vld [vmem:[%s4977_s1 + $0x630] ss:$8 sps:$4 sm:$0xff]  }
  0xa8   : > { %1712 = vmatpush1.bf16.msra.mxu1 %v3677_v15  ;;  %1672 = vmatprep.subr.bf16.mxu0 %v3682_v16  ;;  %v3747_v15 = vld [vmem:[%s4977_s1 + $0x730] ss:$8 sps:$4 sm:$0xff]   ;;  %v3752_v16 = vld [vmem:[%s4977_s1 + $0x644] ss:$8 sps:$4 sm:$0xff]  }
  0xa9   : > { %1713 = vmatprep.subr.bf16.mxu1 %v3685_v17  ;;  %v3755_v17 = vld [vmem:[%s4977_s1 + $0x744] ss:$8 sps:$4 sm:$0xff]  }
  0xab   : > { %1673 = vmatpush1.bf16.msra.mxu0 %v3680_v18  ;;  %v3750_v18 = vld [vmem:[%s4977_s1 + $0x640] ss:$8 sps:$4 sm:$0xff]  }
  0xac   : > { %1714 = vmatpush1.bf16.msra.mxu1 %v3683_v19  ;;  %1674 = vmatprep.subr.bf16.mxu0 %v3688_v20  ;;  %v3753_v19 = vld [vmem:[%s4977_s1 + $0x740] ss:$8 sps:$4 sm:$0xff]   ;;  %v3758_v20 = vld [vmem:[%s4977_s1 + $0x654] ss:$8 sps:$4 sm:$0xff]  }
  0xad   : > { %1715 = vmatprep.subr.bf16.mxu1 %v3691_v21  ;;  %v3761_v21 = vld [vmem:[%s4977_s1 + $0x754] ss:$8 sps:$4 sm:$0xff]  }
  0xaf   : > { %1675 = vmatpush1.bf16.msra.mxu0 %v3686_v22  ;;  %v3756_v22 = vld [vmem:[%s4977_s1 + $0x650] ss:$8 sps:$4 sm:$0xff]  }
  0xb0   : > { %1716 = vmatpush1.bf16.msra.mxu1 %v3689_v23  ;;  %1676 = vmatprep.subr.bf16.mxu0 %v3694_v24  ;;  %v3759_v23 = vld [vmem:[%s4977_s1 + $0x750] ss:$8 sps:$4 sm:$0xff]   ;;  %v3764_v24 = vld [vmem:[%s4977_s1 + $0x664] ss:$8 sps:$4 sm:$0xff]  }
  0xb1   : > { %1717 = vmatprep.subr.bf16.mxu1 %v3697_v26  ;;  %v3762_v26 = vld [vmem:[%s4977_s1 + $0x660] ss:$8 sps:$4 sm:$0xff]  }
  0xb3   : > { %1677 = vmatpush1.bf16.msra.mxu0 %v3692_v27  ;;  %v3765_v27 = vld [vmem:[%s4977_s1 + $0x760] ss:$8 sps:$4 sm:$0xff]  }
  0xb4   : > { %1718 = vmatpush1.bf16.msra.mxu1 %v3695_v28  ;;  %1678 = vmatprep.subr.bf16.mxu0 %v3700_v29  ;;  %v3770_v28 = vld [vmem:[%s4977_s1 + $0x674] ss:$8 sps:$4 sm:$0xff]  }
  0xb5   : > { %1719 = vmatprep.subr.bf16.mxu1 %v3703_v33  ;;  %v3773_v29 = vld [vmem:[%s4977_s1 + $0x774] ss:$8 sps:$4 sm:$0xff]   ;;  %v3779_v33 = vld [vmem:[%s4977_s1 + $0x784] ss:$8 sps:$4 sm:$0xff]  }
  0xb7   : > { %1679 = vmatpush1.bf16.msra.mxu0 %v3698_v34  ;;  %v3774_v34 = vld [vmem:[%s4977_s1 + $0x680] ss:$8 sps:$4 sm:$0xff]  }
  0xb8   : > { %1720 = vmatpush1.bf16.msra.mxu1 %v3701_v35  ;;  %1680 = vmatprep.subr.bf16.mxu0 %v3706_v36  ;;  %v3777_v35 = vld [vmem:[%s4977_s1 + $0x780] ss:$8 sps:$4 sm:$0xff]   ;;  %v3782_v36 = vld [vmem:[%s4977_s1 + $0x694] ss:$8 sps:$4 sm:$0xff]  }
  0xb9   : > { %1721 = vmatprep.subr.bf16.mxu1 %v3709_v38  ;;  %v3785_v38 = vld [vmem:[%s4977_s1 + $0x794] ss:$8 sps:$4 sm:$0xff]  }
  0xbb   : > { %1681 = vmatpush1.bf16.msra.mxu0 %v3704_v46  ;;  %v3786_v46 = vld [vmem:[%s4977_s1 + $0x6a0] ss:$8 sps:$4 sm:$0xff]  }
  0xbc   : > { %1722 = vmatpush1.bf16.msra.mxu1 %v3707_v47  ;;  %1682 = vmatprep.subr.bf16.mxu0 %v3712_v50  ;;  %v3789_v47 = vld [vmem:[%s4977_s1 + $0x7a0] ss:$8 sps:$4 sm:$0xff]   ;;  %v3792_v50 = vld [vmem:[%s4977_s1 + $0x6b0] ss:$8 sps:$4 sm:$0xff]  }
  0xbd   : > { %1723 = vmatprep.subr.bf16.mxu1 %v3715_v51  ;;  %v3795_v51 = vld [vmem:[%s4977_s1 + $0x7b0] ss:$8 sps:$4 sm:$0xff]  }
  0xbf   : > { %1683 = vmatpush1.bf16.msra.mxu0 %v3710_v56  ;;  %v3806_v56 = vld [vmem:[%s4977_s1 + $0x6d4] ss:$8 sps:$4 sm:$0xff]  }
  0xc0   : > { %1724 = vmatpush1.bf16.msra.mxu1 %v3713_v57  ;;  %1684 = vmatprep.subr.bf16.mxu0 %v3718_v58  ;;  %v3809_v57 = vld [vmem:[%s4977_s1 + $0x7d4] ss:$8 sps:$4 sm:$0xff]   ;;  %v3804_v58 = vld [vmem:[%s4977_s1 + $0x6d0] ss:$8 sps:$4 sm:$0xff]  }
  0xc1   : > { %1725 = vmatprep.subr.bf16.mxu1 %v3721_v59  ;;  %v3807_v59 = vld [vmem:[%s4977_s1 + $0x7d0] ss:$8 sps:$4 sm:$0xff]  }
  0xc3   : > { %1685 = vmatpush1.bf16.msra.mxu0 %v3716_v60  ;;  %v3812_v60 = vld [vmem:[%s4977_s1 + $0x6e4] ss:$8 sps:$4 sm:$0xff]  }
  0xc4   : > { %1726 = vmatpush1.bf16.msra.mxu1 %v3719_v61  ;;  %2142 = vmatprep.subr.bf16.mxu0 %v3728_v62  ;;  %v3815_v61 = vld [vmem:[%s4977_s1 + $0x7e4] ss:$8 sps:$4 sm:$0xff]   ;;  %v3810_v62 = vld [vmem:[%s4977_s1 + $0x6e0] ss:$8 sps:$4 sm:$0xff]  }
  0xc5   : > { %2183 = vmatprep.subr.bf16.mxu1 %v3731_v63  ;;  %v3813_v63 = vld [vmem:[%s4977_s1 + $0x7e0] ss:$8 sps:$4 sm:$0xff]  }
  0xc6   : > { %1687 = vmatmul.mubr.bf16.vlgmr.msra.gmra.mrb[8].mxu0 %v1305_v2  ;;  %v3195_v2 = vcombine.low %v4531_v44, %v4376_v37 }
  0xc7   : > { %1728 = vmatmul.mubr.bf16.vlgmr.msra.gmra.mrb[8].mxu1 %v1321_v3  ;;  %2143 = vmatpush1.bf16.msra.mxu0 %v3726_v0  ;;  %v3818_v0 = vld [vmem:[%s4977_s1 + $0x6f4] ss:$8 sps:$4 sm:$0xff]   ;;  %v3197_v3 = vcombine.low %v4534_v45, %v4382_v39 }
  0xc8   : > { %2184 = vmatpush1.bf16.msra.mxu1 %v3729_v1  ;;  %2144 = vmatprep.subr.bf16.mxu0 %v3734_v4  ;;  %v3821_v1 = vld [vmem:[%s4977_s1 + $0x7f4] ss:$8 sps:$4 sm:$0xff]   ;;  %v3816_v4 = vld [vmem:[%s4977_s1 + $0x6f0] ss:$8 sps:$4 sm:$0xff]  }
  0xc9   : > { %2185 = vmatprep.subr.bf16.mxu1 %v3737_v5  ;;  %2174 = vmatprep.mubr.bf16.mxu0 %v1815_v54  ;;  %v3798_v54 = vld [vmem:[%s4977_s1 + $0x6c0] ss:$8 sps:$4 sm:$0xff]   ;;  %v3819_v5 = vld [vmem:[%s4977_s1 + $0x7f0] ss:$8 sps:$4 sm:$0xff]  }
  0xca   : > { %2215 = vmatprep.mubr.bf16.mxu1 %v1817_v55  ;;  %v3801_v55 = vld [vmem:[%s4977_s1 + $0x7c0] ss:$8 sps:$4 sm:$0xff]  }
  0xcb   : > { %2145 = vmatpush1.bf16.msra.mxu0 %v3732_v6  ;;  %v1814_v6 = vrot.slane %v3195_v2, 2 }
  0xcc   : > { %2186 = vmatpush1.bf16.msra.mxu1 %v3735_v7  ;;  %2146 = vmatprep.subr.bf16.mxu0 %v3740_v8  ;;  %v1816_v7 = vrot.slane %v3197_v3, 2 }
  0xcd   : > { %2187 = vmatprep.subr.bf16.mxu1 %v3743_v9 }
  0xcf   : > { %2147 = vmatpush1.bf16.msra.mxu0 %v3738_v10 }
  0xd0   : > { %2188 = vmatpush1.bf16.msra.mxu1 %v3741_v11  ;;  %2148 = vmatprep.subr.bf16.mxu0 %v3746_v12 }
  0xd1   : > { %2189 = vmatprep.subr.bf16.mxu1 %v3749_v13 }
  0xd3   : > { %2149 = vmatpush1.bf16.msra.mxu0 %v3744_v14  ;;  %v3826_v14 = vld [vmem:[%s4979_s3 + $0x40] sm:$0xff]  }
  0xd4   : > { %2190 = vmatpush1.bf16.msra.mxu1 %v3747_v15  ;;  %2150 = vmatprep.subr.bf16.mxu0 %v3752_v16  ;;  %v3827_v15 = vld [vmem:[%s4979_s3] sm:$0xff]  }
  0xd5   : > { %2191 = vmatprep.subr.bf16.mxu1 %v3755_v17  ;;  %v3828_v16 = vld [vmem:[%s4979_s3 + $0xc0] sm:$0xff]  }
  0xd6   : > { %v3829_v17 = vld [vmem:[%s4979_s3 + $0x80] sm:$0xff]  }
  0xd7   : > { %2151 = vmatpush1.bf16.msra.mxu0 %v3750_v18  ;;  %v3830_v18 = vld [vmem:[%s4979_s3 + $0x48] sm:$0xff]  }
  0xd8   : > { %2192 = vmatpush1.bf16.msra.mxu1 %v3753_v19  ;;  %2152 = vmatprep.subr.bf16.mxu0 %v3758_v20  ;;  %v3832_v19 = vld [vmem:[%s4979_s3 + $0xc8] sm:$0xff]  }
  0xd9   : > { %2193 = vmatprep.subr.bf16.mxu1 %v3761_v21  ;;  %v3831_v20 = vld [vmem:[%s4979_s3 + $0x8] sm:$0xff]  }
  0xda   : > { %v3833_v21 = vld [vmem:[%s4979_s3 + $0x88] sm:$0xff]  }
  0xdb   : > { %2153 = vmatpush1.bf16.msra.mxu0 %v3756_v22  ;;  %v3834_v22 = vld [vmem:[%s4979_s3 + $0x50] sm:$0xff]  }
  0xdc   : > { %2194 = vmatpush1.bf16.msra.mxu1 %v3759_v23  ;;  %2154 = vmatprep.subr.bf16.mxu0 %v3764_v24  ;;  %v3836_v23 = vld [vmem:[%s4979_s3 + $0xd0] sm:$0xff]  }
  0xdd   : > { %2195 = vmatprep.subr.bf16.mxu1 %v3767_v25  ;;  %v3835_v24 = vld [vmem:[%s4979_s3 + $0x10] sm:$0xff]  }
  0xde   : > { %v3837_v25 = vld [vmem:[%s4979_s3 + $0x90] sm:$0xff]  }
  0xdf   : > { %2155 = vmatpush1.bf16.msra.mxu0 %v3762_v26  ;;  %v3838_v26 = vld [vmem:[%s4979_s3 + $0x58] sm:$0xff]  }
  0xe0   : > { %2196 = vmatpush1.bf16.msra.mxu1 %v3765_v27  ;;  %2156 = vmatprep.subr.bf16.mxu0 %v3770_v28  ;;  %v3840_v27 = vld [vmem:[%s4979_s3 + $0xd8] sm:$0xff]  }
  0xe1   : > { %2197 = vmatprep.subr.bf16.mxu1 %v3773_v29  ;;  %v3839_v28 = vld [vmem:[%s4979_s3 + $0x18] sm:$0xff]  }
  0xe2   : > { %v3841_v29 = vld [vmem:[%s4979_s3 + $0x98] sm:$0xff]  }
  0xe3   : > { %2157 = vmatpush1.bf16.msra.mxu0 %v3768_v30  ;;  %v3842_v30 = vld [vmem:[%s4979_s3 + $0x60] sm:$0xff]  }
  0xe4   : > { %2198 = vmatpush1.bf16.msra.mxu1 %v3771_v31  ;;  %2158 = vmatprep.subr.bf16.mxu0 %v3776_v32  ;;  %v3844_v31 = vld [vmem:[%s4979_s3 + $0xe0] sm:$0xff]  }
  0xe5   : > { %2199 = vmatprep.subr.bf16.mxu1 %v3779_v33  ;;  %v3843_v32 = vld [vmem:[%s4979_s3 + $0x20] sm:$0xff]  }
  0xe6   : > { %v3845_v33 = vld [vmem:[%s4979_s3 + $0xa0] sm:$0xff]  }
  0xe7   : > { %2159 = vmatpush1.bf16.msra.mxu0 %v3774_v34  ;;  %v3846_v34 = vld [vmem:[%s4979_s3 + $0x68] sm:$0xff]  }
  0xe8   : > { %2200 = vmatpush1.bf16.msra.mxu1 %v3777_v35  ;;  %2160 = vmatprep.subr.bf16.mxu0 %v3782_v36  ;;  %v3847_v35 = vld [vmem:[%s4979_s3 + $0x28] sm:$0xff]  }
  0xe9   : > { %2201 = vmatprep.subr.bf16.mxu1 %v3785_v38 }
  0xeb   : > { %2161 = vmatpush1.bf16.msra.mxu0 %v3780_v40  ;;  %v3848_v40 = vld [vmem:[%s4979_s3 + $0xe8] sm:$0xff]  }
  0xec   : > { %2202 = vmatpush1.bf16.msra.mxu1 %v3783_v41  ;;  %2162 = vmatprep.subr.bf16.mxu0 %v3788_v42 }
  0xed   : > { %2203 = vmatprep.subr.bf16.mxu1 %v3791_v43 }
  0xef   : > { %2163 = vmatpush1.bf16.msra.mxu0 %v3786_v46  ;;  %v3849_v46 = vld [vmem:[%s4979_s3 + $0xa8] sm:$0xff]  }
  0xf0   : > { %2204 = vmatpush1.bf16.msra.mxu1 %v3789_v47  ;;  %2164 = vmatprep.subr.bf16.mxu0 %v3794_v48 }
  0xf1   : > { %2205 = vmatprep.subr.bf16.mxu1 %v3797_v49 }
  0xf3   : > { %2165 = vmatpush1.bf16.msra.mxu0 %v3792_v50  ;;  %v3850_v50 = vld [vmem:[%s4979_s3 + $0x70] sm:$0xff]  }
  0xf4   : > { %2206 = vmatpush1.bf16.msra.mxu1 %v3795_v51  ;;  %2166 = vmatprep.subr.bf16.mxu0 %v3800_v52 }
  0xf5   : > { %2207 = vmatprep.subr.bf16.mxu1 %v3803_v53 }
  0xf7   : > { %2167 = vmatpush1.bf16.msra.mxu0 %v3798_v54  ;;  %v3851_v54 = vld [vmem:[%s4979_s3 + $0x30] sm:$0xff]  }
  0xf8   : > { %2208 = vmatpush1.bf16.msra.mxu1 %v3801_v55  ;;  %2168 = vmatprep.subr.bf16.mxu0 %v3806_v56  ;;  %v3852_v56 = vld [vmem:[%s4979_s3 + $0xf0] sm:$0xff]  }
  0xf9   : > { %2209 = vmatprep.subr.bf16.mxu1 %v3809_v57  ;;  %v3853_v57 = vld [vmem:[%s4979_s3 + $0xb0] sm:$0xff]  }
  0xfb   : > { %2169 = vmatpush1.bf16.msra.mxu0 %v3804_v58  ;;  %v3854_v58 = vld [vmem:[%s4979_s3 + $0x78] sm:$0xff]  }
  0xfc   : > { %2210 = vmatpush1.bf16.msra.mxu1 %v3807_v59  ;;  %2170 = vmatprep.subr.bf16.mxu0 %v3812_v60  ;;  %v3855_v59 = vld [vmem:[%s4979_s3 + $0x38] sm:$0xff]  }
  0xfd   : > { %2211 = vmatprep.subr.bf16.mxu1 %v3815_v61  ;;  %v3856_v60 = vld [vmem:[%s4979_s3 + $0xf8] sm:$0xff]  }
  0xfe   : > { %v3857_v61 = vld [vmem:[%s4979_s3 + $0xb8] sm:$0xff]  }
  0xff   : > { %2171 = vmatpush1.bf16.msra.mxu0 %v3810_v62  ;;  %v3858_v62 = vld [vmem:[%s4979_s3 + $0x140] sm:$0xff]  }
 0x100   : > { %2212 = vmatpush1.bf16.msra.mxu1 %v3813_v63  ;;  %2172 = vmatprep.subr.bf16.mxu0 %v3818_v0  ;;  %v3860_v63 = vld [vmem:[%s4979_s3 + $0x1c0] sm:$0xff]  }
 0x101   : > { %2213 = vmatprep.subr.bf16.mxu1 %v3821_v1 }
 0x103   : > { %2173 = vmatpush1.bf16.msra.mxu0 %v3816_v4 }
 0x104   : > { %2214 = vmatpush1.bf16.msra.mxu1 %v3819_v5  ;;  %3330 = vmatprep.subr.bf16.mxu0 %v3826_v14 }
 0x105   : > { %3352 = vmatprep.subr.bf16.mxu1 %v3828_v16 }
 0x106   : > { %2175 = vmatmul.mubr.bf16.vlgmr.msra.gmra.mrb[12].mxu0 %v1814_v6 }
 0x107   : > { %2216 = vmatmul.mubr.bf16.vlgmr.msra.gmra.mrb[12].mxu1 %v1816_v7  ;;  %3331 = vmatpush3.bf16.msra.mxu0 %v3827_v15 }
 0x108   : > { %3353 = vmatpush3.bf16.msra.mxu1 %v3829_v17  ;;  %3332 = vmatprep.subr.bf16.mxu0 %v3830_v18 }
 0x109   : > { %3354 = vmatprep.subr.bf16.mxu1 %v3832_v19 }
 0x10b   : > { %3333 = vmatpush3.bf16.msra.mxu0 %v3831_v20 }
 0x10c   : > { %3355 = vmatpush3.bf16.msra.mxu1 %v3833_v21  ;;  %3334 = vmatprep.subr.bf16.mxu0 %v3834_v22 }
 0x10d   : > { %3356 = vmatprep.subr.bf16.mxu1 %v3836_v23 }
 0x10f   : > { %3335 = vmatpush3.bf16.msra.mxu0 %v3835_v24 }
 0x110   : > { %3357 = vmatpush3.bf16.msra.mxu1 %v3837_v25  ;;  %3336 = vmatprep.subr.bf16.mxu0 %v3838_v26 }
 0x111   : > { %3358 = vmatprep.subr.bf16.mxu1 %v3840_v27 }
 0x113   : > { %3337 = vmatpush3.bf16.msra.mxu0 %v3839_v28 }
 0x114   : > { %3359 = vmatpush3.bf16.msra.mxu1 %v3841_v29  ;;  %3338 = vmatprep.subr.bf16.mxu0 %v3842_v30 }
 0x115   : > { %3360 = vmatprep.subr.bf16.mxu1 %v3844_v31 }
 0x117   : > { %3339 = vmatpush3.bf16.msra.mxu0 %v3843_v32 }
 0x118   : > { %3361 = vmatpush3.bf16.msra.mxu1 %v3845_v33  ;;  %3340 = vmatprep.subr.bf16.mxu0 %v3846_v34  ;;  %v3859_v33 = vld [vmem:[%s4979_s3 + $0x100] sm:$0xff]   ;;  %v3862_v34 = vld [vmem:[%s4979_s3 + $0x148] sm:$0xff]  }
 0x119   : > { %v750_v37 = vpop.f32.mrb[0].mxu0  ;;  %3362 = vmatprep.subr.bf16.mxu1 %v3848_v40  ;;  %v3864_v40 = vld [vmem:[%s4979_s3 + $0x1c8] sm:$0xff]  }
 0x11a   : > { %v791_v39 = vpop.f32.mrb[0].mxu1  ;;  %v752_v45 = vpop.f32.mrb[1].mxu0 }
 0x11b   : > { %v792_v44 = vadd.f32 %v791_v39, %v750_v37  ;;  %v793_v8 = vpop.f32.mrb[1].mxu1  ;;  %v754_v10 = vpop.f32.mrb[2].mxu0  ;;  %3341 = vmatpush3.bf16.msra.mxu0 %v3847_v35 }
 0x11c   : > { %v794_v9 = vadd.f32 %v793_v8, %v752_v45  ;;  %v795_v11 = vpop.f32.mrb[2].mxu1  ;;  %v755_v12 = vpop.f32.mrb[3].mxu0  ;;  %3363 = vmatpush3.bf16.msra.mxu1 %v3849_v46  ;;  %3342 = vmatprep.subr.bf16.mxu0 %v3850_v50  ;;  %v2228_v8 = vlaneseq  ;;  %v3866_v46 = vld [vmem:[%s4979_s3 + $0x150] sm:$0xff]   ;;  %v3870_v50 = vld [vmem:[%s4979_s3 + $0x158] sm:$0xff]  }
 0x11d   : > { %v796_v13 = vpop.f32.mrb[3].mxu1  ;;  %3364 = vmatprep.subr.bf16.mxu1 %v3852_v56  ;;  %v2226_v11 = vld [vmem:[%s4978_s2] sm:$0x3] }
 0x11e   : > { %v3876_v56 = vld [vmem:[%s4979_s3 + $0x1e0] sm:$0xff]  }
 0x11f   : > { %3343 = vmatpush3.bf16.msra.mxu0 %v3851_v54  ;;  %v3874_v54 = vld [vmem:[%s4979_s3 + $0x160] sm:$0xff]  }
 0x120   : > { %3365 = vmatpush3.bf16.msra.mxu1 %v3853_v57  ;;  %3344 = vmatprep.subr.bf16.mxu0 %v3854_v58  ;;  %v3875_v57 = vld [vmem:[%s4979_s3 + $0x120] sm:$0xff]   ;;  %v3878_v58 = vld [vmem:[%s4979_s3 + $0x168] sm:$0xff]  }
 0x121   : > { %3366 = vmatprep.subr.bf16.mxu1 %v3856_v60  ;;  %v3880_v60 = vld [vmem:[%s4979_s3 + $0x1e8] sm:$0xff]  }
 0x123   : > { %3345 = vmatpush3.bf16.msra.mxu0 %v3855_v59  ;;  %v3877_v59 = vld [vmem:[%s4979_s3 + $0x1a0] sm:$0xff]  }
 0x124   : > { %3367 = vmatpush3.bf16.msra.mxu1 %v3857_v61  ;;  %3374 = vmatprep.subr.bf16.mxu0 %v3858_v62  ;;  %v3879_v61 = vld [vmem:[%s4979_s3 + $0x128] sm:$0xff]   ;;  %v3882_v62 = vld [vmem:[%s4979_s3 + $0x170] sm:$0xff]  }
 0x125   : > { %3396 = vmatprep.subr.bf16.mxu1 %v3860_v63  ;;  %v3881_v63 = vld [vmem:[%s4979_s3 + $0x1a8] sm:$0xff]  }
 0x159   : > { %v1166_v36 = vpop.f32.mrb[4].mxu0 }
 0x15a   : > { %v1207_v38 = vpop.f32.mrb[4].mxu1  ;;  %v1167_v41 = vadd.f32 %v1166_v36, %v792_v44  ;;  %v1168_v42 = vpop.f32.mrb[5].mxu0  ;;  %v3861_v36 = vld [vmem:[%s4979_s3 + $0x180] sm:$0xff]  }
 0x15b   : > { %v1209_v43 = vpop.f32.mrb[5].mxu1  ;;  %v1169_v47 = vadd.f32 %v1168_v42, %v794_v9  ;;  %v1170_v48 = vpop.f32.mrb[6].mxu0  ;;  %v2229_v9 = vshrl.u32 %v2228_v8, 7  ;;  %v3863_v42 = vld [vmem:[%s4979_s3 + $0x108] sm:$0xff]  }
 0x15c   : > { %v1211_v49 = vpop.f32.mrb[6].mxu1  ;;  %v1208_v51 = vadd.f32 %v1207_v38, %v1167_v41  ;;  %v1171_v52 = vpop.f32.mrb[7].mxu0  ;;  %v3868_v48 = vld [vmem:[%s4979_s3 + $0x1d0] sm:$0xff]  }
 0x15d   : > { %v1212_v53 = vpop.f32.mrb[7].mxu1  ;;  %v1210_v55 = vadd.f32 %v1209_v43, %v1169_v47  ;;  %v2230_v10 = vsub.s32 0, %v2229_v9  ;;  %v2234_v12 = vsub.s32 1, %v2229_v9  ;;  %v3865_v47 = vld [vmem:[%s4979_s3 + $0x188] sm:$0xff]   ;;  %v3867_v49 = vld [vmem:[%s4979_s3 + $0x110] sm:$0xff]   ;;  %v3872_v52 = vld [vmem:[%s4979_s3 + $0x1d8] sm:$0xff]  }
 0x15e   : > { %v3871_v53 = vld [vmem:[%s4979_s3 + $0x118] sm:$0xff]  }
 0x15f   : > { %v2231_v16 = vrot.slane %v2226_v11, %v2230_v10  ;;  %v2235_v20 = vrot.slane %v2226_v11, %v2234_v12 }
 0x199   : > { %v1688_v0 = vpop.f32.mrb[8].mxu0 }
 0x19a   : > { %v1729_v1 = vpop.f32.mrb[8].mxu1  ;;  %v1690_v3 = vpop.f32.mrb[9].mxu0 }
 0x19b   : > { %v1730_v2 = vadd.f32 %v1729_v1, %v1688_v0  ;;  %v1731_v4 = vpop.f32.mrb[9].mxu1  ;;  %v1692_v6 = vpop.f32.mrb[10].mxu0  ;;  %v3884_v0 = vld [vmem:[%s4979_s3 + $0x1f0] sm:$0xff]  }
 0x19c   : > { %v1732_v5 = vadd.f32 %v1731_v4, %v1690_v3  ;;  %v1733_v7 = vpop.f32.mrb[10].mxu1  ;;  %v1693_v39 = vpop.f32.mrb[11].mxu0  ;;  %v3883_v1 = vld [vmem:[%s4979_s3 + $0x130] sm:$0xff]   ;;  %v3888_v4 = vld [vmem:[%s4979_s3 + $0x1f8] sm:$0xff]  }
 0x19d   : > { %v1736_v37 = vadd.f32 %v1730_v2, %v1208_v51  ;;  %v1734_v44 = vpop.f32.mrb[11].mxu1  ;;  %v3869_v51 = vld [vmem:[%s4979_s3 + $0x190] sm:$0xff]   ;;  %v3886_v2 = vld [vmem:[%s4979_s3 + $0x178] sm:$0xff]  }
 0x19e   : > { %v1737_v45 = vadd.f32 %v1732_v5, %v1210_v55  ;;  %v3873_v55 = vld [vmem:[%s4979_s3 + $0x198] sm:$0xff]   ;;  %v3885_v3 = vld [vmem:[%s4979_s3 + $0x1b0] sm:$0xff]   ;;  %v2390_v44 = vld [vmem:[%s4980_s4] sm:$0x1] }
 0x19f   : > { %v3887_v5 = vld [vmem:[%s4979_s3 + $0x138] sm:$0xff]  }
 0x1a0   : > { %v3889_v6 = vld [vmem:[%s4979_s3 + $0x1b8] sm:$0xff]  }
 0x1d9   : > { %v2176_v13 = vpop.f32.mrb[12].mxu0 }
 0x1da   : > { %v2217_v14 = vpop.f32.mrb[12].mxu1  ;;  %v2178_v17 = vpop.f32.mrb[13].mxu0 }
 0x1db   : > { %v2218_v15 = vadd.f32 %v2217_v14, %v2176_v13  ;;  %v2219_v18 = vpop.f32.mrb[13].mxu1  ;;  %v2180_v21 = vpop.f32.mrb[14].mxu0 }
 0x1dc   : > { %v2220_v19 = vadd.f32 %v2219_v18, %v2178_v17  ;;  %v2221_v22 = vpop.f32.mrb[14].mxu1  ;;  %v2181_v24 = vpop.f32.mrb[15].mxu0 }
 0x1dd   : > { %v2224_v23 = vadd.f32 %v2218_v15, %v1736_v37  ;;  %v2222_v25 = vpop.f32.mrb[15].mxu1 }
 0x1de   : > { %v2225_v26 = vadd.f32 %v2220_v19, %v1737_v45 }
 0x1df   : > { %v2238_v27 = vadd.f32 %v2231_v16, %v2224_v23 }
 0x1e0   : > { %v2239_v28 = vadd.f32 %v2235_v20, %v2225_v26 }
 0x1e1   : > { %v2240_v29 = vmax.f32 %v2238_v27, 0.0 }
 0x1e2   : > { %v2241_v30 = vmax.f32 %v2239_v28, 0.0 }
 0x1e3   : > { %v4871_v31 = vpack.c.bf16 %v2240_v29, %v2240_v29 }
 0x1e4   : > { %v2243_v32 = vpack.c.bf16 %v2241_v30, %v2241_v30 }
 0x1e5   : > { %v2245_v38 = vshrl.u32 %v4871_v31, 16  ;;  %v2258_v37 = vrot.slane %v4871_v31, 2 }
 0x1e6   : > { %2807 = vmatprep.mubr.bf16.mxu0 %v2243_v32  ;;  %v2248_v35 = vshrl.u32 %v2243_v32, 16  ;;  %v2259_v43 = vrot.slane %v2243_v32, 2 }
 0x1e7   : > { %2808 = vmatmul.mubr.bf16.vlgmr.msra.gmra.mrb[16].mxu0 %v4871_v31  ;;  %v2252_v7 = vrot.slane %v2245_v38, 1 }
 0x1e8   : > { %3375 = vmatpush3.bf16.msra.mxu0 %v3859_v33  ;;  %2847 = vmatprep.mubr.bf16.mxu1 %v2248_v35  ;;  %v2253_v41 = vrot.slane %v2248_v35, 1 }
 0x1e9   : > { %2848 = vmatmul.mubr.bf16.vlgmr.msra.gmra.mrb[16].mxu1 %v2245_v38  ;;  %3376 = vmatprep.subr.bf16.mxu0 %v3862_v34 }
 0x1ea   : > { %3397 = vmatpush3.bf16.msra.mxu1 %v3861_v36  ;;  %2887 = vmatprep.mubr.bf16.mxu0 %v2253_v41 }
 0x1eb   : > { %2927 = vmatprep.mubr.bf16.mxu1 %v2259_v43  ;;  %3398 = vmatprep.subr.bf16.mxu1 %v3864_v40 }
 0x1ec   : > { %3377 = vmatpush3.bf16.msra.mxu0 %v3863_v42 }
 0x1ed   : > { %3378 = vmatprep.subr.bf16.mxu0 %v3866_v46 }
 0x1ee   : > { %3399 = vmatpush3.bf16.msra.mxu1 %v3865_v47 }
 0x1ef   : > { %3400 = vmatprep.subr.bf16.mxu1 %v3868_v48 }
 0x1f0   : > { %3379 = vmatpush3.bf16.msra.mxu0 %v3867_v49 }
 0x1f1   : > { %3380 = vmatprep.subr.bf16.mxu0 %v3870_v50 }
 0x1f2   : > { %3401 = vmatpush3.bf16.msra.mxu1 %v3869_v51 }
 0x1f3   : > { %3402 = vmatprep.subr.bf16.mxu1 %v3872_v52 }
 0x1f4   : > { %3381 = vmatpush3.bf16.msra.mxu0 %v3871_v53 }
 0x1f5   : > { %3382 = vmatprep.subr.bf16.mxu0 %v3874_v54 }
 0x1f6   : > { %3403 = vmatpush3.bf16.msra.mxu1 %v3873_v55 }
 0x1f7   : > { %3404 = vmatprep.subr.bf16.mxu1 %v3876_v56 }
 0x1f8   : > { %3383 = vmatpush3.bf16.msra.mxu0 %v3875_v57 }
 0x1f9   : > { %3384 = vmatprep.subr.bf16.mxu0 %v3878_v58 }
 0x1fa   : > { %3405 = vmatpush3.bf16.msra.mxu1 %v3877_v59 }
 0x1fb   : > { %3406 = vmatprep.subr.bf16.mxu1 %v3880_v60 }
 0x1fc   : > { %3385 = vmatpush3.bf16.msra.mxu0 %v3879_v61 }
 0x1fd   : > { %3386 = vmatprep.subr.bf16.mxu0 %v3882_v62 }
 0x1fe   : > { %3407 = vmatpush3.bf16.msra.mxu1 %v3881_v63 }
 0x1ff   : > { %3408 = vmatprep.subr.bf16.mxu1 %v3884_v0 }
 0x200   : > { %3387 = vmatpush3.bf16.msra.mxu0 %v3883_v1 }
 0x201   : > { %3388 = vmatprep.subr.bf16.mxu0 %v3886_v2 }
 0x202   : > { %3409 = vmatpush3.bf16.msra.mxu1 %v3885_v3 }
 0x203   : > { %3410 = vmatprep.subr.bf16.mxu1 %v3888_v4 }
 0x204   : > { %3389 = vmatpush3.bf16.msra.mxu0 %v3887_v5 }
 0x206   : > { %3411 = vmatpush3.bf16.msra.mxu1 %v3889_v6 }
 0x207   : > { %2888 = vmatmul.mubr.bf16.vlgmr.msra.gmra.mrb[20].mxu0 %v2252_v7 }
 0x209   : > { %2928 = vmatmul.mubr.bf16.vlgmr.msra.gmra.mrb[20].mxu1 %v2258_v37 }
 0x2ba   : > { %v3346_v39 = vpop.f32.mrb[16].mxu0 }
 0x2bb   : > { %v3347_v45 = vpop.f32.mrb[17].mxu0 }
 0x2bc   : > { %v3348_v8 = vadd.f32 %v3347_v45, %v3346_v39  ;;  %v3349_v9 = vpop.f32.mrb[18].mxu0  ;;  %v3368_v10 = vpop.f32.mrb[16].mxu1 }
 0x2bd   : > { %v3350_v11 = vpop.f32.mrb[19].mxu0  ;;  %v3369_v12 = vpop.f32.mrb[17].mxu1 }
 0x2be   : > { %v2810_v13 = vadd.f32 %v3348_v8, %v2390_v44  ;;  %v3370_v14 = vadd.f32 %v3369_v12, %v3368_v10  ;;  %v3371_v15 = vpop.f32.mrb[18].mxu1 }
 0x2bf   : > { %v3372_v16 = vpop.f32.mrb[19].mxu1 }
 0x2c0   : > { %v2850_v17 = vadd.f32 %v3370_v14, %v2810_v13 }
 0x2da   : > { %v3390_v18 = vpop.f32.mrb[20].mxu0 }
 0x2db   : > { %v3391_v19 = vpop.f32.mrb[21].mxu0 }
 0x2dc   : > { %v3392_v20 = vadd.f32 %v3391_v19, %v3390_v18  ;;  %v3393_v21 = vpop.f32.mrb[22].mxu0  ;;  %v3412_v22 = vpop.f32.mrb[20].mxu1 }
 0x2dd   : > { %v3394_v23 = vpop.f32.mrb[23].mxu0  ;;  %v3413_v24 = vpop.f32.mrb[21].mxu1 }
 0x2de   : > { %v2890_v25 = vadd.f32 %v3392_v20, %v2850_v17  ;;  %v3414_v26 = vadd.f32 %v3413_v24, %v3412_v22  ;;  %v3415_v27 = vpop.f32.mrb[22].mxu1 }
 0x2df   : > { %v3416_v28 = vpop.f32.mrb[23].mxu1 }
 0x2e0   : > { %v2930_v29 = vadd.f32 %v3414_v26, %v2890_v25 }
 0x2e2   : > { %2936 = vst.msk [vmem:[%s220_s17] sm:$0x1] %vm2935_vm0, %v2930_v29 }
 0x2e3 PF: > { %s15_s18 = sadd.s32 1, %s3896_s18  }
 0x2e4   : > { %p12_p4 = scmp.ge.s32.totalorder %s15_s18, 4  }
 0x2e6   :  { %14 = sbr.rel (!%p12_p4) target bundleno = 1 (0x1), region = 70 }

</bundles_post_ra>
